<compile_context>
chip_gen: v6e
topology: v6e:2x2x1
jax: 0.10.0
libtpu: 0.0.40
codegen_flags: <defaults>
</compile_context>

<pallas_src>
from functools import partial

import jax
import jax.numpy as jnp
from jax.experimental import pallas as pl
from jax.experimental.pallas import tpu as pltpu


def _round_up(a, b):
    return (a + b - 1) // b * b


def _softshrink(v, lam):
    return jnp.where(v > lam, v - lam, jnp.where(v < -lam, v + lam, 0.0))


# ---------------------------------------------------------------------------
# Pallas kernel: one (frequency-block, row-tile) step of the AFNO spectral MLP.
# Grid = (num_blocks, row_tiles).  Data layout is transposed so kernel tiles
# are (bs_or_K, TM): sublanes = channels of one block, lanes = rows (TM % 128
# == 0 -> lane-dense loads/stores, unmasked vst).
# ---------------------------------------------------------------------------
def _afno_block_kernel(x_ref,
                       w1r_ref, w1i_ref, w1s_ref, b1r_ref, b1i_ref,
                       w2r_ref, w2i_ref, w2s_ref, b2r_ref, b2i_ref,
                       o_ref, *,
                       lam, H, Wf, tm, lo, hi, kept, apply_mask):
    f32 = jnp.float32
    bf16 = jnp.bfloat16

    xr = x_ref[0, 0]                      # (bs, TM) bf16
    xi = x_ref[1, 0]                      # (bs, TM) bf16
    xs = xr + xi                          # Karatsuba operand (xr + xi)

    # ---- layer 1: complex matmul via 3 real MXU matmuls + bias + ReLU -------
    # realT = w1r^T xrT - w1i^T xiT ; imagT = (w1r+w1i)^T (xr+xi)T - m1 - m2
    m1 = jnp.dot(w1r_ref[0], xr, preferred_element_type=f32)   # (K, TM)
    m2 = jnp.dot(w1i_ref[0], xi, preferred_element_type=f32)
    m3 = jnp.dot(w1s_ref[0], xs, preferred_element_type=f32)
    o1r = jnp.maximum(m1 - m2 + b1r_ref[0], 0.0)
    o1i = jnp.maximum(m3 - m1 - m2 + b1i_ref[0], 0.0)

    # ---- layer 2 -------------------------------------------------------------
    n1 = jnp.dot(w2r_ref[0], o1r.astype(bf16), preferred_element_type=f32)
    n2 = jnp.dot(w2i_ref[0], o1i.astype(bf16), preferred_element_type=f32)
    n3 = jnp.dot(w2s_ref[0], (o1r + o1i).astype(bf16),
                 preferred_element_type=f32)
    o2r = n1 - n2 + b2r_ref[0]            # (bs, TM) f32
    o2i = n3 - n1 - n2 + b2i_ref[0]

    # ---- epilogue: softshrink (+ fused hard-thresholding mode mask) ---------
    o2r = _softshrink(o2r, lam)
    o2i = _softshrink(o2i, lam)

    if apply_mask:
        # Columns (lanes) of this tile are flattened (B, H, Wf) positions.
        base = pl.program_id(1) * tm
        gc = base + jax.lax.broadcasted_iota(jnp.int32, (1, tm), 1)
        rin = gc % (H * Wf)               # position within one image's (H, Wf)
        h_row = rin // Wf
        w_col = rin % Wf
        keep = (h_row >= lo) & (h_row < hi) & (w_col < kept)
        mask = keep.astype(f32)           # (1, TM) -> broadcasts over sublanes
        o2r = o2r * mask
        o2i = o2i * mask

    o_ref[0, 0] = o2r.astype(o_ref.dtype)
    o_ref[1, 0] = o2i.astype(o_ref.dtype)


# ---------------------------------------------------------------------------
# Wrapper: FFT glue (XLA) + layout + pallas_call.
# ---------------------------------------------------------------------------
def afno2d_forward(x, w1, b1, w2, b2, *,
                   sparsity_threshold=0.01,
                   hard_thresholding_fraction=1.0):
    """Pallas-TPU AFNO2D.forward.

    x : (B, H, W, C) channel-last, like the PyTorch module.
    w1: (2, nb, bs, K)   b1: (2, nb, K)
    w2: (2, nb, K, bs)   b2: (2, nb, bs)      (K = bs * hidden_size_factor)
    """
    bias = x
    orig_dtype = x.dtype
    xf = x.astype(jnp.float32)
    B, H, W, C = xf.shape
    _, nb, bs, K = w1.shape
    assert C == nb * bs, "hidden_size must equal num_blocks * block_size"
    Wf = W // 2 + 1

    # TODO(synk): no Pallas TPU FFT primitive; rfft2/irfft2 stay as XLA FFTs.
    xc = jnp.fft.rfft2(xf, axes=(1, 2), norm="ortho")        # (B,H,Wf,C) c64

    # Transposed, lane-dense layout: (2[re/im], nb, bs, rows) with rows last so
    # each kernel tile puts the (multiple-of-128) row chunk on the lane axis.
    rows = B * H * Wf
    x_ri = jnp.stack([jnp.real(xc), jnp.imag(xc)], axis=0)    # (2,B,H,Wf,C)
    x_ri = x_ri.reshape(2, rows, nb, bs).transpose(0, 2, 3, 1)  # (2,nb,bs,rows)
    x_ri = x_ri.astype(jnp.bfloat16)                          # halve HBM bytes

    # Row tiling: TM is a multiple of 128 (lane-dense), up to 2048 to amortize
    # per-grid-step overhead; the per-step working set stays well inside v7x's
    # 64 MiB VMEM.  Tiny problems collapse to a single tile.
    TM = 2048 if rows >= 2048 else _round_up(rows, 128)
    rows_p = _round_up(rows, TM)
    if rows_p != rows:
        x_ri = jnp.pad(x_ri, ((0, 0), (0, 0), (0, 0), (0, rows_p - rows)))

    # Per-block transposed weights in bf16 plus precomputed Karatsuba sums.
    bf16, f32 = jnp.bfloat16, jnp.float32
    w1r = jnp.swapaxes(w1[0], 1, 2).astype(bf16)              # (nb, K, bs)
    w1i = jnp.swapaxes(w1[1], 1, 2).astype(bf16)
    w1s = jnp.swapaxes(w1[0] + w1[1], 1, 2).astype(bf16)
    w2r = jnp.swapaxes(w2[0], 1, 2).astype(bf16)              # (nb, bs, K)
    w2i = jnp.swapaxes(w2[1], 1, 2).astype(bf16)
    w2s = jnp.swapaxes(w2[0] + w2[1], 1, 2).astype(bf16)
    b1r = b1[0].reshape(nb, K, 1).astype(f32)
    b1i = b1[1].reshape(nb, K, 1).astype(f32)
    b2r = b2[0].reshape(nb, bs, 1).astype(f32)
    b2i = b2[1].reshape(nb, bs, 1).astype(f32)

    total_modes = H // 2 + 1
    kept = int(total_modes * hard_thresholding_fraction)
    lo, hi = total_modes - kept, total_modes + kept
    # Mask is the identity only if every (h, w) frequency position is kept.
    apply_mask = not (lo <= 0 and hi >= H and kept >= Wf)

    grid = (nb, rows_p // TM)
    x_spec = pl.BlockSpec((2, 1, bs, TM), lambda j, i: (0, j, 0, i))
    w1_spec = pl.BlockSpec((1, K, bs), lambda j, i: (j, 0, 0))
    b1_spec = pl.BlockSpec((1, K, 1), lambda j, i: (j, 0, 0))
    w2_spec = pl.BlockSpec((1, bs, K), lambda j, i: (j, 0, 0))
    b2_spec = pl.BlockSpec((1, bs, 1), lambda j, i: (j, 0, 0))
    o_spec = pl.BlockSpec((2, 1, bs, TM), lambda j, i: (0, j, 0, i))

    kern = partial(_afno_block_kernel,
                   lam=float(sparsity_threshold),
                   H=H, Wf=Wf, tm=TM, lo=lo, hi=hi, kept=kept,
                   apply_mask=apply_mask)

    out = pl.pallas_call(
        kern,
        grid=grid,
        in_specs=[x_spec,
                  w1_spec, w1_spec, w1_spec, b1_spec, b1_spec,
                  w2_spec, w2_spec, w2_spec, b2_spec, b2_spec],
        out_specs=o_spec,
        out_shape=jax.ShapeDtypeStruct((2, nb, bs, rows_p), jnp.bfloat16),
        compiler_params=pltpu.CompilerParams(
            # Both grid axes are independent (no accumulation across them),
            # so both are "parallel": v7x shards them over its 2 TensorCores.
            dimension_semantics=("parallel", "parallel"),
            vmem_limit_bytes=64 * 1024 * 1024),
    )(x_ri, w1r, w1i, w1s, b1r, b1i, w2r, w2i, w2s, b2r, b2i)

    o = out[..., :rows].astype(f32)                           # (2, nb, bs, rows)
    o = o.transpose(0, 3, 1, 2).reshape(2, B, H, Wf, C)
    oc = jax.lax.complex(o[0], o[1])
    y = jnp.fft.irfft2(oc, s=(H, W), axes=(1, 2), norm="ortho")
    return y.astype(orig_dtype) + bias


# ---------------------------------------------------------------------------
# Pure-JAX reference (mirrors the PyTorch module exactly, f32 precision).
# ---------------------------------------------------------------------------
def afno2d_reference(x, w1, b1, w2, b2, sparsity_threshold,
                     hard_thresholding_fraction):
    bias = x
    dtype = x.dtype
    xf = x.astype(jnp.float32)
    B, H, W, C = xf.shape
    _, nb, bs, K = w1.shape
    Wf = W // 2 + 1
    xc = jnp.fft.rfft2(xf, axes=(1, 2), norm="ortho").reshape(B, H, Wf, nb, bs)
    total = H // 2 + 1
    kept = int(total * hard_thresholding_fraction)
    lo, hi = total - kept, total + kept
    xk = xc[:, lo:hi, :kept]
    ein = partial(jnp.einsum, precision=jax.lax.Precision.HIGHEST)
    o1r = jax.nn.relu(ein('...bi,bio->...bo', xk.real, w1[0])
                      - ein('...bi,bio->...bo', xk.imag, w1[1]) + b1[0])
    o1i = jax.nn.relu(ein('...bi,bio->...bo', xk.imag, w1[0])
                      + ein('...bi,bio->...bo', xk.real, w1[1]) + b1[1])
    o2r_k = (ein('...bi,bio->...bo', o1r, w2[0])
             - ein('...bi,bio->...bo', o1i, w2[1]) + b2[0])
    o2i_k = (ein('...bi,bio->...bo', o1i, w2[0])
             + ein('...bi,bio->...bo', o1r, w2[1]) + b2[1])
    o2r = jnp.zeros((B, H, Wf, nb, bs), jnp.float32).at[:, lo:hi, :kept].set(o2r_k)
    o2i = jnp.zeros((B, H, Wf, nb, bs), jnp.float32).at[:, lo:hi, :kept].set(o2i_k)
    lam = sparsity_threshold
    oc = (_softshrink(o2r, lam) + 1j * _softshrink(o2i, lam)).reshape(B, H, Wf, C)
    out = jnp.fft.irfft2(oc, s=(H, W), axes=(1, 2), norm="ortho")
    return out.astype(dtype) + bias


# ---------------------------------------------------------------------------
if __name__ == "__main__":
    key = jax.random.PRNGKey(0)
    kx, k1, k2, k3, k4, kx2 = jax.random.split(key, 6)

    # Small shapes implied by the module: (B, H, W, hidden_size)
    B, H, W = 2, 16, 16
    hidden_size, num_blocks, hsf = 32, 4, 1
    bs = hidden_size // num_blocks
    K = bs * hsf
    scale = 0.02

    x = jax.random.normal(kx, (B, H, W, hidden_size), jnp.float32)
    w1 = scale * jax.random.normal(k1, (2, num_blocks, bs, K), jnp.float32)
    b1 = scale * jax.random.normal(k2, (2, num_blocks, K), jnp.float32)
    w2 = scale * jax.random.normal(k3, (2, num_blocks, K, bs), jnp.float32)
    b2 = scale * jax.random.normal(k4, (2, num_blocks, bs), jnp.float32)

    # Config 1: module defaults (all modes kept, square grid -> no mask).
    fwd = jax.jit(partial(afno2d_forward, sparsity_threshold=0.01,
                          hard_thresholding_fraction=1.0))
    y = fwd(x, w1, b1, w2, b2)
    jax.block_until_ready(y)
    assert y.shape == x.shape and y.dtype == x.dtype
    y_ref = afno2d_reference(x, w1, b1, w2, b2, 0.01, 1.0)
    assert jnp.allclose(y, y_ref, atol=1e-2, rtol=1e-2), \
        float(jnp.max(jnp.abs(y - y_ref)))

    # Config 2: hard_thresholding_fraction < 1 exercises the fused in-kernel
    # mode mask path.
    fwd2 = jax.jit(partial(afno2d_forward, sparsity_threshold=0.01,
                           hard_thresholding_fraction=0.5))
    y2 = fwd2(x, w1, b1, w2, b2)
    jax.block_until_ready(y2)
    y2_ref = afno2d_reference(x, w1, b1, w2, b2, 0.01, 0.5)
    assert jnp.allclose(y2, y2_ref, atol=1e-2, rtol=1e-2), \
        float(jnp.max(jnp.abs(y2 - y2_ref)))

    # Config 3: non-square grid (W > H) — mask matters even at fraction = 1,
    # like the production FourCastNet 720x1440 grid.
    x3 = jax.random.normal(kx2, (1, 8, 16, hidden_size), jnp.float32)
    y3 = jax.jit(partial(afno2d_forward, sparsity_threshold=0.01,
                         hard_thresholding_fraction=1.0))(x3, w1, b1, w2, b2)
    jax.block_until_ready(y3)
    y3_ref = afno2d_reference(x3, w1, b1, w2, b2, 0.01, 1.0)
    assert jnp.allclose(y3, y3_ref, atol=1e-2, rtol=1e-2), \
        float(jnp.max(jnp.abs(y3 - y3_ref)))

    print("KERNEL_OK")
</pallas_src>

<mosaic_0001>
module attributes {stable_mosaic.version = 11 : i64} {
  func.func @_afno_block_kernel(%arg0: i32, %arg1: i32, %arg2: memref<2x1x8x384xbf16, #tpu.memory_space<vmem>>, %arg3: memref<1x8x8xbf16, #tpu.memory_space<vmem>>, %arg4: memref<1x8x8xbf16, #tpu.memory_space<vmem>>, %arg5: memref<1x8x8xbf16, #tpu.memory_space<vmem>>, %arg6: memref<1x8x1xf32, #tpu.memory_space<vmem>>, %arg7: memref<1x8x1xf32, #tpu.memory_space<vmem>>, %arg8: memref<1x8x8xbf16, #tpu.memory_space<vmem>>, %arg9: memref<1x8x8xbf16, #tpu.memory_space<vmem>>, %arg10: memref<1x8x8xbf16, #tpu.memory_space<vmem>>, %arg11: memref<1x8x1xf32, #tpu.memory_space<vmem>>, %arg12: memref<1x8x1xf32, #tpu.memory_space<vmem>>, %arg13: memref<2x1x8x384xbf16, #tpu.memory_space<vmem>>) attributes {dimension_semantics = [#tpu.dimension_semantics<parallel>, #tpu.dimension_semantics<parallel>], iteration_bounds = array<i64: 4, 1>, scalar_prefetch = 0 : i64, scratch_operands = 0 : i64, tpu.core_type = #tpu.core_type<tc>, window_params = [{transform_indices = @transform_0, window_bounds = array<i64: 2, 1, 8, 384>}, {transform_indices = @transform_1, window_bounds = array<i64: 1, 8, 8>}, {transform_indices = @transform_2, window_bounds = array<i64: 1, 8, 8>}, {transform_indices = @transform_3, window_bounds = array<i64: 1, 8, 8>}, {transform_indices = @transform_4, window_bounds = array<i64: 1, 8, 1>}, {transform_indices = @transform_5, window_bounds = array<i64: 1, 8, 1>}, {transform_indices = @transform_6, window_bounds = array<i64: 1, 8, 8>}, {transform_indices = @transform_7, window_bounds = array<i64: 1, 8, 8>}, {transform_indices = @transform_8, window_bounds = array<i64: 1, 8, 8>}, {transform_indices = @transform_9, window_bounds = array<i64: 1, 8, 1>}, {transform_indices = @transform_10, window_bounds = array<i64: 1, 8, 1>}, {transform_indices = @transform_11, window_bounds = array<i64: 2, 1, 8, 384>}]} {
    %c0 = arith.constant 0 : index
    %c0_0 = arith.constant 0 : index
    %c0_1 = arith.constant 0 : index
    %c0_2 = arith.constant 0 : index
    %0 = vector.load %arg2[%c0, %c0_0, %c0_1, %c0_2] : memref<2x1x8x384xbf16, #tpu.memory_space<vmem>>, vector<1x1x8x384xbf16>
    %1 = vector.shape_cast %0 : vector<1x1x8x384xbf16> to vector<8x384xbf16>
    %c1 = arith.constant 1 : index
    %c0_3 = arith.constant 0 : index
    %c0_4 = arith.constant 0 : index
    %c0_5 = arith.constant 0 : index
    %2 = vector.load %arg2[%c1, %c0_3, %c0_4, %c0_5] : memref<2x1x8x384xbf16, #tpu.memory_space<vmem>>, vector<1x1x8x384xbf16>
    %3 = vector.shape_cast %2 : vector<1x1x8x384xbf16> to vector<8x384xbf16>
    %4 = arith.addf %1, %3 : vector<8x384xbf16>
    %c0_6 = arith.constant 0 : index
    %c0_7 = arith.constant 0 : index
    %c0_8 = arith.constant 0 : index
    %5 = vector.load %arg3[%c0_6, %c0_7, %c0_8] : memref<1x8x8xbf16, #tpu.memory_space<vmem>>, vector<1x8x8xbf16>
    %6 = vector.shape_cast %5 : vector<1x8x8xbf16> to vector<8x8xbf16>
    %cst = arith.constant dense<0.000000e+00> : vector<8x384xf32>
    %7 = tpu.matmul %6, %1, %cst {dimension_numbers = #tpu.dot_dimension_numbers<[1], [0], [0], [1], [0, 0, 1, 1], [], []>} : vector<8x8xbf16>, vector<8x384xbf16>, vector<8x384xf32> -> vector<8x384xf32>
    %c0_9 = arith.constant 0 : index
    %c0_10 = arith.constant 0 : index
    %c0_11 = arith.constant 0 : index
    %8 = vector.load %arg4[%c0_9, %c0_10, %c0_11] : memref<1x8x8xbf16, #tpu.memory_space<vmem>>, vector<1x8x8xbf16>
    %9 = vector.shape_cast %8 : vector<1x8x8xbf16> to vector<8x8xbf16>
    %cst_12 = arith.constant dense<0.000000e+00> : vector<8x384xf32>
    %10 = tpu.matmul %9, %3, %cst_12 {dimension_numbers = #tpu.dot_dimension_numbers<[1], [0], [0], [1], [0, 0, 1, 1], [], []>} : vector<8x8xbf16>, vector<8x384xbf16>, vector<8x384xf32> -> vector<8x384xf32>
    %c0_13 = arith.constant 0 : index
    %c0_14 = arith.constant 0 : index
    %c0_15 = arith.constant 0 : index
    %11 = vector.load %arg5[%c0_13, %c0_14, %c0_15] : memref<1x8x8xbf16, #tpu.memory_space<vmem>>, vector<1x8x8xbf16>
    %12 = vector.shape_cast %11 : vector<1x8x8xbf16> to vector<8x8xbf16>
    %cst_16 = arith.constant dense<0.000000e+00> : vector<8x384xf32>
    %13 = tpu.matmul %12, %4, %cst_16 {dimension_numbers = #tpu.dot_dimension_numbers<[1], [0], [0], [1], [0, 0, 1, 1], [], []>} : vector<8x8xbf16>, vector<8x384xbf16>, vector<8x384xf32> -> vector<8x384xf32>
    %14 = arith.subf %7, %10 : vector<8x384xf32>
    %c0_17 = arith.constant 0 : index
    %c0_18 = arith.constant 0 : index
    %c0_19 = arith.constant 0 : index
    %15 = vector.load %arg6[%c0_17, %c0_18, %c0_19] : memref<1x8x1xf32, #tpu.memory_space<vmem>>, vector<1x8x1xf32>
    %16 = vector.shape_cast %15 : vector<1x8x1xf32> to vector<8x1xf32>
    %17 = vector.broadcast %16 : vector<8x1xf32> to vector<8x384xf32>
    %18 = arith.addf %14, %17 : vector<8x384xf32>
    %cst_20 = arith.constant 0.000000e+00 : f32
    %19 = vector.broadcast %cst_20 : f32 to vector<8x384xf32>
    %20 = arith.maximumf %18, %19 : vector<8x384xf32>
    %21 = arith.subf %13, %7 : vector<8x384xf32>
    %22 = arith.subf %21, %10 : vector<8x384xf32>
    %c0_21 = arith.constant 0 : index
    %c0_22 = arith.constant 0 : index
    %c0_23 = arith.constant 0 : index
    %23 = vector.load %arg7[%c0_21, %c0_22, %c0_23] : memref<1x8x1xf32, #tpu.memory_space<vmem>>, vector<1x8x1xf32>
    %24 = vector.shape_cast %23 : vector<1x8x1xf32> to vector<8x1xf32>
    %25 = vector.broadcast %24 : vector<8x1xf32> to vector<8x384xf32>
    %26 = arith.addf %22, %25 : vector<8x384xf32>
    %cst_24 = arith.constant 0.000000e+00 : f32
    %27 = vector.broadcast %cst_24 : f32 to vector<8x384xf32>
    %28 = arith.maximumf %26, %27 : vector<8x384xf32>
    %c0_25 = arith.constant 0 : index
    %c0_26 = arith.constant 0 : index
    %c0_27 = arith.constant 0 : index
    %29 = vector.load %arg8[%c0_25, %c0_26, %c0_27] : memref<1x8x8xbf16, #tpu.memory_space<vmem>>, vector<1x8x8xbf16>
    %30 = vector.shape_cast %29 : vector<1x8x8xbf16> to vector<8x8xbf16>
    %31 = arith.truncf %20 : vector<8x384xf32> to vector<8x384xbf16>
    %cst_28 = arith.constant dense<0.000000e+00> : vector<8x384xf32>
    %32 = tpu.matmul %30, %31, %cst_28 {dimension_numbers = #tpu.dot_dimension_numbers<[1], [0], [0], [1], [0, 0, 1, 1], [], []>} : vector<8x8xbf16>, vector<8x384xbf16>, vector<8x384xf32> -> vector<8x384xf32>
    %c0_29 = arith.constant 0 : index
    %c0_30 = arith.constant 0 : index
    %c0_31 = arith.constant 0 : index
    %33 = vector.load %arg9[%c0_29, %c0_30, %c0_31] : memref<1x8x8xbf16, #tpu.memory_space<vmem>>, vector<1x8x8xbf16>
    %34 = vector.shape_cast %33 : vector<1x8x8xbf16> to vector<8x8xbf16>
    %35 = arith.truncf %28 : vector<8x384xf32> to vector<8x384xbf16>
    %cst_32 = arith.constant dense<0.000000e+00> : vector<8x384xf32>
    %36 = tpu.matmul %34, %35, %cst_32 {dimension_numbers = #tpu.dot_dimension_numbers<[1], [0], [0], [1], [0, 0, 1, 1], [], []>} : vector<8x8xbf16>, vector<8x384xbf16>, vector<8x384xf32> -> vector<8x384xf32>
    %c0_33 = arith.constant 0 : index
    %c0_34 = arith.constant 0 : index
    %c0_35 = arith.constant 0 : index
    %37 = vector.load %arg10[%c0_33, %c0_34, %c0_35] : memref<1x8x8xbf16, #tpu.memory_space<vmem>>, vector<1x8x8xbf16>
    %38 = vector.shape_cast %37 : vector<1x8x8xbf16> to vector<8x8xbf16>
    %39 = arith.addf %20, %28 : vector<8x384xf32>
    %40 = arith.truncf %39 : vector<8x384xf32> to vector<8x384xbf16>
    %cst_36 = arith.constant dense<0.000000e+00> : vector<8x384xf32>
    %41 = tpu.matmul %38, %40, %cst_36 {dimension_numbers = #tpu.dot_dimension_numbers<[1], [0], [0], [1], [0, 0, 1, 1], [], []>} : vector<8x8xbf16>, vector<8x384xbf16>, vector<8x384xf32> -> vector<8x384xf32>
    %42 = arith.subf %32, %36 : vector<8x384xf32>
    %c0_37 = arith.constant 0 : index
    %c0_38 = arith.constant 0 : index
    %c0_39 = arith.constant 0 : index
    %43 = vector.load %arg11[%c0_37, %c0_38, %c0_39] : memref<1x8x1xf32, #tpu.memory_space<vmem>>, vector<1x8x1xf32>
    %44 = vector.shape_cast %43 : vector<1x8x1xf32> to vector<8x1xf32>
    %45 = vector.broadcast %44 : vector<8x1xf32> to vector<8x384xf32>
    %46 = arith.addf %42, %45 : vector<8x384xf32>
    %47 = arith.subf %41, %32 : vector<8x384xf32>
    %48 = arith.subf %47, %36 : vector<8x384xf32>
    %c0_40 = arith.constant 0 : index
    %c0_41 = arith.constant 0 : index
    %c0_42 = arith.constant 0 : index
    %49 = vector.load %arg12[%c0_40, %c0_41, %c0_42] : memref<1x8x1xf32, #tpu.memory_space<vmem>>, vector<1x8x1xf32>
    %50 = vector.shape_cast %49 : vector<1x8x1xf32> to vector<8x1xf32>
    %51 = vector.broadcast %50 : vector<8x1xf32> to vector<8x384xf32>
    %52 = arith.addf %48, %51 : vector<8x384xf32>
    %cst_43 = arith.constant 0.00999999977 : f32
    %53 = vector.broadcast %cst_43 : f32 to vector<8x384xf32>
    %54 = arith.cmpf ogt, %46, %53 : vector<8x384xf32>
    %cst_44 = arith.constant 0.00999999977 : f32
    %55 = vector.broadcast %cst_44 : f32 to vector<8x384xf32>
    %56 = arith.subf %46, %55 : vector<8x384xf32>
    %cst_45 = arith.constant -0.00999999977 : f32
    %57 = vector.broadcast %cst_45 : f32 to vector<8x384xf32>
    %58 = arith.cmpf olt, %46, %57 : vector<8x384xf32>
    %cst_46 = arith.constant 0.00999999977 : f32
    %59 = vector.broadcast %cst_46 : f32 to vector<8x384xf32>
    %60 = arith.addf %46, %59 : vector<8x384xf32>
    %cst_47 = arith.constant 0.000000e+00 : f32
    %61 = vector.broadcast %cst_47 : f32 to vector<8x384xf32>
    %62 = arith.select %58, %60, %61 : vector<8x384xi1>, vector<8x384xf32>
    %63 = arith.select %54, %56, %62 : vector<8x384xi1>, vector<8x384xf32>
    %cst_48 = arith.constant 0.00999999977 : f32
    %64 = vector.broadcast %cst_48 : f32 to vector<8x384xf32>
    %65 = arith.cmpf ogt, %52, %64 : vector<8x384xf32>
    %cst_49 = arith.constant 0.00999999977 : f32
    %66 = vector.broadcast %cst_49 : f32 to vector<8x384xf32>
    %67 = arith.subf %52, %66 : vector<8x384xf32>
    %cst_50 = arith.constant -0.00999999977 : f32
    %68 = vector.broadcast %cst_50 : f32 to vector<8x384xf32>
    %69 = arith.cmpf olt, %52, %68 : vector<8x384xf32>
    %cst_51 = arith.constant 0.00999999977 : f32
    %70 = vector.broadcast %cst_51 : f32 to vector<8x384xf32>
    %71 = arith.addf %52, %70 : vector<8x384xf32>
    %cst_52 = arith.constant 0.000000e+00 : f32
    %72 = vector.broadcast %cst_52 : f32 to vector<8x384xf32>
    %73 = arith.select %69, %71, %72 : vector<8x384xi1>, vector<8x384xf32>
    %74 = arith.select %65, %67, %73 : vector<8x384xi1>, vector<8x384xf32>
    %75 = arith.truncf %63 : vector<8x384xf32> to vector<8x384xbf16>
    %c0_53 = arith.constant 0 : index
    %c0_54 = arith.constant 0 : index
    %c0_55 = arith.constant 0 : index
    %c0_56 = arith.constant 0 : index
    %76 = vector.load %arg13[%c0_53, %c0_54, %c0_55, %c0_56] : memref<2x1x8x384xbf16, #tpu.memory_space<vmem>>, vector<1x1x8x384xbf16>
    %77 = vector.shape_cast %76 : vector<1x1x8x384xbf16> to vector<8x384xbf16>
    %78 = vector.shape_cast %75 : vector<8x384xbf16> to vector<1x1x8x384xbf16>
    tpu.vector_store %arg13[%c0_53, %c0_54, %c0_55, %c0_56], %78 {strides = array<i32>} : memref<2x1x8x384xbf16, #tpu.memory_space<vmem>>, vector<1x1x8x384xbf16>,
    %79 = arith.truncf %74 : vector<8x384xf32> to vector<8x384xbf16>
    %c1_57 = arith.constant 1 : index
    %c0_58 = arith.constant 0 : index
    %c0_59 = arith.constant 0 : index
    %c0_60 = arith.constant 0 : index
    %80 = vector.load %arg13[%c1_57, %c0_58, %c0_59, %c0_60] : memref<2x1x8x384xbf16, #tpu.memory_space<vmem>>, vector<1x1x8x384xbf16>
    %81 = vector.shape_cast %80 : vector<1x1x8x384xbf16> to vector<8x384xbf16>
    %82 = vector.shape_cast %79 : vector<8x384xbf16> to vector<1x1x8x384xbf16>
    tpu.vector_store %arg13[%c1_57, %c0_58, %c0_59, %c0_60], %82 {strides = array<i32>} : memref<2x1x8x384xbf16, #tpu.memory_space<vmem>>, vector<1x1x8x384xbf16>,
    return
  }
  func.func @transform_0(%arg0: i32, %arg1: i32) -> (i32, i32, i32, i32) {
    %c0_i32 = arith.constant 0 : i32
    %c0_i32_0 = arith.constant 0 : i32
    %c0_i32_1 = arith.constant 0 : i32
    return %c0_i32, %arg0, %c0_i32_0, %arg1 : i32, i32, i32, i32
  }
  func.func @transform_1(%arg0: i32, %arg1: i32) -> (i32, i32, i32) {
    %c0_i32 = arith.constant 0 : i32
    %c0_i32_0 = arith.constant 0 : i32
    %c0_i32_1 = arith.constant 0 : i32
    return %arg0, %c0_i32, %c0_i32_0 : i32, i32, i32
  }
  func.func @transform_2(%arg0: i32, %arg1: i32) -> (i32, i32, i32) {
    %c0_i32 = arith.constant 0 : i32
    %c0_i32_0 = arith.constant 0 : i32
    %c0_i32_1 = arith.constant 0 : i32
    return %arg0, %c0_i32, %c0_i32_0 : i32, i32, i32
  }
  func.func @transform_3(%arg0: i32, %arg1: i32) -> (i32, i32, i32) {
    %c0_i32 = arith.constant 0 : i32
    %c0_i32_0 = arith.constant 0 : i32
    %c0_i32_1 = arith.constant 0 : i32
    return %arg0, %c0_i32, %c0_i32_0 : i32, i32, i32
  }
  func.func @transform_4(%arg0: i32, %arg1: i32) -> (i32, i32, i32) {
    %c0_i32 = arith.constant 0 : i32
    %c0_i32_0 = arith.constant 0 : i32
    %c0_i32_1 = arith.constant 0 : i32
    return %arg0, %c0_i32, %c0_i32_0 : i32, i32, i32
  }
  func.func @transform_5(%arg0: i32, %arg1: i32) -> (i32, i32, i32) {
    %c0_i32 = arith.constant 0 : i32
    %c0_i32_0 = arith.constant 0 : i32
    %c0_i32_1 = arith.constant 0 : i32
    return %arg0, %c0_i32, %c0_i32_0 : i32, i32, i32
  }
  func.func @transform_6(%arg0: i32, %arg1: i32) -> (i32, i32, i32) {
    %c0_i32 = arith.constant 0 : i32
    %c0_i32_0 = arith.constant 0 : i32
    %c0_i32_1 = arith.constant 0 : i32
    return %arg0, %c0_i32, %c0_i32_0 : i32, i32, i32
  }
  func.func @transform_7(%arg0: i32, %arg1: i32) -> (i32, i32, i32) {
    %c0_i32 = arith.constant 0 : i32
    %c0_i32_0 = arith.constant 0 : i32
    %c0_i32_1 = arith.constant 0 : i32
    return %arg0, %c0_i32, %c0_i32_0 : i32, i32, i32
  }
  func.func @transform_8(%arg0: i32, %arg1: i32) -> (i32, i32, i32) {
    %c0_i32 = arith.constant 0 : i32
    %c0_i32_0 = arith.constant 0 : i32
    %c0_i32_1 = arith.constant 0 : i32
    return %arg0, %c0_i32, %c0_i32_0 : i32, i32, i32
  }
  func.func @transform_9(%arg0: i32, %arg1: i32) -> (i32, i32, i32) {
    %c0_i32 = arith.constant 0 : i32
    %c0_i32_0 = arith.constant 0 : i32
    %c0_i32_1 = arith.constant 0 : i32
    return %arg0, %c0_i32, %c0_i32_0 : i32, i32, i32
  }
  func.func @transform_10(%arg0: i32, %arg1: i32) -> (i32, i32, i32) {
    %c0_i32 = arith.constant 0 : i32
    %c0_i32_0 = arith.constant 0 : i32
    %c0_i32_1 = arith.constant 0 : i32
    return %arg0, %c0_i32, %c0_i32_0 : i32, i32, i32
  }
  func.func @transform_11(%arg0: i32, %arg1: i32) -> (i32, i32, i32, i32) {
    %c0_i32 = arith.constant 0 : i32
    %c0_i32_0 = arith.constant 0 : i32
    %c0_i32_1 = arith.constant 0 : i32
    return %c0_i32, %arg0, %c0_i32_0, %arg1 : i32, i32, i32, i32
  }
}

</mosaic_0001>

<bundles_post_ra>
// kernel: squeeze.26
= control target key start
LH: loop header
LB: loop body
LE: loop exit
PB: predicated region body
PF: predicated region fallthrough
CT: control target
= control target key end

     0   :  { %s4073_s10 = smov 123   ;;  %s4074_s19 = smov 121   ;;  %vm3_vm0 = vcmask 72704   ;;  %vm2503_vm1 = vcmask 1014784   ;;  %vm2670_vm2 = vcmask 1031168   ;;  %vm2507_vm3 = vcmask 31744   ;;  %s8718_s0 = inlined_call_operand.vmem [shape: f32[1,288,4,8], index: 0, kind: input, shape index: {}]   ;;  %s8719_s1 = inlined_call_operand.vmem [shape: f32[2,16,9,32], index: 1, kind: output, shape index: {}]  }
   0x1   :  { %v2886_v0 = vld [vmem:[%s8718_s0 + $0x40] sm:$0xff]   ;;  %v2868_v1 = vld [vmem:[%s8718_s0 + $0x10] sm:$0xff]   ;;  %v2895_v2 = vld [vmem:[%s8718_s0 + $0x58] sm:$0xff]   ;;  %s4075_s28 = smov 119   ;;  %s4076_s4 = smov 114   ;;  %vm2524_vm4 = vcmask 72736  }
   0x2   :  { %120 = vrot.lane.b32.xlu1 %v2886_v0, %s4073_s10  ;;  %78 = vrot.lane.b32.xlu0 %v2868_v1, %s4073_s10  ;;  %v2877_v3 = vld [vmem:[%s8718_s0 + $0x28] sm:$0xff]   ;;  %v4129_v4 = vld [vmem:[%s8718_s0 + $0x20] sm:$0xff]   ;;  %s4077_s5 = smov 112   ;;  %s4078_s6 = smov 110   ;;  %vm2674_vm5 = vcmask 15360   ;;  %vm2691_vm6 = vcmask 72720  }
   0x3   :  { %v4134_v5 = vld [vmem:[%s8718_s0 + $0x8] sm:$0xff]   ;;  %v4141_v6 = vld [vmem:[%s8718_s0 + $0x50] sm:$0xff]   ;;  %v4146_v7 = vld [vmem:[%s8718_s0 + $0x38] sm:$0xff]   ;;  %s4079_s7 = smov 105   ;;  %s4080_s8 = smov 103  }
   0x4   :  { %v4153_v8 = vld [vmem:[%s8718_s0 + $0x18] sm:$0xff]   ;;  %v4158_v9 = vld [vmem:[%s8718_s0] sm:$0xff]   ;;  %v4165_v10 = vld [vmem:[%s8718_s0 + $0x48] sm:$0xff]   ;;  %s4081_s9 = smov 101   ;;  %s4083_s11 = smov 92  }
   0x5   :  { %v4170_v11 = vld [vmem:[%s8718_s0 + $0x30] sm:$0xff]   ;;  %s4084_s12 = smov 85   ;;  %s4085_s13 = smov 83   ;;  %v5337_v46 = vld [vmem:[%s8718_s0 + $0x20] sm:$0xff]   ;;  %v5342_v47 = vld [vmem:[%s8718_s0 + $0x8] sm:$0xff]  }
   0x6   :  { %141 = vrot.lane.b32.xlu1 %v2895_v2, %s4073_s10  ;;  %99 = vrot.lane.b32.xlu0 %v2877_v3, %s4073_s10  ;;  %s4082_s10 = smov 94   ;;  %s4086_s14 = smov 76   ;;  %v3900_v50 = vld [vmem:[%s8718_s0 + $0x10] sm:$0xff]   ;;  %v5420_v52 = vld [vmem:[%s8718_s0 + $0x38] sm:$0xff]  }
   0x7   :  { %s4087_s15 = smov 74   ;;  %s4088_s22 = smov 67   ;;  %v2504_v51 = vsel %vm2503_vm1, %v3900_v50, %v5342_v47  ;;  %v3936_v55 = vld [vmem:[%s8718_s0 + $0x40] sm:$0xff]   ;;  %v3918_v56 = vld [vmem:[%s8718_s0 + $0x28] sm:$0xff]   ;;  %v5507_v62 = vld [vmem:[%s8718_s0 + $0x50] sm:$0xff]  }
   0x8   :  { %s4089_s29 = smov 65   ;;  %s4092_s21 = smov 49   ;;  %v2588_v57 = vsel %vm2503_vm1, %v3936_v55, %v5420_v52  ;;  %v2546_v58 = vsel %vm2503_vm1, %v3918_v56, %v5337_v46  ;;  %v5502_v61 = vld [vmem:[%s8718_s0] sm:$0xff]   ;;  %v3954_v63 = vld [vmem:[%s8718_s0 + $0x58] sm:$0xff]  }
   0x9   :  { %s4098_s3 = smov 2   ;;  %s4099_s18 = smov 29  }
   0xa   :  { %183 = vrot.lane.b32.xlu1 %v4129_v4, %s4074_s19  ;;  %162 = vrot.lane.b32.xlu0 %v4134_v5, %s4074_s19  ;;  %s4100_s24 = smov 22   ;;  %s4103_s27 = smov 11  }
   0xe   :  { %225 = vrot.lane.b32.xlu1 %v4141_v6, %s4074_s19  ;;  %204 = vrot.lane.b32.xlu0 %v4146_v7, %s4074_s19 }
  0x12   :  { %266 = vrot.lane.b32.xlu1 %v4153_v8, %s4075_s28  ;;  %245 = vrot.lane.b32.xlu0 %v4158_v9, %s4075_s28 }
  0x16   :  { %308 = vrot.lane.b32.xlu1 %v4165_v10, %s4075_s28  ;;  %287 = vrot.lane.b32.xlu0 %v4170_v11, %s4075_s28  ;;  %s4093_s28 = smov 47  }
  0x1a   :  { %350 = vrot.lane.b32.xlu1 %v2877_v3, %s4076_s4  ;;  %329 = vrot.lane.b32.xlu0 %v2868_v1, %s4076_s4 }
  0x1e   :  { %392 = vrot.lane.b32.xlu1 %v2895_v2, %s4076_s4  ;;  %371 = vrot.lane.b32.xlu0 %v2886_v0, %s4076_s4 }
  0x22   :  { %434 = vrot.lane.b32.xlu1 %v4129_v4, %s4077_s5  ;;  %413 = vrot.lane.b32.xlu0 %v4134_v5, %s4077_s5 }
  0x26   :  { %476 = vrot.lane.b32.xlu1 %v4141_v6, %s4077_s5  ;;  %455 = vrot.lane.b32.xlu0 %v4146_v7, %s4077_s5 }
  0x2a   :  { %517 = vrot.lane.b32.xlu1 %v4153_v8, %s4078_s6  ;;  %496 = vrot.lane.b32.xlu0 %v4158_v9, %s4078_s6 }
  0x2e   :  { %559 = vrot.lane.b32.xlu1 %v4165_v10, %s4078_s6  ;;  %538 = vrot.lane.b32.xlu0 %v4170_v11, %s4078_s6  ;;  %s4094_s6 = smov 40  }
  0x32   :  { %601 = vrot.lane.b32.xlu1 %v2877_v3, %s4079_s7  ;;  %580 = vrot.lane.b32.xlu0 %v2868_v1, %s4079_s7  ;;  %v2630_v1 = vsel %vm2503_vm1, %v3954_v63, %v5507_v62 }
  0x36   :  { %643 = vrot.lane.b32.xlu1 %v2895_v2, %s4079_s7  ;;  %622 = vrot.lane.b32.xlu0 %v2886_v0, %s4079_s7  ;;  %s4090_s7 = smov 58   ;;  %v2671_v0 = vsel %vm2670_vm2, %v5342_v47, %v5502_v61 }
  0x3a   :  { %685 = vrot.lane.b32.xlu1 %v4129_v4, %s4080_s8  ;;  %664 = vrot.lane.b32.xlu0 %v4134_v5, %s4080_s8 }
  0x3e   :  { %727 = vrot.lane.b32.xlu1 %v4141_v6, %s4080_s8  ;;  %706 = vrot.lane.b32.xlu0 %v4146_v7, %s4080_s8 }
  0x42   :  { %768 = vrot.lane.b32.xlu1 %v4153_v8, %s4081_s9  ;;  %747 = vrot.lane.b32.xlu0 %v4158_v9, %s4081_s9 }
  0x46   :  { %810 = vrot.lane.b32.xlu1 %v4165_v10, %s4081_s9  ;;  %789 = vrot.lane.b32.xlu0 %v4170_v11, %s4081_s9 }
  0x4a   :  { %852 = vrot.lane.b32.xlu1 %v4129_v4, %s4082_s10  ;;  %831 = vrot.lane.b32.xlu0 %v4134_v5, %s4082_s10 }
  0x4e   :  { %894 = vrot.lane.b32.xlu1 %v4141_v6, %s4082_s10  ;;  %873 = vrot.lane.b32.xlu0 %v4146_v7, %s4082_s10  ;;  %s4097_s10 = smov 4  }
  0x52   :  { %935 = vrot.lane.b32.xlu1 %v4153_v8, %s4083_s11  ;;  %914 = vrot.lane.b32.xlu0 %v4158_v9, %s4083_s11 }
  0x56   :  { %977 = vrot.lane.b32.xlu1 %v4165_v10, %s4083_s11  ;;  %956 = vrot.lane.b32.xlu0 %v4170_v11, %s4083_s11 }
  0x5a   :  { %1019 = vrot.lane.b32.xlu1 %v4129_v4, %s4084_s12  ;;  %998 = vrot.lane.b32.xlu0 %v4134_v5, %s4084_s12 }
  0x5e   :  { %1061 = vrot.lane.b32.xlu1 %v4141_v6, %s4084_s12  ;;  %1040 = vrot.lane.b32.xlu0 %v4146_v7, %s4084_s12 }
  0x62   :  { %1102 = vrot.lane.b32.xlu1 %v4153_v8, %s4085_s13  ;;  %1081 = vrot.lane.b32.xlu0 %v4158_v9, %s4085_s13 }
  0x66   :  { %1144 = vrot.lane.b32.xlu1 %v4165_v10, %s4085_s13  ;;  %1123 = vrot.lane.b32.xlu0 %v4170_v11, %s4085_s13  ;;  %s4095_s13 = smov 38  }
  0x6a   :  { %1186 = vrot.lane.b32.xlu1 %v4129_v4, %s4086_s14  ;;  %1165 = vrot.lane.b32.xlu0 %v4134_v5, %s4086_s14 }
  0x6e   :  { %1228 = vrot.lane.b32.xlu1 %v4141_v6, %s4086_s14  ;;  %1207 = vrot.lane.b32.xlu0 %v4146_v7, %s4086_s14  ;;  %s4091_s14 = smov 56  }
  0x72   :  { %1269 = vrot.lane.b32.xlu1 %v4153_v8, %s4087_s15  ;;  %1248 = vrot.lane.b32.xlu0 %v4158_v9, %s4087_s15 }
  0x74   :  { %v121_v12 = vpop.permute.xlu1 %120   ;;  %v79_v13 = vpop.permute.xlu0 %78  }
  0x75   :  { %2887 = vst.msk [vmem:[%s8719_s1 + $0x21d] sm:$0x1] %vm3_vm0, %v121_v12   ;;  %2888 = vst.msk [vmem:[%s8719_s1 + $0x23c] sm:$0x2] %vm3_vm0, %v121_v12  }
  0x76   :  { %2889 = vst.msk [vmem:[%s8719_s1 + $0x25b] sm:$0x4] %vm3_vm0, %v121_v12   ;;  %2890 = vst.msk [vmem:[%s8719_s1 + $0x27a] sm:$0x8] %vm3_vm0, %v121_v12   ;;  %1311 = vrot.lane.b32.xlu1 %v4165_v10, %s4087_s15  ;;  %1290 = vrot.lane.b32.xlu0 %v4170_v11, %s4087_s15 }
  0x77   :  { %2891 = vst.msk [vmem:[%s8719_s1 + $0x299] sm:$0x10] %vm3_vm0, %v121_v12   ;;  %2892 = vst.msk [vmem:[%s8719_s1 + $0x2b8] sm:$0x20] %vm3_vm0, %v121_v12  }
  0x78   :  { %2893 = vst.msk [vmem:[%s8719_s1 + $0x2d7] sm:$0x40] %vm3_vm0, %v121_v12   ;;  %2894 = vst.msk [vmem:[%s8719_s1 + $0x2f6] sm:$0x80] %vm3_vm0, %v121_v12   ;;  %v142_v14 = vpop.permute.xlu1 %141   ;;  %v100_v15 = vpop.permute.xlu0 %99  }
  0x79   :  { %2869 = vst.msk [vmem:[%s8719_s1 + $0x1d] sm:$0x1] %vm3_vm0, %v79_v13   ;;  %2870 = vst.msk [vmem:[%s8719_s1 + $0x3c] sm:$0x2] %vm3_vm0, %v79_v13  }
  0x7a   :  { %2871 = vst.msk [vmem:[%s8719_s1 + $0x5b] sm:$0x4] %vm3_vm0, %v79_v13   ;;  %2872 = vst.msk [vmem:[%s8719_s1 + $0x7a] sm:$0x8] %vm3_vm0, %v79_v13   ;;  %1353 = vrot.lane.b32.xlu1 %v4129_v4, %s4088_s22  ;;  %1332 = vrot.lane.b32.xlu0 %v4134_v5, %s4088_s22 }
  0x7b   :  { %2873 = vst.msk [vmem:[%s8719_s1 + $0x99] sm:$0x10] %vm3_vm0, %v79_v13   ;;  %2874 = vst.msk [vmem:[%s8719_s1 + $0xb8] sm:$0x20] %vm3_vm0, %v79_v13  }
  0x7c   :  { %2875 = vst.msk [vmem:[%s8719_s1 + $0xd7] sm:$0x40] %vm3_vm0, %v79_v13   ;;  %2876 = vst.msk [vmem:[%s8719_s1 + $0xf6] sm:$0x80] %vm3_vm0, %v79_v13   ;;  %v184_v16 = vpop.permute.xlu1 %183   ;;  %v163_v17 = vpop.permute.xlu0 %162  }
  0x7d   :  { %2896 = vst.msk [vmem:[%s8719_s1 + $0x31d] sm:$0x1] %vm3_vm0, %v142_v14   ;;  %2897 = vst.msk [vmem:[%s8719_s1 + $0x33c] sm:$0x2] %vm3_vm0, %v142_v14  }
  0x7e   :  { %2898 = vst.msk [vmem:[%s8719_s1 + $0x35b] sm:$0x4] %vm3_vm0, %v142_v14   ;;  %2899 = vst.msk [vmem:[%s8719_s1 + $0x37a] sm:$0x8] %vm3_vm0, %v142_v14   ;;  %1395 = vrot.lane.b32.xlu1 %v4141_v6, %s4088_s22  ;;  %1374 = vrot.lane.b32.xlu0 %v4146_v7, %s4088_s22  ;;  %s4096_s22 = smov 31  }
  0x7f   :  { %2900 = vst.msk [vmem:[%s8719_s1 + $0x399] sm:$0x10] %vm3_vm0, %v142_v14   ;;  %2901 = vst.msk [vmem:[%s8719_s1 + $0x3b8] sm:$0x20] %vm3_vm0, %v142_v14  }
  0x80   :  { %2902 = vst.msk [vmem:[%s8719_s1 + $0x3d7] sm:$0x40] %vm3_vm0, %v142_v14   ;;  %2903 = vst.msk [vmem:[%s8719_s1 + $0x3f6] sm:$0x80] %vm3_vm0, %v142_v14   ;;  %v226_v18 = vpop.permute.xlu1 %225   ;;  %v205_v19 = vpop.permute.xlu0 %204  }
  0x81   :  { %2878 = vst.msk [vmem:[%s8719_s1 + $0x11d] sm:$0x1] %vm3_vm0, %v100_v15   ;;  %2879 = vst.msk [vmem:[%s8719_s1 + $0x13c] sm:$0x2] %vm3_vm0, %v100_v15  }
  0x82   :  { %2880 = vst.msk [vmem:[%s8719_s1 + $0x15b] sm:$0x4] %vm3_vm0, %v100_v15   ;;  %2881 = vst.msk [vmem:[%s8719_s1 + $0x17a] sm:$0x8] %vm3_vm0, %v100_v15   ;;  %1436 = vrot.lane.b32.xlu1 %v4153_v8, %s4089_s29  ;;  %1415 = vrot.lane.b32.xlu0 %v4158_v9, %s4089_s29 }
  0x83   :  { %2882 = vst.msk [vmem:[%s8719_s1 + $0x199] sm:$0x10] %vm3_vm0, %v100_v15   ;;  %2883 = vst.msk [vmem:[%s8719_s1 + $0x1b8] sm:$0x20] %vm3_vm0, %v100_v15  }
  0x84   :  { %2884 = vst.msk [vmem:[%s8719_s1 + $0x1d7] sm:$0x40] %vm3_vm0, %v100_v15   ;;  %2885 = vst.msk [vmem:[%s8719_s1 + $0x1f6] sm:$0x80] %vm3_vm0, %v100_v15   ;;  %v267_v20 = vpop.permute.xlu1 %266   ;;  %v246_v21 = vpop.permute.xlu0 %245  }
  0x85   :  { %2914 = vst.msk [vmem:[%s8719_s1 + $0x10f] sm:$0x1] %vm3_vm0, %v184_v16   ;;  %2915 = vst.msk [vmem:[%s8719_s1 + $0x12e] sm:$0x2] %vm3_vm0, %v184_v16  }
  0x86   :  { %2916 = vst.msk [vmem:[%s8719_s1 + $0x14d] sm:$0x4] %vm3_vm0, %v184_v16   ;;  %2917 = vst.msk [vmem:[%s8719_s1 + $0x16c] sm:$0x8] %vm3_vm0, %v184_v16   ;;  %1478 = vrot.lane.b32.xlu1 %v4165_v10, %s4089_s29  ;;  %1457 = vrot.lane.b32.xlu0 %v4170_v11, %s4089_s29 }
  0x87   :  { %2918 = vst.msk [vmem:[%s8719_s1 + $0x18b] sm:$0x10] %vm3_vm0, %v184_v16   ;;  %2919 = vst.msk [vmem:[%s8719_s1 + $0x1aa] sm:$0x20] %vm3_vm0, %v184_v16  }
  0x88   :  { %2920 = vst.msk [vmem:[%s8719_s1 + $0x1c9] sm:$0x40] %vm3_vm0, %v184_v16   ;;  %2921 = vst.msk [vmem:[%s8719_s1 + $0x1e8] sm:$0x80] %vm3_vm0, %v184_v16   ;;  %v309_v22 = vpop.permute.xlu1 %308   ;;  %v288_v23 = vpop.permute.xlu0 %287  }
  0x89   :  { %2905 = vst.msk [vmem:[%s8719_s1 + $0xf] sm:$0x1] %vm3_vm0, %v163_v17   ;;  %2906 = vst.msk [vmem:[%s8719_s1 + $0x2e] sm:$0x2] %vm3_vm0, %v163_v17  }
  0x8a   :  { %2907 = vst.msk [vmem:[%s8719_s1 + $0x4d] sm:$0x4] %vm3_vm0, %v163_v17   ;;  %2908 = vst.msk [vmem:[%s8719_s1 + $0x6c] sm:$0x8] %vm3_vm0, %v163_v17   ;;  %1520 = vrot.lane.b32.xlu1 %v4129_v4, %s4090_s7  ;;  %1499 = vrot.lane.b32.xlu0 %v4134_v5, %s4090_s7 }
  0x8b   :  { %2909 = vst.msk [vmem:[%s8719_s1 + $0x8b] sm:$0x10] %vm3_vm0, %v163_v17   ;;  %2910 = vst.msk [vmem:[%s8719_s1 + $0xaa] sm:$0x20] %vm3_vm0, %v163_v17  }
  0x8c   :  { %2911 = vst.msk [vmem:[%s8719_s1 + $0xc9] sm:$0x40] %vm3_vm0, %v163_v17   ;;  %2912 = vst.msk [vmem:[%s8719_s1 + $0xe8] sm:$0x80] %vm3_vm0, %v163_v17   ;;  %v351_v24 = vpop.permute.xlu1 %350   ;;  %v330_v25 = vpop.permute.xlu0 %329  }
  0x8d   :  { %2932 = vst.msk [vmem:[%s8719_s1 + $0x30f] sm:$0x1] %vm3_vm0, %v226_v18   ;;  %2933 = vst.msk [vmem:[%s8719_s1 + $0x32e] sm:$0x2] %vm3_vm0, %v226_v18  }
  0x8e   :  { %2934 = vst.msk [vmem:[%s8719_s1 + $0x34d] sm:$0x4] %vm3_vm0, %v226_v18   ;;  %2935 = vst.msk [vmem:[%s8719_s1 + $0x36c] sm:$0x8] %vm3_vm0, %v226_v18   ;;  %1562 = vrot.lane.b32.xlu1 %v4141_v6, %s4090_s7  ;;  %1541 = vrot.lane.b32.xlu0 %v4146_v7, %s4090_s7 }
  0x8f   :  { %2936 = vst.msk [vmem:[%s8719_s1 + $0x38b] sm:$0x10] %vm3_vm0, %v226_v18   ;;  %2937 = vst.msk [vmem:[%s8719_s1 + $0x3aa] sm:$0x20] %vm3_vm0, %v226_v18  }
  0x90   :  { %2938 = vst.msk [vmem:[%s8719_s1 + $0x3c9] sm:$0x40] %vm3_vm0, %v226_v18   ;;  %2939 = vst.msk [vmem:[%s8719_s1 + $0x3e8] sm:$0x80] %vm3_vm0, %v226_v18   ;;  %v393_v26 = vpop.permute.xlu1 %392   ;;  %v372_v27 = vpop.permute.xlu0 %371  }
  0x91   :  { %2923 = vst.msk [vmem:[%s8719_s1 + $0x20f] sm:$0x1] %vm3_vm0, %v205_v19   ;;  %2924 = vst.msk [vmem:[%s8719_s1 + $0x22e] sm:$0x2] %vm3_vm0, %v205_v19  }
  0x92   :  { %2925 = vst.msk [vmem:[%s8719_s1 + $0x24d] sm:$0x4] %vm3_vm0, %v205_v19   ;;  %2926 = vst.msk [vmem:[%s8719_s1 + $0x26c] sm:$0x8] %vm3_vm0, %v205_v19   ;;  %1603 = vrot.lane.b32.xlu1 %v4153_v8, %s4091_s14  ;;  %1582 = vrot.lane.b32.xlu0 %v4158_v9, %s4091_s14 }
  0x93   :  { %2927 = vst.msk [vmem:[%s8719_s1 + $0x28b] sm:$0x10] %vm3_vm0, %v205_v19   ;;  %2928 = vst.msk [vmem:[%s8719_s1 + $0x2aa] sm:$0x20] %vm3_vm0, %v205_v19  }
  0x94   :  { %2929 = vst.msk [vmem:[%s8719_s1 + $0x2c9] sm:$0x40] %vm3_vm0, %v205_v19   ;;  %2930 = vst.msk [vmem:[%s8719_s1 + $0x2e8] sm:$0x80] %vm3_vm0, %v205_v19   ;;  %v435_v28 = vpop.permute.xlu1 %434   ;;  %v414_v29 = vpop.permute.xlu0 %413  }
  0x95   :  { %2949 = vst.msk [vmem:[%s8719_s1 + $0x101] sm:$0x1] %vm3_vm0, %v267_v20   ;;  %2950 = vst.msk [vmem:[%s8719_s1 + $0x120] sm:$0x2] %vm3_vm0, %v267_v20  }
  0x96   :  { %2951 = vst.msk [vmem:[%s8719_s1 + $0x13f] sm:$0x4] %vm3_vm0, %v267_v20   ;;  %2952 = vst.msk [vmem:[%s8719_s1 + $0x15e] sm:$0x8] %vm3_vm0, %v267_v20   ;;  %1645 = vrot.lane.b32.xlu1 %v4165_v10, %s4091_s14  ;;  %1624 = vrot.lane.b32.xlu0 %v4170_v11, %s4091_s14 }
  0x97   :  { %2953 = vst.msk [vmem:[%s8719_s1 + $0x17d] sm:$0x10] %vm3_vm0, %v267_v20   ;;  %2954 = vst.msk [vmem:[%s8719_s1 + $0x19c] sm:$0x20] %vm3_vm0, %v267_v20  }
  0x98   :  { %2955 = vst.msk [vmem:[%s8719_s1 + $0x1bb] sm:$0x40] %vm3_vm0, %v267_v20   ;;  %2956 = vst.msk [vmem:[%s8719_s1 + $0x1da] sm:$0x80] %vm3_vm0, %v267_v20   ;;  %v477_v30 = vpop.permute.xlu1 %476   ;;  %v456_v31 = vpop.permute.xlu0 %455  }
  0x99   :  { %2940 = vst.msk [vmem:[%s8719_s1 + $0x1] sm:$0x1] %vm3_vm0, %v246_v21   ;;  %2941 = vst.msk [vmem:[%s8719_s1 + $0x20] sm:$0x2] %vm3_vm0, %v246_v21  }
  0x9a   :  { %2942 = vst.msk [vmem:[%s8719_s1 + $0x3f] sm:$0x4] %vm3_vm0, %v246_v21   ;;  %2943 = vst.msk [vmem:[%s8719_s1 + $0x5e] sm:$0x8] %vm3_vm0, %v246_v21   ;;  %1687 = vrot.lane.b32.xlu1 %v4129_v4, %s4092_s21  ;;  %1666 = vrot.lane.b32.xlu0 %v4134_v5, %s4092_s21 }
  0x9b   :  { %2944 = vst.msk [vmem:[%s8719_s1 + $0x7d] sm:$0x10] %vm3_vm0, %v246_v21   ;;  %2945 = vst.msk [vmem:[%s8719_s1 + $0x9c] sm:$0x20] %vm3_vm0, %v246_v21  }
  0x9c   :  { %2946 = vst.msk [vmem:[%s8719_s1 + $0xbb] sm:$0x40] %vm3_vm0, %v246_v21   ;;  %2947 = vst.msk [vmem:[%s8719_s1 + $0xda] sm:$0x80] %vm3_vm0, %v246_v21   ;;  %v518_v32 = vpop.permute.xlu1 %517   ;;  %v497_v33 = vpop.permute.xlu0 %496  }
  0x9d   :  { %2967 = vst.msk [vmem:[%s8719_s1 + $0x301] sm:$0x1] %vm3_vm0, %v309_v22   ;;  %2968 = vst.msk [vmem:[%s8719_s1 + $0x320] sm:$0x2] %vm3_vm0, %v309_v22  }
  0x9e   :  { %2969 = vst.msk [vmem:[%s8719_s1 + $0x33f] sm:$0x4] %vm3_vm0, %v309_v22   ;;  %2970 = vst.msk [vmem:[%s8719_s1 + $0x35e] sm:$0x8] %vm3_vm0, %v309_v22   ;;  %1729 = vrot.lane.b32.xlu1 %v4141_v6, %s4092_s21  ;;  %1708 = vrot.lane.b32.xlu0 %v4146_v7, %s4092_s21 }
  0x9f   :  { %2971 = vst.msk [vmem:[%s8719_s1 + $0x37d] sm:$0x10] %vm3_vm0, %v309_v22   ;;  %2972 = vst.msk [vmem:[%s8719_s1 + $0x39c] sm:$0x20] %vm3_vm0, %v309_v22  }
  0xa0   :  { %2973 = vst.msk [vmem:[%s8719_s1 + $0x3bb] sm:$0x40] %vm3_vm0, %v309_v22   ;;  %2974 = vst.msk [vmem:[%s8719_s1 + $0x3da] sm:$0x80] %vm3_vm0, %v309_v22   ;;  %v560_v34 = vpop.permute.xlu1 %559   ;;  %v539_v35 = vpop.permute.xlu0 %538  }
  0xa1   :  { %2958 = vst.msk [vmem:[%s8719_s1 + $0x201] sm:$0x1] %vm3_vm0, %v288_v23   ;;  %2959 = vst.msk [vmem:[%s8719_s1 + $0x220] sm:$0x2] %vm3_vm0, %v288_v23  }
  0xa2   :  { %2960 = vst.msk [vmem:[%s8719_s1 + $0x23f] sm:$0x4] %vm3_vm0, %v288_v23   ;;  %2961 = vst.msk [vmem:[%s8719_s1 + $0x25e] sm:$0x8] %vm3_vm0, %v288_v23   ;;  %1770 = vrot.lane.b32.xlu1 %v4153_v8, %s4093_s28  ;;  %1749 = vrot.lane.b32.xlu0 %v4158_v9, %s4093_s28 }
  0xa3   :  { %2962 = vst.msk [vmem:[%s8719_s1 + $0x27d] sm:$0x10] %vm3_vm0, %v288_v23   ;;  %2963 = vst.msk [vmem:[%s8719_s1 + $0x29c] sm:$0x20] %vm3_vm0, %v288_v23  }
  0xa4   :  { %2964 = vst.msk [vmem:[%s8719_s1 + $0x2bb] sm:$0x40] %vm3_vm0, %v288_v23   ;;  %2965 = vst.msk [vmem:[%s8719_s1 + $0x2da] sm:$0x80] %vm3_vm0, %v288_v23   ;;  %v602_v36 = vpop.permute.xlu1 %601   ;;  %v581_v37 = vpop.permute.xlu0 %580  }
  0xa5   :  { %2985 = vst.msk [vmem:[%s8719_s1 + $0x11e] sm:$0x1] %vm3_vm0, %v351_v24   ;;  %2986 = vst.msk [vmem:[%s8719_s1 + $0x13d] sm:$0x2] %vm3_vm0, %v351_v24  }
  0xa6   :  { %2987 = vst.msk [vmem:[%s8719_s1 + $0x15c] sm:$0x4] %vm3_vm0, %v351_v24   ;;  %2988 = vst.msk [vmem:[%s8719_s1 + $0x17b] sm:$0x8] %vm3_vm0, %v351_v24   ;;  %1812 = vrot.lane.b32.xlu1 %v4165_v10, %s4093_s28  ;;  %1791 = vrot.lane.b32.xlu0 %v4170_v11, %s4093_s28 }
  0xa7   :  { %2989 = vst.msk [vmem:[%s8719_s1 + $0x19a] sm:$0x10] %vm3_vm0, %v351_v24   ;;  %2990 = vst.msk [vmem:[%s8719_s1 + $0x1b9] sm:$0x20] %vm3_vm0, %v351_v24  }
  0xa8   :  { %2991 = vst.msk [vmem:[%s8719_s1 + $0x1d8] sm:$0x40] %vm3_vm0, %v351_v24   ;;  %2992 = vst.msk [vmem:[%s8719_s1 + $0x1f7] sm:$0x80] %vm3_vm0, %v351_v24   ;;  %v644_v38 = vpop.permute.xlu1 %643   ;;  %v623_v39 = vpop.permute.xlu0 %622  }
  0xa9   :  { %2976 = vst.msk [vmem:[%s8719_s1 + $0x1e] sm:$0x1] %vm3_vm0, %v330_v25   ;;  %2977 = vst.msk [vmem:[%s8719_s1 + $0x3d] sm:$0x2] %vm3_vm0, %v330_v25  }
  0xaa   :  { %2978 = vst.msk [vmem:[%s8719_s1 + $0x5c] sm:$0x4] %vm3_vm0, %v330_v25   ;;  %2979 = vst.msk [vmem:[%s8719_s1 + $0x7b] sm:$0x8] %vm3_vm0, %v330_v25   ;;  %1854 = vrot.lane.b32.xlu1 %v4129_v4, %s4094_s6  ;;  %1833 = vrot.lane.b32.xlu0 %v4134_v5, %s4094_s6 }
  0xab   :  { %2980 = vst.msk [vmem:[%s8719_s1 + $0x9a] sm:$0x10] %vm3_vm0, %v330_v25   ;;  %2981 = vst.msk [vmem:[%s8719_s1 + $0xb9] sm:$0x20] %vm3_vm0, %v330_v25   ;;  %v5586_v4 = vld [vmem:[%s8718_s0 + $0x30] sm:$0xff]   ;;  %v5591_v5 = vld [vmem:[%s8718_s0 + $0x18] sm:$0xff]  }
  0xac   :  { %2982 = vst.msk [vmem:[%s8719_s1 + $0xd8] sm:$0x40] %vm3_vm0, %v330_v25   ;;  %2983 = vst.msk [vmem:[%s8719_s1 + $0xf7] sm:$0x80] %vm3_vm0, %v330_v25   ;;  %v686_v40 = vpop.permute.xlu1 %685   ;;  %v665_v41 = vpop.permute.xlu0 %664  }
  0xad   :  { %3003 = vst.msk [vmem:[%s8719_s1 + $0x31e] sm:$0x1] %vm3_vm0, %v393_v26   ;;  %3004 = vst.msk [vmem:[%s8719_s1 + $0x33d] sm:$0x2] %vm3_vm0, %v393_v26  }
  0xae   :  { %3005 = vst.msk [vmem:[%s8719_s1 + $0x35c] sm:$0x4] %vm3_vm0, %v393_v26   ;;  %3006 = vst.msk [vmem:[%s8719_s1 + $0x37b] sm:$0x8] %vm3_vm0, %v393_v26   ;;  %1896 = vrot.lane.b32.xlu1 %v4141_v6, %s4094_s6  ;;  %1875 = vrot.lane.b32.xlu0 %v4146_v7, %s4094_s6  ;;  %v2755_v6 = vsel %vm2670_vm2, %v5420_v52, %v5586_v4  ;;  %v2713_v7 = vsel %vm2670_vm2, %v5337_v46, %v5591_v5 }
  0xaf   :  { %3007 = vst.msk [vmem:[%s8719_s1 + $0x39a] sm:$0x10] %vm3_vm0, %v393_v26   ;;  %3008 = vst.msk [vmem:[%s8719_s1 + $0x3b9] sm:$0x20] %vm3_vm0, %v393_v26  }
  0xb0   :  { %3009 = vst.msk [vmem:[%s8719_s1 + $0x3d8] sm:$0x40] %vm3_vm0, %v393_v26   ;;  %3010 = vst.msk [vmem:[%s8719_s1 + $0x3f7] sm:$0x80] %vm3_vm0, %v393_v26   ;;  %v728_v42 = vpop.permute.xlu1 %727   ;;  %v707_v43 = vpop.permute.xlu0 %706  }
  0xb1   :  { %2994 = vst.msk [vmem:[%s8719_s1 + $0x21e] sm:$0x1] %vm3_vm0, %v372_v27   ;;  %2995 = vst.msk [vmem:[%s8719_s1 + $0x23d] sm:$0x2] %vm3_vm0, %v372_v27  }
  0xb2   :  { %2996 = vst.msk [vmem:[%s8719_s1 + $0x25c] sm:$0x4] %vm3_vm0, %v372_v27   ;;  %2997 = vst.msk [vmem:[%s8719_s1 + $0x27b] sm:$0x8] %vm3_vm0, %v372_v27   ;;  %1937 = vrot.lane.b32.xlu1 %v4153_v8, %s4095_s13  ;;  %1916 = vrot.lane.b32.xlu0 %v4158_v9, %s4095_s13 }
  0xb3   :  { %2998 = vst.msk [vmem:[%s8719_s1 + $0x29a] sm:$0x10] %vm3_vm0, %v372_v27   ;;  %2999 = vst.msk [vmem:[%s8719_s1 + $0x2b9] sm:$0x20] %vm3_vm0, %v372_v27  }
  0xb4   :  { %3000 = vst.msk [vmem:[%s8719_s1 + $0x2d8] sm:$0x40] %vm3_vm0, %v372_v27   ;;  %3001 = vst.msk [vmem:[%s8719_s1 + $0x2f7] sm:$0x80] %vm3_vm0, %v372_v27   ;;  %v769_v44 = vpop.permute.xlu1 %768   ;;  %v748_v45 = vpop.permute.xlu0 %747  }
  0xb5   :  { %3021 = vst.msk [vmem:[%s8719_s1 + $0x110] sm:$0x1] %vm3_vm0, %v435_v28   ;;  %3022 = vst.msk [vmem:[%s8719_s1 + $0x12f] sm:$0x2] %vm3_vm0, %v435_v28  }
  0xb6   :  { %3023 = vst.msk [vmem:[%s8719_s1 + $0x14e] sm:$0x4] %vm3_vm0, %v435_v28   ;;  %3024 = vst.msk [vmem:[%s8719_s1 + $0x16d] sm:$0x8] %vm3_vm0, %v435_v28   ;;  %1979 = vrot.lane.b32.xlu1 %v4165_v10, %s4095_s13  ;;  %1958 = vrot.lane.b32.xlu0 %v4170_v11, %s4095_s13 }
  0xb7   :  { %3025 = vst.msk [vmem:[%s8719_s1 + $0x18c] sm:$0x10] %vm3_vm0, %v435_v28   ;;  %3026 = vst.msk [vmem:[%s8719_s1 + $0x1ab] sm:$0x20] %vm3_vm0, %v435_v28   ;;  %v5668_v10 = vld [vmem:[%s8718_s0 + $0x48] sm:$0xff]  }
  0xb8   :  { %3027 = vst.msk [vmem:[%s8719_s1 + $0x1ca] sm:$0x40] %vm3_vm0, %v435_v28   ;;  %3028 = vst.msk [vmem:[%s8719_s1 + $0x1e9] sm:$0x80] %vm3_vm0, %v435_v28   ;;  %v811_v48 = vpop.permute.xlu1 %810   ;;  %v790_v49 = vpop.permute.xlu0 %789   ;;  %v2797_v11 = vsel %vm2670_vm2, %v5507_v62, %v5668_v10  ;;  %v2_v28 = vld [vmem:[%s8718_s0] sm:$0xff]  }
  0xb9   :  { %3012 = vst.msk [vmem:[%s8719_s1 + $0x10] sm:$0x1] %vm3_vm0, %v414_v29   ;;  %3013 = vst.msk [vmem:[%s8719_s1 + $0x2f] sm:$0x2] %vm3_vm0, %v414_v29  }
  0xba   :  { %3014 = vst.msk [vmem:[%s8719_s1 + $0x4e] sm:$0x4] %vm3_vm0, %v414_v29   ;;  %3015 = vst.msk [vmem:[%s8719_s1 + $0x6d] sm:$0x8] %vm3_vm0, %v414_v29   ;;  %2021 = vrot.lane.b32.xlu1 %v5337_v46, %s4096_s22  ;;  %2000 = vrot.lane.b32.xlu0 %v5342_v47, %s4096_s22 }
  0xbb   :  { %3016 = vst.msk [vmem:[%s8719_s1 + $0x8c] sm:$0x10] %vm3_vm0, %v414_v29   ;;  %3017 = vst.msk [vmem:[%s8719_s1 + $0xab] sm:$0x20] %vm3_vm0, %v414_v29  }
  0xbc   :  { %3018 = vst.msk [vmem:[%s8719_s1 + $0xca] sm:$0x40] %vm3_vm0, %v414_v29   ;;  %3019 = vst.msk [vmem:[%s8719_s1 + $0xe9] sm:$0x80] %vm3_vm0, %v414_v29   ;;  %v853_v53 = vpop.permute.xlu1 %852   ;;  %v832_v54 = vpop.permute.xlu0 %831   ;;  %v2841_v29 = vld [vmem:[%s8718_s0 + $0x18] sm:$0xff]  }
  0xbd   :  { %3039 = vst.msk [vmem:[%s8719_s1 + $0x310] sm:$0x1] %vm3_vm0, %v477_v30   ;;  %3040 = vst.msk [vmem:[%s8719_s1 + $0x32f] sm:$0x2] %vm3_vm0, %v477_v30  }
  0xbe   :  { %3041 = vst.msk [vmem:[%s8719_s1 + $0x34e] sm:$0x4] %vm3_vm0, %v477_v30   ;;  %3042 = vst.msk [vmem:[%s8719_s1 + $0x36d] sm:$0x8] %vm3_vm0, %v477_v30   ;;  %2505 = vrot.lane.b32.xlu1 %v2504_v51, %s4097_s10  ;;  %2042 = vrot.lane.b32.xlu0 %v5420_v52, %s4096_s22 }
  0xbf   :  { %3043 = vst.msk [vmem:[%s8719_s1 + $0x38c] sm:$0x10] %vm3_vm0, %v477_v30   ;;  %3044 = vst.msk [vmem:[%s8719_s1 + $0x3ab] sm:$0x20] %vm3_vm0, %v477_v30  }
  0xc0   :  { %3045 = vst.msk [vmem:[%s8719_s1 + $0x3ca] sm:$0x40] %vm3_vm0, %v477_v30   ;;  %3046 = vst.msk [vmem:[%s8719_s1 + $0x3e9] sm:$0x80] %vm3_vm0, %v477_v30   ;;  %v895_v59 = vpop.permute.xlu1 %894   ;;  %v874_v60 = vpop.permute.xlu0 %873   ;;  %v2850_v30 = vld [vmem:[%s8718_s0 + $0x30] sm:$0xff]  }
  0xc1   :  { %3030 = vst.msk [vmem:[%s8719_s1 + $0x210] sm:$0x1] %vm3_vm0, %v456_v31   ;;  %3031 = vst.msk [vmem:[%s8719_s1 + $0x22f] sm:$0x2] %vm3_vm0, %v456_v31  }
  0xc2   :  { %3032 = vst.msk [vmem:[%s8719_s1 + $0x24e] sm:$0x4] %vm3_vm0, %v456_v31   ;;  %3033 = vst.msk [vmem:[%s8719_s1 + $0x26d] sm:$0x8] %vm3_vm0, %v456_v31   ;;  %2589 = vrot.lane.b32.xlu1 %v2588_v57, %s4097_s10  ;;  %2547 = vrot.lane.b32.xlu0 %v2546_v58, %s4097_s10 }
  0xc3   :  { %3034 = vst.msk [vmem:[%s8719_s1 + $0x28c] sm:$0x10] %vm3_vm0, %v456_v31   ;;  %3035 = vst.msk [vmem:[%s8719_s1 + $0x2ab] sm:$0x20] %vm3_vm0, %v456_v31  }
  0xc4   :  { %3036 = vst.msk [vmem:[%s8719_s1 + $0x2ca] sm:$0x40] %vm3_vm0, %v456_v31   ;;  %3037 = vst.msk [vmem:[%s8719_s1 + $0x2e9] sm:$0x80] %vm3_vm0, %v456_v31   ;;  %v936_v2 = vpop.permute.xlu1 %935   ;;  %v915_v3 = vpop.permute.xlu0 %914   ;;  %v2859_v31 = vld [vmem:[%s8718_s0 + $0x48] sm:$0xff]   ;;  %s4102_s0 = smov 13  }
  0xc5   :  { %3056 = vst.msk [vmem:[%s8719_s1 + $0x102] sm:$0x1] %vm3_vm0, %v518_v32   ;;  %3057 = vst.msk [vmem:[%s8719_s1 + $0x121] sm:$0x2] %vm3_vm0, %v518_v32  }
  0xc6   :  { %3058 = vst.msk [vmem:[%s8719_s1 + $0x140] sm:$0x4] %vm3_vm0, %v518_v32   ;;  %3059 = vst.msk [vmem:[%s8719_s1 + $0x15f] sm:$0x8] %vm3_vm0, %v518_v32   ;;  %2672 = vrot.lane.b32.xlu1 %v2671_v0, %s4098_s3  ;;  %2631 = vrot.lane.b32.xlu0 %v2630_v1, %s4097_s10  ;;  %s4101_s10 = smov 20  }
  0xc7   :  { %3060 = vst.msk [vmem:[%s8719_s1 + $0x17e] sm:$0x10] %vm3_vm0, %v518_v32   ;;  %3061 = vst.msk [vmem:[%s8719_s1 + $0x19d] sm:$0x20] %vm3_vm0, %v518_v32  }
  0xc8   :  { %3062 = vst.msk [vmem:[%s8719_s1 + $0x1bc] sm:$0x40] %vm3_vm0, %v518_v32   ;;  %3063 = vst.msk [vmem:[%s8719_s1 + $0x1db] sm:$0x80] %vm3_vm0, %v518_v32   ;;  %v978_v8 = vpop.permute.xlu1 %977   ;;  %v957_v9 = vpop.permute.xlu0 %956  }
  0xc9   :  { %3047 = vst.msk [vmem:[%s8719_s1 + $0x2] sm:$0x1] %vm3_vm0, %v497_v33   ;;  %3048 = vst.msk [vmem:[%s8719_s1 + $0x21] sm:$0x2] %vm3_vm0, %v497_v33  }
  0xca   :  { %3049 = vst.msk [vmem:[%s8719_s1 + $0x40] sm:$0x4] %vm3_vm0, %v497_v33   ;;  %3050 = vst.msk [vmem:[%s8719_s1 + $0x5f] sm:$0x8] %vm3_vm0, %v497_v33   ;;  %2756 = vrot.lane.b32.xlu1 %v2755_v6, %s4098_s3  ;;  %2714 = vrot.lane.b32.xlu0 %v2713_v7, %s4098_s3 }
  0xcb   :  { %3051 = vst.msk [vmem:[%s8719_s1 + $0x7e] sm:$0x10] %vm3_vm0, %v497_v33   ;;  %3052 = vst.msk [vmem:[%s8719_s1 + $0x9d] sm:$0x20] %vm3_vm0, %v497_v33  }
  0xcc   :  { %3053 = vst.msk [vmem:[%s8719_s1 + $0xbc] sm:$0x40] %vm3_vm0, %v497_v33   ;;  %3054 = vst.msk [vmem:[%s8719_s1 + $0xdb] sm:$0x80] %vm3_vm0, %v497_v33   ;;  %v1020_v12 = vpop.permute.xlu1 %1019   ;;  %v999_v13 = vpop.permute.xlu0 %998  }
  0xcd   :  { %3074 = vst.msk [vmem:[%s8719_s1 + $0x302] sm:$0x1] %vm3_vm0, %v560_v34   ;;  %3075 = vst.msk [vmem:[%s8719_s1 + $0x321] sm:$0x2] %vm3_vm0, %v560_v34  }
  0xce   :  { %3076 = vst.msk [vmem:[%s8719_s1 + $0x340] sm:$0x4] %vm3_vm0, %v560_v34   ;;  %3077 = vst.msk [vmem:[%s8719_s1 + $0x35f] sm:$0x8] %vm3_vm0, %v560_v34   ;;  %2063 = vrot.lane.b32.xlu1 %v5507_v62, %s4096_s22  ;;  %2798 = vrot.lane.b32.xlu0 %v2797_v11, %s4098_s3 }
  0xcf   :  { %3078 = vst.msk [vmem:[%s8719_s1 + $0x37e] sm:$0x10] %vm3_vm0, %v560_v34   ;;  %3079 = vst.msk [vmem:[%s8719_s1 + $0x39d] sm:$0x20] %vm3_vm0, %v560_v34  }
  0xd0   :  { %3080 = vst.msk [vmem:[%s8719_s1 + $0x3bc] sm:$0x40] %vm3_vm0, %v560_v34   ;;  %3081 = vst.msk [vmem:[%s8719_s1 + $0x3db] sm:$0x80] %vm3_vm0, %v560_v34   ;;  %v1062_v14 = vpop.permute.xlu1 %1061   ;;  %v1041_v15 = vpop.permute.xlu0 %1040  }
  0xd1   :  { %3065 = vst.msk [vmem:[%s8719_s1 + $0x202] sm:$0x1] %vm3_vm0, %v539_v35   ;;  %3066 = vst.msk [vmem:[%s8719_s1 + $0x221] sm:$0x2] %vm3_vm0, %v539_v35  }
  0xd2   :  { %3067 = vst.msk [vmem:[%s8719_s1 + $0x240] sm:$0x4] %vm3_vm0, %v539_v35   ;;  %3068 = vst.msk [vmem:[%s8719_s1 + $0x25f] sm:$0x8] %vm3_vm0, %v539_v35   ;;  %2104 = vrot.lane.b32.xlu1 %v5591_v5, %s4099_s18  ;;  %2083 = vrot.lane.b32.xlu0 %v5502_v61, %s4099_s18 }
  0xd3   :  { %3069 = vst.msk [vmem:[%s8719_s1 + $0x27e] sm:$0x10] %vm3_vm0, %v539_v35   ;;  %3070 = vst.msk [vmem:[%s8719_s1 + $0x29d] sm:$0x20] %vm3_vm0, %v539_v35  }
  0xd4   :  { %3071 = vst.msk [vmem:[%s8719_s1 + $0x2bc] sm:$0x40] %vm3_vm0, %v539_v35   ;;  %3072 = vst.msk [vmem:[%s8719_s1 + $0x2db] sm:$0x80] %vm3_vm0, %v539_v35   ;;  %v1103_v16 = vpop.permute.xlu1 %1102   ;;  %v1082_v17 = vpop.permute.xlu0 %1081  }
  0xd5   :  { %3092 = vst.msk [vmem:[%s8719_s1 + $0x11f] sm:$0x1] %vm3_vm0, %v602_v36   ;;  %3093 = vst.msk [vmem:[%s8719_s1 + $0x13e] sm:$0x2] %vm3_vm0, %v602_v36  }
  0xd6   :  { %3094 = vst.msk [vmem:[%s8719_s1 + $0x15d] sm:$0x4] %vm3_vm0, %v602_v36   ;;  %3095 = vst.msk [vmem:[%s8719_s1 + $0x17c] sm:$0x8] %vm3_vm0, %v602_v36   ;;  %2146 = vrot.lane.b32.xlu1 %v5668_v10, %s4099_s18  ;;  %2125 = vrot.lane.b32.xlu0 %v5586_v4, %s4099_s18 }
  0xd7   :  { %3096 = vst.msk [vmem:[%s8719_s1 + $0x19b] sm:$0x10] %vm3_vm0, %v602_v36   ;;  %3097 = vst.msk [vmem:[%s8719_s1 + $0x1ba] sm:$0x20] %vm3_vm0, %v602_v36  }
  0xd8   :  { %3098 = vst.msk [vmem:[%s8719_s1 + $0x1d9] sm:$0x40] %vm3_vm0, %v602_v36   ;;  %3099 = vst.msk [vmem:[%s8719_s1 + $0x1f8] sm:$0x80] %vm3_vm0, %v602_v36   ;;  %v1145_v18 = vpop.permute.xlu1 %1144   ;;  %v1124_v19 = vpop.permute.xlu0 %1123  }
  0xd9   :  { %3083 = vst.msk [vmem:[%s8719_s1 + $0x1f] sm:$0x1] %vm3_vm0, %v581_v37   ;;  %3084 = vst.msk [vmem:[%s8719_s1 + $0x3e] sm:$0x2] %vm3_vm0, %v581_v37  }
  0xda   :  { %3085 = vst.msk [vmem:[%s8719_s1 + $0x5d] sm:$0x4] %vm3_vm0, %v581_v37   ;;  %3086 = vst.msk [vmem:[%s8719_s1 + $0x7c] sm:$0x8] %vm3_vm0, %v581_v37   ;;  %2188 = vrot.lane.b32.xlu1 %v5337_v46, %s4100_s24  ;;  %2167 = vrot.lane.b32.xlu0 %v5342_v47, %s4100_s24 }
  0xdb   :  { %3087 = vst.msk [vmem:[%s8719_s1 + $0x9b] sm:$0x10] %vm3_vm0, %v581_v37   ;;  %3088 = vst.msk [vmem:[%s8719_s1 + $0xba] sm:$0x20] %vm3_vm0, %v581_v37  }
  0xdc   :  { %3089 = vst.msk [vmem:[%s8719_s1 + $0xd9] sm:$0x40] %vm3_vm0, %v581_v37   ;;  %3090 = vst.msk [vmem:[%s8719_s1 + $0xf8] sm:$0x80] %vm3_vm0, %v581_v37   ;;  %v1187_v20 = vpop.permute.xlu1 %1186   ;;  %v1166_v21 = vpop.permute.xlu0 %1165  }
  0xdd   :  { %3110 = vst.msk [vmem:[%s8719_s1 + $0x31f] sm:$0x1] %vm3_vm0, %v644_v38   ;;  %3111 = vst.msk [vmem:[%s8719_s1 + $0x33e] sm:$0x2] %vm3_vm0, %v644_v38  }
  0xde   :  { %3112 = vst.msk [vmem:[%s8719_s1 + $0x35d] sm:$0x4] %vm3_vm0, %v644_v38   ;;  %3113 = vst.msk [vmem:[%s8719_s1 + $0x37c] sm:$0x8] %vm3_vm0, %v644_v38   ;;  %2230 = vrot.lane.b32.xlu1 %v5507_v62, %s4100_s24  ;;  %2209 = vrot.lane.b32.xlu0 %v5420_v52, %s4100_s24 }
  0xdf   :  { %3114 = vst.msk [vmem:[%s8719_s1 + $0x39b] sm:$0x10] %vm3_vm0, %v644_v38   ;;  %3115 = vst.msk [vmem:[%s8719_s1 + $0x3ba] sm:$0x20] %vm3_vm0, %v644_v38  }
  0xe0   :  { %3116 = vst.msk [vmem:[%s8719_s1 + $0x3d9] sm:$0x40] %vm3_vm0, %v644_v38   ;;  %3117 = vst.msk [vmem:[%s8719_s1 + $0x3f8] sm:$0x80] %vm3_vm0, %v644_v38   ;;  %v1229_v22 = vpop.permute.xlu1 %1228   ;;  %v1208_v23 = vpop.permute.xlu0 %1207  }
  0xe1   :  { %3101 = vst.msk [vmem:[%s8719_s1 + $0x21f] sm:$0x1] %vm3_vm0, %v623_v39   ;;  %3102 = vst.msk [vmem:[%s8719_s1 + $0x23e] sm:$0x2] %vm3_vm0, %v623_v39  }
  0xe2   :  { %3103 = vst.msk [vmem:[%s8719_s1 + $0x25d] sm:$0x4] %vm3_vm0, %v623_v39   ;;  %3104 = vst.msk [vmem:[%s8719_s1 + $0x27c] sm:$0x8] %vm3_vm0, %v623_v39   ;;  %2271 = vrot.lane.b32.xlu1 %v5591_v5, %s4101_s10  ;;  %2250 = vrot.lane.b32.xlu0 %v5502_v61, %s4101_s10 }
  0xe3   :  { %3105 = vst.msk [vmem:[%s8719_s1 + $0x29b] sm:$0x10] %vm3_vm0, %v623_v39   ;;  %3106 = vst.msk [vmem:[%s8719_s1 + $0x2ba] sm:$0x20] %vm3_vm0, %v623_v39  }
  0xe4   :  { %3107 = vst.msk [vmem:[%s8719_s1 + $0x2d9] sm:$0x40] %vm3_vm0, %v623_v39   ;;  %3108 = vst.msk [vmem:[%s8719_s1 + $0x2f8] sm:$0x80] %vm3_vm0, %v623_v39   ;;  %v1270_v24 = vpop.permute.xlu1 %1269   ;;  %v1249_v25 = vpop.permute.xlu0 %1248  }
  0xe5   :  { %3128 = vst.msk [vmem:[%s8719_s1 + $0x111] sm:$0x1] %vm3_vm0, %v686_v40   ;;  %3129 = vst.msk [vmem:[%s8719_s1 + $0x130] sm:$0x2] %vm3_vm0, %v686_v40  }
  0xe6   :  { %3130 = vst.msk [vmem:[%s8719_s1 + $0x14f] sm:$0x4] %vm3_vm0, %v686_v40   ;;  %3131 = vst.msk [vmem:[%s8719_s1 + $0x16e] sm:$0x8] %vm3_vm0, %v686_v40   ;;  %2313 = vrot.lane.b32.xlu1 %v5668_v10, %s4101_s10  ;;  %2292 = vrot.lane.b32.xlu0 %v5586_v4, %s4101_s10 }
  0xe7   :  { %3132 = vst.msk [vmem:[%s8719_s1 + $0x18d] sm:$0x10] %vm3_vm0, %v686_v40   ;;  %3133 = vst.msk [vmem:[%s8719_s1 + $0x1ac] sm:$0x20] %vm3_vm0, %v686_v40  }
  0xe8   :  { %3134 = vst.msk [vmem:[%s8719_s1 + $0x1cb] sm:$0x40] %vm3_vm0, %v686_v40   ;;  %3135 = vst.msk [vmem:[%s8719_s1 + $0x1ea] sm:$0x80] %vm3_vm0, %v686_v40   ;;  %v1312_v26 = vpop.permute.xlu1 %1311   ;;  %v1291_v27 = vpop.permute.xlu0 %1290  }
  0xe9   :  { %3119 = vst.msk [vmem:[%s8719_s1 + $0x11] sm:$0x1] %vm3_vm0, %v665_v41   ;;  %3120 = vst.msk [vmem:[%s8719_s1 + $0x30] sm:$0x2] %vm3_vm0, %v665_v41  }
  0xea   :  { %3121 = vst.msk [vmem:[%s8719_s1 + $0x4f] sm:$0x4] %vm3_vm0, %v665_v41   ;;  %3122 = vst.msk [vmem:[%s8719_s1 + $0x6e] sm:$0x8] %vm3_vm0, %v665_v41   ;;  %2355 = vrot.lane.b32.xlu1 %v5337_v46, %s4102_s0  ;;  %2334 = vrot.lane.b32.xlu0 %v5342_v47, %s4102_s0 }
  0xeb   :  { %3123 = vst.msk [vmem:[%s8719_s1 + $0x8d] sm:$0x10] %vm3_vm0, %v665_v41   ;;  %3124 = vst.msk [vmem:[%s8719_s1 + $0xac] sm:$0x20] %vm3_vm0, %v665_v41  }
  0xec   :  { %3125 = vst.msk [vmem:[%s8719_s1 + $0xcb] sm:$0x40] %vm3_vm0, %v665_v41   ;;  %3126 = vst.msk [vmem:[%s8719_s1 + $0xea] sm:$0x80] %vm3_vm0, %v665_v41   ;;  %v1354_v32 = vpop.permute.xlu1 %1353   ;;  %v1333_v33 = vpop.permute.xlu0 %1332  }
  0xed   :  { %3146 = vst.msk [vmem:[%s8719_s1 + $0x311] sm:$0x1] %vm3_vm0, %v728_v42   ;;  %3147 = vst.msk [vmem:[%s8719_s1 + $0x330] sm:$0x2] %vm3_vm0, %v728_v42  }
  0xee   :  { %3148 = vst.msk [vmem:[%s8719_s1 + $0x34f] sm:$0x4] %vm3_vm0, %v728_v42   ;;  %3149 = vst.msk [vmem:[%s8719_s1 + $0x36e] sm:$0x8] %vm3_vm0, %v728_v42   ;;  %2397 = vrot.lane.b32.xlu1 %v5507_v62, %s4102_s0  ;;  %2376 = vrot.lane.b32.xlu0 %v5420_v52, %s4102_s0 }
  0xef   :  { %3150 = vst.msk [vmem:[%s8719_s1 + $0x38d] sm:$0x10] %vm3_vm0, %v728_v42   ;;  %3151 = vst.msk [vmem:[%s8719_s1 + $0x3ac] sm:$0x20] %vm3_vm0, %v728_v42  }
  0xf0   :  { %3152 = vst.msk [vmem:[%s8719_s1 + $0x3cb] sm:$0x40] %vm3_vm0, %v728_v42   ;;  %3153 = vst.msk [vmem:[%s8719_s1 + $0x3ea] sm:$0x80] %vm3_vm0, %v728_v42   ;;  %v1396_v34 = vpop.permute.xlu1 %1395   ;;  %v1375_v35 = vpop.permute.xlu0 %1374  }
  0xf1   :  { %3137 = vst.msk [vmem:[%s8719_s1 + $0x211] sm:$0x1] %vm3_vm0, %v707_v43   ;;  %3138 = vst.msk [vmem:[%s8719_s1 + $0x230] sm:$0x2] %vm3_vm0, %v707_v43  }
  0xf2   :  { %3139 = vst.msk [vmem:[%s8719_s1 + $0x24f] sm:$0x4] %vm3_vm0, %v707_v43   ;;  %3140 = vst.msk [vmem:[%s8719_s1 + $0x26e] sm:$0x8] %vm3_vm0, %v707_v43   ;;  %2438 = vrot.lane.b32.xlu1 %v5591_v5, %s4103_s27  ;;  %2417 = vrot.lane.b32.xlu0 %v5502_v61, %s4103_s27 }
  0xf3   :  { %3141 = vst.msk [vmem:[%s8719_s1 + $0x28d] sm:$0x10] %vm3_vm0, %v707_v43   ;;  %3142 = vst.msk [vmem:[%s8719_s1 + $0x2ac] sm:$0x20] %vm3_vm0, %v707_v43  }
  0xf4   :  { %3143 = vst.msk [vmem:[%s8719_s1 + $0x2cb] sm:$0x40] %vm3_vm0, %v707_v43   ;;  %3144 = vst.msk [vmem:[%s8719_s1 + $0x2ea] sm:$0x80] %vm3_vm0, %v707_v43   ;;  %v1437_v36 = vpop.permute.xlu1 %1436   ;;  %v1416_v37 = vpop.permute.xlu0 %1415  }
  0xf5   :  { %3163 = vst.msk [vmem:[%s8719_s1 + $0x103] sm:$0x1] %vm3_vm0, %v769_v44   ;;  %3164 = vst.msk [vmem:[%s8719_s1 + $0x122] sm:$0x2] %vm3_vm0, %v769_v44  }
  0xf6   :  { %3165 = vst.msk [vmem:[%s8719_s1 + $0x141] sm:$0x4] %vm3_vm0, %v769_v44   ;;  %3166 = vst.msk [vmem:[%s8719_s1 + $0x160] sm:$0x8] %vm3_vm0, %v769_v44   ;;  %2480 = vrot.lane.b32.xlu1 %v5668_v10, %s4103_s27  ;;  %2459 = vrot.lane.b32.xlu0 %v5586_v4, %s4103_s27 }
  0xf7   :  { %3167 = vst.msk [vmem:[%s8719_s1 + $0x17f] sm:$0x10] %vm3_vm0, %v769_v44   ;;  %3168 = vst.msk [vmem:[%s8719_s1 + $0x19e] sm:$0x20] %vm3_vm0, %v769_v44  }
  0xf8   :  { %3169 = vst.msk [vmem:[%s8719_s1 + $0x1bd] sm:$0x40] %vm3_vm0, %v769_v44   ;;  %3170 = vst.msk [vmem:[%s8719_s1 + $0x1dc] sm:$0x80] %vm3_vm0, %v769_v44   ;;  %v1479_v38 = vpop.permute.xlu1 %1478   ;;  %v1458_v39 = vpop.permute.xlu0 %1457  }
  0xf9   :  { %3154 = vst.msk [vmem:[%s8719_s1 + $0x3] sm:$0x1] %vm3_vm0, %v748_v45   ;;  %3155 = vst.msk [vmem:[%s8719_s1 + $0x22] sm:$0x2] %vm3_vm0, %v748_v45  }
  0xfa   :  { %3156 = vst.msk [vmem:[%s8719_s1 + $0x41] sm:$0x4] %vm3_vm0, %v748_v45   ;;  %3157 = vst.msk [vmem:[%s8719_s1 + $0x60] sm:$0x8] %vm3_vm0, %v748_v45  }
  0xfb   :  { %3158 = vst.msk [vmem:[%s8719_s1 + $0x7f] sm:$0x10] %vm3_vm0, %v748_v45   ;;  %3159 = vst.msk [vmem:[%s8719_s1 + $0x9e] sm:$0x20] %vm3_vm0, %v748_v45  }
  0xfc   :  { %3160 = vst.msk [vmem:[%s8719_s1 + $0xbd] sm:$0x40] %vm3_vm0, %v748_v45   ;;  %3161 = vst.msk [vmem:[%s8719_s1 + $0xdc] sm:$0x80] %vm3_vm0, %v748_v45   ;;  %v1521_v40 = vpop.permute.xlu1 %1520   ;;  %v1500_v41 = vpop.permute.xlu0 %1499  }
  0xfd   :  { %3181 = vst.msk [vmem:[%s8719_s1 + $0x303] sm:$0x1] %vm3_vm0, %v811_v48   ;;  %3182 = vst.msk [vmem:[%s8719_s1 + $0x322] sm:$0x2] %vm3_vm0, %v811_v48  }
  0xfe   :  { %3183 = vst.msk [vmem:[%s8719_s1 + $0x341] sm:$0x4] %vm3_vm0, %v811_v48   ;;  %3184 = vst.msk [vmem:[%s8719_s1 + $0x360] sm:$0x8] %vm3_vm0, %v811_v48  }
  0xff   :  { %3185 = vst.msk [vmem:[%s8719_s1 + $0x37f] sm:$0x10] %vm3_vm0, %v811_v48   ;;  %3186 = vst.msk [vmem:[%s8719_s1 + $0x39e] sm:$0x20] %vm3_vm0, %v811_v48  }
 0x100   :  { %3187 = vst.msk [vmem:[%s8719_s1 + $0x3bd] sm:$0x40] %vm3_vm0, %v811_v48   ;;  %3188 = vst.msk [vmem:[%s8719_s1 + $0x3dc] sm:$0x80] %vm3_vm0, %v811_v48   ;;  %v1563_v42 = vpop.permute.xlu1 %1562   ;;  %v1542_v43 = vpop.permute.xlu0 %1541  }
 0x101   :  { %3172 = vst.msk [vmem:[%s8719_s1 + $0x203] sm:$0x1] %vm3_vm0, %v790_v49   ;;  %3173 = vst.msk [vmem:[%s8719_s1 + $0x222] sm:$0x2] %vm3_vm0, %v790_v49  }
 0x102   :  { %3174 = vst.msk [vmem:[%s8719_s1 + $0x241] sm:$0x4] %vm3_vm0, %v790_v49   ;;  %3175 = vst.msk [vmem:[%s8719_s1 + $0x260] sm:$0x8] %vm3_vm0, %v790_v49  }
 0x103   :  { %3176 = vst.msk [vmem:[%s8719_s1 + $0x27f] sm:$0x10] %vm3_vm0, %v790_v49   ;;  %3177 = vst.msk [vmem:[%s8719_s1 + $0x29e] sm:$0x20] %vm3_vm0, %v790_v49  }
 0x104   :  { %3178 = vst.msk [vmem:[%s8719_s1 + $0x2bd] sm:$0x40] %vm3_vm0, %v790_v49   ;;  %3179 = vst.msk [vmem:[%s8719_s1 + $0x2dc] sm:$0x80] %vm3_vm0, %v790_v49   ;;  %v1604_v44 = vpop.permute.xlu1 %1603   ;;  %v1583_v45 = vpop.permute.xlu0 %1582  }
 0x105   :  { %3199 = vst.msk [vmem:[%s8719_s1 + $0x112] sm:$0x1] %vm3_vm0, %v853_v53   ;;  %3200 = vst.msk [vmem:[%s8719_s1 + $0x131] sm:$0x2] %vm3_vm0, %v853_v53  }
 0x106   :  { %3201 = vst.msk [vmem:[%s8719_s1 + $0x150] sm:$0x4] %vm3_vm0, %v853_v53   ;;  %3202 = vst.msk [vmem:[%s8719_s1 + $0x16f] sm:$0x8] %vm3_vm0, %v853_v53  }
 0x107   :  { %3203 = vst.msk [vmem:[%s8719_s1 + $0x18e] sm:$0x10] %vm3_vm0, %v853_v53   ;;  %3204 = vst.msk [vmem:[%s8719_s1 + $0x1ad] sm:$0x20] %vm3_vm0, %v853_v53  }
 0x108   :  { %3205 = vst.msk [vmem:[%s8719_s1 + $0x1cc] sm:$0x40] %vm3_vm0, %v853_v53   ;;  %3206 = vst.msk [vmem:[%s8719_s1 + $0x1eb] sm:$0x80] %vm3_vm0, %v853_v53   ;;  %v1646_v46 = vpop.permute.xlu1 %1645   ;;  %v1625_v47 = vpop.permute.xlu0 %1624  }
 0x109   :  { %3190 = vst.msk [vmem:[%s8719_s1 + $0x12] sm:$0x1] %vm3_vm0, %v832_v54   ;;  %3191 = vst.msk [vmem:[%s8719_s1 + $0x31] sm:$0x2] %vm3_vm0, %v832_v54  }
 0x10a   :  { %3192 = vst.msk [vmem:[%s8719_s1 + $0x50] sm:$0x4] %vm3_vm0, %v832_v54   ;;  %3193 = vst.msk [vmem:[%s8719_s1 + $0x6f] sm:$0x8] %vm3_vm0, %v832_v54  }
 0x10b   :  { %3194 = vst.msk [vmem:[%s8719_s1 + $0x8e] sm:$0x10] %vm3_vm0, %v832_v54   ;;  %3195 = vst.msk [vmem:[%s8719_s1 + $0xad] sm:$0x20] %vm3_vm0, %v832_v54  }
 0x10c   :  { %3196 = vst.msk [vmem:[%s8719_s1 + $0xcc] sm:$0x40] %vm3_vm0, %v832_v54   ;;  %3197 = vst.msk [vmem:[%s8719_s1 + $0xeb] sm:$0x80] %vm3_vm0, %v832_v54   ;;  %v1688_v48 = vpop.permute.xlu1 %1687   ;;  %v1667_v49 = vpop.permute.xlu0 %1666  }
 0x10d   :  { %3217 = vst.msk [vmem:[%s8719_s1 + $0x312] sm:$0x1] %vm3_vm0, %v895_v59   ;;  %3218 = vst.msk [vmem:[%s8719_s1 + $0x331] sm:$0x2] %vm3_vm0, %v895_v59  }
 0x10e   :  { %3219 = vst.msk [vmem:[%s8719_s1 + $0x350] sm:$0x4] %vm3_vm0, %v895_v59   ;;  %3220 = vst.msk [vmem:[%s8719_s1 + $0x36f] sm:$0x8] %vm3_vm0, %v895_v59  }
 0x10f   :  { %3221 = vst.msk [vmem:[%s8719_s1 + $0x38e] sm:$0x10] %vm3_vm0, %v895_v59   ;;  %3222 = vst.msk [vmem:[%s8719_s1 + $0x3ad] sm:$0x20] %vm3_vm0, %v895_v59  }
 0x110   :  { %3223 = vst.msk [vmem:[%s8719_s1 + $0x3cc] sm:$0x40] %vm3_vm0, %v895_v59   ;;  %3224 = vst.msk [vmem:[%s8719_s1 + $0x3eb] sm:$0x80] %vm3_vm0, %v895_v59   ;;  %v1730_v50 = vpop.permute.xlu1 %1729   ;;  %v1709_v51 = vpop.permute.xlu0 %1708  }
 0x111   :  { %3208 = vst.msk [vmem:[%s8719_s1 + $0x212] sm:$0x1] %vm3_vm0, %v874_v60   ;;  %3209 = vst.msk [vmem:[%s8719_s1 + $0x231] sm:$0x2] %vm3_vm0, %v874_v60  }
 0x112   :  { %3210 = vst.msk [vmem:[%s8719_s1 + $0x250] sm:$0x4] %vm3_vm0, %v874_v60   ;;  %3211 = vst.msk [vmem:[%s8719_s1 + $0x26f] sm:$0x8] %vm3_vm0, %v874_v60  }
 0x113   :  { %3212 = vst.msk [vmem:[%s8719_s1 + $0x28e] sm:$0x10] %vm3_vm0, %v874_v60   ;;  %3213 = vst.msk [vmem:[%s8719_s1 + $0x2ad] sm:$0x20] %vm3_vm0, %v874_v60  }
 0x114   :  { %3214 = vst.msk [vmem:[%s8719_s1 + $0x2cc] sm:$0x40] %vm3_vm0, %v874_v60   ;;  %3215 = vst.msk [vmem:[%s8719_s1 + $0x2eb] sm:$0x80] %vm3_vm0, %v874_v60   ;;  %v1771_v52 = vpop.permute.xlu1 %1770   ;;  %v1750_v53 = vpop.permute.xlu0 %1749  }
 0x115   :  { %3234 = vst.msk [vmem:[%s8719_s1 + $0x104] sm:$0x1] %vm3_vm0, %v936_v2   ;;  %3235 = vst.msk [vmem:[%s8719_s1 + $0x123] sm:$0x2] %vm3_vm0, %v936_v2  }
 0x116   :  { %3236 = vst.msk [vmem:[%s8719_s1 + $0x142] sm:$0x4] %vm3_vm0, %v936_v2   ;;  %3237 = vst.msk [vmem:[%s8719_s1 + $0x161] sm:$0x8] %vm3_vm0, %v936_v2  }
 0x117   :  { %3238 = vst.msk [vmem:[%s8719_s1 + $0x180] sm:$0x10] %vm3_vm0, %v936_v2   ;;  %3239 = vst.msk [vmem:[%s8719_s1 + $0x19f] sm:$0x20] %vm3_vm0, %v936_v2  }
 0x118   :  { %3240 = vst.msk [vmem:[%s8719_s1 + $0x1be] sm:$0x40] %vm3_vm0, %v936_v2   ;;  %3241 = vst.msk [vmem:[%s8719_s1 + $0x1dd] sm:$0x80] %vm3_vm0, %v936_v2   ;;  %v1813_v54 = vpop.permute.xlu1 %1812   ;;  %v1792_v55 = vpop.permute.xlu0 %1791  }
 0x119   :  { %3225 = vst.msk [vmem:[%s8719_s1 + $0x4] sm:$0x1] %vm3_vm0, %v915_v3   ;;  %3226 = vst.msk [vmem:[%s8719_s1 + $0x23] sm:$0x2] %vm3_vm0, %v915_v3  }
 0x11a   :  { %3227 = vst.msk [vmem:[%s8719_s1 + $0x42] sm:$0x4] %vm3_vm0, %v915_v3   ;;  %3228 = vst.msk [vmem:[%s8719_s1 + $0x61] sm:$0x8] %vm3_vm0, %v915_v3  }
 0x11b   :  { %3229 = vst.msk [vmem:[%s8719_s1 + $0x80] sm:$0x10] %vm3_vm0, %v915_v3   ;;  %3230 = vst.msk [vmem:[%s8719_s1 + $0x9f] sm:$0x20] %vm3_vm0, %v915_v3  }
 0x11c   :  { %3231 = vst.msk [vmem:[%s8719_s1 + $0xbe] sm:$0x40] %vm3_vm0, %v915_v3   ;;  %3232 = vst.msk [vmem:[%s8719_s1 + $0xdd] sm:$0x80] %vm3_vm0, %v915_v3   ;;  %v1855_v56 = vpop.permute.xlu1 %1854   ;;  %v1834_v57 = vpop.permute.xlu0 %1833  }
 0x11d   :  { %3252 = vst.msk [vmem:[%s8719_s1 + $0x304] sm:$0x1] %vm3_vm0, %v978_v8   ;;  %3253 = vst.msk [vmem:[%s8719_s1 + $0x323] sm:$0x2] %vm3_vm0, %v978_v8  }
 0x11e   :  { %3254 = vst.msk [vmem:[%s8719_s1 + $0x342] sm:$0x4] %vm3_vm0, %v978_v8   ;;  %3255 = vst.msk [vmem:[%s8719_s1 + $0x361] sm:$0x8] %vm3_vm0, %v978_v8  }
 0x11f   :  { %3256 = vst.msk [vmem:[%s8719_s1 + $0x380] sm:$0x10] %vm3_vm0, %v978_v8   ;;  %3257 = vst.msk [vmem:[%s8719_s1 + $0x39f] sm:$0x20] %vm3_vm0, %v978_v8  }
 0x120   :  { %3258 = vst.msk [vmem:[%s8719_s1 + $0x3be] sm:$0x40] %vm3_vm0, %v978_v8   ;;  %3259 = vst.msk [vmem:[%s8719_s1 + $0x3dd] sm:$0x80] %vm3_vm0, %v978_v8   ;;  %v1897_v58 = vpop.permute.xlu1 %1896   ;;  %v1876_v59 = vpop.permute.xlu0 %1875  }
 0x121   :  { %3243 = vst.msk [vmem:[%s8719_s1 + $0x204] sm:$0x1] %vm3_vm0, %v957_v9   ;;  %3244 = vst.msk [vmem:[%s8719_s1 + $0x223] sm:$0x2] %vm3_vm0, %v957_v9  }
 0x122   :  { %3245 = vst.msk [vmem:[%s8719_s1 + $0x242] sm:$0x4] %vm3_vm0, %v957_v9   ;;  %3246 = vst.msk [vmem:[%s8719_s1 + $0x261] sm:$0x8] %vm3_vm0, %v957_v9  }
 0x123   :  { %3247 = vst.msk [vmem:[%s8719_s1 + $0x280] sm:$0x10] %vm3_vm0, %v957_v9   ;;  %3248 = vst.msk [vmem:[%s8719_s1 + $0x29f] sm:$0x20] %vm3_vm0, %v957_v9  }
 0x124   :  { %3249 = vst.msk [vmem:[%s8719_s1 + $0x2be] sm:$0x40] %vm3_vm0, %v957_v9   ;;  %3250 = vst.msk [vmem:[%s8719_s1 + $0x2dd] sm:$0x80] %vm3_vm0, %v957_v9   ;;  %v1938_v60 = vpop.permute.xlu1 %1937   ;;  %v1917_v61 = vpop.permute.xlu0 %1916  }
 0x125   :  { %3270 = vst.msk [vmem:[%s8719_s1 + $0x113] sm:$0x1] %vm3_vm0, %v1020_v12   ;;  %3271 = vst.msk [vmem:[%s8719_s1 + $0x132] sm:$0x2] %vm3_vm0, %v1020_v12  }
 0x126   :  { %3272 = vst.msk [vmem:[%s8719_s1 + $0x151] sm:$0x4] %vm3_vm0, %v1020_v12   ;;  %3273 = vst.msk [vmem:[%s8719_s1 + $0x170] sm:$0x8] %vm3_vm0, %v1020_v12  }
 0x127   :  { %3274 = vst.msk [vmem:[%s8719_s1 + $0x18f] sm:$0x10] %vm3_vm0, %v1020_v12   ;;  %3275 = vst.msk [vmem:[%s8719_s1 + $0x1ae] sm:$0x20] %vm3_vm0, %v1020_v12  }
 0x128   :  { %3276 = vst.msk [vmem:[%s8719_s1 + $0x1cd] sm:$0x40] %vm3_vm0, %v1020_v12   ;;  %3277 = vst.msk [vmem:[%s8719_s1 + $0x1ec] sm:$0x80] %vm3_vm0, %v1020_v12   ;;  %v1980_v62 = vpop.permute.xlu1 %1979   ;;  %v1959_v63 = vpop.permute.xlu0 %1958  }
 0x129   :  { %3261 = vst.msk [vmem:[%s8719_s1 + $0x13] sm:$0x1] %vm3_vm0, %v999_v13   ;;  %3262 = vst.msk [vmem:[%s8719_s1 + $0x32] sm:$0x2] %vm3_vm0, %v999_v13  }
 0x12a   :  { %3263 = vst.msk [vmem:[%s8719_s1 + $0x51] sm:$0x4] %vm3_vm0, %v999_v13   ;;  %3264 = vst.msk [vmem:[%s8719_s1 + $0x70] sm:$0x8] %vm3_vm0, %v999_v13  }
 0x12b   :  { %3265 = vst.msk [vmem:[%s8719_s1 + $0x8f] sm:$0x10] %vm3_vm0, %v999_v13   ;;  %3266 = vst.msk [vmem:[%s8719_s1 + $0xae] sm:$0x20] %vm3_vm0, %v999_v13  }
 0x12c   :  { %3267 = vst.msk [vmem:[%s8719_s1 + $0xcd] sm:$0x40] %vm3_vm0, %v999_v13   ;;  %3268 = vst.msk [vmem:[%s8719_s1 + $0xec] sm:$0x80] %vm3_vm0, %v999_v13   ;;  %v2022_v0 = vpop.permute.xlu1 %2021   ;;  %v2001_v1 = vpop.permute.xlu0 %2000  }
 0x12d   :  { %3288 = vst.msk [vmem:[%s8719_s1 + $0x313] sm:$0x1] %vm3_vm0, %v1062_v14   ;;  %3289 = vst.msk [vmem:[%s8719_s1 + $0x332] sm:$0x2] %vm3_vm0, %v1062_v14  }
 0x12e   :  { %3290 = vst.msk [vmem:[%s8719_s1 + $0x351] sm:$0x4] %vm3_vm0, %v1062_v14   ;;  %3291 = vst.msk [vmem:[%s8719_s1 + $0x370] sm:$0x8] %vm3_vm0, %v1062_v14  }
 0x12f   :  { %3292 = vst.msk [vmem:[%s8719_s1 + $0x38f] sm:$0x10] %vm3_vm0, %v1062_v14   ;;  %3293 = vst.msk [vmem:[%s8719_s1 + $0x3ae] sm:$0x20] %vm3_vm0, %v1062_v14  }
 0x130   :  { %3294 = vst.msk [vmem:[%s8719_s1 + $0x3cd] sm:$0x40] %vm3_vm0, %v1062_v14   ;;  %3295 = vst.msk [vmem:[%s8719_s1 + $0x3ec] sm:$0x80] %vm3_vm0, %v1062_v14   ;;  %v2506_v2 = vpop.permute.xlu1 %2505   ;;  %v2043_v3 = vpop.permute.xlu0 %2042  }
 0x131   :  { %3279 = vst.msk [vmem:[%s8719_s1 + $0x213] sm:$0x1] %vm3_vm0, %v1041_v15   ;;  %3280 = vst.msk [vmem:[%s8719_s1 + $0x232] sm:$0x2] %vm3_vm0, %v1041_v15  }
 0x132   :  { %3281 = vst.msk [vmem:[%s8719_s1 + $0x251] sm:$0x4] %vm3_vm0, %v1041_v15   ;;  %3282 = vst.msk [vmem:[%s8719_s1 + $0x270] sm:$0x8] %vm3_vm0, %v1041_v15  }
 0x133   :  { %3283 = vst.msk [vmem:[%s8719_s1 + $0x28f] sm:$0x10] %vm3_vm0, %v1041_v15   ;;  %3284 = vst.msk [vmem:[%s8719_s1 + $0x2ae] sm:$0x20] %vm3_vm0, %v1041_v15  }
 0x134   :  { %3285 = vst.msk [vmem:[%s8719_s1 + $0x2cd] sm:$0x40] %vm3_vm0, %v1041_v15   ;;  %3286 = vst.msk [vmem:[%s8719_s1 + $0x2ec] sm:$0x80] %vm3_vm0, %v1041_v15   ;;  %v2590_v4 = vpop.permute.xlu1 %2589   ;;  %v2548_v5 = vpop.permute.xlu0 %2547  }
 0x135   :  { %3305 = vst.msk [vmem:[%s8719_s1 + $0x105] sm:$0x1] %vm3_vm0, %v1103_v16   ;;  %3306 = vst.msk [vmem:[%s8719_s1 + $0x124] sm:$0x2] %vm3_vm0, %v1103_v16  }
 0x136   :  { %3307 = vst.msk [vmem:[%s8719_s1 + $0x143] sm:$0x4] %vm3_vm0, %v1103_v16   ;;  %3308 = vst.msk [vmem:[%s8719_s1 + $0x162] sm:$0x8] %vm3_vm0, %v1103_v16  }
 0x137   :  { %3309 = vst.msk [vmem:[%s8719_s1 + $0x181] sm:$0x10] %vm3_vm0, %v1103_v16   ;;  %3310 = vst.msk [vmem:[%s8719_s1 + $0x1a0] sm:$0x20] %vm3_vm0, %v1103_v16  }
 0x138   :  { %3311 = vst.msk [vmem:[%s8719_s1 + $0x1bf] sm:$0x40] %vm3_vm0, %v1103_v16   ;;  %3312 = vst.msk [vmem:[%s8719_s1 + $0x1de] sm:$0x80] %vm3_vm0, %v1103_v16   ;;  %v2673_v6 = vpop.permute.xlu1 %2672   ;;  %v2632_v7 = vpop.permute.xlu0 %2631  }
 0x139   :  { %3296 = vst.msk [vmem:[%s8719_s1 + $0x5] sm:$0x1] %vm3_vm0, %v1082_v17   ;;  %3297 = vst.msk [vmem:[%s8719_s1 + $0x24] sm:$0x2] %vm3_vm0, %v1082_v17  }
 0x13a   :  { %3298 = vst.msk [vmem:[%s8719_s1 + $0x43] sm:$0x4] %vm3_vm0, %v1082_v17   ;;  %3299 = vst.msk [vmem:[%s8719_s1 + $0x62] sm:$0x8] %vm3_vm0, %v1082_v17  }
 0x13b   :  { %3300 = vst.msk [vmem:[%s8719_s1 + $0x81] sm:$0x10] %vm3_vm0, %v1082_v17   ;;  %3301 = vst.msk [vmem:[%s8719_s1 + $0xa0] sm:$0x20] %vm3_vm0, %v1082_v17  }
 0x13c   :  { %3302 = vst.msk [vmem:[%s8719_s1 + $0xbf] sm:$0x40] %vm3_vm0, %v1082_v17   ;;  %3303 = vst.msk [vmem:[%s8719_s1 + $0xde] sm:$0x80] %vm3_vm0, %v1082_v17   ;;  %v2757_v8 = vpop.permute.xlu1 %2756   ;;  %v2715_v9 = vpop.permute.xlu0 %2714  }
 0x13d   :  { %3323 = vst.msk [vmem:[%s8719_s1 + $0x305] sm:$0x1] %vm3_vm0, %v1145_v18   ;;  %3324 = vst.msk [vmem:[%s8719_s1 + $0x324] sm:$0x2] %vm3_vm0, %v1145_v18  }
 0x13e   :  { %3325 = vst.msk [vmem:[%s8719_s1 + $0x343] sm:$0x4] %vm3_vm0, %v1145_v18   ;;  %3326 = vst.msk [vmem:[%s8719_s1 + $0x362] sm:$0x8] %vm3_vm0, %v1145_v18  }
 0x13f   :  { %3327 = vst.msk [vmem:[%s8719_s1 + $0x381] sm:$0x10] %vm3_vm0, %v1145_v18   ;;  %3328 = vst.msk [vmem:[%s8719_s1 + $0x3a0] sm:$0x20] %vm3_vm0, %v1145_v18  }
 0x140   :  { %3329 = vst.msk [vmem:[%s8719_s1 + $0x3bf] sm:$0x40] %vm3_vm0, %v1145_v18   ;;  %3330 = vst.msk [vmem:[%s8719_s1 + $0x3de] sm:$0x80] %vm3_vm0, %v1145_v18   ;;  %v2064_v10 = vpop.permute.xlu1 %2063   ;;  %v2799_v11 = vpop.permute.xlu0 %2798  }
 0x141   :  { %3314 = vst.msk [vmem:[%s8719_s1 + $0x205] sm:$0x1] %vm3_vm0, %v1124_v19   ;;  %3315 = vst.msk [vmem:[%s8719_s1 + $0x224] sm:$0x2] %vm3_vm0, %v1124_v19  }
 0x142   :  { %3316 = vst.msk [vmem:[%s8719_s1 + $0x243] sm:$0x4] %vm3_vm0, %v1124_v19   ;;  %3317 = vst.msk [vmem:[%s8719_s1 + $0x262] sm:$0x8] %vm3_vm0, %v1124_v19  }
 0x143   :  { %3318 = vst.msk [vmem:[%s8719_s1 + $0x281] sm:$0x10] %vm3_vm0, %v1124_v19   ;;  %3319 = vst.msk [vmem:[%s8719_s1 + $0x2a0] sm:$0x20] %vm3_vm0, %v1124_v19  }
 0x144   :  { %3320 = vst.msk [vmem:[%s8719_s1 + $0x2bf] sm:$0x40] %vm3_vm0, %v1124_v19   ;;  %3321 = vst.msk [vmem:[%s8719_s1 + $0x2de] sm:$0x80] %vm3_vm0, %v1124_v19   ;;  %v2105_v12 = vpop.permute.xlu1 %2104   ;;  %v2084_v13 = vpop.permute.xlu0 %2083  }
 0x145   :  { %3341 = vst.msk [vmem:[%s8719_s1 + $0x114] sm:$0x1] %vm3_vm0, %v1187_v20   ;;  %3342 = vst.msk [vmem:[%s8719_s1 + $0x133] sm:$0x2] %vm3_vm0, %v1187_v20  }
 0x146   :  { %3343 = vst.msk [vmem:[%s8719_s1 + $0x152] sm:$0x4] %vm3_vm0, %v1187_v20   ;;  %3344 = vst.msk [vmem:[%s8719_s1 + $0x171] sm:$0x8] %vm3_vm0, %v1187_v20  }
 0x147   :  { %3345 = vst.msk [vmem:[%s8719_s1 + $0x190] sm:$0x10] %vm3_vm0, %v1187_v20   ;;  %3346 = vst.msk [vmem:[%s8719_s1 + $0x1af] sm:$0x20] %vm3_vm0, %v1187_v20  }
 0x148   :  { %3347 = vst.msk [vmem:[%s8719_s1 + $0x1ce] sm:$0x40] %vm3_vm0, %v1187_v20   ;;  %3348 = vst.msk [vmem:[%s8719_s1 + $0x1ed] sm:$0x80] %vm3_vm0, %v1187_v20   ;;  %v2147_v14 = vpop.permute.xlu1 %2146   ;;  %v2126_v15 = vpop.permute.xlu0 %2125  }
 0x149   :  { %3332 = vst.msk [vmem:[%s8719_s1 + $0x14] sm:$0x1] %vm3_vm0, %v1166_v21   ;;  %3333 = vst.msk [vmem:[%s8719_s1 + $0x33] sm:$0x2] %vm3_vm0, %v1166_v21  }
 0x14a   :  { %3334 = vst.msk [vmem:[%s8719_s1 + $0x52] sm:$0x4] %vm3_vm0, %v1166_v21   ;;  %3335 = vst.msk [vmem:[%s8719_s1 + $0x71] sm:$0x8] %vm3_vm0, %v1166_v21  }
 0x14b   :  { %3336 = vst.msk [vmem:[%s8719_s1 + $0x90] sm:$0x10] %vm3_vm0, %v1166_v21   ;;  %3337 = vst.msk [vmem:[%s8719_s1 + $0xaf] sm:$0x20] %vm3_vm0, %v1166_v21  }
 0x14c   :  { %3338 = vst.msk [vmem:[%s8719_s1 + $0xce] sm:$0x40] %vm3_vm0, %v1166_v21   ;;  %3339 = vst.msk [vmem:[%s8719_s1 + $0xed] sm:$0x80] %vm3_vm0, %v1166_v21   ;;  %v2189_v16 = vpop.permute.xlu1 %2188   ;;  %v2168_v17 = vpop.permute.xlu0 %2167  }
 0x14d   :  { %3359 = vst.msk [vmem:[%s8719_s1 + $0x314] sm:$0x1] %vm3_vm0, %v1229_v22   ;;  %3360 = vst.msk [vmem:[%s8719_s1 + $0x333] sm:$0x2] %vm3_vm0, %v1229_v22  }
 0x14e   :  { %3361 = vst.msk [vmem:[%s8719_s1 + $0x352] sm:$0x4] %vm3_vm0, %v1229_v22   ;;  %3362 = vst.msk [vmem:[%s8719_s1 + $0x371] sm:$0x8] %vm3_vm0, %v1229_v22  }
 0x14f   :  { %3363 = vst.msk [vmem:[%s8719_s1 + $0x390] sm:$0x10] %vm3_vm0, %v1229_v22   ;;  %3364 = vst.msk [vmem:[%s8719_s1 + $0x3af] sm:$0x20] %vm3_vm0, %v1229_v22  }
 0x150   :  { %3365 = vst.msk [vmem:[%s8719_s1 + $0x3ce] sm:$0x40] %vm3_vm0, %v1229_v22   ;;  %3366 = vst.msk [vmem:[%s8719_s1 + $0x3ed] sm:$0x80] %vm3_vm0, %v1229_v22   ;;  %v2231_v18 = vpop.permute.xlu1 %2230   ;;  %v2210_v19 = vpop.permute.xlu0 %2209  }
 0x151   :  { %3350 = vst.msk [vmem:[%s8719_s1 + $0x214] sm:$0x1] %vm3_vm0, %v1208_v23   ;;  %3351 = vst.msk [vmem:[%s8719_s1 + $0x233] sm:$0x2] %vm3_vm0, %v1208_v23  }
 0x152   :  { %3352 = vst.msk [vmem:[%s8719_s1 + $0x252] sm:$0x4] %vm3_vm0, %v1208_v23   ;;  %3353 = vst.msk [vmem:[%s8719_s1 + $0x271] sm:$0x8] %vm3_vm0, %v1208_v23  }
 0x153   :  { %3354 = vst.msk [vmem:[%s8719_s1 + $0x290] sm:$0x10] %vm3_vm0, %v1208_v23   ;;  %3355 = vst.msk [vmem:[%s8719_s1 + $0x2af] sm:$0x20] %vm3_vm0, %v1208_v23  }
 0x154   :  { %3356 = vst.msk [vmem:[%s8719_s1 + $0x2ce] sm:$0x40] %vm3_vm0, %v1208_v23   ;;  %3357 = vst.msk [vmem:[%s8719_s1 + $0x2ed] sm:$0x80] %vm3_vm0, %v1208_v23   ;;  %v2272_v20 = vpop.permute.xlu1 %2271   ;;  %v2251_v21 = vpop.permute.xlu0 %2250  }
 0x155   :  { %3376 = vst.msk [vmem:[%s8719_s1 + $0x106] sm:$0x1] %vm3_vm0, %v1270_v24   ;;  %3377 = vst.msk [vmem:[%s8719_s1 + $0x125] sm:$0x2] %vm3_vm0, %v1270_v24  }
 0x156   :  { %3378 = vst.msk [vmem:[%s8719_s1 + $0x144] sm:$0x4] %vm3_vm0, %v1270_v24   ;;  %3379 = vst.msk [vmem:[%s8719_s1 + $0x163] sm:$0x8] %vm3_vm0, %v1270_v24  }
 0x157   :  { %3380 = vst.msk [vmem:[%s8719_s1 + $0x182] sm:$0x10] %vm3_vm0, %v1270_v24   ;;  %3381 = vst.msk [vmem:[%s8719_s1 + $0x1a1] sm:$0x20] %vm3_vm0, %v1270_v24  }
 0x158   :  { %3382 = vst.msk [vmem:[%s8719_s1 + $0x1c0] sm:$0x40] %vm3_vm0, %v1270_v24   ;;  %3383 = vst.msk [vmem:[%s8719_s1 + $0x1df] sm:$0x80] %vm3_vm0, %v1270_v24   ;;  %v2314_v22 = vpop.permute.xlu1 %2313   ;;  %v2293_v23 = vpop.permute.xlu0 %2292  }
 0x159   :  { %3367 = vst.msk [vmem:[%s8719_s1 + $0x6] sm:$0x1] %vm3_vm0, %v1249_v25   ;;  %3368 = vst.msk [vmem:[%s8719_s1 + $0x25] sm:$0x2] %vm3_vm0, %v1249_v25  }
 0x15a   :  { %3369 = vst.msk [vmem:[%s8719_s1 + $0x44] sm:$0x4] %vm3_vm0, %v1249_v25   ;;  %3370 = vst.msk [vmem:[%s8719_s1 + $0x63] sm:$0x8] %vm3_vm0, %v1249_v25  }
 0x15b   :  { %3371 = vst.msk [vmem:[%s8719_s1 + $0x82] sm:$0x10] %vm3_vm0, %v1249_v25   ;;  %3372 = vst.msk [vmem:[%s8719_s1 + $0xa1] sm:$0x20] %vm3_vm0, %v1249_v25  }
 0x15c   :  { %3373 = vst.msk [vmem:[%s8719_s1 + $0xc0] sm:$0x40] %vm3_vm0, %v1249_v25   ;;  %3374 = vst.msk [vmem:[%s8719_s1 + $0xdf] sm:$0x80] %vm3_vm0, %v1249_v25   ;;  %v2356_v24 = vpop.permute.xlu1 %2355   ;;  %v2335_v25 = vpop.permute.xlu0 %2334  }
 0x15d   :  { %3394 = vst.msk [vmem:[%s8719_s1 + $0x306] sm:$0x1] %vm3_vm0, %v1312_v26   ;;  %3395 = vst.msk [vmem:[%s8719_s1 + $0x325] sm:$0x2] %vm3_vm0, %v1312_v26  }
 0x15e   :  { %3396 = vst.msk [vmem:[%s8719_s1 + $0x344] sm:$0x4] %vm3_vm0, %v1312_v26   ;;  %3397 = vst.msk [vmem:[%s8719_s1 + $0x363] sm:$0x8] %vm3_vm0, %v1312_v26  }
 0x15f   :  { %3398 = vst.msk [vmem:[%s8719_s1 + $0x382] sm:$0x10] %vm3_vm0, %v1312_v26   ;;  %3399 = vst.msk [vmem:[%s8719_s1 + $0x3a1] sm:$0x20] %vm3_vm0, %v1312_v26  }
 0x160   :  { %3400 = vst.msk [vmem:[%s8719_s1 + $0x3c0] sm:$0x40] %vm3_vm0, %v1312_v26   ;;  %3401 = vst.msk [vmem:[%s8719_s1 + $0x3df] sm:$0x80] %vm3_vm0, %v1312_v26   ;;  %v2398_v26 = vpop.permute.xlu1 %2397  }
 0x161   :  { %3385 = vst.msk [vmem:[%s8719_s1 + $0x206] sm:$0x1] %vm3_vm0, %v1291_v27   ;;  %3386 = vst.msk [vmem:[%s8719_s1 + $0x225] sm:$0x2] %vm3_vm0, %v1291_v27  }
 0x162   :  { %3387 = vst.msk [vmem:[%s8719_s1 + $0x244] sm:$0x4] %vm3_vm0, %v1291_v27   ;;  %3388 = vst.msk [vmem:[%s8719_s1 + $0x263] sm:$0x8] %vm3_vm0, %v1291_v27  }
 0x163   :  { %3389 = vst.msk [vmem:[%s8719_s1 + $0x282] sm:$0x10] %vm3_vm0, %v1291_v27   ;;  %3390 = vst.msk [vmem:[%s8719_s1 + $0x2a1] sm:$0x20] %vm3_vm0, %v1291_v27  }
 0x164   :  { %3391 = vst.msk [vmem:[%s8719_s1 + $0x2c0] sm:$0x40] %vm3_vm0, %v1291_v27   ;;  %3392 = vst.msk [vmem:[%s8719_s1 + $0x2df] sm:$0x80] %vm3_vm0, %v1291_v27   ;;  %v2377_v27 = vpop.permute.xlu0 %2376  }
 0x165   :  { %4 = vst.msk [vmem:[%s8719_s1] sm:$0x1] %vm3_vm0, %v2_v28   ;;  %2834 = vst.msk [vmem:[%s8719_s1 + $0x1f] sm:$0x2] %vm3_vm0, %v2_v28  }
 0x166   :  { %2835 = vst.msk [vmem:[%s8719_s1 + $0x3e] sm:$0x4] %vm3_vm0, %v2_v28   ;;  %2836 = vst.msk [vmem:[%s8719_s1 + $0x5d] sm:$0x8] %vm3_vm0, %v2_v28  }
 0x167   :  { %2837 = vst.msk [vmem:[%s8719_s1 + $0x7c] sm:$0x10] %vm3_vm0, %v2_v28   ;;  %2838 = vst.msk [vmem:[%s8719_s1 + $0x9b] sm:$0x20] %vm3_vm0, %v2_v28  }
 0x168   :  { %2839 = vst.msk [vmem:[%s8719_s1 + $0xba] sm:$0x40] %vm3_vm0, %v2_v28   ;;  %2840 = vst.msk [vmem:[%s8719_s1 + $0xd9] sm:$0x80] %vm3_vm0, %v2_v28   ;;  %v2439_v28 = vpop.permute.xlu1 %2438  }
 0x169   :  { %2842 = vst.msk [vmem:[%s8719_s1 + $0x100] sm:$0x1] %vm3_vm0, %v2841_v29   ;;  %2843 = vst.msk [vmem:[%s8719_s1 + $0x11f] sm:$0x2] %vm3_vm0, %v2841_v29  }
 0x16a   :  { %2844 = vst.msk [vmem:[%s8719_s1 + $0x13e] sm:$0x4] %vm3_vm0, %v2841_v29   ;;  %2845 = vst.msk [vmem:[%s8719_s1 + $0x15d] sm:$0x8] %vm3_vm0, %v2841_v29  }
 0x16b   :  { %2846 = vst.msk [vmem:[%s8719_s1 + $0x17c] sm:$0x10] %vm3_vm0, %v2841_v29   ;;  %2847 = vst.msk [vmem:[%s8719_s1 + $0x19b] sm:$0x20] %vm3_vm0, %v2841_v29  }
 0x16c   :  { %2848 = vst.msk [vmem:[%s8719_s1 + $0x1ba] sm:$0x40] %vm3_vm0, %v2841_v29   ;;  %2849 = vst.msk [vmem:[%s8719_s1 + $0x1d9] sm:$0x80] %vm3_vm0, %v2841_v29   ;;  %v2418_v29 = vpop.permute.xlu0 %2417  }
 0x16d   :  { %2851 = vst.msk [vmem:[%s8719_s1 + $0x200] sm:$0x1] %vm3_vm0, %v2850_v30   ;;  %2852 = vst.msk [vmem:[%s8719_s1 + $0x21f] sm:$0x2] %vm3_vm0, %v2850_v30  }
 0x16e   :  { %2853 = vst.msk [vmem:[%s8719_s1 + $0x23e] sm:$0x4] %vm3_vm0, %v2850_v30   ;;  %2854 = vst.msk [vmem:[%s8719_s1 + $0x25d] sm:$0x8] %vm3_vm0, %v2850_v30  }
 0x16f   :  { %2855 = vst.msk [vmem:[%s8719_s1 + $0x27c] sm:$0x10] %vm3_vm0, %v2850_v30   ;;  %2856 = vst.msk [vmem:[%s8719_s1 + $0x29b] sm:$0x20] %vm3_vm0, %v2850_v30  }
 0x170   :  { %2857 = vst.msk [vmem:[%s8719_s1 + $0x2ba] sm:$0x40] %vm3_vm0, %v2850_v30   ;;  %2858 = vst.msk [vmem:[%s8719_s1 + $0x2d9] sm:$0x80] %vm3_vm0, %v2850_v30   ;;  %v2481_v30 = vpop.permute.xlu1 %2480  }
 0x171   :  { %2860 = vst.msk [vmem:[%s8719_s1 + $0x300] sm:$0x1] %vm3_vm0, %v2859_v31   ;;  %2861 = vst.msk [vmem:[%s8719_s1 + $0x31f] sm:$0x2] %vm3_vm0, %v2859_v31  }
 0x172   :  { %2862 = vst.msk [vmem:[%s8719_s1 + $0x33e] sm:$0x4] %vm3_vm0, %v2859_v31   ;;  %2863 = vst.msk [vmem:[%s8719_s1 + $0x35d] sm:$0x8] %vm3_vm0, %v2859_v31  }
 0x173   :  { %2864 = vst.msk [vmem:[%s8719_s1 + $0x37c] sm:$0x10] %vm3_vm0, %v2859_v31   ;;  %2865 = vst.msk [vmem:[%s8719_s1 + $0x39b] sm:$0x20] %vm3_vm0, %v2859_v31  }
 0x174   :  { %2866 = vst.msk [vmem:[%s8719_s1 + $0x3ba] sm:$0x40] %vm3_vm0, %v2859_v31   ;;  %2867 = vst.msk [vmem:[%s8719_s1 + $0x3d9] sm:$0x80] %vm3_vm0, %v2859_v31   ;;  %v2460_v31 = vpop.permute.xlu0 %2459  }
 0x175   :  { %3412 = vst.msk [vmem:[%s8719_s1 + $0x115] sm:$0x1] %vm3_vm0, %v1354_v32   ;;  %3413 = vst.msk [vmem:[%s8719_s1 + $0x134] sm:$0x2] %vm3_vm0, %v1354_v32  }
 0x176   :  { %3414 = vst.msk [vmem:[%s8719_s1 + $0x153] sm:$0x4] %vm3_vm0, %v1354_v32   ;;  %3415 = vst.msk [vmem:[%s8719_s1 + $0x172] sm:$0x8] %vm3_vm0, %v1354_v32  }
 0x177   :  { %3416 = vst.msk [vmem:[%s8719_s1 + $0x191] sm:$0x10] %vm3_vm0, %v1354_v32   ;;  %3417 = vst.msk [vmem:[%s8719_s1 + $0x1b0] sm:$0x20] %vm3_vm0, %v1354_v32  }
 0x178   :  { %3418 = vst.msk [vmem:[%s8719_s1 + $0x1cf] sm:$0x40] %vm3_vm0, %v1354_v32   ;;  %3419 = vst.msk [vmem:[%s8719_s1 + $0x1ee] sm:$0x80] %vm3_vm0, %v1354_v32  }
 0x179   :  { %3403 = vst.msk [vmem:[%s8719_s1 + $0x15] sm:$0x1] %vm3_vm0, %v1333_v33   ;;  %3404 = vst.msk [vmem:[%s8719_s1 + $0x34] sm:$0x2] %vm3_vm0, %v1333_v33  }
 0x17a   :  { %3405 = vst.msk [vmem:[%s8719_s1 + $0x53] sm:$0x4] %vm3_vm0, %v1333_v33   ;;  %3406 = vst.msk [vmem:[%s8719_s1 + $0x72] sm:$0x8] %vm3_vm0, %v1333_v33  }
 0x17b   :  { %3407 = vst.msk [vmem:[%s8719_s1 + $0x91] sm:$0x10] %vm3_vm0, %v1333_v33   ;;  %3408 = vst.msk [vmem:[%s8719_s1 + $0xb0] sm:$0x20] %vm3_vm0, %v1333_v33  }
 0x17c   :  { %3409 = vst.msk [vmem:[%s8719_s1 + $0xcf] sm:$0x40] %vm3_vm0, %v1333_v33   ;;  %3410 = vst.msk [vmem:[%s8719_s1 + $0xee] sm:$0x80] %vm3_vm0, %v1333_v33  }
 0x17d   :  { %3430 = vst.msk [vmem:[%s8719_s1 + $0x315] sm:$0x1] %vm3_vm0, %v1396_v34   ;;  %3431 = vst.msk [vmem:[%s8719_s1 + $0x334] sm:$0x2] %vm3_vm0, %v1396_v34  }
 0x17e   :  { %3432 = vst.msk [vmem:[%s8719_s1 + $0x353] sm:$0x4] %vm3_vm0, %v1396_v34   ;;  %3433 = vst.msk [vmem:[%s8719_s1 + $0x372] sm:$0x8] %vm3_vm0, %v1396_v34  }
 0x17f   :  { %3434 = vst.msk [vmem:[%s8719_s1 + $0x391] sm:$0x10] %vm3_vm0, %v1396_v34   ;;  %3435 = vst.msk [vmem:[%s8719_s1 + $0x3b0] sm:$0x20] %vm3_vm0, %v1396_v34  }
 0x180   :  { %3436 = vst.msk [vmem:[%s8719_s1 + $0x3cf] sm:$0x40] %vm3_vm0, %v1396_v34   ;;  %3437 = vst.msk [vmem:[%s8719_s1 + $0x3ee] sm:$0x80] %vm3_vm0, %v1396_v34  }
 0x181   :  { %3421 = vst.msk [vmem:[%s8719_s1 + $0x215] sm:$0x1] %vm3_vm0, %v1375_v35   ;;  %3422 = vst.msk [vmem:[%s8719_s1 + $0x234] sm:$0x2] %vm3_vm0, %v1375_v35  }
 0x182   :  { %3423 = vst.msk [vmem:[%s8719_s1 + $0x253] sm:$0x4] %vm3_vm0, %v1375_v35   ;;  %3424 = vst.msk [vmem:[%s8719_s1 + $0x272] sm:$0x8] %vm3_vm0, %v1375_v35  }
 0x183   :  { %3425 = vst.msk [vmem:[%s8719_s1 + $0x291] sm:$0x10] %vm3_vm0, %v1375_v35   ;;  %3426 = vst.msk [vmem:[%s8719_s1 + $0x2b0] sm:$0x20] %vm3_vm0, %v1375_v35  }
 0x184   :  { %3427 = vst.msk [vmem:[%s8719_s1 + $0x2cf] sm:$0x40] %vm3_vm0, %v1375_v35   ;;  %3428 = vst.msk [vmem:[%s8719_s1 + $0x2ee] sm:$0x80] %vm3_vm0, %v1375_v35  }
 0x185   :  { %3447 = vst.msk [vmem:[%s8719_s1 + $0x107] sm:$0x1] %vm3_vm0, %v1437_v36   ;;  %3448 = vst.msk [vmem:[%s8719_s1 + $0x126] sm:$0x2] %vm3_vm0, %v1437_v36  }
 0x186   :  { %3449 = vst.msk [vmem:[%s8719_s1 + $0x145] sm:$0x4] %vm3_vm0, %v1437_v36   ;;  %3450 = vst.msk [vmem:[%s8719_s1 + $0x164] sm:$0x8] %vm3_vm0, %v1437_v36  }
 0x187   :  { %3451 = vst.msk [vmem:[%s8719_s1 + $0x183] sm:$0x10] %vm3_vm0, %v1437_v36   ;;  %3452 = vst.msk [vmem:[%s8719_s1 + $0x1a2] sm:$0x20] %vm3_vm0, %v1437_v36  }
 0x188   :  { %3453 = vst.msk [vmem:[%s8719_s1 + $0x1c1] sm:$0x40] %vm3_vm0, %v1437_v36   ;;  %3454 = vst.msk [vmem:[%s8719_s1 + $0x1e0] sm:$0x80] %vm3_vm0, %v1437_v36  }
 0x189   :  { %3438 = vst.msk [vmem:[%s8719_s1 + $0x7] sm:$0x1] %vm3_vm0, %v1416_v37   ;;  %3439 = vst.msk [vmem:[%s8719_s1 + $0x26] sm:$0x2] %vm3_vm0, %v1416_v37  }
 0x18a   :  { %3440 = vst.msk [vmem:[%s8719_s1 + $0x45] sm:$0x4] %vm3_vm0, %v1416_v37   ;;  %3441 = vst.msk [vmem:[%s8719_s1 + $0x64] sm:$0x8] %vm3_vm0, %v1416_v37  }
 0x18b   :  { %3442 = vst.msk [vmem:[%s8719_s1 + $0x83] sm:$0x10] %vm3_vm0, %v1416_v37   ;;  %3443 = vst.msk [vmem:[%s8719_s1 + $0xa2] sm:$0x20] %vm3_vm0, %v1416_v37  }
 0x18c   :  { %3444 = vst.msk [vmem:[%s8719_s1 + $0xc1] sm:$0x40] %vm3_vm0, %v1416_v37   ;;  %3445 = vst.msk [vmem:[%s8719_s1 + $0xe0] sm:$0x80] %vm3_vm0, %v1416_v37  }
 0x18d   :  { %3465 = vst.msk [vmem:[%s8719_s1 + $0x307] sm:$0x1] %vm3_vm0, %v1479_v38   ;;  %3466 = vst.msk [vmem:[%s8719_s1 + $0x326] sm:$0x2] %vm3_vm0, %v1479_v38  }
 0x18e   :  { %3467 = vst.msk [vmem:[%s8719_s1 + $0x345] sm:$0x4] %vm3_vm0, %v1479_v38   ;;  %3468 = vst.msk [vmem:[%s8719_s1 + $0x364] sm:$0x8] %vm3_vm0, %v1479_v38  }
 0x18f   :  { %3469 = vst.msk [vmem:[%s8719_s1 + $0x383] sm:$0x10] %vm3_vm0, %v1479_v38   ;;  %3470 = vst.msk [vmem:[%s8719_s1 + $0x3a2] sm:$0x20] %vm3_vm0, %v1479_v38  }
 0x190   :  { %3471 = vst.msk [vmem:[%s8719_s1 + $0x3c1] sm:$0x40] %vm3_vm0, %v1479_v38   ;;  %3472 = vst.msk [vmem:[%s8719_s1 + $0x3e0] sm:$0x80] %vm3_vm0, %v1479_v38  }
 0x191   :  { %3456 = vst.msk [vmem:[%s8719_s1 + $0x207] sm:$0x1] %vm3_vm0, %v1458_v39   ;;  %3457 = vst.msk [vmem:[%s8719_s1 + $0x226] sm:$0x2] %vm3_vm0, %v1458_v39  }
 0x192   :  { %3458 = vst.msk [vmem:[%s8719_s1 + $0x245] sm:$0x4] %vm3_vm0, %v1458_v39   ;;  %3459 = vst.msk [vmem:[%s8719_s1 + $0x264] sm:$0x8] %vm3_vm0, %v1458_v39  }
 0x193   :  { %3460 = vst.msk [vmem:[%s8719_s1 + $0x283] sm:$0x10] %vm3_vm0, %v1458_v39   ;;  %3461 = vst.msk [vmem:[%s8719_s1 + $0x2a2] sm:$0x20] %vm3_vm0, %v1458_v39  }
 0x194   :  { %3462 = vst.msk [vmem:[%s8719_s1 + $0x2c1] sm:$0x40] %vm3_vm0, %v1458_v39   ;;  %3463 = vst.msk [vmem:[%s8719_s1 + $0x2e0] sm:$0x80] %vm3_vm0, %v1458_v39  }
 0x195   :  { %3483 = vst.msk [vmem:[%s8719_s1 + $0x116] sm:$0x1] %vm3_vm0, %v1521_v40   ;;  %3484 = vst.msk [vmem:[%s8719_s1 + $0x135] sm:$0x2] %vm3_vm0, %v1521_v40  }
 0x196   :  { %3485 = vst.msk [vmem:[%s8719_s1 + $0x154] sm:$0x4] %vm3_vm0, %v1521_v40   ;;  %3486 = vst.msk [vmem:[%s8719_s1 + $0x173] sm:$0x8] %vm3_vm0, %v1521_v40  }
 0x197   :  { %3487 = vst.msk [vmem:[%s8719_s1 + $0x192] sm:$0x10] %vm3_vm0, %v1521_v40   ;;  %3488 = vst.msk [vmem:[%s8719_s1 + $0x1b1] sm:$0x20] %vm3_vm0, %v1521_v40  }
 0x198   :  { %3489 = vst.msk [vmem:[%s8719_s1 + $0x1d0] sm:$0x40] %vm3_vm0, %v1521_v40   ;;  %3490 = vst.msk [vmem:[%s8719_s1 + $0x1ef] sm:$0x80] %vm3_vm0, %v1521_v40  }
 0x199   :  { %3474 = vst.msk [vmem:[%s8719_s1 + $0x16] sm:$0x1] %vm3_vm0, %v1500_v41   ;;  %3475 = vst.msk [vmem:[%s8719_s1 + $0x35] sm:$0x2] %vm3_vm0, %v1500_v41  }
 0x19a   :  { %3476 = vst.msk [vmem:[%s8719_s1 + $0x54] sm:$0x4] %vm3_vm0, %v1500_v41   ;;  %3477 = vst.msk [vmem:[%s8719_s1 + $0x73] sm:$0x8] %vm3_vm0, %v1500_v41  }
 0x19b   :  { %3478 = vst.msk [vmem:[%s8719_s1 + $0x92] sm:$0x10] %vm3_vm0, %v1500_v41   ;;  %3479 = vst.msk [vmem:[%s8719_s1 + $0xb1] sm:$0x20] %vm3_vm0, %v1500_v41  }
 0x19c   :  { %3480 = vst.msk [vmem:[%s8719_s1 + $0xd0] sm:$0x40] %vm3_vm0, %v1500_v41   ;;  %3481 = vst.msk [vmem:[%s8719_s1 + $0xef] sm:$0x80] %vm3_vm0, %v1500_v41  }
 0x19d   :  { %3501 = vst.msk [vmem:[%s8719_s1 + $0x316] sm:$0x1] %vm3_vm0, %v1563_v42   ;;  %3502 = vst.msk [vmem:[%s8719_s1 + $0x335] sm:$0x2] %vm3_vm0, %v1563_v42  }
 0x19e   :  { %3503 = vst.msk [vmem:[%s8719_s1 + $0x354] sm:$0x4] %vm3_vm0, %v1563_v42   ;;  %3504 = vst.msk [vmem:[%s8719_s1 + $0x373] sm:$0x8] %vm3_vm0, %v1563_v42  }
 0x19f   :  { %3505 = vst.msk [vmem:[%s8719_s1 + $0x392] sm:$0x10] %vm3_vm0, %v1563_v42   ;;  %3506 = vst.msk [vmem:[%s8719_s1 + $0x3b1] sm:$0x20] %vm3_vm0, %v1563_v42  }
 0x1a0   :  { %3507 = vst.msk [vmem:[%s8719_s1 + $0x3d0] sm:$0x40] %vm3_vm0, %v1563_v42   ;;  %3508 = vst.msk [vmem:[%s8719_s1 + $0x3ef] sm:$0x80] %vm3_vm0, %v1563_v42  }
 0x1a1   :  { %3492 = vst.msk [vmem:[%s8719_s1 + $0x216] sm:$0x1] %vm3_vm0, %v1542_v43   ;;  %3493 = vst.msk [vmem:[%s8719_s1 + $0x235] sm:$0x2] %vm3_vm0, %v1542_v43  }
 0x1a2   :  { %3494 = vst.msk [vmem:[%s8719_s1 + $0x254] sm:$0x4] %vm3_vm0, %v1542_v43   ;;  %3495 = vst.msk [vmem:[%s8719_s1 + $0x273] sm:$0x8] %vm3_vm0, %v1542_v43  }
 0x1a3   :  { %3496 = vst.msk [vmem:[%s8719_s1 + $0x292] sm:$0x10] %vm3_vm0, %v1542_v43   ;;  %3497 = vst.msk [vmem:[%s8719_s1 + $0x2b1] sm:$0x20] %vm3_vm0, %v1542_v43  }
 0x1a4   :  { %3498 = vst.msk [vmem:[%s8719_s1 + $0x2d0] sm:$0x40] %vm3_vm0, %v1542_v43   ;;  %3499 = vst.msk [vmem:[%s8719_s1 + $0x2ef] sm:$0x80] %vm3_vm0, %v1542_v43  }
 0x1a5   :  { %3518 = vst.msk [vmem:[%s8719_s1 + $0x108] sm:$0x1] %vm3_vm0, %v1604_v44   ;;  %3519 = vst.msk [vmem:[%s8719_s1 + $0x127] sm:$0x2] %vm3_vm0, %v1604_v44  }
 0x1a6   :  { %3520 = vst.msk [vmem:[%s8719_s1 + $0x146] sm:$0x4] %vm3_vm0, %v1604_v44   ;;  %3521 = vst.msk [vmem:[%s8719_s1 + $0x165] sm:$0x8] %vm3_vm0, %v1604_v44  }
 0x1a7   :  { %3522 = vst.msk [vmem:[%s8719_s1 + $0x184] sm:$0x10] %vm3_vm0, %v1604_v44   ;;  %3523 = vst.msk [vmem:[%s8719_s1 + $0x1a3] sm:$0x20] %vm3_vm0, %v1604_v44  }
 0x1a8   :  { %3524 = vst.msk [vmem:[%s8719_s1 + $0x1c2] sm:$0x40] %vm3_vm0, %v1604_v44   ;;  %3525 = vst.msk [vmem:[%s8719_s1 + $0x1e1] sm:$0x80] %vm3_vm0, %v1604_v44  }
 0x1a9   :  { %3509 = vst.msk [vmem:[%s8719_s1 + $0x8] sm:$0x1] %vm3_vm0, %v1583_v45   ;;  %3510 = vst.msk [vmem:[%s8719_s1 + $0x27] sm:$0x2] %vm3_vm0, %v1583_v45  }
 0x1aa   :  { %3511 = vst.msk [vmem:[%s8719_s1 + $0x46] sm:$0x4] %vm3_vm0, %v1583_v45   ;;  %3512 = vst.msk [vmem:[%s8719_s1 + $0x65] sm:$0x8] %vm3_vm0, %v1583_v45  }
 0x1ab   :  { %3513 = vst.msk [vmem:[%s8719_s1 + $0x84] sm:$0x10] %vm3_vm0, %v1583_v45   ;;  %3514 = vst.msk [vmem:[%s8719_s1 + $0xa3] sm:$0x20] %vm3_vm0, %v1583_v45  }
 0x1ac   :  { %3515 = vst.msk [vmem:[%s8719_s1 + $0xc2] sm:$0x40] %vm3_vm0, %v1583_v45   ;;  %3516 = vst.msk [vmem:[%s8719_s1 + $0xe1] sm:$0x80] %vm3_vm0, %v1583_v45  }
 0x1ad   :  { %3536 = vst.msk [vmem:[%s8719_s1 + $0x308] sm:$0x1] %vm3_vm0, %v1646_v46   ;;  %3537 = vst.msk [vmem:[%s8719_s1 + $0x327] sm:$0x2] %vm3_vm0, %v1646_v46  }
 0x1ae   :  { %3538 = vst.msk [vmem:[%s8719_s1 + $0x346] sm:$0x4] %vm3_vm0, %v1646_v46   ;;  %3539 = vst.msk [vmem:[%s8719_s1 + $0x365] sm:$0x8] %vm3_vm0, %v1646_v46  }
 0x1af   :  { %3540 = vst.msk [vmem:[%s8719_s1 + $0x384] sm:$0x10] %vm3_vm0, %v1646_v46   ;;  %3541 = vst.msk [vmem:[%s8719_s1 + $0x3a3] sm:$0x20] %vm3_vm0, %v1646_v46  }
 0x1b0   :  { %3542 = vst.msk [vmem:[%s8719_s1 + $0x3c2] sm:$0x40] %vm3_vm0, %v1646_v46   ;;  %3543 = vst.msk [vmem:[%s8719_s1 + $0x3e1] sm:$0x80] %vm3_vm0, %v1646_v46  }
 0x1b1   :  { %3527 = vst.msk [vmem:[%s8719_s1 + $0x208] sm:$0x1] %vm3_vm0, %v1625_v47   ;;  %3528 = vst.msk [vmem:[%s8719_s1 + $0x227] sm:$0x2] %vm3_vm0, %v1625_v47  }
 0x1b2   :  { %3529 = vst.msk [vmem:[%s8719_s1 + $0x246] sm:$0x4] %vm3_vm0, %v1625_v47   ;;  %3530 = vst.msk [vmem:[%s8719_s1 + $0x265] sm:$0x8] %vm3_vm0, %v1625_v47  }
 0x1b3   :  { %3531 = vst.msk [vmem:[%s8719_s1 + $0x284] sm:$0x10] %vm3_vm0, %v1625_v47   ;;  %3532 = vst.msk [vmem:[%s8719_s1 + $0x2a3] sm:$0x20] %vm3_vm0, %v1625_v47  }
 0x1b4   :  { %3533 = vst.msk [vmem:[%s8719_s1 + $0x2c2] sm:$0x40] %vm3_vm0, %v1625_v47   ;;  %3534 = vst.msk [vmem:[%s8719_s1 + $0x2e1] sm:$0x80] %vm3_vm0, %v1625_v47  }
 0x1b5   :  { %3554 = vst.msk [vmem:[%s8719_s1 + $0x117] sm:$0x1] %vm3_vm0, %v1688_v48   ;;  %3555 = vst.msk [vmem:[%s8719_s1 + $0x136] sm:$0x2] %vm3_vm0, %v1688_v48  }
 0x1b6   :  { %3556 = vst.msk [vmem:[%s8719_s1 + $0x155] sm:$0x4] %vm3_vm0, %v1688_v48   ;;  %3557 = vst.msk [vmem:[%s8719_s1 + $0x174] sm:$0x8] %vm3_vm0, %v1688_v48  }
 0x1b7   :  { %3558 = vst.msk [vmem:[%s8719_s1 + $0x193] sm:$0x10] %vm3_vm0, %v1688_v48   ;;  %3559 = vst.msk [vmem:[%s8719_s1 + $0x1b2] sm:$0x20] %vm3_vm0, %v1688_v48  }
 0x1b8   :  { %3560 = vst.msk [vmem:[%s8719_s1 + $0x1d1] sm:$0x40] %vm3_vm0, %v1688_v48   ;;  %3561 = vst.msk [vmem:[%s8719_s1 + $0x1f0] sm:$0x80] %vm3_vm0, %v1688_v48  }
 0x1b9   :  { %3545 = vst.msk [vmem:[%s8719_s1 + $0x17] sm:$0x1] %vm3_vm0, %v1667_v49   ;;  %3546 = vst.msk [vmem:[%s8719_s1 + $0x36] sm:$0x2] %vm3_vm0, %v1667_v49  }
 0x1ba   :  { %3547 = vst.msk [vmem:[%s8719_s1 + $0x55] sm:$0x4] %vm3_vm0, %v1667_v49   ;;  %3548 = vst.msk [vmem:[%s8719_s1 + $0x74] sm:$0x8] %vm3_vm0, %v1667_v49  }
 0x1bb   :  { %3549 = vst.msk [vmem:[%s8719_s1 + $0x93] sm:$0x10] %vm3_vm0, %v1667_v49   ;;  %3550 = vst.msk [vmem:[%s8719_s1 + $0xb2] sm:$0x20] %vm3_vm0, %v1667_v49  }
 0x1bc   :  { %3551 = vst.msk [vmem:[%s8719_s1 + $0xd1] sm:$0x40] %vm3_vm0, %v1667_v49   ;;  %3552 = vst.msk [vmem:[%s8719_s1 + $0xf0] sm:$0x80] %vm3_vm0, %v1667_v49  }
 0x1bd   :  { %3572 = vst.msk [vmem:[%s8719_s1 + $0x317] sm:$0x1] %vm3_vm0, %v1730_v50   ;;  %3573 = vst.msk [vmem:[%s8719_s1 + $0x336] sm:$0x2] %vm3_vm0, %v1730_v50  }
 0x1be   :  { %3574 = vst.msk [vmem:[%s8719_s1 + $0x355] sm:$0x4] %vm3_vm0, %v1730_v50   ;;  %3575 = vst.msk [vmem:[%s8719_s1 + $0x374] sm:$0x8] %vm3_vm0, %v1730_v50  }
 0x1bf   :  { %3576 = vst.msk [vmem:[%s8719_s1 + $0x393] sm:$0x10] %vm3_vm0, %v1730_v50   ;;  %3577 = vst.msk [vmem:[%s8719_s1 + $0x3b2] sm:$0x20] %vm3_vm0, %v1730_v50  }
 0x1c0   :  { %3578 = vst.msk [vmem:[%s8719_s1 + $0x3d1] sm:$0x40] %vm3_vm0, %v1730_v50   ;;  %3579 = vst.msk [vmem:[%s8719_s1 + $0x3f0] sm:$0x80] %vm3_vm0, %v1730_v50  }
 0x1c1   :  { %3563 = vst.msk [vmem:[%s8719_s1 + $0x217] sm:$0x1] %vm3_vm0, %v1709_v51   ;;  %3564 = vst.msk [vmem:[%s8719_s1 + $0x236] sm:$0x2] %vm3_vm0, %v1709_v51  }
 0x1c2   :  { %3565 = vst.msk [vmem:[%s8719_s1 + $0x255] sm:$0x4] %vm3_vm0, %v1709_v51   ;;  %3566 = vst.msk [vmem:[%s8719_s1 + $0x274] sm:$0x8] %vm3_vm0, %v1709_v51  }
 0x1c3   :  { %3567 = vst.msk [vmem:[%s8719_s1 + $0x293] sm:$0x10] %vm3_vm0, %v1709_v51   ;;  %3568 = vst.msk [vmem:[%s8719_s1 + $0x2b2] sm:$0x20] %vm3_vm0, %v1709_v51  }
 0x1c4   :  { %3569 = vst.msk [vmem:[%s8719_s1 + $0x2d1] sm:$0x40] %vm3_vm0, %v1709_v51   ;;  %3570 = vst.msk [vmem:[%s8719_s1 + $0x2f0] sm:$0x80] %vm3_vm0, %v1709_v51  }
 0x1c5   :  { %3589 = vst.msk [vmem:[%s8719_s1 + $0x109] sm:$0x1] %vm3_vm0, %v1771_v52   ;;  %3590 = vst.msk [vmem:[%s8719_s1 + $0x128] sm:$0x2] %vm3_vm0, %v1771_v52  }
 0x1c6   :  { %3591 = vst.msk [vmem:[%s8719_s1 + $0x147] sm:$0x4] %vm3_vm0, %v1771_v52   ;;  %3592 = vst.msk [vmem:[%s8719_s1 + $0x166] sm:$0x8] %vm3_vm0, %v1771_v52  }
 0x1c7   :  { %3593 = vst.msk [vmem:[%s8719_s1 + $0x185] sm:$0x10] %vm3_vm0, %v1771_v52   ;;  %3594 = vst.msk [vmem:[%s8719_s1 + $0x1a4] sm:$0x20] %vm3_vm0, %v1771_v52  }
 0x1c8   :  { %3595 = vst.msk [vmem:[%s8719_s1 + $0x1c3] sm:$0x40] %vm3_vm0, %v1771_v52   ;;  %3596 = vst.msk [vmem:[%s8719_s1 + $0x1e2] sm:$0x80] %vm3_vm0, %v1771_v52  }
 0x1c9   :  { %3580 = vst.msk [vmem:[%s8719_s1 + $0x9] sm:$0x1] %vm3_vm0, %v1750_v53   ;;  %3581 = vst.msk [vmem:[%s8719_s1 + $0x28] sm:$0x2] %vm3_vm0, %v1750_v53  }
 0x1ca   :  { %3582 = vst.msk [vmem:[%s8719_s1 + $0x47] sm:$0x4] %vm3_vm0, %v1750_v53   ;;  %3583 = vst.msk [vmem:[%s8719_s1 + $0x66] sm:$0x8] %vm3_vm0, %v1750_v53  }
 0x1cb   :  { %3584 = vst.msk [vmem:[%s8719_s1 + $0x85] sm:$0x10] %vm3_vm0, %v1750_v53   ;;  %3585 = vst.msk [vmem:[%s8719_s1 + $0xa4] sm:$0x20] %vm3_vm0, %v1750_v53  }
 0x1cc   :  { %3586 = vst.msk [vmem:[%s8719_s1 + $0xc3] sm:$0x40] %vm3_vm0, %v1750_v53   ;;  %3587 = vst.msk [vmem:[%s8719_s1 + $0xe2] sm:$0x80] %vm3_vm0, %v1750_v53  }
 0x1cd   :  { %3607 = vst.msk [vmem:[%s8719_s1 + $0x309] sm:$0x1] %vm3_vm0, %v1813_v54   ;;  %3608 = vst.msk [vmem:[%s8719_s1 + $0x328] sm:$0x2] %vm3_vm0, %v1813_v54  }
 0x1ce   :  { %3609 = vst.msk [vmem:[%s8719_s1 + $0x347] sm:$0x4] %vm3_vm0, %v1813_v54   ;;  %3610 = vst.msk [vmem:[%s8719_s1 + $0x366] sm:$0x8] %vm3_vm0, %v1813_v54  }
 0x1cf   :  { %3611 = vst.msk [vmem:[%s8719_s1 + $0x385] sm:$0x10] %vm3_vm0, %v1813_v54   ;;  %3612 = vst.msk [vmem:[%s8719_s1 + $0x3a4] sm:$0x20] %vm3_vm0, %v1813_v54  }
 0x1d0   :  { %3613 = vst.msk [vmem:[%s8719_s1 + $0x3c3] sm:$0x40] %vm3_vm0, %v1813_v54   ;;  %3614 = vst.msk [vmem:[%s8719_s1 + $0x3e2] sm:$0x80] %vm3_vm0, %v1813_v54  }
 0x1d1   :  { %3598 = vst.msk [vmem:[%s8719_s1 + $0x209] sm:$0x1] %vm3_vm0, %v1792_v55   ;;  %3599 = vst.msk [vmem:[%s8719_s1 + $0x228] sm:$0x2] %vm3_vm0, %v1792_v55  }
 0x1d2   :  { %3600 = vst.msk [vmem:[%s8719_s1 + $0x247] sm:$0x4] %vm3_vm0, %v1792_v55   ;;  %3601 = vst.msk [vmem:[%s8719_s1 + $0x266] sm:$0x8] %vm3_vm0, %v1792_v55  }
 0x1d3   :  { %3602 = vst.msk [vmem:[%s8719_s1 + $0x285] sm:$0x10] %vm3_vm0, %v1792_v55   ;;  %3603 = vst.msk [vmem:[%s8719_s1 + $0x2a4] sm:$0x20] %vm3_vm0, %v1792_v55  }
 0x1d4   :  { %3604 = vst.msk [vmem:[%s8719_s1 + $0x2c3] sm:$0x40] %vm3_vm0, %v1792_v55   ;;  %3605 = vst.msk [vmem:[%s8719_s1 + $0x2e2] sm:$0x80] %vm3_vm0, %v1792_v55  }
 0x1d5   :  { %3625 = vst.msk [vmem:[%s8719_s1 + $0x118] sm:$0x1] %vm3_vm0, %v1855_v56   ;;  %3626 = vst.msk [vmem:[%s8719_s1 + $0x137] sm:$0x2] %vm3_vm0, %v1855_v56  }
 0x1d6   :  { %3627 = vst.msk [vmem:[%s8719_s1 + $0x156] sm:$0x4] %vm3_vm0, %v1855_v56   ;;  %3628 = vst.msk [vmem:[%s8719_s1 + $0x175] sm:$0x8] %vm3_vm0, %v1855_v56  }
 0x1d7   :  { %3629 = vst.msk [vmem:[%s8719_s1 + $0x194] sm:$0x10] %vm3_vm0, %v1855_v56   ;;  %3630 = vst.msk [vmem:[%s8719_s1 + $0x1b3] sm:$0x20] %vm3_vm0, %v1855_v56  }
 0x1d8   :  { %3631 = vst.msk [vmem:[%s8719_s1 + $0x1d2] sm:$0x40] %vm3_vm0, %v1855_v56   ;;  %3632 = vst.msk [vmem:[%s8719_s1 + $0x1f1] sm:$0x80] %vm3_vm0, %v1855_v56  }
 0x1d9   :  { %3616 = vst.msk [vmem:[%s8719_s1 + $0x18] sm:$0x1] %vm3_vm0, %v1834_v57   ;;  %3617 = vst.msk [vmem:[%s8719_s1 + $0x37] sm:$0x2] %vm3_vm0, %v1834_v57  }
 0x1da   :  { %3618 = vst.msk [vmem:[%s8719_s1 + $0x56] sm:$0x4] %vm3_vm0, %v1834_v57   ;;  %3619 = vst.msk [vmem:[%s8719_s1 + $0x75] sm:$0x8] %vm3_vm0, %v1834_v57  }
 0x1db   :  { %3620 = vst.msk [vmem:[%s8719_s1 + $0x94] sm:$0x10] %vm3_vm0, %v1834_v57   ;;  %3621 = vst.msk [vmem:[%s8719_s1 + $0xb3] sm:$0x20] %vm3_vm0, %v1834_v57  }
 0x1dc   :  { %3622 = vst.msk [vmem:[%s8719_s1 + $0xd2] sm:$0x40] %vm3_vm0, %v1834_v57   ;;  %3623 = vst.msk [vmem:[%s8719_s1 + $0xf1] sm:$0x80] %vm3_vm0, %v1834_v57  }
 0x1dd   :  { %3643 = vst.msk [vmem:[%s8719_s1 + $0x318] sm:$0x1] %vm3_vm0, %v1897_v58   ;;  %3644 = vst.msk [vmem:[%s8719_s1 + $0x337] sm:$0x2] %vm3_vm0, %v1897_v58  }
 0x1de   :  { %3645 = vst.msk [vmem:[%s8719_s1 + $0x356] sm:$0x4] %vm3_vm0, %v1897_v58   ;;  %3646 = vst.msk [vmem:[%s8719_s1 + $0x375] sm:$0x8] %vm3_vm0, %v1897_v58  }
 0x1df   :  { %3647 = vst.msk [vmem:[%s8719_s1 + $0x394] sm:$0x10] %vm3_vm0, %v1897_v58   ;;  %3648 = vst.msk [vmem:[%s8719_s1 + $0x3b3] sm:$0x20] %vm3_vm0, %v1897_v58  }
 0x1e0   :  { %3649 = vst.msk [vmem:[%s8719_s1 + $0x3d2] sm:$0x40] %vm3_vm0, %v1897_v58   ;;  %3650 = vst.msk [vmem:[%s8719_s1 + $0x3f1] sm:$0x80] %vm3_vm0, %v1897_v58  }
 0x1e1   :  { %3634 = vst.msk [vmem:[%s8719_s1 + $0x218] sm:$0x1] %vm3_vm0, %v1876_v59   ;;  %3635 = vst.msk [vmem:[%s8719_s1 + $0x237] sm:$0x2] %vm3_vm0, %v1876_v59  }
 0x1e2   :  { %3636 = vst.msk [vmem:[%s8719_s1 + $0x256] sm:$0x4] %vm3_vm0, %v1876_v59   ;;  %3637 = vst.msk [vmem:[%s8719_s1 + $0x275] sm:$0x8] %vm3_vm0, %v1876_v59  }
 0x1e3   :  { %3638 = vst.msk [vmem:[%s8719_s1 + $0x294] sm:$0x10] %vm3_vm0, %v1876_v59   ;;  %3639 = vst.msk [vmem:[%s8719_s1 + $0x2b3] sm:$0x20] %vm3_vm0, %v1876_v59  }
 0x1e4   :  { %3640 = vst.msk [vmem:[%s8719_s1 + $0x2d2] sm:$0x40] %vm3_vm0, %v1876_v59   ;;  %3641 = vst.msk [vmem:[%s8719_s1 + $0x2f1] sm:$0x80] %vm3_vm0, %v1876_v59  }
 0x1e5   :  { %3660 = vst.msk [vmem:[%s8719_s1 + $0x10a] sm:$0x1] %vm3_vm0, %v1938_v60   ;;  %3661 = vst.msk [vmem:[%s8719_s1 + $0x129] sm:$0x2] %vm3_vm0, %v1938_v60  }
 0x1e6   :  { %3662 = vst.msk [vmem:[%s8719_s1 + $0x148] sm:$0x4] %vm3_vm0, %v1938_v60   ;;  %3663 = vst.msk [vmem:[%s8719_s1 + $0x167] sm:$0x8] %vm3_vm0, %v1938_v60  }
 0x1e7   :  { %3664 = vst.msk [vmem:[%s8719_s1 + $0x186] sm:$0x10] %vm3_vm0, %v1938_v60   ;;  %3665 = vst.msk [vmem:[%s8719_s1 + $0x1a5] sm:$0x20] %vm3_vm0, %v1938_v60  }
 0x1e8   :  { %3666 = vst.msk [vmem:[%s8719_s1 + $0x1c4] sm:$0x40] %vm3_vm0, %v1938_v60   ;;  %3667 = vst.msk [vmem:[%s8719_s1 + $0x1e3] sm:$0x80] %vm3_vm0, %v1938_v60  }
 0x1e9   :  { %3651 = vst.msk [vmem:[%s8719_s1 + $0xa] sm:$0x1] %vm3_vm0, %v1917_v61   ;;  %3652 = vst.msk [vmem:[%s8719_s1 + $0x29] sm:$0x2] %vm3_vm0, %v1917_v61  }
 0x1ea   :  { %3653 = vst.msk [vmem:[%s8719_s1 + $0x48] sm:$0x4] %vm3_vm0, %v1917_v61   ;;  %3654 = vst.msk [vmem:[%s8719_s1 + $0x67] sm:$0x8] %vm3_vm0, %v1917_v61  }
 0x1eb   :  { %3655 = vst.msk [vmem:[%s8719_s1 + $0x86] sm:$0x10] %vm3_vm0, %v1917_v61   ;;  %3656 = vst.msk [vmem:[%s8719_s1 + $0xa5] sm:$0x20] %vm3_vm0, %v1917_v61  }
 0x1ec   :  { %3657 = vst.msk [vmem:[%s8719_s1 + $0xc4] sm:$0x40] %vm3_vm0, %v1917_v61   ;;  %3658 = vst.msk [vmem:[%s8719_s1 + $0xe3] sm:$0x80] %vm3_vm0, %v1917_v61  }
 0x1ed   :  { %3678 = vst.msk [vmem:[%s8719_s1 + $0x30a] sm:$0x1] %vm3_vm0, %v1980_v62   ;;  %3679 = vst.msk [vmem:[%s8719_s1 + $0x329] sm:$0x2] %vm3_vm0, %v1980_v62  }
 0x1ee   :  { %3680 = vst.msk [vmem:[%s8719_s1 + $0x348] sm:$0x4] %vm3_vm0, %v1980_v62   ;;  %3681 = vst.msk [vmem:[%s8719_s1 + $0x367] sm:$0x8] %vm3_vm0, %v1980_v62  }
 0x1ef   :  { %3682 = vst.msk [vmem:[%s8719_s1 + $0x386] sm:$0x10] %vm3_vm0, %v1980_v62   ;;  %3683 = vst.msk [vmem:[%s8719_s1 + $0x3a5] sm:$0x20] %vm3_vm0, %v1980_v62  }
 0x1f0   :  { %3684 = vst.msk [vmem:[%s8719_s1 + $0x3c4] sm:$0x40] %vm3_vm0, %v1980_v62   ;;  %3685 = vst.msk [vmem:[%s8719_s1 + $0x3e3] sm:$0x80] %vm3_vm0, %v1980_v62  }
 0x1f1   :  { %3669 = vst.msk [vmem:[%s8719_s1 + $0x20a] sm:$0x1] %vm3_vm0, %v1959_v63   ;;  %3670 = vst.msk [vmem:[%s8719_s1 + $0x229] sm:$0x2] %vm3_vm0, %v1959_v63  }
 0x1f2   :  { %3671 = vst.msk [vmem:[%s8719_s1 + $0x248] sm:$0x4] %vm3_vm0, %v1959_v63   ;;  %3672 = vst.msk [vmem:[%s8719_s1 + $0x267] sm:$0x8] %vm3_vm0, %v1959_v63  }
 0x1f3   :  { %3673 = vst.msk [vmem:[%s8719_s1 + $0x286] sm:$0x10] %vm3_vm0, %v1959_v63   ;;  %3674 = vst.msk [vmem:[%s8719_s1 + $0x2a5] sm:$0x20] %vm3_vm0, %v1959_v63  }
 0x1f4   :  { %3675 = vst.msk [vmem:[%s8719_s1 + $0x2c4] sm:$0x40] %vm3_vm0, %v1959_v63   ;;  %3676 = vst.msk [vmem:[%s8719_s1 + $0x2e3] sm:$0x80] %vm3_vm0, %v1959_v63  }
 0x1f5   :  { %3696 = vst.msk [vmem:[%s8719_s1 + $0x119] sm:$0x1] %vm3_vm0, %v2022_v0   ;;  %3697 = vst.msk [vmem:[%s8719_s1 + $0x138] sm:$0x2] %vm3_vm0, %v2022_v0  }
 0x1f6   :  { %3698 = vst.msk [vmem:[%s8719_s1 + $0x157] sm:$0x4] %vm3_vm0, %v2022_v0   ;;  %3699 = vst.msk [vmem:[%s8719_s1 + $0x176] sm:$0x8] %vm3_vm0, %v2022_v0  }
 0x1f7   :  { %3700 = vst.msk [vmem:[%s8719_s1 + $0x195] sm:$0x10] %vm3_vm0, %v2022_v0   ;;  %3701 = vst.msk [vmem:[%s8719_s1 + $0x1b4] sm:$0x20] %vm3_vm0, %v2022_v0  }
 0x1f8   :  { %3702 = vst.msk [vmem:[%s8719_s1 + $0x1d3] sm:$0x40] %vm3_vm0, %v2022_v0   ;;  %3703 = vst.msk [vmem:[%s8719_s1 + $0x1f2] sm:$0x80] %vm3_vm0, %v2022_v0  }
 0x1f9   :  { %3687 = vst.msk [vmem:[%s8719_s1 + $0x19] sm:$0x1] %vm3_vm0, %v2001_v1   ;;  %3688 = vst.msk [vmem:[%s8719_s1 + $0x38] sm:$0x2] %vm3_vm0, %v2001_v1  }
 0x1fa   :  { %3689 = vst.msk [vmem:[%s8719_s1 + $0x57] sm:$0x4] %vm3_vm0, %v2001_v1   ;;  %3690 = vst.msk [vmem:[%s8719_s1 + $0x76] sm:$0x8] %vm3_vm0, %v2001_v1  }
 0x1fb   :  { %3691 = vst.msk [vmem:[%s8719_s1 + $0x95] sm:$0x10] %vm3_vm0, %v2001_v1   ;;  %3692 = vst.msk [vmem:[%s8719_s1 + $0xb4] sm:$0x20] %vm3_vm0, %v2001_v1  }
 0x1fc   :  { %3693 = vst.msk [vmem:[%s8719_s1 + $0xd3] sm:$0x40] %vm3_vm0, %v2001_v1   ;;  %3694 = vst.msk [vmem:[%s8719_s1 + $0xf2] sm:$0x80] %vm3_vm0, %v2001_v1  }
 0x1fd   :  { %3901 = vst.msk [vmem:[%s8719_s1 + $0x1c] sm:$0x1] %vm2507_vm3, %v2506_v2   ;;  %3902 = vst.msk [vmem:[%s8719_s1 + $0x3b] sm:$0x2] %vm2507_vm3, %v2506_v2  }
 0x1fe   :  { %3903 = vst.msk [vmem:[%s8719_s1 + $0x5a] sm:$0x4] %vm2507_vm3, %v2506_v2   ;;  %3904 = vst.msk [vmem:[%s8719_s1 + $0x79] sm:$0x8] %vm2507_vm3, %v2506_v2  }
 0x1ff   :  { %3905 = vst.msk [vmem:[%s8719_s1 + $0x98] sm:$0x10] %vm2507_vm3, %v2506_v2   ;;  %3906 = vst.msk [vmem:[%s8719_s1 + $0xb7] sm:$0x20] %vm2507_vm3, %v2506_v2  }
 0x200   :  { %3907 = vst.msk [vmem:[%s8719_s1 + $0xd6] sm:$0x40] %vm2507_vm3, %v2506_v2   ;;  %3908 = vst.msk [vmem:[%s8719_s1 + $0xf5] sm:$0x80] %vm2507_vm3, %v2506_v2  }
 0x201   :  { %3705 = vst.msk [vmem:[%s8719_s1 + $0x219] sm:$0x1] %vm3_vm0, %v2043_v3   ;;  %3706 = vst.msk [vmem:[%s8719_s1 + $0x238] sm:$0x2] %vm3_vm0, %v2043_v3  }
 0x202   :  { %3707 = vst.msk [vmem:[%s8719_s1 + $0x257] sm:$0x4] %vm3_vm0, %v2043_v3   ;;  %3708 = vst.msk [vmem:[%s8719_s1 + $0x276] sm:$0x8] %vm3_vm0, %v2043_v3  }
 0x203   :  { %3709 = vst.msk [vmem:[%s8719_s1 + $0x295] sm:$0x10] %vm3_vm0, %v2043_v3   ;;  %3710 = vst.msk [vmem:[%s8719_s1 + $0x2b4] sm:$0x20] %vm3_vm0, %v2043_v3  }
 0x204   :  { %3711 = vst.msk [vmem:[%s8719_s1 + $0x2d3] sm:$0x40] %vm3_vm0, %v2043_v3   ;;  %3712 = vst.msk [vmem:[%s8719_s1 + $0x2f2] sm:$0x80] %vm3_vm0, %v2043_v3  }
 0x205   :  { %3909 = vst.msk [vmem:[%s8719_s1 + $0x1c] sm:$0x1] %vm2524_vm4, %v2506_v2   ;;  %3910 = vst.msk [vmem:[%s8719_s1 + $0x3b] sm:$0x2] %vm2524_vm4, %v2506_v2  }
 0x206   :  { %3911 = vst.msk [vmem:[%s8719_s1 + $0x5a] sm:$0x4] %vm2524_vm4, %v2506_v2   ;;  %3912 = vst.msk [vmem:[%s8719_s1 + $0x79] sm:$0x8] %vm2524_vm4, %v2506_v2  }
 0x207   :  { %3913 = vst.msk [vmem:[%s8719_s1 + $0x98] sm:$0x10] %vm2524_vm4, %v2506_v2   ;;  %3914 = vst.msk [vmem:[%s8719_s1 + $0xb7] sm:$0x20] %vm2524_vm4, %v2506_v2  }
 0x208   :  { %3915 = vst.msk [vmem:[%s8719_s1 + $0xd6] sm:$0x40] %vm2524_vm4, %v2506_v2   ;;  %3916 = vst.msk [vmem:[%s8719_s1 + $0xf5] sm:$0x80] %vm2524_vm4, %v2506_v2  }
 0x209   :  { %3937 = vst.msk [vmem:[%s8719_s1 + $0x21c] sm:$0x1] %vm2507_vm3, %v2590_v4   ;;  %3938 = vst.msk [vmem:[%s8719_s1 + $0x23b] sm:$0x2] %vm2507_vm3, %v2590_v4  }
 0x20a   :  { %3939 = vst.msk [vmem:[%s8719_s1 + $0x25a] sm:$0x4] %vm2507_vm3, %v2590_v4   ;;  %3940 = vst.msk [vmem:[%s8719_s1 + $0x279] sm:$0x8] %vm2507_vm3, %v2590_v4  }
 0x20b   :  { %3941 = vst.msk [vmem:[%s8719_s1 + $0x298] sm:$0x10] %vm2507_vm3, %v2590_v4   ;;  %3942 = vst.msk [vmem:[%s8719_s1 + $0x2b7] sm:$0x20] %vm2507_vm3, %v2590_v4  }
 0x20c   :  { %3943 = vst.msk [vmem:[%s8719_s1 + $0x2d6] sm:$0x40] %vm2507_vm3, %v2590_v4   ;;  %3944 = vst.msk [vmem:[%s8719_s1 + $0x2f5] sm:$0x80] %vm2507_vm3, %v2590_v4  }
 0x20d   :  { %3919 = vst.msk [vmem:[%s8719_s1 + $0x11c] sm:$0x1] %vm2507_vm3, %v2548_v5   ;;  %3920 = vst.msk [vmem:[%s8719_s1 + $0x13b] sm:$0x2] %vm2507_vm3, %v2548_v5  }
 0x20e   :  { %3921 = vst.msk [vmem:[%s8719_s1 + $0x15a] sm:$0x4] %vm2507_vm3, %v2548_v5   ;;  %3922 = vst.msk [vmem:[%s8719_s1 + $0x179] sm:$0x8] %vm2507_vm3, %v2548_v5  }
 0x20f   :  { %3923 = vst.msk [vmem:[%s8719_s1 + $0x198] sm:$0x10] %vm2507_vm3, %v2548_v5   ;;  %3924 = vst.msk [vmem:[%s8719_s1 + $0x1b7] sm:$0x20] %vm2507_vm3, %v2548_v5  }
 0x210   :  { %3925 = vst.msk [vmem:[%s8719_s1 + $0x1d6] sm:$0x40] %vm2507_vm3, %v2548_v5   ;;  %3926 = vst.msk [vmem:[%s8719_s1 + $0x1f5] sm:$0x80] %vm2507_vm3, %v2548_v5  }
 0x211   :  { %3945 = vst.msk [vmem:[%s8719_s1 + $0x21c] sm:$0x1] %vm2524_vm4, %v2590_v4   ;;  %3946 = vst.msk [vmem:[%s8719_s1 + $0x23b] sm:$0x2] %vm2524_vm4, %v2590_v4  }
 0x212   :  { %3947 = vst.msk [vmem:[%s8719_s1 + $0x25a] sm:$0x4] %vm2524_vm4, %v2590_v4   ;;  %3948 = vst.msk [vmem:[%s8719_s1 + $0x279] sm:$0x8] %vm2524_vm4, %v2590_v4  }
 0x213   :  { %3949 = vst.msk [vmem:[%s8719_s1 + $0x298] sm:$0x10] %vm2524_vm4, %v2590_v4   ;;  %3950 = vst.msk [vmem:[%s8719_s1 + $0x2b7] sm:$0x20] %vm2524_vm4, %v2590_v4  }
 0x214   :  { %3951 = vst.msk [vmem:[%s8719_s1 + $0x2d6] sm:$0x40] %vm2524_vm4, %v2590_v4   ;;  %3952 = vst.msk [vmem:[%s8719_s1 + $0x2f5] sm:$0x80] %vm2524_vm4, %v2590_v4  }
 0x215   :  { %3927 = vst.msk [vmem:[%s8719_s1 + $0x11c] sm:$0x1] %vm2524_vm4, %v2548_v5   ;;  %3928 = vst.msk [vmem:[%s8719_s1 + $0x13b] sm:$0x2] %vm2524_vm4, %v2548_v5  }
 0x216   :  { %3929 = vst.msk [vmem:[%s8719_s1 + $0x15a] sm:$0x4] %vm2524_vm4, %v2548_v5   ;;  %3930 = vst.msk [vmem:[%s8719_s1 + $0x179] sm:$0x8] %vm2524_vm4, %v2548_v5  }
 0x217   :  { %3931 = vst.msk [vmem:[%s8719_s1 + $0x198] sm:$0x10] %vm2524_vm4, %v2548_v5   ;;  %3932 = vst.msk [vmem:[%s8719_s1 + $0x1b7] sm:$0x20] %vm2524_vm4, %v2548_v5  }
 0x218   :  { %3933 = vst.msk [vmem:[%s8719_s1 + $0x1d6] sm:$0x40] %vm2524_vm4, %v2548_v5   ;;  %3934 = vst.msk [vmem:[%s8719_s1 + $0x1f5] sm:$0x80] %vm2524_vm4, %v2548_v5  }
 0x219   :  { %3972 = vst.msk [vmem:[%s8719_s1 + $0xe] sm:$0x1] %vm2674_vm5, %v2673_v6   ;;  %3973 = vst.msk [vmem:[%s8719_s1 + $0x2d] sm:$0x2] %vm2674_vm5, %v2673_v6  }
 0x21a   :  { %3974 = vst.msk [vmem:[%s8719_s1 + $0x4c] sm:$0x4] %vm2674_vm5, %v2673_v6   ;;  %3975 = vst.msk [vmem:[%s8719_s1 + $0x6b] sm:$0x8] %vm2674_vm5, %v2673_v6  }
 0x21b   :  { %3976 = vst.msk [vmem:[%s8719_s1 + $0x8a] sm:$0x10] %vm2674_vm5, %v2673_v6   ;;  %3977 = vst.msk [vmem:[%s8719_s1 + $0xa9] sm:$0x20] %vm2674_vm5, %v2673_v6  }
 0x21c   :  { %3978 = vst.msk [vmem:[%s8719_s1 + $0xc8] sm:$0x40] %vm2674_vm5, %v2673_v6   ;;  %3979 = vst.msk [vmem:[%s8719_s1 + $0xe7] sm:$0x80] %vm2674_vm5, %v2673_v6  }
 0x21d   :  { %3955 = vst.msk [vmem:[%s8719_s1 + $0x31c] sm:$0x1] %vm2507_vm3, %v2632_v7   ;;  %3956 = vst.msk [vmem:[%s8719_s1 + $0x33b] sm:$0x2] %vm2507_vm3, %v2632_v7  }
 0x21e   :  { %3957 = vst.msk [vmem:[%s8719_s1 + $0x35a] sm:$0x4] %vm2507_vm3, %v2632_v7   ;;  %3958 = vst.msk [vmem:[%s8719_s1 + $0x379] sm:$0x8] %vm2507_vm3, %v2632_v7  }
 0x21f   :  { %3959 = vst.msk [vmem:[%s8719_s1 + $0x398] sm:$0x10] %vm2507_vm3, %v2632_v7   ;;  %3960 = vst.msk [vmem:[%s8719_s1 + $0x3b7] sm:$0x20] %vm2507_vm3, %v2632_v7  }
 0x220   :  { %3961 = vst.msk [vmem:[%s8719_s1 + $0x3d6] sm:$0x40] %vm2507_vm3, %v2632_v7   ;;  %3962 = vst.msk [vmem:[%s8719_s1 + $0x3f5] sm:$0x80] %vm2507_vm3, %v2632_v7  }
 0x221   :  { %3980 = vst.msk [vmem:[%s8719_s1 + $0xe] sm:$0x1] %vm2691_vm6, %v2673_v6   ;;  %3981 = vst.msk [vmem:[%s8719_s1 + $0x2d] sm:$0x2] %vm2691_vm6, %v2673_v6  }
 0x222   :  { %3982 = vst.msk [vmem:[%s8719_s1 + $0x4c] sm:$0x4] %vm2691_vm6, %v2673_v6   ;;  %3983 = vst.msk [vmem:[%s8719_s1 + $0x6b] sm:$0x8] %vm2691_vm6, %v2673_v6  }
 0x223   :  { %3984 = vst.msk [vmem:[%s8719_s1 + $0x8a] sm:$0x10] %vm2691_vm6, %v2673_v6   ;;  %3985 = vst.msk [vmem:[%s8719_s1 + $0xa9] sm:$0x20] %vm2691_vm6, %v2673_v6  }
 0x224   :  { %3986 = vst.msk [vmem:[%s8719_s1 + $0xc8] sm:$0x40] %vm2691_vm6, %v2673_v6   ;;  %3987 = vst.msk [vmem:[%s8719_s1 + $0xe7] sm:$0x80] %vm2691_vm6, %v2673_v6  }
 0x225   :  { %3963 = vst.msk [vmem:[%s8719_s1 + $0x31c] sm:$0x1] %vm2524_vm4, %v2632_v7   ;;  %3964 = vst.msk [vmem:[%s8719_s1 + $0x33b] sm:$0x2] %vm2524_vm4, %v2632_v7  }
 0x226   :  { %3965 = vst.msk [vmem:[%s8719_s1 + $0x35a] sm:$0x4] %vm2524_vm4, %v2632_v7   ;;  %3966 = vst.msk [vmem:[%s8719_s1 + $0x379] sm:$0x8] %vm2524_vm4, %v2632_v7  }
 0x227   :  { %3967 = vst.msk [vmem:[%s8719_s1 + $0x398] sm:$0x10] %vm2524_vm4, %v2632_v7   ;;  %3968 = vst.msk [vmem:[%s8719_s1 + $0x3b7] sm:$0x20] %vm2524_vm4, %v2632_v7  }
 0x228   :  { %3969 = vst.msk [vmem:[%s8719_s1 + $0x3d6] sm:$0x40] %vm2524_vm4, %v2632_v7   ;;  %3970 = vst.msk [vmem:[%s8719_s1 + $0x3f5] sm:$0x80] %vm2524_vm4, %v2632_v7  }
 0x229   :  { %4008 = vst.msk [vmem:[%s8719_s1 + $0x20e] sm:$0x1] %vm2674_vm5, %v2757_v8   ;;  %4009 = vst.msk [vmem:[%s8719_s1 + $0x22d] sm:$0x2] %vm2674_vm5, %v2757_v8  }
 0x22a   :  { %4010 = vst.msk [vmem:[%s8719_s1 + $0x24c] sm:$0x4] %vm2674_vm5, %v2757_v8   ;;  %4011 = vst.msk [vmem:[%s8719_s1 + $0x26b] sm:$0x8] %vm2674_vm5, %v2757_v8  }
 0x22b   :  { %4012 = vst.msk [vmem:[%s8719_s1 + $0x28a] sm:$0x10] %vm2674_vm5, %v2757_v8   ;;  %4013 = vst.msk [vmem:[%s8719_s1 + $0x2a9] sm:$0x20] %vm2674_vm5, %v2757_v8  }
 0x22c   :  { %4014 = vst.msk [vmem:[%s8719_s1 + $0x2c8] sm:$0x40] %vm2674_vm5, %v2757_v8   ;;  %4015 = vst.msk [vmem:[%s8719_s1 + $0x2e7] sm:$0x80] %vm2674_vm5, %v2757_v8  }
 0x22d   :  { %3990 = vst.msk [vmem:[%s8719_s1 + $0x10e] sm:$0x1] %vm2674_vm5, %v2715_v9   ;;  %3991 = vst.msk [vmem:[%s8719_s1 + $0x12d] sm:$0x2] %vm2674_vm5, %v2715_v9  }
 0x22e   :  { %3992 = vst.msk [vmem:[%s8719_s1 + $0x14c] sm:$0x4] %vm2674_vm5, %v2715_v9   ;;  %3993 = vst.msk [vmem:[%s8719_s1 + $0x16b] sm:$0x8] %vm2674_vm5, %v2715_v9  }
 0x22f   :  { %3994 = vst.msk [vmem:[%s8719_s1 + $0x18a] sm:$0x10] %vm2674_vm5, %v2715_v9   ;;  %3995 = vst.msk [vmem:[%s8719_s1 + $0x1a9] sm:$0x20] %vm2674_vm5, %v2715_v9  }
 0x230   :  { %3996 = vst.msk [vmem:[%s8719_s1 + $0x1c8] sm:$0x40] %vm2674_vm5, %v2715_v9   ;;  %3997 = vst.msk [vmem:[%s8719_s1 + $0x1e7] sm:$0x80] %vm2674_vm5, %v2715_v9  }
 0x231   :  { %4016 = vst.msk [vmem:[%s8719_s1 + $0x20e] sm:$0x1] %vm2691_vm6, %v2757_v8   ;;  %4017 = vst.msk [vmem:[%s8719_s1 + $0x22d] sm:$0x2] %vm2691_vm6, %v2757_v8  }
 0x232   :  { %4018 = vst.msk [vmem:[%s8719_s1 + $0x24c] sm:$0x4] %vm2691_vm6, %v2757_v8   ;;  %4019 = vst.msk [vmem:[%s8719_s1 + $0x26b] sm:$0x8] %vm2691_vm6, %v2757_v8  }
 0x233   :  { %4020 = vst.msk [vmem:[%s8719_s1 + $0x28a] sm:$0x10] %vm2691_vm6, %v2757_v8   ;;  %4021 = vst.msk [vmem:[%s8719_s1 + $0x2a9] sm:$0x20] %vm2691_vm6, %v2757_v8  }
 0x234   :  { %4022 = vst.msk [vmem:[%s8719_s1 + $0x2c8] sm:$0x40] %vm2691_vm6, %v2757_v8   ;;  %4023 = vst.msk [vmem:[%s8719_s1 + $0x2e7] sm:$0x80] %vm2691_vm6, %v2757_v8  }
 0x235   :  { %3998 = vst.msk [vmem:[%s8719_s1 + $0x10e] sm:$0x1] %vm2691_vm6, %v2715_v9   ;;  %3999 = vst.msk [vmem:[%s8719_s1 + $0x12d] sm:$0x2] %vm2691_vm6, %v2715_v9  }
 0x236   :  { %4000 = vst.msk [vmem:[%s8719_s1 + $0x14c] sm:$0x4] %vm2691_vm6, %v2715_v9   ;;  %4001 = vst.msk [vmem:[%s8719_s1 + $0x16b] sm:$0x8] %vm2691_vm6, %v2715_v9  }
 0x237   :  { %4002 = vst.msk [vmem:[%s8719_s1 + $0x18a] sm:$0x10] %vm2691_vm6, %v2715_v9   ;;  %4003 = vst.msk [vmem:[%s8719_s1 + $0x1a9] sm:$0x20] %vm2691_vm6, %v2715_v9  }
 0x238   :  { %4004 = vst.msk [vmem:[%s8719_s1 + $0x1c8] sm:$0x40] %vm2691_vm6, %v2715_v9   ;;  %4005 = vst.msk [vmem:[%s8719_s1 + $0x1e7] sm:$0x80] %vm2691_vm6, %v2715_v9  }
 0x239   :  { %3714 = vst.msk [vmem:[%s8719_s1 + $0x319] sm:$0x1] %vm3_vm0, %v2064_v10   ;;  %3715 = vst.msk [vmem:[%s8719_s1 + $0x338] sm:$0x2] %vm3_vm0, %v2064_v10  }
 0x23a   :  { %3716 = vst.msk [vmem:[%s8719_s1 + $0x357] sm:$0x4] %vm3_vm0, %v2064_v10   ;;  %3717 = vst.msk [vmem:[%s8719_s1 + $0x376] sm:$0x8] %vm3_vm0, %v2064_v10  }
 0x23b   :  { %3718 = vst.msk [vmem:[%s8719_s1 + $0x395] sm:$0x10] %vm3_vm0, %v2064_v10   ;;  %3719 = vst.msk [vmem:[%s8719_s1 + $0x3b4] sm:$0x20] %vm3_vm0, %v2064_v10  }
 0x23c   :  { %3720 = vst.msk [vmem:[%s8719_s1 + $0x3d3] sm:$0x40] %vm3_vm0, %v2064_v10   ;;  %3721 = vst.msk [vmem:[%s8719_s1 + $0x3f2] sm:$0x80] %vm3_vm0, %v2064_v10  }
 0x23d   :  { %4026 = vst.msk [vmem:[%s8719_s1 + $0x30e] sm:$0x1] %vm2674_vm5, %v2799_v11   ;;  %4027 = vst.msk [vmem:[%s8719_s1 + $0x32d] sm:$0x2] %vm2674_vm5, %v2799_v11  }
 0x23e   :  { %4028 = vst.msk [vmem:[%s8719_s1 + $0x34c] sm:$0x4] %vm2674_vm5, %v2799_v11   ;;  %4029 = vst.msk [vmem:[%s8719_s1 + $0x36b] sm:$0x8] %vm2674_vm5, %v2799_v11  }
 0x23f   :  { %4030 = vst.msk [vmem:[%s8719_s1 + $0x38a] sm:$0x10] %vm2674_vm5, %v2799_v11   ;;  %4031 = vst.msk [vmem:[%s8719_s1 + $0x3a9] sm:$0x20] %vm2674_vm5, %v2799_v11  }
 0x240   :  { %4032 = vst.msk [vmem:[%s8719_s1 + $0x3c8] sm:$0x40] %vm2674_vm5, %v2799_v11   ;;  %4033 = vst.msk [vmem:[%s8719_s1 + $0x3e7] sm:$0x80] %vm2674_vm5, %v2799_v11  }
 0x241   :  { %4034 = vst.msk [vmem:[%s8719_s1 + $0x30e] sm:$0x1] %vm2691_vm6, %v2799_v11   ;;  %4035 = vst.msk [vmem:[%s8719_s1 + $0x32d] sm:$0x2] %vm2691_vm6, %v2799_v11  }
 0x242   :  { %4036 = vst.msk [vmem:[%s8719_s1 + $0x34c] sm:$0x4] %vm2691_vm6, %v2799_v11   ;;  %4037 = vst.msk [vmem:[%s8719_s1 + $0x36b] sm:$0x8] %vm2691_vm6, %v2799_v11  }
 0x243   :  { %4038 = vst.msk [vmem:[%s8719_s1 + $0x38a] sm:$0x10] %vm2691_vm6, %v2799_v11   ;;  %4039 = vst.msk [vmem:[%s8719_s1 + $0x3a9] sm:$0x20] %vm2691_vm6, %v2799_v11  }
 0x244   :  { %4040 = vst.msk [vmem:[%s8719_s1 + $0x3c8] sm:$0x40] %vm2691_vm6, %v2799_v11   ;;  %4041 = vst.msk [vmem:[%s8719_s1 + $0x3e7] sm:$0x80] %vm2691_vm6, %v2799_v11  }
 0x245   :  { %3731 = vst.msk [vmem:[%s8719_s1 + $0x10b] sm:$0x1] %vm3_vm0, %v2105_v12   ;;  %3732 = vst.msk [vmem:[%s8719_s1 + $0x12a] sm:$0x2] %vm3_vm0, %v2105_v12  }
 0x246   :  { %3733 = vst.msk [vmem:[%s8719_s1 + $0x149] sm:$0x4] %vm3_vm0, %v2105_v12   ;;  %3734 = vst.msk [vmem:[%s8719_s1 + $0x168] sm:$0x8] %vm3_vm0, %v2105_v12  }
 0x247   :  { %3735 = vst.msk [vmem:[%s8719_s1 + $0x187] sm:$0x10] %vm3_vm0, %v2105_v12   ;;  %3736 = vst.msk [vmem:[%s8719_s1 + $0x1a6] sm:$0x20] %vm3_vm0, %v2105_v12  }
 0x248   :  { %3737 = vst.msk [vmem:[%s8719_s1 + $0x1c5] sm:$0x40] %vm3_vm0, %v2105_v12   ;;  %3738 = vst.msk [vmem:[%s8719_s1 + $0x1e4] sm:$0x80] %vm3_vm0, %v2105_v12  }
 0x249   :  { %3722 = vst.msk [vmem:[%s8719_s1 + $0xb] sm:$0x1] %vm3_vm0, %v2084_v13   ;;  %3723 = vst.msk [vmem:[%s8719_s1 + $0x2a] sm:$0x2] %vm3_vm0, %v2084_v13  }
 0x24a   :  { %3724 = vst.msk [vmem:[%s8719_s1 + $0x49] sm:$0x4] %vm3_vm0, %v2084_v13   ;;  %3725 = vst.msk [vmem:[%s8719_s1 + $0x68] sm:$0x8] %vm3_vm0, %v2084_v13  }
 0x24b   :  { %3726 = vst.msk [vmem:[%s8719_s1 + $0x87] sm:$0x10] %vm3_vm0, %v2084_v13   ;;  %3727 = vst.msk [vmem:[%s8719_s1 + $0xa6] sm:$0x20] %vm3_vm0, %v2084_v13  }
 0x24c   :  { %3728 = vst.msk [vmem:[%s8719_s1 + $0xc5] sm:$0x40] %vm3_vm0, %v2084_v13   ;;  %3729 = vst.msk [vmem:[%s8719_s1 + $0xe4] sm:$0x80] %vm3_vm0, %v2084_v13  }
 0x24d   :  { %3749 = vst.msk [vmem:[%s8719_s1 + $0x30b] sm:$0x1] %vm3_vm0, %v2147_v14   ;;  %3750 = vst.msk [vmem:[%s8719_s1 + $0x32a] sm:$0x2] %vm3_vm0, %v2147_v14  }
 0x24e   :  { %3751 = vst.msk [vmem:[%s8719_s1 + $0x349] sm:$0x4] %vm3_vm0, %v2147_v14   ;;  %3752 = vst.msk [vmem:[%s8719_s1 + $0x368] sm:$0x8] %vm3_vm0, %v2147_v14  }
 0x24f   :  { %3753 = vst.msk [vmem:[%s8719_s1 + $0x387] sm:$0x10] %vm3_vm0, %v2147_v14   ;;  %3754 = vst.msk [vmem:[%s8719_s1 + $0x3a6] sm:$0x20] %vm3_vm0, %v2147_v14  }
 0x250   :  { %3755 = vst.msk [vmem:[%s8719_s1 + $0x3c5] sm:$0x40] %vm3_vm0, %v2147_v14   ;;  %3756 = vst.msk [vmem:[%s8719_s1 + $0x3e4] sm:$0x80] %vm3_vm0, %v2147_v14  }
 0x251   :  { %3740 = vst.msk [vmem:[%s8719_s1 + $0x20b] sm:$0x1] %vm3_vm0, %v2126_v15   ;;  %3741 = vst.msk [vmem:[%s8719_s1 + $0x22a] sm:$0x2] %vm3_vm0, %v2126_v15  }
 0x252   :  { %3742 = vst.msk [vmem:[%s8719_s1 + $0x249] sm:$0x4] %vm3_vm0, %v2126_v15   ;;  %3743 = vst.msk [vmem:[%s8719_s1 + $0x268] sm:$0x8] %vm3_vm0, %v2126_v15  }
 0x253   :  { %3744 = vst.msk [vmem:[%s8719_s1 + $0x287] sm:$0x10] %vm3_vm0, %v2126_v15   ;;  %3745 = vst.msk [vmem:[%s8719_s1 + $0x2a6] sm:$0x20] %vm3_vm0, %v2126_v15  }
 0x254   :  { %3746 = vst.msk [vmem:[%s8719_s1 + $0x2c5] sm:$0x40] %vm3_vm0, %v2126_v15   ;;  %3747 = vst.msk [vmem:[%s8719_s1 + $0x2e4] sm:$0x80] %vm3_vm0, %v2126_v15  }
 0x255   :  { %3767 = vst.msk [vmem:[%s8719_s1 + $0x11a] sm:$0x1] %vm3_vm0, %v2189_v16   ;;  %3768 = vst.msk [vmem:[%s8719_s1 + $0x139] sm:$0x2] %vm3_vm0, %v2189_v16  }
 0x256   :  { %3769 = vst.msk [vmem:[%s8719_s1 + $0x158] sm:$0x4] %vm3_vm0, %v2189_v16   ;;  %3770 = vst.msk [vmem:[%s8719_s1 + $0x177] sm:$0x8] %vm3_vm0, %v2189_v16  }
 0x257   :  { %3771 = vst.msk [vmem:[%s8719_s1 + $0x196] sm:$0x10] %vm3_vm0, %v2189_v16   ;;  %3772 = vst.msk [vmem:[%s8719_s1 + $0x1b5] sm:$0x20] %vm3_vm0, %v2189_v16  }
 0x258   :  { %3773 = vst.msk [vmem:[%s8719_s1 + $0x1d4] sm:$0x40] %vm3_vm0, %v2189_v16   ;;  %3774 = vst.msk [vmem:[%s8719_s1 + $0x1f3] sm:$0x80] %vm3_vm0, %v2189_v16  }
 0x259   :  { %3758 = vst.msk [vmem:[%s8719_s1 + $0x1a] sm:$0x1] %vm3_vm0, %v2168_v17   ;;  %3759 = vst.msk [vmem:[%s8719_s1 + $0x39] sm:$0x2] %vm3_vm0, %v2168_v17  }
 0x25a   :  { %3760 = vst.msk [vmem:[%s8719_s1 + $0x58] sm:$0x4] %vm3_vm0, %v2168_v17   ;;  %3761 = vst.msk [vmem:[%s8719_s1 + $0x77] sm:$0x8] %vm3_vm0, %v2168_v17  }
 0x25b   :  { %3762 = vst.msk [vmem:[%s8719_s1 + $0x96] sm:$0x10] %vm3_vm0, %v2168_v17   ;;  %3763 = vst.msk [vmem:[%s8719_s1 + $0xb5] sm:$0x20] %vm3_vm0, %v2168_v17  }
 0x25c   :  { %3764 = vst.msk [vmem:[%s8719_s1 + $0xd4] sm:$0x40] %vm3_vm0, %v2168_v17   ;;  %3765 = vst.msk [vmem:[%s8719_s1 + $0xf3] sm:$0x80] %vm3_vm0, %v2168_v17  }
 0x25d   :  { %3785 = vst.msk [vmem:[%s8719_s1 + $0x31a] sm:$0x1] %vm3_vm0, %v2231_v18   ;;  %3786 = vst.msk [vmem:[%s8719_s1 + $0x339] sm:$0x2] %vm3_vm0, %v2231_v18  }
 0x25e   :  { %3787 = vst.msk [vmem:[%s8719_s1 + $0x358] sm:$0x4] %vm3_vm0, %v2231_v18   ;;  %3788 = vst.msk [vmem:[%s8719_s1 + $0x377] sm:$0x8] %vm3_vm0, %v2231_v18  }
 0x25f   :  { %3789 = vst.msk [vmem:[%s8719_s1 + $0x396] sm:$0x10] %vm3_vm0, %v2231_v18   ;;  %3790 = vst.msk [vmem:[%s8719_s1 + $0x3b5] sm:$0x20] %vm3_vm0, %v2231_v18  }
 0x260   :  { %3791 = vst.msk [vmem:[%s8719_s1 + $0x3d4] sm:$0x40] %vm3_vm0, %v2231_v18   ;;  %3792 = vst.msk [vmem:[%s8719_s1 + $0x3f3] sm:$0x80] %vm3_vm0, %v2231_v18  }
 0x261   :  { %3776 = vst.msk [vmem:[%s8719_s1 + $0x21a] sm:$0x1] %vm3_vm0, %v2210_v19   ;;  %3777 = vst.msk [vmem:[%s8719_s1 + $0x239] sm:$0x2] %vm3_vm0, %v2210_v19  }
 0x262   :  { %3778 = vst.msk [vmem:[%s8719_s1 + $0x258] sm:$0x4] %vm3_vm0, %v2210_v19   ;;  %3779 = vst.msk [vmem:[%s8719_s1 + $0x277] sm:$0x8] %vm3_vm0, %v2210_v19  }
 0x263   :  { %3780 = vst.msk [vmem:[%s8719_s1 + $0x296] sm:$0x10] %vm3_vm0, %v2210_v19   ;;  %3781 = vst.msk [vmem:[%s8719_s1 + $0x2b5] sm:$0x20] %vm3_vm0, %v2210_v19  }
 0x264   :  { %3782 = vst.msk [vmem:[%s8719_s1 + $0x2d4] sm:$0x40] %vm3_vm0, %v2210_v19   ;;  %3783 = vst.msk [vmem:[%s8719_s1 + $0x2f3] sm:$0x80] %vm3_vm0, %v2210_v19  }
 0x265   :  { %3802 = vst.msk [vmem:[%s8719_s1 + $0x10c] sm:$0x1] %vm3_vm0, %v2272_v20   ;;  %3803 = vst.msk [vmem:[%s8719_s1 + $0x12b] sm:$0x2] %vm3_vm0, %v2272_v20  }
 0x266   :  { %3804 = vst.msk [vmem:[%s8719_s1 + $0x14a] sm:$0x4] %vm3_vm0, %v2272_v20   ;;  %3805 = vst.msk [vmem:[%s8719_s1 + $0x169] sm:$0x8] %vm3_vm0, %v2272_v20  }
 0x267   :  { %3806 = vst.msk [vmem:[%s8719_s1 + $0x188] sm:$0x10] %vm3_vm0, %v2272_v20   ;;  %3807 = vst.msk [vmem:[%s8719_s1 + $0x1a7] sm:$0x20] %vm3_vm0, %v2272_v20  }
 0x268   :  { %3808 = vst.msk [vmem:[%s8719_s1 + $0x1c6] sm:$0x40] %vm3_vm0, %v2272_v20   ;;  %3809 = vst.msk [vmem:[%s8719_s1 + $0x1e5] sm:$0x80] %vm3_vm0, %v2272_v20  }
 0x269   :  { %3793 = vst.msk [vmem:[%s8719_s1 + $0xc] sm:$0x1] %vm3_vm0, %v2251_v21   ;;  %3794 = vst.msk [vmem:[%s8719_s1 + $0x2b] sm:$0x2] %vm3_vm0, %v2251_v21  }
 0x26a   :  { %3795 = vst.msk [vmem:[%s8719_s1 + $0x4a] sm:$0x4] %vm3_vm0, %v2251_v21   ;;  %3796 = vst.msk [vmem:[%s8719_s1 + $0x69] sm:$0x8] %vm3_vm0, %v2251_v21  }
 0x26b   :  { %3797 = vst.msk [vmem:[%s8719_s1 + $0x88] sm:$0x10] %vm3_vm0, %v2251_v21   ;;  %3798 = vst.msk [vmem:[%s8719_s1 + $0xa7] sm:$0x20] %vm3_vm0, %v2251_v21  }
 0x26c   :  { %3799 = vst.msk [vmem:[%s8719_s1 + $0xc6] sm:$0x40] %vm3_vm0, %v2251_v21   ;;  %3800 = vst.msk [vmem:[%s8719_s1 + $0xe5] sm:$0x80] %vm3_vm0, %v2251_v21  }
 0x26d   :  { %3820 = vst.msk [vmem:[%s8719_s1 + $0x30c] sm:$0x1] %vm3_vm0, %v2314_v22   ;;  %3821 = vst.msk [vmem:[%s8719_s1 + $0x32b] sm:$0x2] %vm3_vm0, %v2314_v22  }
 0x26e   :  { %3822 = vst.msk [vmem:[%s8719_s1 + $0x34a] sm:$0x4] %vm3_vm0, %v2314_v22   ;;  %3823 = vst.msk [vmem:[%s8719_s1 + $0x369] sm:$0x8] %vm3_vm0, %v2314_v22  }
 0x26f   :  { %3824 = vst.msk [vmem:[%s8719_s1 + $0x388] sm:$0x10] %vm3_vm0, %v2314_v22   ;;  %3825 = vst.msk [vmem:[%s8719_s1 + $0x3a7] sm:$0x20] %vm3_vm0, %v2314_v22  }
 0x270   :  { %3826 = vst.msk [vmem:[%s8719_s1 + $0x3c6] sm:$0x40] %vm3_vm0, %v2314_v22   ;;  %3827 = vst.msk [vmem:[%s8719_s1 + $0x3e5] sm:$0x80] %vm3_vm0, %v2314_v22  }
 0x271   :  { %3811 = vst.msk [vmem:[%s8719_s1 + $0x20c] sm:$0x1] %vm3_vm0, %v2293_v23   ;;  %3812 = vst.msk [vmem:[%s8719_s1 + $0x22b] sm:$0x2] %vm3_vm0, %v2293_v23  }
 0x272   :  { %3813 = vst.msk [vmem:[%s8719_s1 + $0x24a] sm:$0x4] %vm3_vm0, %v2293_v23   ;;  %3814 = vst.msk [vmem:[%s8719_s1 + $0x269] sm:$0x8] %vm3_vm0, %v2293_v23  }
 0x273   :  { %3815 = vst.msk [vmem:[%s8719_s1 + $0x288] sm:$0x10] %vm3_vm0, %v2293_v23   ;;  %3816 = vst.msk [vmem:[%s8719_s1 + $0x2a7] sm:$0x20] %vm3_vm0, %v2293_v23  }
 0x274   :  { %3817 = vst.msk [vmem:[%s8719_s1 + $0x2c6] sm:$0x40] %vm3_vm0, %v2293_v23   ;;  %3818 = vst.msk [vmem:[%s8719_s1 + $0x2e5] sm:$0x80] %vm3_vm0, %v2293_v23  }
 0x275   :  { %3838 = vst.msk [vmem:[%s8719_s1 + $0x11b] sm:$0x1] %vm3_vm0, %v2356_v24   ;;  %3839 = vst.msk [vmem:[%s8719_s1 + $0x13a] sm:$0x2] %vm3_vm0, %v2356_v24  }
 0x276   :  { %3840 = vst.msk [vmem:[%s8719_s1 + $0x159] sm:$0x4] %vm3_vm0, %v2356_v24   ;;  %3841 = vst.msk [vmem:[%s8719_s1 + $0x178] sm:$0x8] %vm3_vm0, %v2356_v24  }
 0x277   :  { %3842 = vst.msk [vmem:[%s8719_s1 + $0x197] sm:$0x10] %vm3_vm0, %v2356_v24   ;;  %3843 = vst.msk [vmem:[%s8719_s1 + $0x1b6] sm:$0x20] %vm3_vm0, %v2356_v24  }
 0x278   :  { %3844 = vst.msk [vmem:[%s8719_s1 + $0x1d5] sm:$0x40] %vm3_vm0, %v2356_v24   ;;  %3845 = vst.msk [vmem:[%s8719_s1 + $0x1f4] sm:$0x80] %vm3_vm0, %v2356_v24  }
 0x279   :  { %3829 = vst.msk [vmem:[%s8719_s1 + $0x1b] sm:$0x1] %vm3_vm0, %v2335_v25   ;;  %3830 = vst.msk [vmem:[%s8719_s1 + $0x3a] sm:$0x2] %vm3_vm0, %v2335_v25  }
 0x27a   :  { %3831 = vst.msk [vmem:[%s8719_s1 + $0x59] sm:$0x4] %vm3_vm0, %v2335_v25   ;;  %3832 = vst.msk [vmem:[%s8719_s1 + $0x78] sm:$0x8] %vm3_vm0, %v2335_v25  }
 0x27b   :  { %3833 = vst.msk [vmem:[%s8719_s1 + $0x97] sm:$0x10] %vm3_vm0, %v2335_v25   ;;  %3834 = vst.msk [vmem:[%s8719_s1 + $0xb6] sm:$0x20] %vm3_vm0, %v2335_v25  }
 0x27c   :  { %3835 = vst.msk [vmem:[%s8719_s1 + $0xd5] sm:$0x40] %vm3_vm0, %v2335_v25   ;;  %3836 = vst.msk [vmem:[%s8719_s1 + $0xf4] sm:$0x80] %vm3_vm0, %v2335_v25  }
 0x27d   :  { %3856 = vst.msk [vmem:[%s8719_s1 + $0x31b] sm:$0x1] %vm3_vm0, %v2398_v26   ;;  %3857 = vst.msk [vmem:[%s8719_s1 + $0x33a] sm:$0x2] %vm3_vm0, %v2398_v26  }
 0x27e   :  { %3858 = vst.msk [vmem:[%s8719_s1 + $0x359] sm:$0x4] %vm3_vm0, %v2398_v26   ;;  %3859 = vst.msk [vmem:[%s8719_s1 + $0x378] sm:$0x8] %vm3_vm0, %v2398_v26  }
 0x27f   :  { %3860 = vst.msk [vmem:[%s8719_s1 + $0x397] sm:$0x10] %vm3_vm0, %v2398_v26   ;;  %3861 = vst.msk [vmem:[%s8719_s1 + $0x3b6] sm:$0x20] %vm3_vm0, %v2398_v26  }
 0x280   :  { %3862 = vst.msk [vmem:[%s8719_s1 + $0x3d5] sm:$0x40] %vm3_vm0, %v2398_v26   ;;  %3863 = vst.msk [vmem:[%s8719_s1 + $0x3f4] sm:$0x80] %vm3_vm0, %v2398_v26  }
 0x281   :  { %3847 = vst.msk [vmem:[%s8719_s1 + $0x21b] sm:$0x1] %vm3_vm0, %v2377_v27   ;;  %3848 = vst.msk [vmem:[%s8719_s1 + $0x23a] sm:$0x2] %vm3_vm0, %v2377_v27  }
 0x282   :  { %3849 = vst.msk [vmem:[%s8719_s1 + $0x259] sm:$0x4] %vm3_vm0, %v2377_v27   ;;  %3850 = vst.msk [vmem:[%s8719_s1 + $0x278] sm:$0x8] %vm3_vm0, %v2377_v27  }
 0x283   :  { %3851 = vst.msk [vmem:[%s8719_s1 + $0x297] sm:$0x10] %vm3_vm0, %v2377_v27   ;;  %3852 = vst.msk [vmem:[%s8719_s1 + $0x2b6] sm:$0x20] %vm3_vm0, %v2377_v27  }
 0x284   :  { %3853 = vst.msk [vmem:[%s8719_s1 + $0x2d5] sm:$0x40] %vm3_vm0, %v2377_v27   ;;  %3854 = vst.msk [vmem:[%s8719_s1 + $0x2f4] sm:$0x80] %vm3_vm0, %v2377_v27  }
 0x285   :  { %3873 = vst.msk [vmem:[%s8719_s1 + $0x10d] sm:$0x1] %vm3_vm0, %v2439_v28   ;;  %3874 = vst.msk [vmem:[%s8719_s1 + $0x12c] sm:$0x2] %vm3_vm0, %v2439_v28  }
 0x286   :  { %3875 = vst.msk [vmem:[%s8719_s1 + $0x14b] sm:$0x4] %vm3_vm0, %v2439_v28   ;;  %3876 = vst.msk [vmem:[%s8719_s1 + $0x16a] sm:$0x8] %vm3_vm0, %v2439_v28  }
 0x287   :  { %3877 = vst.msk [vmem:[%s8719_s1 + $0x189] sm:$0x10] %vm3_vm0, %v2439_v28   ;;  %3878 = vst.msk [vmem:[%s8719_s1 + $0x1a8] sm:$0x20] %vm3_vm0, %v2439_v28  }
 0x288   :  { %3879 = vst.msk [vmem:[%s8719_s1 + $0x1c7] sm:$0x40] %vm3_vm0, %v2439_v28   ;;  %3880 = vst.msk [vmem:[%s8719_s1 + $0x1e6] sm:$0x80] %vm3_vm0, %v2439_v28  }
 0x289   :  { %3864 = vst.msk [vmem:[%s8719_s1 + $0xd] sm:$0x1] %vm3_vm0, %v2418_v29   ;;  %3865 = vst.msk [vmem:[%s8719_s1 + $0x2c] sm:$0x2] %vm3_vm0, %v2418_v29  }
 0x28a   :  { %3866 = vst.msk [vmem:[%s8719_s1 + $0x4b] sm:$0x4] %vm3_vm0, %v2418_v29   ;;  %3867 = vst.msk [vmem:[%s8719_s1 + $0x6a] sm:$0x8] %vm3_vm0, %v2418_v29  }
 0x28b   :  { %3868 = vst.msk [vmem:[%s8719_s1 + $0x89] sm:$0x10] %vm3_vm0, %v2418_v29   ;;  %3869 = vst.msk [vmem:[%s8719_s1 + $0xa8] sm:$0x20] %vm3_vm0, %v2418_v29  }
 0x28c   :  { %3870 = vst.msk [vmem:[%s8719_s1 + $0xc7] sm:$0x40] %vm3_vm0, %v2418_v29   ;;  %3871 = vst.msk [vmem:[%s8719_s1 + $0xe6] sm:$0x80] %vm3_vm0, %v2418_v29  }
 0x28d   :  { %3891 = vst.msk [vmem:[%s8719_s1 + $0x30d] sm:$0x1] %vm3_vm0, %v2481_v30   ;;  %3892 = vst.msk [vmem:[%s8719_s1 + $0x32c] sm:$0x2] %vm3_vm0, %v2481_v30  }
 0x28e   :  { %3893 = vst.msk [vmem:[%s8719_s1 + $0x34b] sm:$0x4] %vm3_vm0, %v2481_v30   ;;  %3894 = vst.msk [vmem:[%s8719_s1 + $0x36a] sm:$0x8] %vm3_vm0, %v2481_v30  }
 0x28f   :  { %3895 = vst.msk [vmem:[%s8719_s1 + $0x389] sm:$0x10] %vm3_vm0, %v2481_v30   ;;  %3896 = vst.msk [vmem:[%s8719_s1 + $0x3a8] sm:$0x20] %vm3_vm0, %v2481_v30  }
 0x290   :  { %3897 = vst.msk [vmem:[%s8719_s1 + $0x3c7] sm:$0x40] %vm3_vm0, %v2481_v30   ;;  %3898 = vst.msk [vmem:[%s8719_s1 + $0x3e6] sm:$0x80] %vm3_vm0, %v2481_v30  }
 0x291   :  { %3882 = vst.msk [vmem:[%s8719_s1 + $0x20d] sm:$0x1] %vm3_vm0, %v2460_v31   ;;  %3883 = vst.msk [vmem:[%s8719_s1 + $0x22c] sm:$0x2] %vm3_vm0, %v2460_v31  }
 0x292   :  { %3884 = vst.msk [vmem:[%s8719_s1 + $0x24b] sm:$0x4] %vm3_vm0, %v2460_v31   ;;  %3885 = vst.msk [vmem:[%s8719_s1 + $0x26a] sm:$0x8] %vm3_vm0, %v2460_v31  }
 0x293   :  { %3886 = vst.msk [vmem:[%s8719_s1 + $0x289] sm:$0x10] %vm3_vm0, %v2460_v31   ;;  %3887 = vst.msk [vmem:[%s8719_s1 + $0x2a8] sm:$0x20] %vm3_vm0, %v2460_v31  }
 0x294   :  { %3888 = vst.msk [vmem:[%s8719_s1 + $0x2c7] sm:$0x40] %vm3_vm0, %v2460_v31   ;;  %3889 = vst.msk [vmem:[%s8719_s1 + $0x2e6] sm:$0x80] %vm3_vm0, %v2460_v31  }

// kernel: afno2d_forward.1
= control target key start
LH: loop header
LB: loop body
LE: loop exit
PB: predicated region body
PF: predicated region fallthrough
CT: control target
= control target key end

     0   :  { %s1866_s17 = smov 0   ;;  %s1868_s18 = smov 0   ;;  %s2054_s0 = inlined_call_operand.vmem [shape: bf16[2,4,8,384], index: 0, kind: input, shape index: {}]   ;;  %s2055_s1 = inlined_call_operand.vmem [shape: bf16[4,8,8], index: 1, kind: input, shape index: {}]   ;;  %s2056_s2 = inlined_call_operand.vmem [shape: bf16[4,8,8], index: 2, kind: input, shape index: {}]   ;;  %s2057_s3 = inlined_call_operand.vmem [shape: bf16[4,8,8], index: 3, kind: input, shape index: {}]   ;;  %s2058_s4 = inlined_call_operand.vmem [shape: f32[4,8,1], index: 4, kind: input, shape index: {}]   ;;  %s2059_s5 = inlined_call_operand.vmem [shape: f32[4,8,1], index: 5, kind: input, shape index: {}]   ;;  %s2060_s6 = inlined_call_operand.vmem [shape: bf16[4,8,8], index: 6, kind: input, shape index: {}]   ;;  %s2061_s7 = inlined_call_operand.vmem [shape: bf16[4,8,8], index: 7, kind: input, shape index: {}]   ;;  %s2062_s8 = inlined_call_operand.vmem [shape: bf16[4,8,8], index: 8, kind: input, shape index: {}]   ;;  %s2063_s9 = inlined_call_operand.vmem [shape: f32[4,8,1], index: 9, kind: input, shape index: {}]   ;;  %s2064_s10 = inlined_call_operand.vmem [shape: f32[4,8,1], index: 10, kind: input, shape index: {}]   ;;  %s2065_s11 = inlined_call_operand.vmem [shape: bf16[2,4,8,384], index: 11, kind: output, shape index: {}]  }
   0x1   :  { %s1870_s19 = smov 0   ;;  %s1872_s20 = smov 0  }
   0x2   :  { %s1874_s21 = smov 0  }
   0x3 LB: > { %s33_s22 = sadd.s32 1, %s1797_s20  ;;  %s1588_s23 = sadd.s32 4294967295, %s1801_s21   ;;  %s1801_s21 = sphi %s1874_s21, %s21_s21   ;;  %s1797_s20 = sphi %s1872_s20, %s2070_s20   ;;  %s1793_s19 = sphi %s1870_s19, %s2069_s19   ;;  %s1789_s18 = sphi %s1868_s18, %s2068_s18   ;;  %s1785_s17 = sphi %s1866_s17, %s2067_s17  }
   0x4   : > { %p35_p0 = scmp.ge.s32.totalorder %s33_s22, 4  ;;  %p49_p1 = scmp.ne.s32.totalorder %s1789_s18, %s1785_s17 }
   0x5   : > { %p50_p2 = scmp.eq.s32.totalorder %s1801_s21, 0  ;;  %p341_p4 = scmp.eq.s32.totalorder %s1588_s23, 3 }
   0x6   : > { %s2072_s22 = smov (%p35_p0, %s33_s22), 0  ;;  %s42_s25 = sadd.s32 1, %s1789_s18 }
   0x7   : > { %p51_p3 = por %p50_p2, %p49_p1  ;;  %s37_s24 = ssub.s32 %s1797_s20, %s2072_s22 }
   0x8   : > { %p40_p5 = scmp.eq.s32.totalorder %s37_s24, 0  ;;  %p1901_p6 = por %p341_p4, %p49_p1 }
   0x9   : > { %p1591_p7 = scmp.ge.s32.totalorder %s1801_s21, 4 }
   0xa   : > { %s1906_s27 = scalar_select %p40_p5, %s1789_s18, %s42_s25  }
   0xb   : > { %363 = sbr.rel (%p1591_p7) target bundleno = 23 (0x17), region = 16 }
  0x10   : > { %366 = sbr.rel (!%p51_p3) target bundleno = 23 (0x17), region = 20  ;;  %s368_s28 = sand.u32 (%p51_p3), 1, %s1789_s18  }
  0x11   : > { %s1709_s29 = smul.u32 (%p51_p3), 12, %s1797_s20 }
  0x12   : > { %s1708_s30 = smul.u32 (%p51_p3), 24, %s368_s28 }
  0x13   : > { %s375_s14 = scalar_lea.vmem (%p51_p3), %s2054_s0, %s1709_s29 }
  0x14   : > { %v390_v0 = vld [vmem:[%s375_s14] sm:$0xff] (%p51_p3)  ;;  %v392_v1 = vld [vmem:[%s375_s14 + $0x30] sm:$0xff] (%p51_p3)  ;;  %v1593_v2 = vld [vmem:[%s375_s14 + $0x8] sm:$0xf] (%p51_p3)  ;;  %s370_s15 = scalar_lea.vmem (%p51_p3), [#allocation2], %s1708_s30 }
  0x15   : > { %391 = vst [vmem:[%s370_s15] sm:$0xff] %v390_v0  ;;  %393 = vst [vmem:[%s370_s15 + $0xc] sm:$0xff] %v392_v1  ;;  %v1595_v3 = vld [vmem:[%s375_s14 + $0x38] sm:$0xf] }
  0x16   : > { %1594 = vst [vmem:[%s370_s15 + $0x8] sm:$0xf] %v1593_v2  ;;  %1596 = vst [vmem:[%s370_s15 + $0x14] sm:$0xf] %v1595_v3 }
  0x17 PF: > { %p1597_p8 = scmp.ge.s32.totalorder %s1801_s21, 1  ;;  %p480_p9 = scmp.lt.s32.totalorder %s1801_s21, 5 }
  0x19   : > { %p481_p10 = pnand %p1597_p8, %p480_p9 }
  0x1a   : > { %s487_s16 = sand.u32 (!%p481_p10), 1, %s1785_s17   ;;  %p566_p11 = scmp.lt.s32.totalorder (!%p481_p10), %s1793_s19, 3 }
  0x1b   : > { %484 = sbr.rel (%p481_p10) target bundleno = 490 (0x1ea), region = 86 }
  0x1c   : > { %s1918_s23 = smul.u32 (!%p481_p10), 24, %s487_s16 }
  0x1e   : > { %s489_s17 = scalar_lea.vmem (!%p481_p10), [#allocation2], %s1918_s23 }
  0x20   : > { %v1803_v4 = vmov 0.0   ;;  %v1804_v5 = vmov 0   ;;  %vm1805_vm0 = vmmov 0   ;;  %s567_s24 = scalar_select %p566_p11, %s1793_s19, 3  ;;  %vm628_vm1 = vcmask 1043456   ;;  %v608_v6 = vld [vmem:[%s489_s17] sm:$0xff] }
  0x21   : > { %1672 = vmatprep.subr.bf16.mxu1 %v1803_v4  ;;  %670 = vmatprep.mubr.bf16.mxu0 %v1804_v5  ;;  %v1608_v7 = vld [vmem:[%s489_s17 + $0xc] sm:$0xff]  ;;  %v609_v8 = vld [vmem:[%s489_s17 + $0x8] sm:$0xf]  ;;  %v1611_v9 = vcombine.high %v608_v6, %v608_v6  ;;  %v1610_v10 = vcombine.low %v608_v6, %v608_v6  ;;  %v1609_v11 = vld [vmem:[%s489_s17 + $0x14] sm:$0xf]  ;;  %vm624_vm2 = vcmask 64512  }
  0x22   : > { %1674 = vmatprep.mubr.msk.bf16.mxu1 %vm1805_vm0, %v1803_v4  ;;  %1755 = vset.pattern.permute.xlu0 %v1804_v5  ;;  %s1928_s25 = sshll.u32 %s567_s24, 2  ;;  %s1930_s28 = sshll.u32 %s567_s24, 3  ;;  %v1612_v12 = vcombine.low %v609_v8, %v609_v8  ;;  %v613_v13 = vadd.bf16 %v1608_v7, %v608_v6  ;;  %v1617_v14 = vcombine.high %v1608_v7, %v1608_v7 }
  0x23   : > { %1756 = vset.pattern.permute.xlu1 %v1804_v5  ;;  %s569_s12 = scalar_lea.vmem %s2055_s1, %s1928_s25  ;;  %v1616_v15 = vcombine.low %v1608_v7, %v1608_v7  ;;  %v1618_v16 = vcombine.low %v1609_v11, %v1609_v11  ;;  %s581_s15 = scalar_lea.vmem %s2058_s4, %s1930_s28  ;;  %1613 = vmatprep.subr.msk.bf16.mxu0 %vm628_vm1, %v1611_v9  ;;  %v630_v17 = vsel %vm628_vm1, %v1610_v10, 0  ;;  %v614_v21 = vadd.bf16 %v1609_v11, %v609_v8 }
  0x24   : > { %v636_v18 = vsel %vm628_vm1, %v1612_v12, 0  ;;  %v926_v19 = vld [vmem:[%s581_s15] sm:$0xff]  ;;  %653 = vmatpush1.bf16.msra.mxu0 %v630_v17  ;;  %s585_s17 = scalar_lea.vmem %s2059_s5, %s1930_s28  ;;  %v1623_v24 = vcombine.high %v613_v13, %v613_v13  ;;  %v1622_v27 = vcombine.low %v613_v13, %v613_v13  ;;  %s577_s15 = scalar_lea.vmem %s2057_s3, %s1928_s25 }
  0x25   : > { %1673 = vmatpush3.bf16.msra.mxu1 %v636_v18  ;;  %v615_v20 = vld [vmem:[%s569_s12] sm:$0xf]  ;;  %1619 = vmatprep.subr.msk.bf16.mxu0 %vm628_vm1, %v1617_v14  ;;  %v732_v22 = vsel %vm628_vm1, %v1616_v15, 0  ;;  %v738_v23 = vsel %vm628_vm1, %v1618_v16, 0  ;;  %v1624_v26 = vcombine.low %v614_v21, %v614_v21  ;;  %s573_s12 = scalar_lea.vmem %s2056_s2, %s1928_s25  ;;  %s589_s14 = scalar_lea.vmem %s2060_s6, %s1928_s25 }
  0x26   : > { %1678 = vmatprep.subr.bf16.mxu1 %v1803_v4  ;;  %929 = vperm.xlu0 %1755, %v926_v19   ;;  %v944_v25 = vld [vmem:[%s585_s17] sm:$0xff]  ;;  %v834_v29 = vsel %vm628_vm1, %v1622_v27, 0  ;;  %s601_s17 = scalar_lea.vmem %s2063_s9, %s1930_s28  ;;  %s593_s24 = scalar_lea.vmem %s2061_s7, %s1928_s25 }
  0x27   : > { %1614 = vmatmul.mubr.msk.bf16.vlgmr.msra.gmra.mxu0 %vm624_vm2, %v615_v20  ;;  %v719_v28 = vld [vmem:[%s573_s12] sm:$0xf]  ;;  %v840_v30 = vsel %vm628_vm1, %v1624_v26, 0  ;;  %s605_s12 = scalar_lea.vmem %s2064_s10, %s1930_s28  ;;  %s597_s30 = scalar_lea.vmem %s2062_s8, %s1928_s25 }
  0x28   : > { %1675 = vmatmul.mubr.msk.bf16.vlgmr.msra.gmra.mxu1 %vm624_vm2, %v615_v20  ;;  %755 = vmatpush1.bf16.msra.mxu0 %v732_v22  ;;  %v821_v31 = vld [vmem:[%s577_s15] sm:$0xf]  ;;  %s2023_s25 = scalar_lea.vmem [#allocation3], %s1918_s23  ;;  %s1711_s23 = smul.u32 (%p1901_p6), 12, %s1793_s19 }
  0x29   : > { %1679 = vmatpush3.bf16.msra.mxu1 %v738_v23  ;;  %772 = vmatprep.mubr.bf16.mxu0 %v1804_v5  ;;  %v1253_v32 = vld [vmem:[%s601_s17] sm:$0xff] }
  0x2a   : > { %1680 = vmatprep.mubr.msk.bf16.mxu1 %vm1805_vm0, %v1803_v4  ;;  %1625 = vmatprep.subr.msk.bf16.mxu0 %vm628_vm1, %v1623_v24  ;;  %v1268_v33 = vld [vmem:[%s605_s12] sm:$0xff]  ;;  %s1355_s13 = scalar_lea.vmem (%p1901_p6), %s2065_s11, %s1711_s23 }
  0x2b   : > { %1684 = vmatprep.subr.bf16.mxu1 %v1803_v4  ;;  %947 = vperm.xlu0 %1755, %v944_v25   ;;  %v956_v8 = vld [vmem:[%s589_s14] sm:$0xf] }
  0x2c   : > { %1256 = vperm.xlu1 %1756, %v1253_v32   ;;  %v1053_v32 = vld [vmem:[%s593_s24] sm:$0xf] }
  0x2f   : > { %1620 = vmatmul.mubr.msk.bf16.vlgmr.msra.gmra.mxu0 %vm624_vm2, %v719_v28 }
  0x30   : > { %1681 = vmatmul.mubr.msk.bf16.vlgmr.msra.gmra.mxu1 %vm624_vm2, %v719_v28  ;;  %857 = vmatpush1.bf16.msra.mxu0 %v834_v29 }
  0x31   : > { %1685 = vmatpush3.bf16.msra.mxu1 %v840_v30  ;;  %874 = vmatprep.mubr.bf16.mxu0 %v1804_v5 }
  0x32   : > { %1686 = vmatprep.mubr.msk.bf16.mxu1 %vm1805_vm0, %v1803_v4  ;;  %1690 = vmatprep.subr.bf16.mxu1 %v1803_v4 }
  0x33   : > { %1271 = vperm.xlu1 %1756, %v1268_v33  }
  0x37   : > { %1626 = vmatmul.mubr.msk.bf16.vlgmr.msra.gmra.mxu0 %vm624_vm2, %v821_v31 }
  0x38   : > { %1687 = vmatmul.mubr.msk.bf16.vlgmr.msra.gmra.mxu1 %vm624_vm2, %v821_v31  ;;  %1004 = vmatprep.mubr.bf16.mxu0 %v1804_v5 }
  0x39   : > { %1692 = vmatprep.mubr.msk.bf16.mxu1 %vm1805_vm0, %v1803_v4 }
  0xa1   : > { %v930_v42 = vpop.permute.xlu0 %929 }
  0xa6   : > { %v948_v9 = vpop.permute.xlu0 %947 }
  0xe7   : > { %v672_v34 = vpop.f32.mrf.mxu0 }
  0xe8   : > { %v713_v35 = vpop.f32.mrf.mxu1 }
  0xe9   : > { %v674_v36 = vpop.f32.mrf.mxu0 }
  0xea   : > { %v1676_v37 = vpop.f32.mrf.mxu1 }
  0xeb   : > { %v676_v38 = vpop.f32.mrf.mxu0 }
  0xec   : > { %v716_v39 = vpop.f32.mrf.mxu1 }
  0xed   : > { %v677_v40 = vpop.f32.mrf.mxu0  ;;  %v1150_v39 = vld [vmem:[%s597_s30] sm:$0xf] }
  0xee   : > { %v1677_v41 = vpop.f32.mrf.mxu1 }
  0xef   : > { %v774_v43 = vpop.f32.mrf.mxu0 }
  0xf0   : > { %v815_v44 = vpop.f32.mrf.mxu1  ;;  %v923_v45 = vsub.f32 %v672_v34, %v774_v43 }
  0xf1   : > { %v925_v46 = vsub.f32 %v713_v35, %v815_v44  ;;  %v776_v47 = vpop.f32.mrf.mxu0 }
  0xf2   : > { %v1682_v48 = vpop.f32.mrf.mxu1  ;;  %v932_v49 = vadd.f32 %v930_v42, %v923_v45  ;;  %v924_v51 = vsub.f32 %v674_v36, %v776_v47 }
  0xf3   : > { %v934_v50 = vadd.f32 %v930_v42, %v925_v46  ;;  %v778_v52 = vpop.f32.mrf.mxu0  ;;  %v1257_v48 = vpop.permute.xlu1 %1256 }
  0xf4   : > { %v818_v53 = vpop.f32.mrf.mxu1  ;;  %v935_v54 = vmax.f32 %v932_v49, 0.0  ;;  %v933_v56 = vadd.f32 %v930_v42, %v924_v51 }
  0xf5   : > { %v937_v55 = vmax.f32 %v934_v50, 0.0  ;;  %v779_v57 = vpop.f32.mrf.mxu0 }
  0xf6   : > { %v1683_v58 = vpop.f32.mrf.mxu1  ;;  %v936_v59 = vmax.f32 %v933_v56, 0.0  ;;  %v957_v61 = vpack.c.bf16 %v935_v54, %v935_v54 }
  0xf7   : > { %v959_v60 = vpack.c.bf16 %v937_v55, %v937_v55  ;;  %v876_v62 = vpop.f32.mrf.mxu0 }
  0xf8   : > { %v917_v63 = vpop.f32.mrf.mxu1  ;;  %v958_v0 = vpack.c.bf16 %v936_v59, %v936_v59  ;;  %v938_v1 = vsub.f32 %v876_v62, %v672_v34  ;;  %v964_v13 = vsel %vm628_vm1, %v957_v61, 0 }
  0xf9   : > { %v940_v2 = vsub.f32 %v917_v63, %v713_v35  ;;  %v970_v3 = vsel %vm628_vm1, %v959_v60, 0  ;;  %v878_v6 = vpop.f32.mrf.mxu0 }
  0xfa   : > { %v1688_v7 = vpop.f32.mrf.mxu1  ;;  %1691 = vmatpush3.bf16.msra.mxu1 %v970_v3  ;;  %v941_v10 = vsub.f32 %v938_v1, %v774_v43  ;;  %v939_v12 = vsub.f32 %v878_v6, %v674_v36  ;;  %1628 = vmatprep.subr.msk.bf16.mxu0 %vm628_vm1, %v958_v0  ;;  %v1272_v6 = vpop.permute.xlu1 %1271 }
  0xfb   : > { %v943_v11 = vsub.f32 %v940_v2, %v815_v44  ;;  %1696 = vmatprep.subr.bf16.mxu1 %v1803_v4  ;;  %v880_v14 = vpop.f32.mrf.mxu0  ;;  %987 = vmatpush1.bf16.msra.mxu0 %v964_v13 }
  0xfc   : > { %v920_v15 = vpop.f32.mrf.mxu1  ;;  %v950_v16 = vadd.f32 %v948_v9, %v941_v10  ;;  %v942_v18 = vsub.f32 %v939_v12, %v776_v47 }
  0xfd   : > { %v952_v17 = vadd.f32 %v948_v9, %v943_v11  ;;  %1693 = vmatmul.mubr.msk.bf16.vlgmr.msra.gmra.mxu1 %vm624_vm2, %v956_v8  ;;  %v881_v19 = vpop.f32.mrf.mxu0 }
  0xfe   : > { %v1689_v20 = vpop.f32.mrf.mxu1  ;;  %1698 = vmatprep.mubr.msk.bf16.mxu1 %vm1805_vm0, %v1803_v4  ;;  %v953_v21 = vmax.f32 %v950_v16, 0.0  ;;  %v951_v23 = vadd.f32 %v948_v9, %v942_v18  ;;  %1629 = vmatmul.mubr.msk.bf16.vlgmr.msra.gmra.mxu0 %vm624_vm2, %v956_v8 }
  0xff   : > { %v955_v22 = vmax.f32 %v952_v17, 0.0  ;;  %1101 = vmatprep.mubr.bf16.mxu0 %v1804_v5 }
 0x100   : > { %v954_v24 = vmax.f32 %v951_v23, 0.0  ;;  %v1054_v26 = vpack.c.bf16 %v953_v21, %v953_v21  ;;  %v1151_v28 = vadd.f32 %v953_v21, %v935_v54 }
 0x101   : > { %v1056_v25 = vpack.c.bf16 %v955_v22, %v955_v22  ;;  %v1153_v27 = vadd.f32 %v955_v22, %v937_v55 }
 0x102   : > { %v1055_v29 = vpack.c.bf16 %v954_v24, %v954_v24  ;;  %v1152_v30 = vadd.f32 %v954_v24, %v936_v59  ;;  %v1061_v34 = vsel %vm628_vm1, %v1054_v26, 0  ;;  %v1154_v36 = vpack.c.bf16 %v1151_v28, %v1151_v28 }
 0x103   : > { %v1067_v31 = vsel %vm628_vm1, %v1056_v25, 0  ;;  %v1156_v33 = vpack.c.bf16 %v1153_v27, %v1153_v27 }
 0x104   : > { %1697 = vmatpush3.bf16.msra.mxu1 %v1067_v31  ;;  %1631 = vmatprep.subr.msk.bf16.mxu0 %vm628_vm1, %v1055_v29  ;;  %v1155_v35 = vpack.c.bf16 %v1152_v30, %v1152_v30  ;;  %v1161_v38 = vsel %vm628_vm1, %v1154_v36, 0 }
 0x105   : > { %1702 = vmatprep.subr.bf16.mxu1 %v1803_v4  ;;  %1084 = vmatpush1.bf16.msra.mxu0 %v1061_v34  ;;  %v1167_v37 = vsel %vm628_vm1, %v1156_v33, 0 }
 0x106   : > { %1634 = vmatprep.subr.msk.bf16.mxu0 %vm628_vm1, %v1155_v35 }
 0x107   : > { %1699 = vmatmul.mubr.msk.bf16.vlgmr.msra.gmra.mxu1 %vm624_vm2, %v1053_v32 }
 0x108   : > { %1703 = vmatpush3.bf16.msra.mxu1 %v1167_v37  ;;  %1704 = vmatprep.mubr.msk.bf16.mxu1 %vm1805_vm0, %v1803_v4 }
 0x109   : > { %1632 = vmatmul.mubr.msk.bf16.vlgmr.msra.gmra.mxu0 %vm624_vm2, %v1053_v32 }
 0x10a   : > { %1184 = vmatpush1.bf16.msra.mxu0 %v1161_v38  ;;  %1201 = vmatprep.mubr.bf16.mxu0 %v1804_v5 }
 0x10f   : > { %1705 = vmatmul.mubr.msk.bf16.vlgmr.msra.gmra.mxu1 %vm624_vm2, %v1150_v39 }
 0x111   : > { %1635 = vmatmul.mubr.msk.bf16.vlgmr.msra.gmra.mxu0 %vm624_vm2, %v1150_v39 }
 0x1bd   : > { %v1047_v40 = vpop.f32.mrf.mxu1 }
 0x1be   : > { %v1006_v41 = vpop.f32.mrf.mxu0 }
 0x1bf   : > { %v1694_v42 = vpop.f32.mrf.mxu1 }
 0x1c0   : > { %v1008_v4 = vpop.f32.mrf.mxu0 }
 0x1c1   : > { %v1050_v43 = vpop.f32.mrf.mxu1 }
 0x1c2   : > { %v1010_v44 = vpop.f32.mrf.mxu0 }
 0x1c3   : > { %v1695_v45 = vpop.f32.mrf.mxu1 }
 0x1c4   : > { %v1011_v46 = vpop.f32.mrf.mxu0 }
 0x1c7   : > { %v1144_v47 = vpop.f32.mrf.mxu1 }
 0x1c8   : > { %v1252_v49 = vsub.f32 %v1047_v40, %v1144_v47 }
 0x1c9   : > { %v1103_v50 = vpop.f32.mrf.mxu0  ;;  %v1700_v51 = vpop.f32.mrf.mxu1 }
 0x1ca   : > { %v1261_v52 = vadd.f32 %v1257_v48, %v1252_v49  ;;  %v1250_v5 = vsub.f32 %v1006_v41, %v1103_v50 }
 0x1cb   : > { %v1105_v53 = vpop.f32.mrf.mxu0  ;;  %v1147_v54 = vpop.f32.mrf.mxu1 }
 0x1cc   : > { %v1639_v55 = vadd.f32 -0.01, %v1261_v52  ;;  %vm1285_vm3 = vcmp.lt.f32.partialorder %v1261_v52, -0.01  ;;  %v1259_v56 = vadd.f32 %v1257_v48, %v1250_v5  ;;  %v1288_v57 = vadd.f32 0.01, %v1261_v52 }
 0x1cd   : > { %v1251_v58 = vsub.f32 %v1008_v4, %v1105_v53  ;;  %v1107_v59 = vpop.f32.mrf.mxu0  ;;  %v1701_v60 = vpop.f32.mrf.mxu1  ;;  %vm1279_vm4 = vcmp.gt.f32.partialorder %v1261_v52, 0.01 }
 0x1ce   : > { %v1291_v61 = vsel %vm1285_vm3, %v1288_v57, 0.0  ;;  %vm1283_vm5 = vcmp.lt.f32.partialorder %v1259_v56, -0.01  ;;  %v1286_v62 = vadd.f32 0.01, %v1259_v56 }
 0x1cf   : > { %v1260_v63 = vadd.f32 %v1257_v48, %v1251_v58  ;;  %v1108_v0 = vpop.f32.mrf.mxu0  ;;  %v1244_v1 = vpop.f32.mrf.mxu1  ;;  %v1294_v2 = vsel %vm1279_vm4, %v1639_v55, %v1291_v61  ;;  %v1637_v8 = vadd.f32 -0.01, %v1259_v56  ;;  %vm1277_vm7 = vcmp.gt.f32.partialorder %v1259_v56, 0.01 }
 0x1d0   : > { %v1264_v3 = vsub.f32 %v1244_v1, %v1047_v40  ;;  %v1657_v7 = vpack.c.bf16 %v1294_v2, %v1294_v2  ;;  %v1289_v12 = vsel %vm1283_vm5, %v1286_v62, 0.0 }
 0x1d1   : > { %v1638_v9 = vadd.f32 -0.01, %v1260_v63  ;;  %v1203_v10 = vpop.f32.mrf.mxu0  ;;  %v1706_v11 = vpop.f32.mrf.mxu1  ;;  %vm1284_vm6 = vcmp.lt.f32.partialorder %v1260_v63, -0.01  ;;  %v1287_v13 = vadd.f32 0.01, %v1260_v63  ;;  %v1292_v21 = vsel %vm1277_vm7, %v1637_v8, %v1289_v12 }
 0x1d2   : > { %v1267_v14 = vsub.f32 %v1264_v3, %v1144_v47  ;;  %1327 = vst [vmem:[%s2023_s25 + $0x8] sm:$0xf] %v1657_v7  ;;  %v1262_v15 = vsub.f32 %v1203_v10, %v1006_v41  ;;  %vm1278_vm8 = vcmp.gt.f32.partialorder %v1260_v63, 0.01 }
 0x1d3   : > { %v1205_v16 = vpop.f32.mrf.mxu0  ;;  %v1247_v17 = vpop.f32.mrf.mxu1  ;;  %v1290_v18 = vsel %vm1284_vm6, %v1287_v13, 0.0 }
 0x1d4   : > { %v1276_v19 = vadd.f32 %v1272_v6, %v1267_v14  ;;  %v1263_v20 = vsub.f32 %v1205_v16, %v1008_v4  ;;  %v1293_v22 = vsel %vm1278_vm8, %v1638_v9, %v1290_v18  ;;  %v1265_v23 = vsub.f32 %v1262_v15, %v1103_v50 }
 0x1d5   : > { %v1207_v24 = vpop.f32.mrf.mxu0  ;;  %v1707_v25 = vpop.f32.mrf.mxu1  ;;  %v1656_v26 = vpack.c.bf16 %v1293_v22, %v1292_v21 }
 0x1d6   : > { %v1642_v27 = vadd.f32 -0.01, %v1276_v19  ;;  %v1274_v28 = vadd.f32 %v1272_v6, %v1265_v23  ;;  %vm1303_vm9 = vcmp.lt.f32.partialorder %v1276_v19, -0.01  ;;  %v1306_v29 = vadd.f32 0.01, %v1276_v19 }
 0x1d7   : > { %v1266_v30 = vsub.f32 %v1263_v20, %v1105_v53  ;;  %v1208_v31 = vpop.f32.mrf.mxu0  ;;  %1326 = vst [vmem:[%s2023_s25] sm:$0xff] %v1656_v26  ;;  %vm1297_vm11 = vcmp.gt.f32.partialorder %v1276_v19, 0.01 }
 0x1d8   : > { %vm1301_vm10 = vcmp.lt.f32.partialorder %v1274_v28, -0.01  ;;  %v1304_v33 = vadd.f32 0.01, %v1274_v28  ;;  %v1309_v34 = vsel %vm1303_vm9, %v1306_v29, 0.0 }
 0x1d9   : > { %v1275_v32 = vadd.f32 %v1272_v6, %v1266_v30  ;;  %v1640_v35 = vadd.f32 -0.01, %v1274_v28  ;;  %v1312_v36 = vsel %vm1297_vm11, %v1642_v27, %v1309_v34  ;;  %vm1295_vm13 = vcmp.gt.f32.partialorder %v1274_v28, 0.01  ;;  %v1650_v46 = vld [vmem:[%s2023_s25 + $0x8] sm:$0xf] (%p1901_p6) }
 0x1da   : > { %v1307_v38 = vsel %vm1301_vm10, %v1304_v33, 0.0  ;;  %v1659_v39 = vpack.c.bf16 %v1312_v36, %v1312_v36  ;;  %1651 = vst [vmem:[%s1355_s13 + $0x8] sm:$0xf] (%p1901_p6), %v1650_v46 }
 0x1db   : > { %v1641_v37 = vadd.f32 -0.01, %v1275_v32  ;;  %vm1302_vm12 = vcmp.lt.f32.partialorder %v1275_v32, -0.01  ;;  %v1305_v40 = vadd.f32 0.01, %v1275_v32  ;;  %v1310_v42 = vsel %vm1295_vm13, %v1640_v35, %v1307_v38 }
 0x1dc   : > { %1648 = vst [vmem:[%s2023_s25 + $0x14] sm:$0xf] %v1659_v39  ;;  %vm1296_vm14 = vcmp.gt.f32.partialorder %v1275_v32, 0.01 }
 0x1dd   : > { %v1308_v41 = vsel %vm1302_vm12, %v1305_v40, 0.0  ;;  %1350 = sbr.rel (!%p1901_p6) target bundleno = 490 (0x1ea), region = 94 }
 0x1de   : > { %v1311_v4 = vsel %vm1296_vm14, %v1641_v37, %v1308_v41  ;;  %v1370_v44 = vld [vmem:[%s2023_s25] sm:$0xff] (%p1901_p6) }
 0x1df   : > { %v1658_v43 = vpack.c.bf16 %v1311_v4, %v1310_v42  ;;  %1371 = vst [vmem:[%s1355_s13] sm:$0xff] (%p1901_p6), %v1370_v44 }
 0x1e1   : > { %1647 = vst [vmem:[%s2023_s25 + $0xc] sm:$0xff] %v1658_v43 }
 0x1e3   : > { %v1652_v47 = vld [vmem:[%s2023_s25 + $0x14] sm:$0xf] }
 0x1e4   : > { %1653 = vst [vmem:[%s1355_s13 + $0x38] sm:$0xf] %v1652_v47 }
 0x1e8   : > { %v1372_v45 = vld [vmem:[%s2023_s25 + $0xc] sm:$0xff] }
 0x1e9   : > { %1373 = vst [vmem:[%s1355_s13 + $0x30] sm:$0xff] %v1372_v45 }
 0x1ea PF: > { %s21_s21 = sadd.s32 1, %s1801_s21   ;;  %s2067_s17 = smov %s1789_s18 }
 0x1eb   : > { %p18_p12 = scmp.ge.s32.totalorder %s21_s21, 6   ;;  %s2068_s18 = smov %s1906_s27 }
 0x1ec   : > { %s2069_s19 = smov %s1797_s20  ;;  %s2070_s20 = smov %s2072_s22 }
 0x1ed   :  { %20 = sbr.rel (!%p18_p12) target bundleno = 3 (0x3), region = 195 }

// kernel: squeeze.26.clone
= control target key start
LH: loop header
LB: loop body
LE: loop exit
PB: predicated region body
PF: predicated region fallthrough
CT: control target
= control target key end

     0   :  { %s5079_s18 = smov 121   ;;  %vm2695_vm0 = vcmask 1014784   ;;  %s5080_s19 = smov 119   ;;  %vm2862_vm1 = vcmask 1031168   ;;  %vm195_vm2 = vcmask 72704   ;;  %vm2699_vm3 = vcmask 31744   ;;  %s6561_s0 = inlined_call_operand.vmem [shape: bf16[1,288,4,8], index: 0, kind: input, shape index: {}]   ;;  %s6562_s1 = inlined_call_operand.vmem [shape: bf16[2,16,9,32], index: 1, kind: output, shape index: {}]  }
   0x1   :  { %v4672_v0 = vld [vmem:[%s6561_s0 + $0x10] sm:$0xff]   ;;  %v4673_v1 = vld [vmem:[%s6561_s0 + $0x8] sm:$0xff]   ;;  %v4346_v2 = vld [vmem:[%s6561_s0] sm:$0xff]   ;;  %s5081_s20 = smov 114   ;;  %s5082_s21 = smov 112   ;;  %vm2716_vm4 = vcmask 72736  }
   0x2   :  { %v4340_v3 = vunpack.c.h.bf16 %v4672_v0  ;;  %v4343_v4 = vunpack.c.l.bf16 %v4673_v1  ;;  %v4339_v5 = vunpack.c.l.bf16 %v4672_v0  ;;  %v4669_v6 = vld [vmem:[%s6561_s0 + $0x28] sm:$0xff]   ;;  %v4670_v7 = vld [vmem:[%s6561_s0 + $0x20] sm:$0xff]   ;;  %v4671_v8 = vld [vmem:[%s6561_s0 + $0x18] sm:$0xff]   ;;  %v4348_v9 = vunpack.c.h.bf16 %v4346_v2  ;;  %s5078_s0 = smov 123   ;;  %s5083_s22 = smov 110  }
   0x3   :  { %v4328_v10 = vunpack.c.h.bf16 %v4669_v6  ;;  %v4331_v11 = vunpack.c.l.bf16 %v4670_v7  ;;  %v4327_v13 = vunpack.c.l.bf16 %v4669_v6  ;;  %v4336_v15 = vunpack.c.h.bf16 %v4671_v8  ;;  %s5084_s23 = smov 105   ;;  %s5085_s24 = smov 103  }
   0x4   :  { %v5137_v12 = vpack.i.bf16 %v4340_v3, %v4343_v4  ;;  %v5139_v14 = vpack.i.bf16 %v4339_v5, %v4348_v9  ;;  %v4344_v16 = vunpack.c.h.bf16 %v4673_v1  ;;  %v4347_v17 = vunpack.c.l.bf16 %v4346_v2  ;;  %s5086_s25 = smov 101   ;;  %s5087_s26 = smov 94  }
   0x5   :  { %v5142_v18 = vpack.i.bf16 %v4328_v10, %v4331_v11  ;;  %v4332_v19 = vunpack.c.h.bf16 %v4670_v7  ;;  %v4335_v20 = vunpack.c.l.bf16 %v4671_v8  ;;  %v5145_v21 = vpack.i.bf16 %v4327_v13, %v4336_v15  ;;  %s5088_s27 = smov 92   ;;  %s5089_s28 = smov 85  }
   0x6   :  { %4769 = vrot.lane.b32.xlu0 %v5137_v12, %s5078_s0  ;;  %4779 = vrot.lane.b32.xlu1 %v5139_v14, %s5079_s18  ;;  %v5148_v22 = vpack.i.bf16 %v4344_v16, %v4347_v17  ;;  %v5155_v24 = vsel %vm2695_vm0, %v4343_v4, %v4348_v9  ;;  %v5157_v25 = vsel %vm2695_vm0, %v4340_v3, %v4339_v5  ;;  %s5090_s29 = smov 83   ;;  %s5091_s30 = smov 76   ;;  %vm2866_vm5 = vcmask 15360  }
   0x7   :  { %v5151_v23 = vpack.i.bf16 %v4332_v19, %v4335_v20  ;;  %v4993_v26 = vpack.i.bf16 %v5157_v25, %v5155_v24  ;;  %v5161_v27 = vsel %vm2862_vm1, %v4348_v9, %v4347_v17  ;;  %v5163_v28 = vsel %vm2862_vm1, %v4339_v5, %v4344_v16  ;;  %196 = vst.msk [vmem:[#allocation0] sm:$0x1] %vm195_vm2, %v4347_v17   ;;  %s5092_s2 = smov 74   ;;  %s5093_s3 = smov 67  }
   0x8   :  { %v5165_v29 = vsel %vm2695_vm0, %v4331_v11, %v4336_v15  ;;  %v5003_v30 = vpack.i.bf16 %v5163_v28, %v5161_v27  ;;  %v5170_v31 = vsel %vm2695_vm0, %v4328_v10, %v4327_v13  ;;  %v5172_v32 = vsel %vm2862_vm1, %v4336_v15, %v4335_v20  ;;  %198 = vst.msk [vmem:[#allocation0 + $0x1f] sm:$0x2] %vm195_vm2, %v4347_v17   ;;  %s5094_s4 = smov 65   ;;  %s5095_s5 = smov 58  }
   0x9   :  { %v4998_v33 = vpack.i.bf16 %v5170_v31, %v5165_v29  ;;  %v5177_v34 = vsel %vm2862_vm1, %v4327_v13, %v4332_v19  ;;  %200 = vst.msk [vmem:[#allocation0 + $0x3e] sm:$0x4] %vm195_vm2, %v4347_v17   ;;  %202 = vst.msk [vmem:[#allocation0 + $0x5d] sm:$0x8] %vm195_vm2, %v4347_v17   ;;  %s5096_s6 = smov 56   ;;  %s5097_s7 = smov 49  }
   0xa   :  { %4774 = vrot.lane.b32.xlu0 %v5142_v18, %s5078_s0  ;;  %4784 = vrot.lane.b32.xlu1 %v5145_v21, %s5079_s18  ;;  %v5008_v35 = vpack.i.bf16 %v5177_v34, %v5172_v32  ;;  %204 = vst.msk [vmem:[#allocation0 + $0x7c] sm:$0x10] %vm195_vm2, %v4347_v17   ;;  %206 = vst.msk [vmem:[#allocation0 + $0x9b] sm:$0x20] %vm195_vm2, %v4347_v17   ;;  %s5098_s8 = smov 47   ;;  %s5099_s9 = smov 40  }
   0xb   :  { %208 = vst.msk [vmem:[#allocation0 + $0xba] sm:$0x40] %vm195_vm2, %v4347_v17   ;;  %210 = vst.msk [vmem:[#allocation0 + $0xd9] sm:$0x80] %vm195_vm2, %v4347_v17   ;;  %s5100_s10 = smov 38   ;;  %s5101_s11 = smov 4  }
   0xc   :  { %215 = vst.msk [vmem:[#allocation0 + $0x100] sm:$0x1] %vm195_vm2, %v4344_v16   ;;  %217 = vst.msk [vmem:[#allocation0 + $0x11f] sm:$0x2] %vm195_vm2, %v4344_v16   ;;  %s5102_s12 = smov 2   ;;  %s5103_s13 = smov 31  }
   0xd   :  { %219 = vst.msk [vmem:[#allocation0 + $0x13e] sm:$0x4] %vm195_vm2, %v4344_v16   ;;  %221 = vst.msk [vmem:[#allocation0 + $0x15d] sm:$0x8] %vm195_vm2, %v4344_v16   ;;  %s5104_s14 = smov 29   ;;  %s5105_s15 = smov 22  }
   0xe   :  { %4789 = vrot.lane.b32.xlu0 %v5148_v22, %s5080_s19  ;;  %4794 = vrot.lane.b32.xlu1 %v5151_v23, %s5080_s19  ;;  %223 = vst.msk [vmem:[#allocation0 + $0x17c] sm:$0x10] %vm195_vm2, %v4344_v16   ;;  %225 = vst.msk [vmem:[#allocation0 + $0x19b] sm:$0x20] %vm195_vm2, %v4344_v16   ;;  %s5106_s16 = smov 20   ;;  %s5107_s17 = smov 13  }
   0xf   :  { %227 = vst.msk [vmem:[#allocation0 + $0x1ba] sm:$0x40] %vm195_vm2, %v4344_v16   ;;  %229 = vst.msk [vmem:[#allocation0 + $0x1d9] sm:$0x80] %vm195_vm2, %v4344_v16   ;;  %s5108_s0 = smov 11   ;;  %vm2883_vm6 = vcmask 72720  }
  0x10   :  { %234 = vst.msk [vmem:[#allocation0 + $0x200] sm:$0x1] %vm195_vm2, %v4335_v20   ;;  %236 = vst.msk [vmem:[#allocation0 + $0x21f] sm:$0x2] %vm195_vm2, %v4335_v20  }
  0x11   :  { %238 = vst.msk [vmem:[#allocation0 + $0x23e] sm:$0x4] %vm195_vm2, %v4335_v20   ;;  %240 = vst.msk [vmem:[#allocation0 + $0x25d] sm:$0x8] %vm195_vm2, %v4335_v20  }
  0x12   :  { %4799 = vrot.lane.b32.xlu0 %v5137_v12, %s5081_s20  ;;  %4804 = vrot.lane.b32.xlu1 %v5142_v18, %s5081_s20  ;;  %242 = vst.msk [vmem:[#allocation0 + $0x27c] sm:$0x10] %vm195_vm2, %v4335_v20   ;;  %244 = vst.msk [vmem:[#allocation0 + $0x29b] sm:$0x20] %vm195_vm2, %v4335_v20  }
  0x13   :  { %246 = vst.msk [vmem:[#allocation0 + $0x2ba] sm:$0x40] %vm195_vm2, %v4335_v20   ;;  %248 = vst.msk [vmem:[#allocation0 + $0x2d9] sm:$0x80] %vm195_vm2, %v4335_v20  }
  0x14   :  { %253 = vst.msk [vmem:[#allocation0 + $0x300] sm:$0x1] %vm195_vm2, %v4332_v19   ;;  %255 = vst.msk [vmem:[#allocation0 + $0x31f] sm:$0x2] %vm195_vm2, %v4332_v19  }
  0x15   :  { %257 = vst.msk [vmem:[#allocation0 + $0x33e] sm:$0x4] %vm195_vm2, %v4332_v19   ;;  %259 = vst.msk [vmem:[#allocation0 + $0x35d] sm:$0x8] %vm195_vm2, %v4332_v19  }
  0x16   :  { %4809 = vrot.lane.b32.xlu0 %v5139_v14, %s5082_s21  ;;  %261 = vst.msk [vmem:[#allocation0 + $0x37c] sm:$0x10] %vm195_vm2, %v4332_v19   ;;  %263 = vst.msk [vmem:[#allocation0 + $0x39b] sm:$0x20] %vm195_vm2, %v4332_v19   ;;  %4814 = vrot.lane.b32.xlu1 %v5145_v21, %s5082_s21 }
  0x17   :  { %265 = vst.msk [vmem:[#allocation0 + $0x3ba] sm:$0x40] %vm195_vm2, %v4332_v19   ;;  %267 = vst.msk [vmem:[#allocation0 + $0x3d9] sm:$0x80] %vm195_vm2, %v4332_v19  }
  0x1a   :  { %4819 = vrot.lane.b32.xlu0 %v5148_v22, %s5083_s22  ;;  %4824 = vrot.lane.b32.xlu1 %v5151_v23, %s5083_s22 }
  0x1e   :  { %4829 = vrot.lane.b32.xlu0 %v5137_v12, %s5084_s23  ;;  %4834 = vrot.lane.b32.xlu1 %v5142_v18, %s5084_s23 }
  0x22   :  { %4839 = vrot.lane.b32.xlu0 %v5139_v14, %s5085_s24  ;;  %4844 = vrot.lane.b32.xlu1 %v5145_v21, %s5085_s24 }
  0x26   :  { %4849 = vrot.lane.b32.xlu0 %v5148_v22, %s5086_s25  ;;  %4854 = vrot.lane.b32.xlu1 %v5151_v23, %s5086_s25 }
  0x2a   :  { %4859 = vrot.lane.b32.xlu0 %v5139_v14, %s5087_s26  ;;  %4864 = vrot.lane.b32.xlu1 %v5145_v21, %s5087_s26 }
  0x2e   :  { %4869 = vrot.lane.b32.xlu0 %v5148_v22, %s5088_s27  ;;  %4874 = vrot.lane.b32.xlu1 %v5151_v23, %s5088_s27 }
  0x32   :  { %4879 = vrot.lane.b32.xlu0 %v5139_v14, %s5089_s28  ;;  %4884 = vrot.lane.b32.xlu1 %v5145_v21, %s5089_s28 }
  0x36   :  { %4889 = vrot.lane.b32.xlu0 %v5148_v22, %s5090_s29  ;;  %4894 = vrot.lane.b32.xlu1 %v5151_v23, %s5090_s29 }
  0x3a   :  { %4899 = vrot.lane.b32.xlu0 %v5139_v14, %s5091_s30  ;;  %4904 = vrot.lane.b32.xlu1 %v5145_v21, %s5091_s30 }
  0x3e   :  { %4909 = vrot.lane.b32.xlu0 %v5148_v22, %s5092_s2  ;;  %4914 = vrot.lane.b32.xlu1 %v5151_v23, %s5092_s2 }
  0x42   :  { %4919 = vrot.lane.b32.xlu0 %v5139_v14, %s5093_s3  ;;  %4924 = vrot.lane.b32.xlu1 %v5145_v21, %s5093_s3 }
  0x46   :  { %4929 = vrot.lane.b32.xlu0 %v5148_v22, %s5094_s4  ;;  %4934 = vrot.lane.b32.xlu1 %v5151_v23, %s5094_s4 }
  0x4a   :  { %4939 = vrot.lane.b32.xlu0 %v5139_v14, %s5095_s5  ;;  %4944 = vrot.lane.b32.xlu1 %v5145_v21, %s5095_s5 }
  0x4e   :  { %4949 = vrot.lane.b32.xlu0 %v5148_v22, %s5096_s6  ;;  %4954 = vrot.lane.b32.xlu1 %v5151_v23, %s5096_s6 }
  0x52   :  { %4959 = vrot.lane.b32.xlu0 %v5139_v14, %s5097_s7  ;;  %4964 = vrot.lane.b32.xlu1 %v5145_v21, %s5097_s7 }
  0x56   :  { %4969 = vrot.lane.b32.xlu0 %v5148_v22, %s5098_s8  ;;  %4974 = vrot.lane.b32.xlu1 %v5151_v23, %s5098_s8 }
  0x5a   :  { %4979 = vrot.lane.b32.xlu0 %v5139_v14, %s5099_s9  ;;  %4984 = vrot.lane.b32.xlu1 %v5145_v21, %s5099_s9 }
  0x5e   :  { %4989 = vrot.lane.b32.xlu0 %v5148_v22, %s5100_s10  ;;  %4994 = vrot.lane.b32.xlu1 %v4993_v26, %s5101_s11 }
  0x62   :  { %4999 = vrot.lane.b32.xlu0 %v4998_v33, %s5101_s11  ;;  %5004 = vrot.lane.b32.xlu1 %v5003_v30, %s5102_s12 }
  0x66   :  { %5009 = vrot.lane.b32.xlu0 %v5008_v35, %s5102_s12  ;;  %5014 = vrot.lane.b32.xlu1 %v5151_v23, %s5100_s10 }
  0x6a   :  { %5019 = vrot.lane.b32.xlu0 %v5139_v14, %s5103_s13  ;;  %5024 = vrot.lane.b32.xlu1 %v5145_v21, %s5103_s13 }
  0x6e   :  { %5029 = vrot.lane.b32.xlu0 %v5148_v22, %s5104_s14  ;;  %5034 = vrot.lane.b32.xlu1 %v5151_v23, %s5104_s14 }
  0x72   :  { %5039 = vrot.lane.b32.xlu0 %v5139_v14, %s5105_s15  ;;  %5044 = vrot.lane.b32.xlu1 %v5145_v21, %s5105_s15 }
  0x76   :  { %5049 = vrot.lane.b32.xlu0 %v5148_v22, %s5106_s16  ;;  %5054 = vrot.lane.b32.xlu1 %v5151_v23, %s5106_s16 }
  0x78   :  { %v4770_v36 = vpop.permute.xlu0 %4769  ;;  %v4780_v39 = vpop.permute.xlu1 %4779 }
  0x79   :  { %v4772_v37 = vunpack.i.h.bf16 %v4770_v36  ;;  %v4771_v38 = vunpack.i.l.bf16 %v4770_v36  ;;  %v4782_v40 = vunpack.i.h.bf16 %v4780_v39  ;;  %v4781_v41 = vunpack.i.l.bf16 %v4780_v39 }
  0x7a   :  { %5059 = vrot.lane.b32.xlu0 %v5139_v14, %s5107_s17  ;;  %5064 = vrot.lane.b32.xlu1 %v5145_v21, %s5107_s17 }
  0x7b   :  { %295 = vst.msk [vmem:[#allocation0 + $0x11d] sm:$0x1] %vm195_vm2, %v4772_v37   ;;  %297 = vst.msk [vmem:[#allocation0 + $0x13c] sm:$0x2] %vm195_vm2, %v4772_v37  }
  0x7c   :  { %299 = vst.msk [vmem:[#allocation0 + $0x15b] sm:$0x4] %vm195_vm2, %v4772_v37   ;;  %301 = vst.msk [vmem:[#allocation0 + $0x17a] sm:$0x8] %vm195_vm2, %v4772_v37   ;;  %v4775_v42 = vpop.permute.xlu0 %4774  ;;  %v4785_v45 = vpop.permute.xlu1 %4784 }
  0x7d   :  { %303 = vst.msk [vmem:[#allocation0 + $0x199] sm:$0x10] %vm195_vm2, %v4772_v37   ;;  %305 = vst.msk [vmem:[#allocation0 + $0x1b8] sm:$0x20] %vm195_vm2, %v4772_v37   ;;  %v4777_v43 = vunpack.i.h.bf16 %v4775_v42  ;;  %v4776_v44 = vunpack.i.l.bf16 %v4775_v42  ;;  %v4787_v46 = vunpack.i.h.bf16 %v4785_v45  ;;  %v4786_v47 = vunpack.i.l.bf16 %v4785_v45 }
  0x7e   :  { %307 = vst.msk [vmem:[#allocation0 + $0x1d7] sm:$0x40] %vm195_vm2, %v4772_v37   ;;  %309 = vst.msk [vmem:[#allocation0 + $0x1f6] sm:$0x80] %vm195_vm2, %v4772_v37   ;;  %5069 = vrot.lane.b32.xlu0 %v5148_v22, %s5108_s0  ;;  %5074 = vrot.lane.b32.xlu1 %v5151_v23, %s5108_s0 }
  0x7f   :  { %274 = vst.msk [vmem:[#allocation0 + $0x1d] sm:$0x1] %vm195_vm2, %v4771_v38   ;;  %276 = vst.msk [vmem:[#allocation0 + $0x3c] sm:$0x2] %vm195_vm2, %v4771_v38  }
  0x80   :  { %278 = vst.msk [vmem:[#allocation0 + $0x5b] sm:$0x4] %vm195_vm2, %v4771_v38   ;;  %280 = vst.msk [vmem:[#allocation0 + $0x7a] sm:$0x8] %vm195_vm2, %v4771_v38   ;;  %v4790_v48 = vpop.permute.xlu0 %4789  ;;  %v4795_v51 = vpop.permute.xlu1 %4794 }
  0x81   :  { %282 = vst.msk [vmem:[#allocation0 + $0x99] sm:$0x10] %vm195_vm2, %v4771_v38   ;;  %284 = vst.msk [vmem:[#allocation0 + $0xb8] sm:$0x20] %vm195_vm2, %v4771_v38   ;;  %v4792_v49 = vunpack.i.h.bf16 %v4790_v48  ;;  %v4791_v50 = vunpack.i.l.bf16 %v4790_v48  ;;  %v4797_v52 = vunpack.i.h.bf16 %v4795_v51  ;;  %v4796_v53 = vunpack.i.l.bf16 %v4795_v51 }
  0x82   :  { %286 = vst.msk [vmem:[#allocation0 + $0xd7] sm:$0x40] %vm195_vm2, %v4771_v38   ;;  %288 = vst.msk [vmem:[#allocation0 + $0xf6] sm:$0x80] %vm195_vm2, %v4771_v38  }
  0x83   :  { %379 = vst.msk [vmem:[#allocation0 + $0x10f] sm:$0x1] %vm195_vm2, %v4782_v40   ;;  %381 = vst.msk [vmem:[#allocation0 + $0x12e] sm:$0x2] %vm195_vm2, %v4782_v40  }
  0x84   :  { %383 = vst.msk [vmem:[#allocation0 + $0x14d] sm:$0x4] %vm195_vm2, %v4782_v40   ;;  %385 = vst.msk [vmem:[#allocation0 + $0x16c] sm:$0x8] %vm195_vm2, %v4782_v40   ;;  %v4800_v54 = vpop.permute.xlu0 %4799  ;;  %v4805_v57 = vpop.permute.xlu1 %4804 }
  0x85   :  { %387 = vst.msk [vmem:[#allocation0 + $0x18b] sm:$0x10] %vm195_vm2, %v4782_v40   ;;  %389 = vst.msk [vmem:[#allocation0 + $0x1aa] sm:$0x20] %vm195_vm2, %v4782_v40   ;;  %v4802_v55 = vunpack.i.h.bf16 %v4800_v54  ;;  %v4801_v56 = vunpack.i.l.bf16 %v4800_v54  ;;  %v4807_v58 = vunpack.i.h.bf16 %v4805_v57  ;;  %v4806_v59 = vunpack.i.l.bf16 %v4805_v57 }
  0x86   :  { %391 = vst.msk [vmem:[#allocation0 + $0x1c9] sm:$0x40] %vm195_vm2, %v4782_v40   ;;  %393 = vst.msk [vmem:[#allocation0 + $0x1e8] sm:$0x80] %vm195_vm2, %v4782_v40  }
  0x87   :  { %358 = vst.msk [vmem:[#allocation0 + $0xf] sm:$0x1] %vm195_vm2, %v4781_v41   ;;  %360 = vst.msk [vmem:[#allocation0 + $0x2e] sm:$0x2] %vm195_vm2, %v4781_v41  }
  0x88   :  { %362 = vst.msk [vmem:[#allocation0 + $0x4d] sm:$0x4] %vm195_vm2, %v4781_v41   ;;  %364 = vst.msk [vmem:[#allocation0 + $0x6c] sm:$0x8] %vm195_vm2, %v4781_v41   ;;  %v4810_v60 = vpop.permute.xlu0 %4809  ;;  %v4815_v63 = vpop.permute.xlu1 %4814 }
  0x89   :  { %366 = vst.msk [vmem:[#allocation0 + $0x8b] sm:$0x10] %vm195_vm2, %v4781_v41   ;;  %368 = vst.msk [vmem:[#allocation0 + $0xaa] sm:$0x20] %vm195_vm2, %v4781_v41   ;;  %v4812_v61 = vunpack.i.h.bf16 %v4810_v60  ;;  %v4811_v62 = vunpack.i.l.bf16 %v4810_v60  ;;  %v4817_v0 = vunpack.i.h.bf16 %v4815_v63  ;;  %v4816_v1 = vunpack.i.l.bf16 %v4815_v63 }
  0x8a   :  { %370 = vst.msk [vmem:[#allocation0 + $0xc9] sm:$0x40] %vm195_vm2, %v4781_v41   ;;  %372 = vst.msk [vmem:[#allocation0 + $0xe8] sm:$0x80] %vm195_vm2, %v4781_v41  }
  0x8b   :  { %337 = vst.msk [vmem:[#allocation0 + $0x31d] sm:$0x1] %vm195_vm2, %v4777_v43   ;;  %339 = vst.msk [vmem:[#allocation0 + $0x33c] sm:$0x2] %vm195_vm2, %v4777_v43  }
  0x8c   :  { %341 = vst.msk [vmem:[#allocation0 + $0x35b] sm:$0x4] %vm195_vm2, %v4777_v43   ;;  %343 = vst.msk [vmem:[#allocation0 + $0x37a] sm:$0x8] %vm195_vm2, %v4777_v43   ;;  %v4820_v2 = vpop.permute.xlu0 %4819  ;;  %v4825_v5 = vpop.permute.xlu1 %4824 }
  0x8d   :  { %345 = vst.msk [vmem:[#allocation0 + $0x399] sm:$0x10] %vm195_vm2, %v4777_v43   ;;  %347 = vst.msk [vmem:[#allocation0 + $0x3b8] sm:$0x20] %vm195_vm2, %v4777_v43   ;;  %v4822_v3 = vunpack.i.h.bf16 %v4820_v2  ;;  %v4821_v4 = vunpack.i.l.bf16 %v4820_v2  ;;  %v4827_v6 = vunpack.i.h.bf16 %v4825_v5  ;;  %v4826_v7 = vunpack.i.l.bf16 %v4825_v5 }
  0x8e   :  { %349 = vst.msk [vmem:[#allocation0 + $0x3d7] sm:$0x40] %vm195_vm2, %v4777_v43   ;;  %351 = vst.msk [vmem:[#allocation0 + $0x3f6] sm:$0x80] %vm195_vm2, %v4777_v43  }
  0x8f   :  { %316 = vst.msk [vmem:[#allocation0 + $0x21d] sm:$0x1] %vm195_vm2, %v4776_v44   ;;  %318 = vst.msk [vmem:[#allocation0 + $0x23c] sm:$0x2] %vm195_vm2, %v4776_v44  }
  0x90   :  { %320 = vst.msk [vmem:[#allocation0 + $0x25b] sm:$0x4] %vm195_vm2, %v4776_v44   ;;  %322 = vst.msk [vmem:[#allocation0 + $0x27a] sm:$0x8] %vm195_vm2, %v4776_v44   ;;  %v4830_v8 = vpop.permute.xlu0 %4829  ;;  %v4835_v11 = vpop.permute.xlu1 %4834 }
  0x91   :  { %324 = vst.msk [vmem:[#allocation0 + $0x299] sm:$0x10] %vm195_vm2, %v4776_v44   ;;  %326 = vst.msk [vmem:[#allocation0 + $0x2b8] sm:$0x20] %vm195_vm2, %v4776_v44   ;;  %v4832_v9 = vunpack.i.h.bf16 %v4830_v8  ;;  %v4831_v10 = vunpack.i.l.bf16 %v4830_v8  ;;  %v4837_v12 = vunpack.i.h.bf16 %v4835_v11  ;;  %v4836_v13 = vunpack.i.l.bf16 %v4835_v11 }
  0x92   :  { %328 = vst.msk [vmem:[#allocation0 + $0x2d7] sm:$0x40] %vm195_vm2, %v4776_v44   ;;  %330 = vst.msk [vmem:[#allocation0 + $0x2f6] sm:$0x80] %vm195_vm2, %v4776_v44  }
  0x93   :  { %421 = vst.msk [vmem:[#allocation0 + $0x30f] sm:$0x1] %vm195_vm2, %v4787_v46   ;;  %423 = vst.msk [vmem:[#allocation0 + $0x32e] sm:$0x2] %vm195_vm2, %v4787_v46  }
  0x94   :  { %425 = vst.msk [vmem:[#allocation0 + $0x34d] sm:$0x4] %vm195_vm2, %v4787_v46   ;;  %427 = vst.msk [vmem:[#allocation0 + $0x36c] sm:$0x8] %vm195_vm2, %v4787_v46   ;;  %v4840_v14 = vpop.permute.xlu0 %4839  ;;  %v4845_v17 = vpop.permute.xlu1 %4844 }
  0x95   :  { %429 = vst.msk [vmem:[#allocation0 + $0x38b] sm:$0x10] %vm195_vm2, %v4787_v46   ;;  %431 = vst.msk [vmem:[#allocation0 + $0x3aa] sm:$0x20] %vm195_vm2, %v4787_v46   ;;  %v4842_v15 = vunpack.i.h.bf16 %v4840_v14  ;;  %v4841_v16 = vunpack.i.l.bf16 %v4840_v14  ;;  %v4847_v18 = vunpack.i.h.bf16 %v4845_v17  ;;  %v4846_v19 = vunpack.i.l.bf16 %v4845_v17 }
  0x96   :  { %433 = vst.msk [vmem:[#allocation0 + $0x3c9] sm:$0x40] %vm195_vm2, %v4787_v46   ;;  %435 = vst.msk [vmem:[#allocation0 + $0x3e8] sm:$0x80] %vm195_vm2, %v4787_v46  }
  0x97   :  { %400 = vst.msk [vmem:[#allocation0 + $0x20f] sm:$0x1] %vm195_vm2, %v4786_v47   ;;  %402 = vst.msk [vmem:[#allocation0 + $0x22e] sm:$0x2] %vm195_vm2, %v4786_v47  }
  0x98   :  { %404 = vst.msk [vmem:[#allocation0 + $0x24d] sm:$0x4] %vm195_vm2, %v4786_v47   ;;  %406 = vst.msk [vmem:[#allocation0 + $0x26c] sm:$0x8] %vm195_vm2, %v4786_v47   ;;  %v4850_v20 = vpop.permute.xlu0 %4849  ;;  %v4855_v23 = vpop.permute.xlu1 %4854 }
  0x99   :  { %408 = vst.msk [vmem:[#allocation0 + $0x28b] sm:$0x10] %vm195_vm2, %v4786_v47   ;;  %410 = vst.msk [vmem:[#allocation0 + $0x2aa] sm:$0x20] %vm195_vm2, %v4786_v47   ;;  %v4852_v21 = vunpack.i.h.bf16 %v4850_v20  ;;  %v4851_v22 = vunpack.i.l.bf16 %v4850_v20  ;;  %v4857_v24 = vunpack.i.h.bf16 %v4855_v23  ;;  %v4856_v25 = vunpack.i.l.bf16 %v4855_v23 }
  0x9a   :  { %412 = vst.msk [vmem:[#allocation0 + $0x2c9] sm:$0x40] %vm195_vm2, %v4786_v47   ;;  %414 = vst.msk [vmem:[#allocation0 + $0x2e8] sm:$0x80] %vm195_vm2, %v4786_v47  }
  0x9b   :  { %462 = vst.msk [vmem:[#allocation0 + $0x101] sm:$0x1] %vm195_vm2, %v4792_v49   ;;  %464 = vst.msk [vmem:[#allocation0 + $0x120] sm:$0x2] %vm195_vm2, %v4792_v49  }
  0x9c   :  { %466 = vst.msk [vmem:[#allocation0 + $0x13f] sm:$0x4] %vm195_vm2, %v4792_v49   ;;  %468 = vst.msk [vmem:[#allocation0 + $0x15e] sm:$0x8] %vm195_vm2, %v4792_v49   ;;  %v4860_v26 = vpop.permute.xlu0 %4859  ;;  %v4865_v29 = vpop.permute.xlu1 %4864 }
  0x9d   :  { %470 = vst.msk [vmem:[#allocation0 + $0x17d] sm:$0x10] %vm195_vm2, %v4792_v49   ;;  %472 = vst.msk [vmem:[#allocation0 + $0x19c] sm:$0x20] %vm195_vm2, %v4792_v49   ;;  %v4862_v27 = vunpack.i.h.bf16 %v4860_v26  ;;  %v4861_v28 = vunpack.i.l.bf16 %v4860_v26  ;;  %v4867_v30 = vunpack.i.h.bf16 %v4865_v29  ;;  %v4866_v31 = vunpack.i.l.bf16 %v4865_v29 }
  0x9e   :  { %474 = vst.msk [vmem:[#allocation0 + $0x1bb] sm:$0x40] %vm195_vm2, %v4792_v49   ;;  %476 = vst.msk [vmem:[#allocation0 + $0x1da] sm:$0x80] %vm195_vm2, %v4792_v49  }
  0x9f   :  { %441 = vst.msk [vmem:[#allocation0 + $0x1] sm:$0x1] %vm195_vm2, %v4791_v50   ;;  %443 = vst.msk [vmem:[#allocation0 + $0x20] sm:$0x2] %vm195_vm2, %v4791_v50  }
  0xa0   :  { %445 = vst.msk [vmem:[#allocation0 + $0x3f] sm:$0x4] %vm195_vm2, %v4791_v50   ;;  %447 = vst.msk [vmem:[#allocation0 + $0x5e] sm:$0x8] %vm195_vm2, %v4791_v50   ;;  %v4870_v32 = vpop.permute.xlu0 %4869  ;;  %v4875_v35 = vpop.permute.xlu1 %4874 }
  0xa1   :  { %449 = vst.msk [vmem:[#allocation0 + $0x7d] sm:$0x10] %vm195_vm2, %v4791_v50   ;;  %451 = vst.msk [vmem:[#allocation0 + $0x9c] sm:$0x20] %vm195_vm2, %v4791_v50   ;;  %v4872_v33 = vunpack.i.h.bf16 %v4870_v32  ;;  %v4871_v34 = vunpack.i.l.bf16 %v4870_v32  ;;  %v4877_v36 = vunpack.i.h.bf16 %v4875_v35  ;;  %v4876_v37 = vunpack.i.l.bf16 %v4875_v35 }
  0xa2   :  { %453 = vst.msk [vmem:[#allocation0 + $0xbb] sm:$0x40] %vm195_vm2, %v4791_v50   ;;  %455 = vst.msk [vmem:[#allocation0 + $0xda] sm:$0x80] %vm195_vm2, %v4791_v50  }
  0xa3   :  { %504 = vst.msk [vmem:[#allocation0 + $0x301] sm:$0x1] %vm195_vm2, %v4797_v52   ;;  %506 = vst.msk [vmem:[#allocation0 + $0x320] sm:$0x2] %vm195_vm2, %v4797_v52  }
  0xa4   :  { %508 = vst.msk [vmem:[#allocation0 + $0x33f] sm:$0x4] %vm195_vm2, %v4797_v52   ;;  %510 = vst.msk [vmem:[#allocation0 + $0x35e] sm:$0x8] %vm195_vm2, %v4797_v52   ;;  %v4880_v38 = vpop.permute.xlu0 %4879  ;;  %v4885_v41 = vpop.permute.xlu1 %4884 }
  0xa5   :  { %512 = vst.msk [vmem:[#allocation0 + $0x37d] sm:$0x10] %vm195_vm2, %v4797_v52   ;;  %514 = vst.msk [vmem:[#allocation0 + $0x39c] sm:$0x20] %vm195_vm2, %v4797_v52   ;;  %v4882_v39 = vunpack.i.h.bf16 %v4880_v38  ;;  %v4881_v40 = vunpack.i.l.bf16 %v4880_v38  ;;  %v4887_v42 = vunpack.i.h.bf16 %v4885_v41  ;;  %v4886_v43 = vunpack.i.l.bf16 %v4885_v41 }
  0xa6   :  { %516 = vst.msk [vmem:[#allocation0 + $0x3bb] sm:$0x40] %vm195_vm2, %v4797_v52   ;;  %518 = vst.msk [vmem:[#allocation0 + $0x3da] sm:$0x80] %vm195_vm2, %v4797_v52  }
  0xa7   :  { %483 = vst.msk [vmem:[#allocation0 + $0x201] sm:$0x1] %vm195_vm2, %v4796_v53   ;;  %485 = vst.msk [vmem:[#allocation0 + $0x220] sm:$0x2] %vm195_vm2, %v4796_v53  }
  0xa8   :  { %487 = vst.msk [vmem:[#allocation0 + $0x23f] sm:$0x4] %vm195_vm2, %v4796_v53   ;;  %489 = vst.msk [vmem:[#allocation0 + $0x25e] sm:$0x8] %vm195_vm2, %v4796_v53   ;;  %v4890_v44 = vpop.permute.xlu0 %4889  ;;  %v4895_v47 = vpop.permute.xlu1 %4894 }
  0xa9   :  { %491 = vst.msk [vmem:[#allocation0 + $0x27d] sm:$0x10] %vm195_vm2, %v4796_v53   ;;  %493 = vst.msk [vmem:[#allocation0 + $0x29c] sm:$0x20] %vm195_vm2, %v4796_v53   ;;  %v4892_v45 = vunpack.i.h.bf16 %v4890_v44  ;;  %v4891_v46 = vunpack.i.l.bf16 %v4890_v44  ;;  %v4897_v48 = vunpack.i.h.bf16 %v4895_v47  ;;  %v4896_v49 = vunpack.i.l.bf16 %v4895_v47 }
  0xaa   :  { %495 = vst.msk [vmem:[#allocation0 + $0x2bb] sm:$0x40] %vm195_vm2, %v4796_v53   ;;  %497 = vst.msk [vmem:[#allocation0 + $0x2da] sm:$0x80] %vm195_vm2, %v4796_v53  }
  0xab   :  { %546 = vst.msk [vmem:[#allocation0 + $0x11e] sm:$0x1] %vm195_vm2, %v4802_v55   ;;  %548 = vst.msk [vmem:[#allocation0 + $0x13d] sm:$0x2] %vm195_vm2, %v4802_v55  }
  0xac   :  { %550 = vst.msk [vmem:[#allocation0 + $0x15c] sm:$0x4] %vm195_vm2, %v4802_v55   ;;  %552 = vst.msk [vmem:[#allocation0 + $0x17b] sm:$0x8] %vm195_vm2, %v4802_v55   ;;  %v4900_v50 = vpop.permute.xlu0 %4899  ;;  %v4905_v53 = vpop.permute.xlu1 %4904 }
  0xad   :  { %554 = vst.msk [vmem:[#allocation0 + $0x19a] sm:$0x10] %vm195_vm2, %v4802_v55   ;;  %556 = vst.msk [vmem:[#allocation0 + $0x1b9] sm:$0x20] %vm195_vm2, %v4802_v55   ;;  %v4902_v51 = vunpack.i.h.bf16 %v4900_v50  ;;  %v4901_v52 = vunpack.i.l.bf16 %v4900_v50  ;;  %v4907_v54 = vunpack.i.h.bf16 %v4905_v53 }
  0xae   :  { %558 = vst.msk [vmem:[#allocation0 + $0x1d8] sm:$0x40] %vm195_vm2, %v4802_v55   ;;  %560 = vst.msk [vmem:[#allocation0 + $0x1f7] sm:$0x80] %vm195_vm2, %v4802_v55   ;;  %v4906_v55 = vunpack.i.l.bf16 %v4905_v53 }
  0xaf   :  { %525 = vst.msk [vmem:[#allocation0 + $0x1e] sm:$0x1] %vm195_vm2, %v4801_v56   ;;  %527 = vst.msk [vmem:[#allocation0 + $0x3d] sm:$0x2] %vm195_vm2, %v4801_v56  }
  0xb0   :  { %529 = vst.msk [vmem:[#allocation0 + $0x5c] sm:$0x4] %vm195_vm2, %v4801_v56   ;;  %531 = vst.msk [vmem:[#allocation0 + $0x7b] sm:$0x8] %vm195_vm2, %v4801_v56  }
  0xb1   :  { %533 = vst.msk [vmem:[#allocation0 + $0x9a] sm:$0x10] %vm195_vm2, %v4801_v56   ;;  %535 = vst.msk [vmem:[#allocation0 + $0xb9] sm:$0x20] %vm195_vm2, %v4801_v56  }
  0xb2   :  { %537 = vst.msk [vmem:[#allocation0 + $0xd8] sm:$0x40] %vm195_vm2, %v4801_v56   ;;  %539 = vst.msk [vmem:[#allocation0 + $0xf7] sm:$0x80] %vm195_vm2, %v4801_v56   ;;  %v4910_v56 = vpop.permute.xlu0 %4909 }
  0xb3   :  { %588 = vst.msk [vmem:[#allocation0 + $0x31e] sm:$0x1] %vm195_vm2, %v4807_v58   ;;  %590 = vst.msk [vmem:[#allocation0 + $0x33d] sm:$0x2] %vm195_vm2, %v4807_v58   ;;  %v4912_v57 = vunpack.i.h.bf16 %v4910_v56 }
  0xb4   :  { %592 = vst.msk [vmem:[#allocation0 + $0x35c] sm:$0x4] %vm195_vm2, %v4807_v58   ;;  %594 = vst.msk [vmem:[#allocation0 + $0x37b] sm:$0x8] %vm195_vm2, %v4807_v58  }
  0xb5   :  { %596 = vst.msk [vmem:[#allocation0 + $0x39a] sm:$0x10] %vm195_vm2, %v4807_v58   ;;  %598 = vst.msk [vmem:[#allocation0 + $0x3b9] sm:$0x20] %vm195_vm2, %v4807_v58  }
  0xb6   :  { %600 = vst.msk [vmem:[#allocation0 + $0x3d8] sm:$0x40] %vm195_vm2, %v4807_v58   ;;  %602 = vst.msk [vmem:[#allocation0 + $0x3f7] sm:$0x80] %vm195_vm2, %v4807_v58   ;;  %v4911_v58 = vunpack.i.l.bf16 %v4910_v56 }
  0xb7   :  { %567 = vst.msk [vmem:[#allocation0 + $0x21e] sm:$0x1] %vm195_vm2, %v4806_v59   ;;  %569 = vst.msk [vmem:[#allocation0 + $0x23d] sm:$0x2] %vm195_vm2, %v4806_v59  }
  0xb8   :  { %571 = vst.msk [vmem:[#allocation0 + $0x25c] sm:$0x4] %vm195_vm2, %v4806_v59   ;;  %573 = vst.msk [vmem:[#allocation0 + $0x27b] sm:$0x8] %vm195_vm2, %v4806_v59  }
  0xb9   :  { %575 = vst.msk [vmem:[#allocation0 + $0x29a] sm:$0x10] %vm195_vm2, %v4806_v59   ;;  %577 = vst.msk [vmem:[#allocation0 + $0x2b9] sm:$0x20] %vm195_vm2, %v4806_v59  }
  0xba   :  { %579 = vst.msk [vmem:[#allocation0 + $0x2d8] sm:$0x40] %vm195_vm2, %v4806_v59   ;;  %581 = vst.msk [vmem:[#allocation0 + $0x2f7] sm:$0x80] %vm195_vm2, %v4806_v59   ;;  %v4915_v59 = vpop.permute.xlu1 %4914 }
  0xbb   :  { %630 = vst.msk [vmem:[#allocation0 + $0x110] sm:$0x1] %vm195_vm2, %v4812_v61   ;;  %632 = vst.msk [vmem:[#allocation0 + $0x12f] sm:$0x2] %vm195_vm2, %v4812_v61   ;;  %v4917_v60 = vunpack.i.h.bf16 %v4915_v59 }
  0xbc   :  { %634 = vst.msk [vmem:[#allocation0 + $0x14e] sm:$0x4] %vm195_vm2, %v4812_v61   ;;  %636 = vst.msk [vmem:[#allocation0 + $0x16d] sm:$0x8] %vm195_vm2, %v4812_v61  }
  0xbd   :  { %638 = vst.msk [vmem:[#allocation0 + $0x18c] sm:$0x10] %vm195_vm2, %v4812_v61   ;;  %640 = vst.msk [vmem:[#allocation0 + $0x1ab] sm:$0x20] %vm195_vm2, %v4812_v61  }
  0xbe   :  { %642 = vst.msk [vmem:[#allocation0 + $0x1ca] sm:$0x40] %vm195_vm2, %v4812_v61   ;;  %644 = vst.msk [vmem:[#allocation0 + $0x1e9] sm:$0x80] %vm195_vm2, %v4812_v61   ;;  %v4916_v61 = vunpack.i.l.bf16 %v4915_v59 }
  0xbf   :  { %609 = vst.msk [vmem:[#allocation0 + $0x10] sm:$0x1] %vm195_vm2, %v4811_v62   ;;  %611 = vst.msk [vmem:[#allocation0 + $0x2f] sm:$0x2] %vm195_vm2, %v4811_v62  }
  0xc0   :  { %613 = vst.msk [vmem:[#allocation0 + $0x4e] sm:$0x4] %vm195_vm2, %v4811_v62   ;;  %615 = vst.msk [vmem:[#allocation0 + $0x6d] sm:$0x8] %vm195_vm2, %v4811_v62  }
  0xc1   :  { %617 = vst.msk [vmem:[#allocation0 + $0x8c] sm:$0x10] %vm195_vm2, %v4811_v62   ;;  %619 = vst.msk [vmem:[#allocation0 + $0xab] sm:$0x20] %vm195_vm2, %v4811_v62  }
  0xc2   :  { %621 = vst.msk [vmem:[#allocation0 + $0xca] sm:$0x40] %vm195_vm2, %v4811_v62   ;;  %623 = vst.msk [vmem:[#allocation0 + $0xe9] sm:$0x80] %vm195_vm2, %v4811_v62   ;;  %v4920_v62 = vpop.permute.xlu0 %4919 }
  0xc3   :  { %672 = vst.msk [vmem:[#allocation0 + $0x310] sm:$0x1] %vm195_vm2, %v4817_v0   ;;  %674 = vst.msk [vmem:[#allocation0 + $0x32f] sm:$0x2] %vm195_vm2, %v4817_v0   ;;  %v4922_v63 = vunpack.i.h.bf16 %v4920_v62 }
  0xc4   :  { %676 = vst.msk [vmem:[#allocation0 + $0x34e] sm:$0x4] %vm195_vm2, %v4817_v0   ;;  %678 = vst.msk [vmem:[#allocation0 + $0x36d] sm:$0x8] %vm195_vm2, %v4817_v0  }
  0xc5   :  { %680 = vst.msk [vmem:[#allocation0 + $0x38c] sm:$0x10] %vm195_vm2, %v4817_v0   ;;  %682 = vst.msk [vmem:[#allocation0 + $0x3ab] sm:$0x20] %vm195_vm2, %v4817_v0  }
  0xc6   :  { %684 = vst.msk [vmem:[#allocation0 + $0x3ca] sm:$0x40] %vm195_vm2, %v4817_v0   ;;  %686 = vst.msk [vmem:[#allocation0 + $0x3e9] sm:$0x80] %vm195_vm2, %v4817_v0   ;;  %v4921_v0 = vunpack.i.l.bf16 %v4920_v62 }
  0xc7   :  { %651 = vst.msk [vmem:[#allocation0 + $0x210] sm:$0x1] %vm195_vm2, %v4816_v1   ;;  %653 = vst.msk [vmem:[#allocation0 + $0x22f] sm:$0x2] %vm195_vm2, %v4816_v1  }
  0xc8   :  { %655 = vst.msk [vmem:[#allocation0 + $0x24e] sm:$0x4] %vm195_vm2, %v4816_v1   ;;  %657 = vst.msk [vmem:[#allocation0 + $0x26d] sm:$0x8] %vm195_vm2, %v4816_v1  }
  0xc9   :  { %659 = vst.msk [vmem:[#allocation0 + $0x28c] sm:$0x10] %vm195_vm2, %v4816_v1   ;;  %661 = vst.msk [vmem:[#allocation0 + $0x2ab] sm:$0x20] %vm195_vm2, %v4816_v1  }
  0xca   :  { %663 = vst.msk [vmem:[#allocation0 + $0x2ca] sm:$0x40] %vm195_vm2, %v4816_v1   ;;  %665 = vst.msk [vmem:[#allocation0 + $0x2e9] sm:$0x80] %vm195_vm2, %v4816_v1   ;;  %v4925_v1 = vpop.permute.xlu1 %4924 }
  0xcb   :  { %713 = vst.msk [vmem:[#allocation0 + $0x102] sm:$0x1] %vm195_vm2, %v4822_v3   ;;  %715 = vst.msk [vmem:[#allocation0 + $0x121] sm:$0x2] %vm195_vm2, %v4822_v3   ;;  %v4927_v2 = vunpack.i.h.bf16 %v4925_v1 }
  0xcc   :  { %717 = vst.msk [vmem:[#allocation0 + $0x140] sm:$0x4] %vm195_vm2, %v4822_v3   ;;  %719 = vst.msk [vmem:[#allocation0 + $0x15f] sm:$0x8] %vm195_vm2, %v4822_v3  }
  0xcd   :  { %721 = vst.msk [vmem:[#allocation0 + $0x17e] sm:$0x10] %vm195_vm2, %v4822_v3   ;;  %723 = vst.msk [vmem:[#allocation0 + $0x19d] sm:$0x20] %vm195_vm2, %v4822_v3  }
  0xce   :  { %725 = vst.msk [vmem:[#allocation0 + $0x1bc] sm:$0x40] %vm195_vm2, %v4822_v3   ;;  %727 = vst.msk [vmem:[#allocation0 + $0x1db] sm:$0x80] %vm195_vm2, %v4822_v3   ;;  %v4926_v3 = vunpack.i.l.bf16 %v4925_v1 }
  0xcf   :  { %692 = vst.msk [vmem:[#allocation0 + $0x2] sm:$0x1] %vm195_vm2, %v4821_v4   ;;  %694 = vst.msk [vmem:[#allocation0 + $0x21] sm:$0x2] %vm195_vm2, %v4821_v4  }
  0xd0   :  { %696 = vst.msk [vmem:[#allocation0 + $0x40] sm:$0x4] %vm195_vm2, %v4821_v4   ;;  %698 = vst.msk [vmem:[#allocation0 + $0x5f] sm:$0x8] %vm195_vm2, %v4821_v4  }
  0xd1   :  { %700 = vst.msk [vmem:[#allocation0 + $0x7e] sm:$0x10] %vm195_vm2, %v4821_v4   ;;  %702 = vst.msk [vmem:[#allocation0 + $0x9d] sm:$0x20] %vm195_vm2, %v4821_v4  }
  0xd2   :  { %704 = vst.msk [vmem:[#allocation0 + $0xbc] sm:$0x40] %vm195_vm2, %v4821_v4   ;;  %706 = vst.msk [vmem:[#allocation0 + $0xdb] sm:$0x80] %vm195_vm2, %v4821_v4   ;;  %v4930_v4 = vpop.permute.xlu0 %4929 }
  0xd3   :  { %755 = vst.msk [vmem:[#allocation0 + $0x302] sm:$0x1] %vm195_vm2, %v4827_v6   ;;  %757 = vst.msk [vmem:[#allocation0 + $0x321] sm:$0x2] %vm195_vm2, %v4827_v6   ;;  %v4932_v5 = vunpack.i.h.bf16 %v4930_v4 }
  0xd4   :  { %759 = vst.msk [vmem:[#allocation0 + $0x340] sm:$0x4] %vm195_vm2, %v4827_v6   ;;  %761 = vst.msk [vmem:[#allocation0 + $0x35f] sm:$0x8] %vm195_vm2, %v4827_v6  }
  0xd5   :  { %763 = vst.msk [vmem:[#allocation0 + $0x37e] sm:$0x10] %vm195_vm2, %v4827_v6   ;;  %765 = vst.msk [vmem:[#allocation0 + $0x39d] sm:$0x20] %vm195_vm2, %v4827_v6  }
  0xd6   :  { %767 = vst.msk [vmem:[#allocation0 + $0x3bc] sm:$0x40] %vm195_vm2, %v4827_v6   ;;  %769 = vst.msk [vmem:[#allocation0 + $0x3db] sm:$0x80] %vm195_vm2, %v4827_v6   ;;  %v4931_v6 = vunpack.i.l.bf16 %v4930_v4 }
  0xd7   :  { %734 = vst.msk [vmem:[#allocation0 + $0x202] sm:$0x1] %vm195_vm2, %v4826_v7   ;;  %736 = vst.msk [vmem:[#allocation0 + $0x221] sm:$0x2] %vm195_vm2, %v4826_v7  }
  0xd8   :  { %738 = vst.msk [vmem:[#allocation0 + $0x240] sm:$0x4] %vm195_vm2, %v4826_v7   ;;  %740 = vst.msk [vmem:[#allocation0 + $0x25f] sm:$0x8] %vm195_vm2, %v4826_v7  }
  0xd9   :  { %742 = vst.msk [vmem:[#allocation0 + $0x27e] sm:$0x10] %vm195_vm2, %v4826_v7   ;;  %744 = vst.msk [vmem:[#allocation0 + $0x29d] sm:$0x20] %vm195_vm2, %v4826_v7  }
  0xda   :  { %746 = vst.msk [vmem:[#allocation0 + $0x2bc] sm:$0x40] %vm195_vm2, %v4826_v7   ;;  %748 = vst.msk [vmem:[#allocation0 + $0x2db] sm:$0x80] %vm195_vm2, %v4826_v7   ;;  %v4935_v7 = vpop.permute.xlu1 %4934 }
  0xdb   :  { %797 = vst.msk [vmem:[#allocation0 + $0x11f] sm:$0x1] %vm195_vm2, %v4832_v9   ;;  %799 = vst.msk [vmem:[#allocation0 + $0x13e] sm:$0x2] %vm195_vm2, %v4832_v9   ;;  %v4937_v8 = vunpack.i.h.bf16 %v4935_v7 }
  0xdc   :  { %801 = vst.msk [vmem:[#allocation0 + $0x15d] sm:$0x4] %vm195_vm2, %v4832_v9   ;;  %803 = vst.msk [vmem:[#allocation0 + $0x17c] sm:$0x8] %vm195_vm2, %v4832_v9  }
  0xdd   :  { %805 = vst.msk [vmem:[#allocation0 + $0x19b] sm:$0x10] %vm195_vm2, %v4832_v9   ;;  %807 = vst.msk [vmem:[#allocation0 + $0x1ba] sm:$0x20] %vm195_vm2, %v4832_v9  }
  0xde   :  { %809 = vst.msk [vmem:[#allocation0 + $0x1d9] sm:$0x40] %vm195_vm2, %v4832_v9   ;;  %811 = vst.msk [vmem:[#allocation0 + $0x1f8] sm:$0x80] %vm195_vm2, %v4832_v9   ;;  %v4936_v9 = vunpack.i.l.bf16 %v4935_v7 }
  0xdf   :  { %776 = vst.msk [vmem:[#allocation0 + $0x1f] sm:$0x1] %vm195_vm2, %v4831_v10   ;;  %778 = vst.msk [vmem:[#allocation0 + $0x3e] sm:$0x2] %vm195_vm2, %v4831_v10  }
  0xe0   :  { %780 = vst.msk [vmem:[#allocation0 + $0x5d] sm:$0x4] %vm195_vm2, %v4831_v10   ;;  %782 = vst.msk [vmem:[#allocation0 + $0x7c] sm:$0x8] %vm195_vm2, %v4831_v10  }
  0xe1   :  { %784 = vst.msk [vmem:[#allocation0 + $0x9b] sm:$0x10] %vm195_vm2, %v4831_v10   ;;  %786 = vst.msk [vmem:[#allocation0 + $0xba] sm:$0x20] %vm195_vm2, %v4831_v10  }
  0xe2   :  { %788 = vst.msk [vmem:[#allocation0 + $0xd9] sm:$0x40] %vm195_vm2, %v4831_v10   ;;  %790 = vst.msk [vmem:[#allocation0 + $0xf8] sm:$0x80] %vm195_vm2, %v4831_v10   ;;  %v4940_v10 = vpop.permute.xlu0 %4939 }
  0xe3   :  { %839 = vst.msk [vmem:[#allocation0 + $0x31f] sm:$0x1] %vm195_vm2, %v4837_v12   ;;  %841 = vst.msk [vmem:[#allocation0 + $0x33e] sm:$0x2] %vm195_vm2, %v4837_v12   ;;  %v4942_v11 = vunpack.i.h.bf16 %v4940_v10 }
  0xe4   :  { %843 = vst.msk [vmem:[#allocation0 + $0x35d] sm:$0x4] %vm195_vm2, %v4837_v12   ;;  %845 = vst.msk [vmem:[#allocation0 + $0x37c] sm:$0x8] %vm195_vm2, %v4837_v12  }
  0xe5   :  { %847 = vst.msk [vmem:[#allocation0 + $0x39b] sm:$0x10] %vm195_vm2, %v4837_v12   ;;  %849 = vst.msk [vmem:[#allocation0 + $0x3ba] sm:$0x20] %vm195_vm2, %v4837_v12  }
  0xe6   :  { %851 = vst.msk [vmem:[#allocation0 + $0x3d9] sm:$0x40] %vm195_vm2, %v4837_v12   ;;  %853 = vst.msk [vmem:[#allocation0 + $0x3f8] sm:$0x80] %vm195_vm2, %v4837_v12   ;;  %v4941_v12 = vunpack.i.l.bf16 %v4940_v10 }
  0xe7   :  { %818 = vst.msk [vmem:[#allocation0 + $0x21f] sm:$0x1] %vm195_vm2, %v4836_v13   ;;  %820 = vst.msk [vmem:[#allocation0 + $0x23e] sm:$0x2] %vm195_vm2, %v4836_v13  }
  0xe8   :  { %822 = vst.msk [vmem:[#allocation0 + $0x25d] sm:$0x4] %vm195_vm2, %v4836_v13   ;;  %824 = vst.msk [vmem:[#allocation0 + $0x27c] sm:$0x8] %vm195_vm2, %v4836_v13  }
  0xe9   :  { %826 = vst.msk [vmem:[#allocation0 + $0x29b] sm:$0x10] %vm195_vm2, %v4836_v13   ;;  %828 = vst.msk [vmem:[#allocation0 + $0x2ba] sm:$0x20] %vm195_vm2, %v4836_v13  }
  0xea   :  { %830 = vst.msk [vmem:[#allocation0 + $0x2d9] sm:$0x40] %vm195_vm2, %v4836_v13   ;;  %832 = vst.msk [vmem:[#allocation0 + $0x2f8] sm:$0x80] %vm195_vm2, %v4836_v13   ;;  %v4945_v13 = vpop.permute.xlu1 %4944 }
  0xeb   :  { %881 = vst.msk [vmem:[#allocation0 + $0x111] sm:$0x1] %vm195_vm2, %v4842_v15   ;;  %883 = vst.msk [vmem:[#allocation0 + $0x130] sm:$0x2] %vm195_vm2, %v4842_v15   ;;  %v4947_v14 = vunpack.i.h.bf16 %v4945_v13 }
  0xec   :  { %885 = vst.msk [vmem:[#allocation0 + $0x14f] sm:$0x4] %vm195_vm2, %v4842_v15   ;;  %887 = vst.msk [vmem:[#allocation0 + $0x16e] sm:$0x8] %vm195_vm2, %v4842_v15  }
  0xed   :  { %889 = vst.msk [vmem:[#allocation0 + $0x18d] sm:$0x10] %vm195_vm2, %v4842_v15   ;;  %891 = vst.msk [vmem:[#allocation0 + $0x1ac] sm:$0x20] %vm195_vm2, %v4842_v15  }
  0xee   :  { %893 = vst.msk [vmem:[#allocation0 + $0x1cb] sm:$0x40] %vm195_vm2, %v4842_v15   ;;  %895 = vst.msk [vmem:[#allocation0 + $0x1ea] sm:$0x80] %vm195_vm2, %v4842_v15   ;;  %v4946_v15 = vunpack.i.l.bf16 %v4945_v13 }
  0xef   :  { %860 = vst.msk [vmem:[#allocation0 + $0x11] sm:$0x1] %vm195_vm2, %v4841_v16   ;;  %862 = vst.msk [vmem:[#allocation0 + $0x30] sm:$0x2] %vm195_vm2, %v4841_v16  }
  0xf0   :  { %864 = vst.msk [vmem:[#allocation0 + $0x4f] sm:$0x4] %vm195_vm2, %v4841_v16   ;;  %866 = vst.msk [vmem:[#allocation0 + $0x6e] sm:$0x8] %vm195_vm2, %v4841_v16  }
  0xf1   :  { %868 = vst.msk [vmem:[#allocation0 + $0x8d] sm:$0x10] %vm195_vm2, %v4841_v16   ;;  %870 = vst.msk [vmem:[#allocation0 + $0xac] sm:$0x20] %vm195_vm2, %v4841_v16  }
  0xf2   :  { %872 = vst.msk [vmem:[#allocation0 + $0xcb] sm:$0x40] %vm195_vm2, %v4841_v16   ;;  %874 = vst.msk [vmem:[#allocation0 + $0xea] sm:$0x80] %vm195_vm2, %v4841_v16   ;;  %v4950_v16 = vpop.permute.xlu0 %4949 }
  0xf3   :  { %923 = vst.msk [vmem:[#allocation0 + $0x311] sm:$0x1] %vm195_vm2, %v4847_v18   ;;  %925 = vst.msk [vmem:[#allocation0 + $0x330] sm:$0x2] %vm195_vm2, %v4847_v18   ;;  %v4952_v17 = vunpack.i.h.bf16 %v4950_v16 }
  0xf4   :  { %927 = vst.msk [vmem:[#allocation0 + $0x34f] sm:$0x4] %vm195_vm2, %v4847_v18   ;;  %929 = vst.msk [vmem:[#allocation0 + $0x36e] sm:$0x8] %vm195_vm2, %v4847_v18  }
  0xf5   :  { %931 = vst.msk [vmem:[#allocation0 + $0x38d] sm:$0x10] %vm195_vm2, %v4847_v18   ;;  %933 = vst.msk [vmem:[#allocation0 + $0x3ac] sm:$0x20] %vm195_vm2, %v4847_v18  }
  0xf6   :  { %935 = vst.msk [vmem:[#allocation0 + $0x3cb] sm:$0x40] %vm195_vm2, %v4847_v18   ;;  %937 = vst.msk [vmem:[#allocation0 + $0x3ea] sm:$0x80] %vm195_vm2, %v4847_v18   ;;  %v4951_v18 = vunpack.i.l.bf16 %v4950_v16 }
  0xf7   :  { %902 = vst.msk [vmem:[#allocation0 + $0x211] sm:$0x1] %vm195_vm2, %v4846_v19   ;;  %904 = vst.msk [vmem:[#allocation0 + $0x230] sm:$0x2] %vm195_vm2, %v4846_v19  }
  0xf8   :  { %906 = vst.msk [vmem:[#allocation0 + $0x24f] sm:$0x4] %vm195_vm2, %v4846_v19   ;;  %908 = vst.msk [vmem:[#allocation0 + $0x26e] sm:$0x8] %vm195_vm2, %v4846_v19  }
  0xf9   :  { %910 = vst.msk [vmem:[#allocation0 + $0x28d] sm:$0x10] %vm195_vm2, %v4846_v19   ;;  %912 = vst.msk [vmem:[#allocation0 + $0x2ac] sm:$0x20] %vm195_vm2, %v4846_v19  }
  0xfa   :  { %914 = vst.msk [vmem:[#allocation0 + $0x2cb] sm:$0x40] %vm195_vm2, %v4846_v19   ;;  %916 = vst.msk [vmem:[#allocation0 + $0x2ea] sm:$0x80] %vm195_vm2, %v4846_v19   ;;  %v4955_v19 = vpop.permute.xlu1 %4954 }
  0xfb   :  { %964 = vst.msk [vmem:[#allocation0 + $0x103] sm:$0x1] %vm195_vm2, %v4852_v21   ;;  %966 = vst.msk [vmem:[#allocation0 + $0x122] sm:$0x2] %vm195_vm2, %v4852_v21   ;;  %v4957_v20 = vunpack.i.h.bf16 %v4955_v19 }
  0xfc   :  { %968 = vst.msk [vmem:[#allocation0 + $0x141] sm:$0x4] %vm195_vm2, %v4852_v21   ;;  %970 = vst.msk [vmem:[#allocation0 + $0x160] sm:$0x8] %vm195_vm2, %v4852_v21  }
  0xfd   :  { %972 = vst.msk [vmem:[#allocation0 + $0x17f] sm:$0x10] %vm195_vm2, %v4852_v21   ;;  %974 = vst.msk [vmem:[#allocation0 + $0x19e] sm:$0x20] %vm195_vm2, %v4852_v21  }
  0xfe   :  { %976 = vst.msk [vmem:[#allocation0 + $0x1bd] sm:$0x40] %vm195_vm2, %v4852_v21   ;;  %978 = vst.msk [vmem:[#allocation0 + $0x1dc] sm:$0x80] %vm195_vm2, %v4852_v21   ;;  %v4956_v21 = vunpack.i.l.bf16 %v4955_v19 }
  0xff   :  { %943 = vst.msk [vmem:[#allocation0 + $0x3] sm:$0x1] %vm195_vm2, %v4851_v22   ;;  %945 = vst.msk [vmem:[#allocation0 + $0x22] sm:$0x2] %vm195_vm2, %v4851_v22  }
 0x100   :  { %947 = vst.msk [vmem:[#allocation0 + $0x41] sm:$0x4] %vm195_vm2, %v4851_v22   ;;  %949 = vst.msk [vmem:[#allocation0 + $0x60] sm:$0x8] %vm195_vm2, %v4851_v22  }
 0x101   :  { %951 = vst.msk [vmem:[#allocation0 + $0x7f] sm:$0x10] %vm195_vm2, %v4851_v22   ;;  %953 = vst.msk [vmem:[#allocation0 + $0x9e] sm:$0x20] %vm195_vm2, %v4851_v22  }
 0x102   :  { %955 = vst.msk [vmem:[#allocation0 + $0xbd] sm:$0x40] %vm195_vm2, %v4851_v22   ;;  %957 = vst.msk [vmem:[#allocation0 + $0xdc] sm:$0x80] %vm195_vm2, %v4851_v22   ;;  %v4960_v22 = vpop.permute.xlu0 %4959 }
 0x103   :  { %1006 = vst.msk [vmem:[#allocation0 + $0x303] sm:$0x1] %vm195_vm2, %v4857_v24   ;;  %1008 = vst.msk [vmem:[#allocation0 + $0x322] sm:$0x2] %vm195_vm2, %v4857_v24   ;;  %v4962_v23 = vunpack.i.h.bf16 %v4960_v22 }
 0x104   :  { %1010 = vst.msk [vmem:[#allocation0 + $0x341] sm:$0x4] %vm195_vm2, %v4857_v24   ;;  %1012 = vst.msk [vmem:[#allocation0 + $0x360] sm:$0x8] %vm195_vm2, %v4857_v24  }
 0x105   :  { %1014 = vst.msk [vmem:[#allocation0 + $0x37f] sm:$0x10] %vm195_vm2, %v4857_v24   ;;  %1016 = vst.msk [vmem:[#allocation0 + $0x39e] sm:$0x20] %vm195_vm2, %v4857_v24  }
 0x106   :  { %1018 = vst.msk [vmem:[#allocation0 + $0x3bd] sm:$0x40] %vm195_vm2, %v4857_v24   ;;  %1020 = vst.msk [vmem:[#allocation0 + $0x3dc] sm:$0x80] %vm195_vm2, %v4857_v24   ;;  %v4961_v24 = vunpack.i.l.bf16 %v4960_v22 }
 0x107   :  { %985 = vst.msk [vmem:[#allocation0 + $0x203] sm:$0x1] %vm195_vm2, %v4856_v25   ;;  %987 = vst.msk [vmem:[#allocation0 + $0x222] sm:$0x2] %vm195_vm2, %v4856_v25  }
 0x108   :  { %989 = vst.msk [vmem:[#allocation0 + $0x241] sm:$0x4] %vm195_vm2, %v4856_v25   ;;  %991 = vst.msk [vmem:[#allocation0 + $0x260] sm:$0x8] %vm195_vm2, %v4856_v25  }
 0x109   :  { %993 = vst.msk [vmem:[#allocation0 + $0x27f] sm:$0x10] %vm195_vm2, %v4856_v25   ;;  %995 = vst.msk [vmem:[#allocation0 + $0x29e] sm:$0x20] %vm195_vm2, %v4856_v25  }
 0x10a   :  { %997 = vst.msk [vmem:[#allocation0 + $0x2bd] sm:$0x40] %vm195_vm2, %v4856_v25   ;;  %999 = vst.msk [vmem:[#allocation0 + $0x2dc] sm:$0x80] %vm195_vm2, %v4856_v25   ;;  %v4965_v25 = vpop.permute.xlu1 %4964 }
 0x10b   :  { %1048 = vst.msk [vmem:[#allocation0 + $0x112] sm:$0x1] %vm195_vm2, %v4862_v27   ;;  %1050 = vst.msk [vmem:[#allocation0 + $0x131] sm:$0x2] %vm195_vm2, %v4862_v27   ;;  %v4967_v26 = vunpack.i.h.bf16 %v4965_v25 }
 0x10c   :  { %1052 = vst.msk [vmem:[#allocation0 + $0x150] sm:$0x4] %vm195_vm2, %v4862_v27   ;;  %1054 = vst.msk [vmem:[#allocation0 + $0x16f] sm:$0x8] %vm195_vm2, %v4862_v27  }
 0x10d   :  { %1056 = vst.msk [vmem:[#allocation0 + $0x18e] sm:$0x10] %vm195_vm2, %v4862_v27   ;;  %1058 = vst.msk [vmem:[#allocation0 + $0x1ad] sm:$0x20] %vm195_vm2, %v4862_v27  }
 0x10e   :  { %1060 = vst.msk [vmem:[#allocation0 + $0x1cc] sm:$0x40] %vm195_vm2, %v4862_v27   ;;  %1062 = vst.msk [vmem:[#allocation0 + $0x1eb] sm:$0x80] %vm195_vm2, %v4862_v27   ;;  %v4966_v27 = vunpack.i.l.bf16 %v4965_v25 }
 0x10f   :  { %1027 = vst.msk [vmem:[#allocation0 + $0x12] sm:$0x1] %vm195_vm2, %v4861_v28   ;;  %1029 = vst.msk [vmem:[#allocation0 + $0x31] sm:$0x2] %vm195_vm2, %v4861_v28  }
 0x110   :  { %1031 = vst.msk [vmem:[#allocation0 + $0x50] sm:$0x4] %vm195_vm2, %v4861_v28   ;;  %1033 = vst.msk [vmem:[#allocation0 + $0x6f] sm:$0x8] %vm195_vm2, %v4861_v28  }
 0x111   :  { %1035 = vst.msk [vmem:[#allocation0 + $0x8e] sm:$0x10] %vm195_vm2, %v4861_v28   ;;  %1037 = vst.msk [vmem:[#allocation0 + $0xad] sm:$0x20] %vm195_vm2, %v4861_v28  }
 0x112   :  { %1039 = vst.msk [vmem:[#allocation0 + $0xcc] sm:$0x40] %vm195_vm2, %v4861_v28   ;;  %1041 = vst.msk [vmem:[#allocation0 + $0xeb] sm:$0x80] %vm195_vm2, %v4861_v28   ;;  %v4970_v28 = vpop.permute.xlu0 %4969 }
 0x113   :  { %1090 = vst.msk [vmem:[#allocation0 + $0x312] sm:$0x1] %vm195_vm2, %v4867_v30   ;;  %1092 = vst.msk [vmem:[#allocation0 + $0x331] sm:$0x2] %vm195_vm2, %v4867_v30   ;;  %v4972_v29 = vunpack.i.h.bf16 %v4970_v28 }
 0x114   :  { %1094 = vst.msk [vmem:[#allocation0 + $0x350] sm:$0x4] %vm195_vm2, %v4867_v30   ;;  %1096 = vst.msk [vmem:[#allocation0 + $0x36f] sm:$0x8] %vm195_vm2, %v4867_v30  }
 0x115   :  { %1098 = vst.msk [vmem:[#allocation0 + $0x38e] sm:$0x10] %vm195_vm2, %v4867_v30   ;;  %1100 = vst.msk [vmem:[#allocation0 + $0x3ad] sm:$0x20] %vm195_vm2, %v4867_v30  }
 0x116   :  { %1102 = vst.msk [vmem:[#allocation0 + $0x3cc] sm:$0x40] %vm195_vm2, %v4867_v30   ;;  %1104 = vst.msk [vmem:[#allocation0 + $0x3eb] sm:$0x80] %vm195_vm2, %v4867_v30   ;;  %v4971_v30 = vunpack.i.l.bf16 %v4970_v28 }
 0x117   :  { %1069 = vst.msk [vmem:[#allocation0 + $0x212] sm:$0x1] %vm195_vm2, %v4866_v31   ;;  %1071 = vst.msk [vmem:[#allocation0 + $0x231] sm:$0x2] %vm195_vm2, %v4866_v31  }
 0x118   :  { %1073 = vst.msk [vmem:[#allocation0 + $0x250] sm:$0x4] %vm195_vm2, %v4866_v31   ;;  %1075 = vst.msk [vmem:[#allocation0 + $0x26f] sm:$0x8] %vm195_vm2, %v4866_v31  }
 0x119   :  { %1077 = vst.msk [vmem:[#allocation0 + $0x28e] sm:$0x10] %vm195_vm2, %v4866_v31   ;;  %1079 = vst.msk [vmem:[#allocation0 + $0x2ad] sm:$0x20] %vm195_vm2, %v4866_v31  }
 0x11a   :  { %1081 = vst.msk [vmem:[#allocation0 + $0x2cc] sm:$0x40] %vm195_vm2, %v4866_v31   ;;  %1083 = vst.msk [vmem:[#allocation0 + $0x2eb] sm:$0x80] %vm195_vm2, %v4866_v31   ;;  %v4975_v31 = vpop.permute.xlu1 %4974 }
 0x11b   :  { %1131 = vst.msk [vmem:[#allocation0 + $0x104] sm:$0x1] %vm195_vm2, %v4872_v33   ;;  %1133 = vst.msk [vmem:[#allocation0 + $0x123] sm:$0x2] %vm195_vm2, %v4872_v33   ;;  %v4977_v32 = vunpack.i.h.bf16 %v4975_v31 }
 0x11c   :  { %1135 = vst.msk [vmem:[#allocation0 + $0x142] sm:$0x4] %vm195_vm2, %v4872_v33   ;;  %1137 = vst.msk [vmem:[#allocation0 + $0x161] sm:$0x8] %vm195_vm2, %v4872_v33  }
 0x11d   :  { %1139 = vst.msk [vmem:[#allocation0 + $0x180] sm:$0x10] %vm195_vm2, %v4872_v33   ;;  %1141 = vst.msk [vmem:[#allocation0 + $0x19f] sm:$0x20] %vm195_vm2, %v4872_v33  }
 0x11e   :  { %1143 = vst.msk [vmem:[#allocation0 + $0x1be] sm:$0x40] %vm195_vm2, %v4872_v33   ;;  %1145 = vst.msk [vmem:[#allocation0 + $0x1dd] sm:$0x80] %vm195_vm2, %v4872_v33   ;;  %v4976_v33 = vunpack.i.l.bf16 %v4975_v31 }
 0x11f   :  { %1110 = vst.msk [vmem:[#allocation0 + $0x4] sm:$0x1] %vm195_vm2, %v4871_v34   ;;  %1112 = vst.msk [vmem:[#allocation0 + $0x23] sm:$0x2] %vm195_vm2, %v4871_v34  }
 0x120   :  { %1114 = vst.msk [vmem:[#allocation0 + $0x42] sm:$0x4] %vm195_vm2, %v4871_v34   ;;  %1116 = vst.msk [vmem:[#allocation0 + $0x61] sm:$0x8] %vm195_vm2, %v4871_v34  }
 0x121   :  { %1118 = vst.msk [vmem:[#allocation0 + $0x80] sm:$0x10] %vm195_vm2, %v4871_v34   ;;  %1120 = vst.msk [vmem:[#allocation0 + $0x9f] sm:$0x20] %vm195_vm2, %v4871_v34  }
 0x122   :  { %1122 = vst.msk [vmem:[#allocation0 + $0xbe] sm:$0x40] %vm195_vm2, %v4871_v34   ;;  %1124 = vst.msk [vmem:[#allocation0 + $0xdd] sm:$0x80] %vm195_vm2, %v4871_v34   ;;  %v4980_v34 = vpop.permute.xlu0 %4979 }
 0x123   :  { %1173 = vst.msk [vmem:[#allocation0 + $0x304] sm:$0x1] %vm195_vm2, %v4877_v36   ;;  %1175 = vst.msk [vmem:[#allocation0 + $0x323] sm:$0x2] %vm195_vm2, %v4877_v36   ;;  %v4982_v35 = vunpack.i.h.bf16 %v4980_v34 }
 0x124   :  { %1177 = vst.msk [vmem:[#allocation0 + $0x342] sm:$0x4] %vm195_vm2, %v4877_v36   ;;  %1179 = vst.msk [vmem:[#allocation0 + $0x361] sm:$0x8] %vm195_vm2, %v4877_v36  }
 0x125   :  { %1181 = vst.msk [vmem:[#allocation0 + $0x380] sm:$0x10] %vm195_vm2, %v4877_v36   ;;  %1183 = vst.msk [vmem:[#allocation0 + $0x39f] sm:$0x20] %vm195_vm2, %v4877_v36  }
 0x126   :  { %1185 = vst.msk [vmem:[#allocation0 + $0x3be] sm:$0x40] %vm195_vm2, %v4877_v36   ;;  %1187 = vst.msk [vmem:[#allocation0 + $0x3dd] sm:$0x80] %vm195_vm2, %v4877_v36   ;;  %v4981_v36 = vunpack.i.l.bf16 %v4980_v34 }
 0x127   :  { %1152 = vst.msk [vmem:[#allocation0 + $0x204] sm:$0x1] %vm195_vm2, %v4876_v37   ;;  %1154 = vst.msk [vmem:[#allocation0 + $0x223] sm:$0x2] %vm195_vm2, %v4876_v37  }
 0x128   :  { %1156 = vst.msk [vmem:[#allocation0 + $0x242] sm:$0x4] %vm195_vm2, %v4876_v37   ;;  %1158 = vst.msk [vmem:[#allocation0 + $0x261] sm:$0x8] %vm195_vm2, %v4876_v37  }
 0x129   :  { %1160 = vst.msk [vmem:[#allocation0 + $0x280] sm:$0x10] %vm195_vm2, %v4876_v37   ;;  %1162 = vst.msk [vmem:[#allocation0 + $0x29f] sm:$0x20] %vm195_vm2, %v4876_v37  }
 0x12a   :  { %1164 = vst.msk [vmem:[#allocation0 + $0x2be] sm:$0x40] %vm195_vm2, %v4876_v37   ;;  %1166 = vst.msk [vmem:[#allocation0 + $0x2dd] sm:$0x80] %vm195_vm2, %v4876_v37   ;;  %v4985_v37 = vpop.permute.xlu1 %4984 }
 0x12b   :  { %1215 = vst.msk [vmem:[#allocation0 + $0x113] sm:$0x1] %vm195_vm2, %v4882_v39   ;;  %1217 = vst.msk [vmem:[#allocation0 + $0x132] sm:$0x2] %vm195_vm2, %v4882_v39   ;;  %v4987_v38 = vunpack.i.h.bf16 %v4985_v37 }
 0x12c   :  { %1219 = vst.msk [vmem:[#allocation0 + $0x151] sm:$0x4] %vm195_vm2, %v4882_v39   ;;  %1221 = vst.msk [vmem:[#allocation0 + $0x170] sm:$0x8] %vm195_vm2, %v4882_v39  }
 0x12d   :  { %1223 = vst.msk [vmem:[#allocation0 + $0x18f] sm:$0x10] %vm195_vm2, %v4882_v39   ;;  %1225 = vst.msk [vmem:[#allocation0 + $0x1ae] sm:$0x20] %vm195_vm2, %v4882_v39  }
 0x12e   :  { %1227 = vst.msk [vmem:[#allocation0 + $0x1cd] sm:$0x40] %vm195_vm2, %v4882_v39   ;;  %1229 = vst.msk [vmem:[#allocation0 + $0x1ec] sm:$0x80] %vm195_vm2, %v4882_v39   ;;  %v4986_v39 = vunpack.i.l.bf16 %v4985_v37 }
 0x12f   :  { %1194 = vst.msk [vmem:[#allocation0 + $0x13] sm:$0x1] %vm195_vm2, %v4881_v40   ;;  %1196 = vst.msk [vmem:[#allocation0 + $0x32] sm:$0x2] %vm195_vm2, %v4881_v40  }
 0x130   :  { %1198 = vst.msk [vmem:[#allocation0 + $0x51] sm:$0x4] %vm195_vm2, %v4881_v40   ;;  %1200 = vst.msk [vmem:[#allocation0 + $0x70] sm:$0x8] %vm195_vm2, %v4881_v40  }
 0x131   :  { %1202 = vst.msk [vmem:[#allocation0 + $0x8f] sm:$0x10] %vm195_vm2, %v4881_v40   ;;  %1204 = vst.msk [vmem:[#allocation0 + $0xae] sm:$0x20] %vm195_vm2, %v4881_v40  }
 0x132   :  { %1206 = vst.msk [vmem:[#allocation0 + $0xcd] sm:$0x40] %vm195_vm2, %v4881_v40   ;;  %1208 = vst.msk [vmem:[#allocation0 + $0xec] sm:$0x80] %vm195_vm2, %v4881_v40   ;;  %v4990_v40 = vpop.permute.xlu0 %4989 }
 0x133   :  { %1257 = vst.msk [vmem:[#allocation0 + $0x313] sm:$0x1] %vm195_vm2, %v4887_v42   ;;  %1259 = vst.msk [vmem:[#allocation0 + $0x332] sm:$0x2] %vm195_vm2, %v4887_v42   ;;  %v4992_v41 = vunpack.i.h.bf16 %v4990_v40 }
 0x134   :  { %1261 = vst.msk [vmem:[#allocation0 + $0x351] sm:$0x4] %vm195_vm2, %v4887_v42   ;;  %1263 = vst.msk [vmem:[#allocation0 + $0x370] sm:$0x8] %vm195_vm2, %v4887_v42  }
 0x135   :  { %1265 = vst.msk [vmem:[#allocation0 + $0x38f] sm:$0x10] %vm195_vm2, %v4887_v42   ;;  %1267 = vst.msk [vmem:[#allocation0 + $0x3ae] sm:$0x20] %vm195_vm2, %v4887_v42  }
 0x136   :  { %1269 = vst.msk [vmem:[#allocation0 + $0x3cd] sm:$0x40] %vm195_vm2, %v4887_v42   ;;  %1271 = vst.msk [vmem:[#allocation0 + $0x3ec] sm:$0x80] %vm195_vm2, %v4887_v42   ;;  %v4991_v42 = vunpack.i.l.bf16 %v4990_v40 }
 0x137   :  { %1236 = vst.msk [vmem:[#allocation0 + $0x213] sm:$0x1] %vm195_vm2, %v4886_v43   ;;  %1238 = vst.msk [vmem:[#allocation0 + $0x232] sm:$0x2] %vm195_vm2, %v4886_v43  }
 0x138   :  { %1240 = vst.msk [vmem:[#allocation0 + $0x251] sm:$0x4] %vm195_vm2, %v4886_v43   ;;  %1242 = vst.msk [vmem:[#allocation0 + $0x270] sm:$0x8] %vm195_vm2, %v4886_v43  }
 0x139   :  { %1244 = vst.msk [vmem:[#allocation0 + $0x28f] sm:$0x10] %vm195_vm2, %v4886_v43   ;;  %1246 = vst.msk [vmem:[#allocation0 + $0x2ae] sm:$0x20] %vm195_vm2, %v4886_v43  }
 0x13a   :  { %1248 = vst.msk [vmem:[#allocation0 + $0x2cd] sm:$0x40] %vm195_vm2, %v4886_v43   ;;  %1250 = vst.msk [vmem:[#allocation0 + $0x2ec] sm:$0x80] %vm195_vm2, %v4886_v43   ;;  %v4995_v43 = vpop.permute.xlu1 %4994 }
 0x13b   :  { %1298 = vst.msk [vmem:[#allocation0 + $0x105] sm:$0x1] %vm195_vm2, %v4892_v45   ;;  %1300 = vst.msk [vmem:[#allocation0 + $0x124] sm:$0x2] %vm195_vm2, %v4892_v45   ;;  %v4997_v44 = vunpack.i.h.bf16 %v4995_v43 }
 0x13c   :  { %1302 = vst.msk [vmem:[#allocation0 + $0x143] sm:$0x4] %vm195_vm2, %v4892_v45   ;;  %1304 = vst.msk [vmem:[#allocation0 + $0x162] sm:$0x8] %vm195_vm2, %v4892_v45  }
 0x13d   :  { %1306 = vst.msk [vmem:[#allocation0 + $0x181] sm:$0x10] %vm195_vm2, %v4892_v45   ;;  %1308 = vst.msk [vmem:[#allocation0 + $0x1a0] sm:$0x20] %vm195_vm2, %v4892_v45  }
 0x13e   :  { %1310 = vst.msk [vmem:[#allocation0 + $0x1bf] sm:$0x40] %vm195_vm2, %v4892_v45   ;;  %1312 = vst.msk [vmem:[#allocation0 + $0x1de] sm:$0x80] %vm195_vm2, %v4892_v45   ;;  %v4996_v45 = vunpack.i.l.bf16 %v4995_v43  ;;  %v5005_v47 = vpop.permute.xlu1 %5004 }
 0x13f   :  { %1277 = vst.msk [vmem:[#allocation0 + $0x5] sm:$0x1] %vm195_vm2, %v4891_v46   ;;  %1279 = vst.msk [vmem:[#allocation0 + $0x24] sm:$0x2] %vm195_vm2, %v4891_v46   ;;  %v6029_v50 = vunpack.i.h.bf16 %v5005_v47 }
 0x140   :  { %1281 = vst.msk [vmem:[#allocation0 + $0x43] sm:$0x4] %vm195_vm2, %v4891_v46   ;;  %1283 = vst.msk [vmem:[#allocation0 + $0x62] sm:$0x8] %vm195_vm2, %v4891_v46  }
 0x141   :  { %1285 = vst.msk [vmem:[#allocation0 + $0x81] sm:$0x10] %vm195_vm2, %v4891_v46   ;;  %1287 = vst.msk [vmem:[#allocation0 + $0xa0] sm:$0x20] %vm195_vm2, %v4891_v46  }
 0x142   :  { %1289 = vst.msk [vmem:[#allocation0 + $0xbf] sm:$0x40] %vm195_vm2, %v4891_v46   ;;  %1291 = vst.msk [vmem:[#allocation0 + $0xde] sm:$0x80] %vm195_vm2, %v4891_v46   ;;  %v5000_v46 = vpop.permute.xlu0 %4999  ;;  %v5015_v53 = vpop.permute.xlu1 %5014 }
 0x143   :  { %1340 = vst.msk [vmem:[#allocation0 + $0x305] sm:$0x1] %vm195_vm2, %v4897_v48   ;;  %1342 = vst.msk [vmem:[#allocation0 + $0x324] sm:$0x2] %vm195_vm2, %v4897_v48   ;;  %v5017_v56 = vunpack.i.h.bf16 %v5015_v53 }
 0x144   :  { %1344 = vst.msk [vmem:[#allocation0 + $0x343] sm:$0x4] %vm195_vm2, %v4897_v48   ;;  %1346 = vst.msk [vmem:[#allocation0 + $0x362] sm:$0x8] %vm195_vm2, %v4897_v48  }
 0x145   :  { %1348 = vst.msk [vmem:[#allocation0 + $0x381] sm:$0x10] %vm195_vm2, %v4897_v48   ;;  %1350 = vst.msk [vmem:[#allocation0 + $0x3a0] sm:$0x20] %vm195_vm2, %v4897_v48  }
 0x146   :  { %1352 = vst.msk [vmem:[#allocation0 + $0x3bf] sm:$0x40] %vm195_vm2, %v4897_v48   ;;  %1354 = vst.msk [vmem:[#allocation0 + $0x3de] sm:$0x80] %vm195_vm2, %v4897_v48   ;;  %v5002_v48 = vunpack.i.h.bf16 %v5000_v46  ;;  %v5025_v59 = vpop.permute.xlu1 %5024 }
 0x147   :  { %1319 = vst.msk [vmem:[#allocation0 + $0x205] sm:$0x1] %vm195_vm2, %v4896_v49   ;;  %1321 = vst.msk [vmem:[#allocation0 + $0x224] sm:$0x2] %vm195_vm2, %v4896_v49   ;;  %v5027_v62 = vunpack.i.h.bf16 %v5025_v59 }
 0x148   :  { %1323 = vst.msk [vmem:[#allocation0 + $0x243] sm:$0x4] %vm195_vm2, %v4896_v49   ;;  %1325 = vst.msk [vmem:[#allocation0 + $0x262] sm:$0x8] %vm195_vm2, %v4896_v49  }
 0x149   :  { %1327 = vst.msk [vmem:[#allocation0 + $0x281] sm:$0x10] %vm195_vm2, %v4896_v49   ;;  %1329 = vst.msk [vmem:[#allocation0 + $0x2a0] sm:$0x20] %vm195_vm2, %v4896_v49  }
 0x14a   :  { %1331 = vst.msk [vmem:[#allocation0 + $0x2bf] sm:$0x40] %vm195_vm2, %v4896_v49   ;;  %1333 = vst.msk [vmem:[#allocation0 + $0x2de] sm:$0x80] %vm195_vm2, %v4896_v49   ;;  %v5001_v49 = vunpack.i.l.bf16 %v5000_v46  ;;  %v5035_v1 = vpop.permute.xlu1 %5034 }
 0x14b   :  { %1382 = vst.msk [vmem:[#allocation0 + $0x114] sm:$0x1] %vm195_vm2, %v4902_v51   ;;  %1384 = vst.msk [vmem:[#allocation0 + $0x133] sm:$0x2] %vm195_vm2, %v4902_v51   ;;  %v5037_v4 = vunpack.i.h.bf16 %v5035_v1 }
 0x14c   :  { %1386 = vst.msk [vmem:[#allocation0 + $0x152] sm:$0x4] %vm195_vm2, %v4902_v51   ;;  %1388 = vst.msk [vmem:[#allocation0 + $0x171] sm:$0x8] %vm195_vm2, %v4902_v51  }
 0x14d   :  { %1390 = vst.msk [vmem:[#allocation0 + $0x190] sm:$0x10] %vm195_vm2, %v4902_v51   ;;  %1392 = vst.msk [vmem:[#allocation0 + $0x1af] sm:$0x20] %vm195_vm2, %v4902_v51  }
 0x14e   :  { %1394 = vst.msk [vmem:[#allocation0 + $0x1ce] sm:$0x40] %vm195_vm2, %v4902_v51   ;;  %1396 = vst.msk [vmem:[#allocation0 + $0x1ed] sm:$0x80] %vm195_vm2, %v4902_v51   ;;  %v5006_v51 = vunpack.i.l.bf16 %v5005_v47  ;;  %v5045_v7 = vpop.permute.xlu1 %5044 }
 0x14f   :  { %1361 = vst.msk [vmem:[#allocation0 + $0x14] sm:$0x1] %vm195_vm2, %v4901_v52   ;;  %1363 = vst.msk [vmem:[#allocation0 + $0x33] sm:$0x2] %vm195_vm2, %v4901_v52   ;;  %v5047_v10 = vunpack.i.h.bf16 %v5045_v7 }
 0x150   :  { %1365 = vst.msk [vmem:[#allocation0 + $0x52] sm:$0x4] %vm195_vm2, %v4901_v52   ;;  %1367 = vst.msk [vmem:[#allocation0 + $0x71] sm:$0x8] %vm195_vm2, %v4901_v52  }
 0x151   :  { %1369 = vst.msk [vmem:[#allocation0 + $0x90] sm:$0x10] %vm195_vm2, %v4901_v52   ;;  %1371 = vst.msk [vmem:[#allocation0 + $0xaf] sm:$0x20] %vm195_vm2, %v4901_v52  }
 0x152   :  { %1373 = vst.msk [vmem:[#allocation0 + $0xce] sm:$0x40] %vm195_vm2, %v4901_v52   ;;  %1375 = vst.msk [vmem:[#allocation0 + $0xed] sm:$0x80] %vm195_vm2, %v4901_v52   ;;  %v5010_v52 = vpop.permute.xlu0 %5009  ;;  %v5055_v13 = vpop.permute.xlu1 %5054 }
 0x153   :  { %1424 = vst.msk [vmem:[#allocation0 + $0x314] sm:$0x1] %vm195_vm2, %v4907_v54   ;;  %1426 = vst.msk [vmem:[#allocation0 + $0x333] sm:$0x2] %vm195_vm2, %v4907_v54   ;;  %v5057_v16 = vunpack.i.h.bf16 %v5055_v13 }
 0x154   :  { %1428 = vst.msk [vmem:[#allocation0 + $0x352] sm:$0x4] %vm195_vm2, %v4907_v54   ;;  %1430 = vst.msk [vmem:[#allocation0 + $0x371] sm:$0x8] %vm195_vm2, %v4907_v54  }
 0x155   :  { %1432 = vst.msk [vmem:[#allocation0 + $0x390] sm:$0x10] %vm195_vm2, %v4907_v54   ;;  %1434 = vst.msk [vmem:[#allocation0 + $0x3af] sm:$0x20] %vm195_vm2, %v4907_v54  }
 0x156   :  { %1436 = vst.msk [vmem:[#allocation0 + $0x3ce] sm:$0x40] %vm195_vm2, %v4907_v54   ;;  %1438 = vst.msk [vmem:[#allocation0 + $0x3ed] sm:$0x80] %vm195_vm2, %v4907_v54   ;;  %v6087_v54 = vunpack.i.h.bf16 %v5010_v52  ;;  %v5065_v19 = vpop.permute.xlu1 %5064 }
 0x157   :  { %1403 = vst.msk [vmem:[#allocation0 + $0x214] sm:$0x1] %vm195_vm2, %v4906_v55   ;;  %1405 = vst.msk [vmem:[#allocation0 + $0x233] sm:$0x2] %vm195_vm2, %v4906_v55   ;;  %v5067_v22 = vunpack.i.h.bf16 %v5065_v19 }
 0x158   :  { %1407 = vst.msk [vmem:[#allocation0 + $0x252] sm:$0x4] %vm195_vm2, %v4906_v55   ;;  %1409 = vst.msk [vmem:[#allocation0 + $0x271] sm:$0x8] %vm195_vm2, %v4906_v55  }
 0x159   :  { %1411 = vst.msk [vmem:[#allocation0 + $0x290] sm:$0x10] %vm195_vm2, %v4906_v55   ;;  %1413 = vst.msk [vmem:[#allocation0 + $0x2af] sm:$0x20] %vm195_vm2, %v4906_v55  }
 0x15a   :  { %1415 = vst.msk [vmem:[#allocation0 + $0x2ce] sm:$0x40] %vm195_vm2, %v4906_v55   ;;  %1417 = vst.msk [vmem:[#allocation0 + $0x2ed] sm:$0x80] %vm195_vm2, %v4906_v55   ;;  %v5011_v55 = vunpack.i.l.bf16 %v5010_v52  ;;  %v5075_v25 = vpop.permute.xlu1 %5074 }
 0x15b   :  { %1465 = vst.msk [vmem:[#allocation0 + $0x106] sm:$0x1] %vm195_vm2, %v4912_v57   ;;  %1467 = vst.msk [vmem:[#allocation0 + $0x125] sm:$0x2] %vm195_vm2, %v4912_v57   ;;  %v5077_v28 = vunpack.i.h.bf16 %v5075_v25 }
 0x15c   :  { %1469 = vst.msk [vmem:[#allocation0 + $0x144] sm:$0x4] %vm195_vm2, %v4912_v57   ;;  %1471 = vst.msk [vmem:[#allocation0 + $0x163] sm:$0x8] %vm195_vm2, %v4912_v57  }
 0x15d   :  { %1473 = vst.msk [vmem:[#allocation0 + $0x182] sm:$0x10] %vm195_vm2, %v4912_v57   ;;  %1475 = vst.msk [vmem:[#allocation0 + $0x1a1] sm:$0x20] %vm195_vm2, %v4912_v57  }
 0x15e   :  { %1477 = vst.msk [vmem:[#allocation0 + $0x1c0] sm:$0x40] %vm195_vm2, %v4912_v57   ;;  %1479 = vst.msk [vmem:[#allocation0 + $0x1df] sm:$0x80] %vm195_vm2, %v4912_v57   ;;  %v5016_v57 = vunpack.i.l.bf16 %v5015_v53 }
 0x15f   :  { %1444 = vst.msk [vmem:[#allocation0 + $0x6] sm:$0x1] %vm195_vm2, %v4911_v58   ;;  %1446 = vst.msk [vmem:[#allocation0 + $0x25] sm:$0x2] %vm195_vm2, %v4911_v58  }
 0x160   :  { %1448 = vst.msk [vmem:[#allocation0 + $0x44] sm:$0x4] %vm195_vm2, %v4911_v58   ;;  %1450 = vst.msk [vmem:[#allocation0 + $0x63] sm:$0x8] %vm195_vm2, %v4911_v58  }
 0x161   :  { %1452 = vst.msk [vmem:[#allocation0 + $0x82] sm:$0x10] %vm195_vm2, %v4911_v58   ;;  %1454 = vst.msk [vmem:[#allocation0 + $0xa1] sm:$0x20] %vm195_vm2, %v4911_v58  }
 0x162   :  { %1456 = vst.msk [vmem:[#allocation0 + $0xc0] sm:$0x40] %vm195_vm2, %v4911_v58   ;;  %1458 = vst.msk [vmem:[#allocation0 + $0xdf] sm:$0x80] %vm195_vm2, %v4911_v58   ;;  %v5020_v58 = vpop.permute.xlu0 %5019 }
 0x163   :  { %1507 = vst.msk [vmem:[#allocation0 + $0x306] sm:$0x1] %vm195_vm2, %v4917_v60   ;;  %1509 = vst.msk [vmem:[#allocation0 + $0x325] sm:$0x2] %vm195_vm2, %v4917_v60  }
 0x164   :  { %1511 = vst.msk [vmem:[#allocation0 + $0x344] sm:$0x4] %vm195_vm2, %v4917_v60   ;;  %1513 = vst.msk [vmem:[#allocation0 + $0x363] sm:$0x8] %vm195_vm2, %v4917_v60  }
 0x165   :  { %1515 = vst.msk [vmem:[#allocation0 + $0x382] sm:$0x10] %vm195_vm2, %v4917_v60   ;;  %1517 = vst.msk [vmem:[#allocation0 + $0x3a1] sm:$0x20] %vm195_vm2, %v4917_v60  }
 0x166   :  { %1519 = vst.msk [vmem:[#allocation0 + $0x3c0] sm:$0x40] %vm195_vm2, %v4917_v60   ;;  %1521 = vst.msk [vmem:[#allocation0 + $0x3df] sm:$0x80] %vm195_vm2, %v4917_v60   ;;  %v5022_v60 = vunpack.i.h.bf16 %v5020_v58 }
 0x167   :  { %1486 = vst.msk [vmem:[#allocation0 + $0x206] sm:$0x1] %vm195_vm2, %v4916_v61   ;;  %1488 = vst.msk [vmem:[#allocation0 + $0x225] sm:$0x2] %vm195_vm2, %v4916_v61  }
 0x168   :  { %1490 = vst.msk [vmem:[#allocation0 + $0x244] sm:$0x4] %vm195_vm2, %v4916_v61   ;;  %1492 = vst.msk [vmem:[#allocation0 + $0x263] sm:$0x8] %vm195_vm2, %v4916_v61  }
 0x169   :  { %1494 = vst.msk [vmem:[#allocation0 + $0x282] sm:$0x10] %vm195_vm2, %v4916_v61   ;;  %1496 = vst.msk [vmem:[#allocation0 + $0x2a1] sm:$0x20] %vm195_vm2, %v4916_v61  }
 0x16a   :  { %1498 = vst.msk [vmem:[#allocation0 + $0x2c0] sm:$0x40] %vm195_vm2, %v4916_v61   ;;  %1500 = vst.msk [vmem:[#allocation0 + $0x2df] sm:$0x80] %vm195_vm2, %v4916_v61   ;;  %v5021_v61 = vunpack.i.l.bf16 %v5020_v58 }
 0x16b   :  { %1549 = vst.msk [vmem:[#allocation0 + $0x115] sm:$0x1] %vm195_vm2, %v4922_v63   ;;  %1551 = vst.msk [vmem:[#allocation0 + $0x134] sm:$0x2] %vm195_vm2, %v4922_v63  }
 0x16c   :  { %1553 = vst.msk [vmem:[#allocation0 + $0x153] sm:$0x4] %vm195_vm2, %v4922_v63   ;;  %1555 = vst.msk [vmem:[#allocation0 + $0x172] sm:$0x8] %vm195_vm2, %v4922_v63  }
 0x16d   :  { %1557 = vst.msk [vmem:[#allocation0 + $0x191] sm:$0x10] %vm195_vm2, %v4922_v63   ;;  %1559 = vst.msk [vmem:[#allocation0 + $0x1b0] sm:$0x20] %vm195_vm2, %v4922_v63  }
 0x16e   :  { %1561 = vst.msk [vmem:[#allocation0 + $0x1cf] sm:$0x40] %vm195_vm2, %v4922_v63   ;;  %1563 = vst.msk [vmem:[#allocation0 + $0x1ee] sm:$0x80] %vm195_vm2, %v4922_v63   ;;  %v5026_v63 = vunpack.i.l.bf16 %v5025_v59 }
 0x16f   :  { %1528 = vst.msk [vmem:[#allocation0 + $0x15] sm:$0x1] %vm195_vm2, %v4921_v0   ;;  %1530 = vst.msk [vmem:[#allocation0 + $0x34] sm:$0x2] %vm195_vm2, %v4921_v0  }
 0x170   :  { %1532 = vst.msk [vmem:[#allocation0 + $0x53] sm:$0x4] %vm195_vm2, %v4921_v0   ;;  %1534 = vst.msk [vmem:[#allocation0 + $0x72] sm:$0x8] %vm195_vm2, %v4921_v0  }
 0x171   :  { %1536 = vst.msk [vmem:[#allocation0 + $0x91] sm:$0x10] %vm195_vm2, %v4921_v0   ;;  %1538 = vst.msk [vmem:[#allocation0 + $0xb0] sm:$0x20] %vm195_vm2, %v4921_v0  }
 0x172   :  { %1540 = vst.msk [vmem:[#allocation0 + $0xcf] sm:$0x40] %vm195_vm2, %v4921_v0   ;;  %1542 = vst.msk [vmem:[#allocation0 + $0xee] sm:$0x80] %vm195_vm2, %v4921_v0   ;;  %v5030_v0 = vpop.permute.xlu0 %5029 }
 0x173   :  { %1591 = vst.msk [vmem:[#allocation0 + $0x315] sm:$0x1] %vm195_vm2, %v4927_v2   ;;  %1593 = vst.msk [vmem:[#allocation0 + $0x334] sm:$0x2] %vm195_vm2, %v4927_v2  }
 0x174   :  { %1595 = vst.msk [vmem:[#allocation0 + $0x353] sm:$0x4] %vm195_vm2, %v4927_v2   ;;  %1597 = vst.msk [vmem:[#allocation0 + $0x372] sm:$0x8] %vm195_vm2, %v4927_v2  }
 0x175   :  { %1599 = vst.msk [vmem:[#allocation0 + $0x391] sm:$0x10] %vm195_vm2, %v4927_v2   ;;  %1601 = vst.msk [vmem:[#allocation0 + $0x3b0] sm:$0x20] %vm195_vm2, %v4927_v2  }
 0x176   :  { %1603 = vst.msk [vmem:[#allocation0 + $0x3cf] sm:$0x40] %vm195_vm2, %v4927_v2   ;;  %1605 = vst.msk [vmem:[#allocation0 + $0x3ee] sm:$0x80] %vm195_vm2, %v4927_v2   ;;  %v5032_v2 = vunpack.i.h.bf16 %v5030_v0 }
 0x177   :  { %1570 = vst.msk [vmem:[#allocation0 + $0x215] sm:$0x1] %vm195_vm2, %v4926_v3   ;;  %1572 = vst.msk [vmem:[#allocation0 + $0x234] sm:$0x2] %vm195_vm2, %v4926_v3  }
 0x178   :  { %1574 = vst.msk [vmem:[#allocation0 + $0x253] sm:$0x4] %vm195_vm2, %v4926_v3   ;;  %1576 = vst.msk [vmem:[#allocation0 + $0x272] sm:$0x8] %vm195_vm2, %v4926_v3  }
 0x179   :  { %1578 = vst.msk [vmem:[#allocation0 + $0x291] sm:$0x10] %vm195_vm2, %v4926_v3   ;;  %1580 = vst.msk [vmem:[#allocation0 + $0x2b0] sm:$0x20] %vm195_vm2, %v4926_v3  }
 0x17a   :  { %1582 = vst.msk [vmem:[#allocation0 + $0x2cf] sm:$0x40] %vm195_vm2, %v4926_v3   ;;  %1584 = vst.msk [vmem:[#allocation0 + $0x2ee] sm:$0x80] %vm195_vm2, %v4926_v3   ;;  %v5031_v3 = vunpack.i.l.bf16 %v5030_v0 }
 0x17b   :  { %1632 = vst.msk [vmem:[#allocation0 + $0x107] sm:$0x1] %vm195_vm2, %v4932_v5   ;;  %1634 = vst.msk [vmem:[#allocation0 + $0x126] sm:$0x2] %vm195_vm2, %v4932_v5  }
 0x17c   :  { %1636 = vst.msk [vmem:[#allocation0 + $0x145] sm:$0x4] %vm195_vm2, %v4932_v5   ;;  %1638 = vst.msk [vmem:[#allocation0 + $0x164] sm:$0x8] %vm195_vm2, %v4932_v5  }
 0x17d   :  { %1640 = vst.msk [vmem:[#allocation0 + $0x183] sm:$0x10] %vm195_vm2, %v4932_v5   ;;  %1642 = vst.msk [vmem:[#allocation0 + $0x1a2] sm:$0x20] %vm195_vm2, %v4932_v5  }
 0x17e   :  { %1644 = vst.msk [vmem:[#allocation0 + $0x1c1] sm:$0x40] %vm195_vm2, %v4932_v5   ;;  %1646 = vst.msk [vmem:[#allocation0 + $0x1e0] sm:$0x80] %vm195_vm2, %v4932_v5   ;;  %v5036_v5 = vunpack.i.l.bf16 %v5035_v1 }
 0x17f   :  { %1611 = vst.msk [vmem:[#allocation0 + $0x7] sm:$0x1] %vm195_vm2, %v4931_v6   ;;  %1613 = vst.msk [vmem:[#allocation0 + $0x26] sm:$0x2] %vm195_vm2, %v4931_v6  }
 0x180   :  { %1615 = vst.msk [vmem:[#allocation0 + $0x45] sm:$0x4] %vm195_vm2, %v4931_v6   ;;  %1617 = vst.msk [vmem:[#allocation0 + $0x64] sm:$0x8] %vm195_vm2, %v4931_v6  }
 0x181   :  { %1619 = vst.msk [vmem:[#allocation0 + $0x83] sm:$0x10] %vm195_vm2, %v4931_v6   ;;  %1621 = vst.msk [vmem:[#allocation0 + $0xa2] sm:$0x20] %vm195_vm2, %v4931_v6  }
 0x182   :  { %1623 = vst.msk [vmem:[#allocation0 + $0xc1] sm:$0x40] %vm195_vm2, %v4931_v6   ;;  %1625 = vst.msk [vmem:[#allocation0 + $0xe0] sm:$0x80] %vm195_vm2, %v4931_v6   ;;  %v5040_v6 = vpop.permute.xlu0 %5039 }
 0x183   :  { %1674 = vst.msk [vmem:[#allocation0 + $0x307] sm:$0x1] %vm195_vm2, %v4937_v8   ;;  %1676 = vst.msk [vmem:[#allocation0 + $0x326] sm:$0x2] %vm195_vm2, %v4937_v8  }
 0x184   :  { %1678 = vst.msk [vmem:[#allocation0 + $0x345] sm:$0x4] %vm195_vm2, %v4937_v8   ;;  %1680 = vst.msk [vmem:[#allocation0 + $0x364] sm:$0x8] %vm195_vm2, %v4937_v8  }
 0x185   :  { %1682 = vst.msk [vmem:[#allocation0 + $0x383] sm:$0x10] %vm195_vm2, %v4937_v8   ;;  %1684 = vst.msk [vmem:[#allocation0 + $0x3a2] sm:$0x20] %vm195_vm2, %v4937_v8  }
 0x186   :  { %1686 = vst.msk [vmem:[#allocation0 + $0x3c1] sm:$0x40] %vm195_vm2, %v4937_v8   ;;  %1688 = vst.msk [vmem:[#allocation0 + $0x3e0] sm:$0x80] %vm195_vm2, %v4937_v8   ;;  %v5042_v8 = vunpack.i.h.bf16 %v5040_v6  ;;  %v3060_v52 = vld [vmem:[#allocation0 + $0x20] sm:$0xff] }
 0x187   :  { %1653 = vst.msk [vmem:[#allocation0 + $0x207] sm:$0x1] %vm195_vm2, %v4936_v9   ;;  %1655 = vst.msk [vmem:[#allocation0 + $0x226] sm:$0x2] %vm195_vm2, %v4936_v9   ;;  %v3092_v53 = vld [vmem:[#allocation0 + $0x40] sm:$0xff] }
 0x188   :  { %1657 = vst.msk [vmem:[#allocation0 + $0x245] sm:$0x4] %vm195_vm2, %v4936_v9   ;;  %1659 = vst.msk [vmem:[#allocation0 + $0x264] sm:$0x8] %vm195_vm2, %v4936_v9  }
 0x189   :  { %1661 = vst.msk [vmem:[#allocation0 + $0x283] sm:$0x10] %vm195_vm2, %v4936_v9   ;;  %1663 = vst.msk [vmem:[#allocation0 + $0x2a2] sm:$0x20] %vm195_vm2, %v4936_v9  }
 0x18a   :  { %1665 = vst.msk [vmem:[#allocation0 + $0x2c1] sm:$0x40] %vm195_vm2, %v4936_v9   ;;  %1667 = vst.msk [vmem:[#allocation0 + $0x2e0] sm:$0x80] %vm195_vm2, %v4936_v9   ;;  %v5041_v9 = vunpack.i.l.bf16 %v5040_v6 }
 0x18b   :  { %1716 = vst.msk [vmem:[#allocation0 + $0x116] sm:$0x1] %vm195_vm2, %v4942_v11   ;;  %1718 = vst.msk [vmem:[#allocation0 + $0x135] sm:$0x2] %vm195_vm2, %v4942_v11  }
 0x18c   :  { %1720 = vst.msk [vmem:[#allocation0 + $0x154] sm:$0x4] %vm195_vm2, %v4942_v11   ;;  %1722 = vst.msk [vmem:[#allocation0 + $0x173] sm:$0x8] %vm195_vm2, %v4942_v11  }
 0x18d   :  { %1724 = vst.msk [vmem:[#allocation0 + $0x192] sm:$0x10] %vm195_vm2, %v4942_v11   ;;  %1726 = vst.msk [vmem:[#allocation0 + $0x1b1] sm:$0x20] %vm195_vm2, %v4942_v11  }
 0x18e   :  { %1728 = vst.msk [vmem:[#allocation0 + $0x1d0] sm:$0x40] %vm195_vm2, %v4942_v11   ;;  %1730 = vst.msk [vmem:[#allocation0 + $0x1ef] sm:$0x80] %vm195_vm2, %v4942_v11   ;;  %v5046_v11 = vunpack.i.l.bf16 %v5045_v7 }
 0x18f   :  { %1695 = vst.msk [vmem:[#allocation0 + $0x16] sm:$0x1] %vm195_vm2, %v4941_v12   ;;  %1697 = vst.msk [vmem:[#allocation0 + $0x35] sm:$0x2] %vm195_vm2, %v4941_v12  }
 0x190   :  { %1699 = vst.msk [vmem:[#allocation0 + $0x54] sm:$0x4] %vm195_vm2, %v4941_v12   ;;  %1701 = vst.msk [vmem:[#allocation0 + $0x73] sm:$0x8] %vm195_vm2, %v4941_v12  }
 0x191   :  { %1703 = vst.msk [vmem:[#allocation0 + $0x92] sm:$0x10] %vm195_vm2, %v4941_v12   ;;  %1705 = vst.msk [vmem:[#allocation0 + $0xb1] sm:$0x20] %vm195_vm2, %v4941_v12  }
 0x192   :  { %1707 = vst.msk [vmem:[#allocation0 + $0xd0] sm:$0x40] %vm195_vm2, %v4941_v12   ;;  %1709 = vst.msk [vmem:[#allocation0 + $0xef] sm:$0x80] %vm195_vm2, %v4941_v12   ;;  %v5050_v12 = vpop.permute.xlu0 %5049 }
 0x193   :  { %1758 = vst.msk [vmem:[#allocation0 + $0x316] sm:$0x1] %vm195_vm2, %v4947_v14   ;;  %1760 = vst.msk [vmem:[#allocation0 + $0x335] sm:$0x2] %vm195_vm2, %v4947_v14  }
 0x194   :  { %1762 = vst.msk [vmem:[#allocation0 + $0x354] sm:$0x4] %vm195_vm2, %v4947_v14   ;;  %1764 = vst.msk [vmem:[#allocation0 + $0x373] sm:$0x8] %vm195_vm2, %v4947_v14  }
 0x195   :  { %1766 = vst.msk [vmem:[#allocation0 + $0x392] sm:$0x10] %vm195_vm2, %v4947_v14   ;;  %1768 = vst.msk [vmem:[#allocation0 + $0x3b1] sm:$0x20] %vm195_vm2, %v4947_v14  }
 0x196   :  { %1770 = vst.msk [vmem:[#allocation0 + $0x3d0] sm:$0x40] %vm195_vm2, %v4947_v14   ;;  %1772 = vst.msk [vmem:[#allocation0 + $0x3ef] sm:$0x80] %vm195_vm2, %v4947_v14   ;;  %v5052_v14 = vunpack.i.h.bf16 %v5050_v12 }
 0x197   :  { %1737 = vst.msk [vmem:[#allocation0 + $0x216] sm:$0x1] %vm195_vm2, %v4946_v15   ;;  %1739 = vst.msk [vmem:[#allocation0 + $0x235] sm:$0x2] %vm195_vm2, %v4946_v15  }
 0x198   :  { %1741 = vst.msk [vmem:[#allocation0 + $0x254] sm:$0x4] %vm195_vm2, %v4946_v15   ;;  %1743 = vst.msk [vmem:[#allocation0 + $0x273] sm:$0x8] %vm195_vm2, %v4946_v15  }
 0x199   :  { %1745 = vst.msk [vmem:[#allocation0 + $0x292] sm:$0x10] %vm195_vm2, %v4946_v15   ;;  %1747 = vst.msk [vmem:[#allocation0 + $0x2b1] sm:$0x20] %vm195_vm2, %v4946_v15  }
 0x19a   :  { %1749 = vst.msk [vmem:[#allocation0 + $0x2d0] sm:$0x40] %vm195_vm2, %v4946_v15   ;;  %1751 = vst.msk [vmem:[#allocation0 + $0x2ef] sm:$0x80] %vm195_vm2, %v4946_v15   ;;  %v5051_v15 = vunpack.i.l.bf16 %v5050_v12 }
 0x19b   :  { %1799 = vst.msk [vmem:[#allocation0 + $0x108] sm:$0x1] %vm195_vm2, %v4952_v17   ;;  %1801 = vst.msk [vmem:[#allocation0 + $0x127] sm:$0x2] %vm195_vm2, %v4952_v17  }
 0x19c   :  { %1803 = vst.msk [vmem:[#allocation0 + $0x146] sm:$0x4] %vm195_vm2, %v4952_v17   ;;  %1805 = vst.msk [vmem:[#allocation0 + $0x165] sm:$0x8] %vm195_vm2, %v4952_v17  }
 0x19d   :  { %1807 = vst.msk [vmem:[#allocation0 + $0x184] sm:$0x10] %vm195_vm2, %v4952_v17   ;;  %1809 = vst.msk [vmem:[#allocation0 + $0x1a3] sm:$0x20] %vm195_vm2, %v4952_v17  }
 0x19e   :  { %1811 = vst.msk [vmem:[#allocation0 + $0x1c2] sm:$0x40] %vm195_vm2, %v4952_v17   ;;  %1813 = vst.msk [vmem:[#allocation0 + $0x1e1] sm:$0x80] %vm195_vm2, %v4952_v17   ;;  %v5056_v17 = vunpack.i.l.bf16 %v5055_v13 }
 0x19f   :  { %1778 = vst.msk [vmem:[#allocation0 + $0x8] sm:$0x1] %vm195_vm2, %v4951_v18   ;;  %1780 = vst.msk [vmem:[#allocation0 + $0x27] sm:$0x2] %vm195_vm2, %v4951_v18  }
 0x1a0   :  { %1782 = vst.msk [vmem:[#allocation0 + $0x46] sm:$0x4] %vm195_vm2, %v4951_v18   ;;  %1784 = vst.msk [vmem:[#allocation0 + $0x65] sm:$0x8] %vm195_vm2, %v4951_v18  }
 0x1a1   :  { %1786 = vst.msk [vmem:[#allocation0 + $0x84] sm:$0x10] %vm195_vm2, %v4951_v18   ;;  %1788 = vst.msk [vmem:[#allocation0 + $0xa3] sm:$0x20] %vm195_vm2, %v4951_v18  }
 0x1a2   :  { %1790 = vst.msk [vmem:[#allocation0 + $0xc2] sm:$0x40] %vm195_vm2, %v4951_v18   ;;  %1792 = vst.msk [vmem:[#allocation0 + $0xe1] sm:$0x80] %vm195_vm2, %v4951_v18   ;;  %v5060_v18 = vpop.permute.xlu0 %5059 }
 0x1a3   :  { %1841 = vst.msk [vmem:[#allocation0 + $0x308] sm:$0x1] %vm195_vm2, %v4957_v20   ;;  %1843 = vst.msk [vmem:[#allocation0 + $0x327] sm:$0x2] %vm195_vm2, %v4957_v20  }
 0x1a4   :  { %1845 = vst.msk [vmem:[#allocation0 + $0x346] sm:$0x4] %vm195_vm2, %v4957_v20   ;;  %1847 = vst.msk [vmem:[#allocation0 + $0x365] sm:$0x8] %vm195_vm2, %v4957_v20  }
 0x1a5   :  { %1849 = vst.msk [vmem:[#allocation0 + $0x384] sm:$0x10] %vm195_vm2, %v4957_v20   ;;  %1851 = vst.msk [vmem:[#allocation0 + $0x3a3] sm:$0x20] %vm195_vm2, %v4957_v20  }
 0x1a6   :  { %1853 = vst.msk [vmem:[#allocation0 + $0x3c2] sm:$0x40] %vm195_vm2, %v4957_v20   ;;  %1855 = vst.msk [vmem:[#allocation0 + $0x3e1] sm:$0x80] %vm195_vm2, %v4957_v20   ;;  %v5062_v20 = vunpack.i.h.bf16 %v5060_v18 }
 0x1a7   :  { %1820 = vst.msk [vmem:[#allocation0 + $0x208] sm:$0x1] %vm195_vm2, %v4956_v21   ;;  %1822 = vst.msk [vmem:[#allocation0 + $0x227] sm:$0x2] %vm195_vm2, %v4956_v21  }
 0x1a8   :  { %1824 = vst.msk [vmem:[#allocation0 + $0x246] sm:$0x4] %vm195_vm2, %v4956_v21   ;;  %1826 = vst.msk [vmem:[#allocation0 + $0x265] sm:$0x8] %vm195_vm2, %v4956_v21  }
 0x1a9   :  { %1828 = vst.msk [vmem:[#allocation0 + $0x284] sm:$0x10] %vm195_vm2, %v4956_v21   ;;  %1830 = vst.msk [vmem:[#allocation0 + $0x2a3] sm:$0x20] %vm195_vm2, %v4956_v21  }
 0x1aa   :  { %1832 = vst.msk [vmem:[#allocation0 + $0x2c2] sm:$0x40] %vm195_vm2, %v4956_v21   ;;  %1834 = vst.msk [vmem:[#allocation0 + $0x2e1] sm:$0x80] %vm195_vm2, %v4956_v21   ;;  %v5061_v21 = vunpack.i.l.bf16 %v5060_v18 }
 0x1ab   :  { %1883 = vst.msk [vmem:[#allocation0 + $0x117] sm:$0x1] %vm195_vm2, %v4962_v23   ;;  %1885 = vst.msk [vmem:[#allocation0 + $0x136] sm:$0x2] %vm195_vm2, %v4962_v23  }
 0x1ac   :  { %1887 = vst.msk [vmem:[#allocation0 + $0x155] sm:$0x4] %vm195_vm2, %v4962_v23   ;;  %1889 = vst.msk [vmem:[#allocation0 + $0x174] sm:$0x8] %vm195_vm2, %v4962_v23  }
 0x1ad   :  { %1891 = vst.msk [vmem:[#allocation0 + $0x193] sm:$0x10] %vm195_vm2, %v4962_v23   ;;  %1893 = vst.msk [vmem:[#allocation0 + $0x1b2] sm:$0x20] %vm195_vm2, %v4962_v23  }
 0x1ae   :  { %1895 = vst.msk [vmem:[#allocation0 + $0x1d1] sm:$0x40] %vm195_vm2, %v4962_v23   ;;  %1897 = vst.msk [vmem:[#allocation0 + $0x1f0] sm:$0x80] %vm195_vm2, %v4962_v23   ;;  %v5066_v23 = vunpack.i.l.bf16 %v5065_v19 }
 0x1af   :  { %1862 = vst.msk [vmem:[#allocation0 + $0x17] sm:$0x1] %vm195_vm2, %v4961_v24   ;;  %1864 = vst.msk [vmem:[#allocation0 + $0x36] sm:$0x2] %vm195_vm2, %v4961_v24  }
 0x1b0   :  { %1866 = vst.msk [vmem:[#allocation0 + $0x55] sm:$0x4] %vm195_vm2, %v4961_v24   ;;  %1868 = vst.msk [vmem:[#allocation0 + $0x74] sm:$0x8] %vm195_vm2, %v4961_v24  }
 0x1b1   :  { %1870 = vst.msk [vmem:[#allocation0 + $0x93] sm:$0x10] %vm195_vm2, %v4961_v24   ;;  %1872 = vst.msk [vmem:[#allocation0 + $0xb2] sm:$0x20] %vm195_vm2, %v4961_v24  }
 0x1b2   :  { %1874 = vst.msk [vmem:[#allocation0 + $0xd1] sm:$0x40] %vm195_vm2, %v4961_v24   ;;  %1876 = vst.msk [vmem:[#allocation0 + $0xf0] sm:$0x80] %vm195_vm2, %v4961_v24   ;;  %v5070_v24 = vpop.permute.xlu0 %5069 }
 0x1b3   :  { %1925 = vst.msk [vmem:[#allocation0 + $0x317] sm:$0x1] %vm195_vm2, %v4967_v26   ;;  %1927 = vst.msk [vmem:[#allocation0 + $0x336] sm:$0x2] %vm195_vm2, %v4967_v26  }
 0x1b4   :  { %1929 = vst.msk [vmem:[#allocation0 + $0x355] sm:$0x4] %vm195_vm2, %v4967_v26   ;;  %1931 = vst.msk [vmem:[#allocation0 + $0x374] sm:$0x8] %vm195_vm2, %v4967_v26  }
 0x1b5   :  { %1933 = vst.msk [vmem:[#allocation0 + $0x393] sm:$0x10] %vm195_vm2, %v4967_v26   ;;  %1935 = vst.msk [vmem:[#allocation0 + $0x3b2] sm:$0x20] %vm195_vm2, %v4967_v26  }
 0x1b6   :  { %1937 = vst.msk [vmem:[#allocation0 + $0x3d1] sm:$0x40] %vm195_vm2, %v4967_v26   ;;  %1939 = vst.msk [vmem:[#allocation0 + $0x3f0] sm:$0x80] %vm195_vm2, %v4967_v26   ;;  %v5072_v26 = vunpack.i.h.bf16 %v5070_v24  ;;  %v3076_v31 = vld [vmem:[#allocation0 + $0x30] sm:$0xff] }
 0x1b7   :  { %1904 = vst.msk [vmem:[#allocation0 + $0x217] sm:$0x1] %vm195_vm2, %v4966_v27   ;;  %1906 = vst.msk [vmem:[#allocation0 + $0x236] sm:$0x2] %vm195_vm2, %v4966_v27  }
 0x1b8   :  { %1908 = vst.msk [vmem:[#allocation0 + $0x255] sm:$0x4] %vm195_vm2, %v4966_v27   ;;  %1910 = vst.msk [vmem:[#allocation0 + $0x274] sm:$0x8] %vm195_vm2, %v4966_v27   ;;  %v3172_v34 = vld [vmem:[#allocation0 + $0x90] sm:$0xff] }
 0x1b9   :  { %1912 = vst.msk [vmem:[#allocation0 + $0x293] sm:$0x10] %vm195_vm2, %v4966_v27   ;;  %1914 = vst.msk [vmem:[#allocation0 + $0x2b2] sm:$0x20] %vm195_vm2, %v4966_v27   ;;  %v3268_v40 = vld [vmem:[#allocation0 + $0xf0] sm:$0xff] }
 0x1ba   :  { %1916 = vst.msk [vmem:[#allocation0 + $0x2d1] sm:$0x40] %vm195_vm2, %v4966_v27   ;;  %1918 = vst.msk [vmem:[#allocation0 + $0x2f0] sm:$0x80] %vm195_vm2, %v4966_v27   ;;  %v5071_v27 = vunpack.i.l.bf16 %v5070_v24 }
 0x1bb   :  { %1966 = vst.msk [vmem:[#allocation0 + $0x109] sm:$0x1] %vm195_vm2, %v4972_v29   ;;  %1968 = vst.msk [vmem:[#allocation0 + $0x128] sm:$0x2] %vm195_vm2, %v4972_v29  }
 0x1bc   :  { %1970 = vst.msk [vmem:[#allocation0 + $0x147] sm:$0x4] %vm195_vm2, %v4972_v29   ;;  %1972 = vst.msk [vmem:[#allocation0 + $0x166] sm:$0x8] %vm195_vm2, %v4972_v29  }
 0x1bd   :  { %1974 = vst.msk [vmem:[#allocation0 + $0x185] sm:$0x10] %vm195_vm2, %v4972_v29   ;;  %1976 = vst.msk [vmem:[#allocation0 + $0x1a4] sm:$0x20] %vm195_vm2, %v4972_v29  }
 0x1be   :  { %1978 = vst.msk [vmem:[#allocation0 + $0x1c3] sm:$0x40] %vm195_vm2, %v4972_v29   ;;  %1980 = vst.msk [vmem:[#allocation0 + $0x1e2] sm:$0x80] %vm195_vm2, %v4972_v29   ;;  %v5076_v29 = vunpack.i.l.bf16 %v5075_v25 }
 0x1bf   :  { %1945 = vst.msk [vmem:[#allocation0 + $0x9] sm:$0x1] %vm195_vm2, %v4971_v30   ;;  %1947 = vst.msk [vmem:[#allocation0 + $0x28] sm:$0x2] %vm195_vm2, %v4971_v30  }
 0x1c0   :  { %1949 = vst.msk [vmem:[#allocation0 + $0x47] sm:$0x4] %vm195_vm2, %v4971_v30   ;;  %1951 = vst.msk [vmem:[#allocation0 + $0x66] sm:$0x8] %vm195_vm2, %v4971_v30  }
 0x1c1   :  { %1953 = vst.msk [vmem:[#allocation0 + $0x85] sm:$0x10] %vm195_vm2, %v4971_v30   ;;  %1955 = vst.msk [vmem:[#allocation0 + $0xa4] sm:$0x20] %vm195_vm2, %v4971_v30  }
 0x1c2   :  { %1957 = vst.msk [vmem:[#allocation0 + $0xc3] sm:$0x40] %vm195_vm2, %v4971_v30   ;;  %1959 = vst.msk [vmem:[#allocation0 + $0xe2] sm:$0x80] %vm195_vm2, %v4971_v30   ;;  %v3044_v30 = vld [vmem:[#allocation0 + $0x10] sm:$0xff] }
 0x1c3   :  { %2008 = vst.msk [vmem:[#allocation0 + $0x309] sm:$0x1] %vm195_vm2, %v4977_v32   ;;  %2010 = vst.msk [vmem:[#allocation0 + $0x328] sm:$0x2] %vm195_vm2, %v4977_v32  }
 0x1c4   :  { %2012 = vst.msk [vmem:[#allocation0 + $0x347] sm:$0x4] %vm195_vm2, %v4977_v32   ;;  %2014 = vst.msk [vmem:[#allocation0 + $0x366] sm:$0x8] %vm195_vm2, %v4977_v32  }
 0x1c5   :  { %2016 = vst.msk [vmem:[#allocation0 + $0x385] sm:$0x10] %vm195_vm2, %v4977_v32   ;;  %2018 = vst.msk [vmem:[#allocation0 + $0x3a4] sm:$0x20] %vm195_vm2, %v4977_v32  }
 0x1c6   :  { %2020 = vst.msk [vmem:[#allocation0 + $0x3c3] sm:$0x40] %vm195_vm2, %v4977_v32   ;;  %2022 = vst.msk [vmem:[#allocation0 + $0x3e2] sm:$0x80] %vm195_vm2, %v4977_v32   ;;  %v3108_v32 = vld [vmem:[#allocation0 + $0x50] sm:$0xff] }
 0x1c7   :  { %1987 = vst.msk [vmem:[#allocation0 + $0x209] sm:$0x1] %vm195_vm2, %v4976_v33   ;;  %1989 = vst.msk [vmem:[#allocation0 + $0x228] sm:$0x2] %vm195_vm2, %v4976_v33  }
 0x1c8   :  { %1991 = vst.msk [vmem:[#allocation0 + $0x247] sm:$0x4] %vm195_vm2, %v4976_v33   ;;  %1993 = vst.msk [vmem:[#allocation0 + $0x266] sm:$0x8] %vm195_vm2, %v4976_v33  }
 0x1c9   :  { %1995 = vst.msk [vmem:[#allocation0 + $0x285] sm:$0x10] %vm195_vm2, %v4976_v33   ;;  %1997 = vst.msk [vmem:[#allocation0 + $0x2a4] sm:$0x20] %vm195_vm2, %v4976_v33  }
 0x1ca   :  { %1999 = vst.msk [vmem:[#allocation0 + $0x2c3] sm:$0x40] %vm195_vm2, %v4976_v33   ;;  %2001 = vst.msk [vmem:[#allocation0 + $0x2e2] sm:$0x80] %vm195_vm2, %v4976_v33   ;;  %v3140_v33 = vld [vmem:[#allocation0 + $0x70] sm:$0xff] }
 0x1cb   :  { %2050 = vst.msk [vmem:[#allocation0 + $0x118] sm:$0x1] %vm195_vm2, %v4982_v35   ;;  %2052 = vst.msk [vmem:[#allocation0 + $0x137] sm:$0x2] %vm195_vm2, %v4982_v35  }
 0x1cc   :  { %2054 = vst.msk [vmem:[#allocation0 + $0x156] sm:$0x4] %vm195_vm2, %v4982_v35   ;;  %2056 = vst.msk [vmem:[#allocation0 + $0x175] sm:$0x8] %vm195_vm2, %v4982_v35  }
 0x1cd   :  { %2058 = vst.msk [vmem:[#allocation0 + $0x194] sm:$0x10] %vm195_vm2, %v4982_v35   ;;  %2060 = vst.msk [vmem:[#allocation0 + $0x1b3] sm:$0x20] %vm195_vm2, %v4982_v35  }
 0x1ce   :  { %2062 = vst.msk [vmem:[#allocation0 + $0x1d2] sm:$0x40] %vm195_vm2, %v4982_v35   ;;  %2064 = vst.msk [vmem:[#allocation0 + $0x1f1] sm:$0x80] %vm195_vm2, %v4982_v35   ;;  %v3204_v35 = vld [vmem:[#allocation0 + $0xb0] sm:$0xff] }
 0x1cf   :  { %2029 = vst.msk [vmem:[#allocation0 + $0x18] sm:$0x1] %vm195_vm2, %v4981_v36   ;;  %2031 = vst.msk [vmem:[#allocation0 + $0x37] sm:$0x2] %vm195_vm2, %v4981_v36  }
 0x1d0   :  { %2033 = vst.msk [vmem:[#allocation0 + $0x56] sm:$0x4] %vm195_vm2, %v4981_v36   ;;  %2035 = vst.msk [vmem:[#allocation0 + $0x75] sm:$0x8] %vm195_vm2, %v4981_v36  }
 0x1d1   :  { %2037 = vst.msk [vmem:[#allocation0 + $0x94] sm:$0x10] %vm195_vm2, %v4981_v36   ;;  %2039 = vst.msk [vmem:[#allocation0 + $0xb3] sm:$0x20] %vm195_vm2, %v4981_v36  }
 0x1d2   :  { %2041 = vst.msk [vmem:[#allocation0 + $0xd2] sm:$0x40] %vm195_vm2, %v4981_v36   ;;  %2043 = vst.msk [vmem:[#allocation0 + $0xf1] sm:$0x80] %vm195_vm2, %v4981_v36  }
 0x1d3   :  { %2092 = vst.msk [vmem:[#allocation0 + $0x318] sm:$0x1] %vm195_vm2, %v4987_v38   ;;  %2094 = vst.msk [vmem:[#allocation0 + $0x337] sm:$0x2] %vm195_vm2, %v4987_v38  }
 0x1d4   :  { %2096 = vst.msk [vmem:[#allocation0 + $0x356] sm:$0x4] %vm195_vm2, %v4987_v38   ;;  %2098 = vst.msk [vmem:[#allocation0 + $0x375] sm:$0x8] %vm195_vm2, %v4987_v38  }
 0x1d5   :  { %2100 = vst.msk [vmem:[#allocation0 + $0x394] sm:$0x10] %vm195_vm2, %v4987_v38   ;;  %2102 = vst.msk [vmem:[#allocation0 + $0x3b3] sm:$0x20] %vm195_vm2, %v4987_v38  }
 0x1d6   :  { %2104 = vst.msk [vmem:[#allocation0 + $0x3d2] sm:$0x40] %vm195_vm2, %v4987_v38   ;;  %2106 = vst.msk [vmem:[#allocation0 + $0x3f1] sm:$0x80] %vm195_vm2, %v4987_v38  }
 0x1d7   :  { %2071 = vst.msk [vmem:[#allocation0 + $0x218] sm:$0x1] %vm195_vm2, %v4986_v39   ;;  %2073 = vst.msk [vmem:[#allocation0 + $0x237] sm:$0x2] %vm195_vm2, %v4986_v39  }
 0x1d8   :  { %2075 = vst.msk [vmem:[#allocation0 + $0x256] sm:$0x4] %vm195_vm2, %v4986_v39   ;;  %2077 = vst.msk [vmem:[#allocation0 + $0x275] sm:$0x8] %vm195_vm2, %v4986_v39  }
 0x1d9   :  { %2079 = vst.msk [vmem:[#allocation0 + $0x294] sm:$0x10] %vm195_vm2, %v4986_v39   ;;  %2081 = vst.msk [vmem:[#allocation0 + $0x2b3] sm:$0x20] %vm195_vm2, %v4986_v39  }
 0x1da   :  { %2083 = vst.msk [vmem:[#allocation0 + $0x2d2] sm:$0x40] %vm195_vm2, %v4986_v39   ;;  %2085 = vst.msk [vmem:[#allocation0 + $0x2f1] sm:$0x80] %vm195_vm2, %v4986_v39   ;;  %v3236_v39 = vld [vmem:[#allocation0 + $0xd0] sm:$0xff] }
 0x1db   :  { %2133 = vst.msk [vmem:[#allocation0 + $0x10a] sm:$0x1] %vm195_vm2, %v4992_v41   ;;  %2135 = vst.msk [vmem:[#allocation0 + $0x129] sm:$0x2] %vm195_vm2, %v4992_v41  }
 0x1dc   :  { %2137 = vst.msk [vmem:[#allocation0 + $0x148] sm:$0x4] %vm195_vm2, %v4992_v41   ;;  %2139 = vst.msk [vmem:[#allocation0 + $0x167] sm:$0x8] %vm195_vm2, %v4992_v41  }
 0x1dd   :  { %2141 = vst.msk [vmem:[#allocation0 + $0x186] sm:$0x10] %vm195_vm2, %v4992_v41   ;;  %2143 = vst.msk [vmem:[#allocation0 + $0x1a5] sm:$0x20] %vm195_vm2, %v4992_v41  }
 0x1de   :  { %2145 = vst.msk [vmem:[#allocation0 + $0x1c4] sm:$0x40] %vm195_vm2, %v4992_v41   ;;  %2147 = vst.msk [vmem:[#allocation0 + $0x1e3] sm:$0x80] %vm195_vm2, %v4992_v41   ;;  %v3300_v41 = vld [vmem:[#allocation0 + $0x110] sm:$0xff] }
 0x1df   :  { %2112 = vst.msk [vmem:[#allocation0 + $0xa] sm:$0x1] %vm195_vm2, %v4991_v42   ;;  %2114 = vst.msk [vmem:[#allocation0 + $0x29] sm:$0x2] %vm195_vm2, %v4991_v42  }
 0x1e0   :  { %2116 = vst.msk [vmem:[#allocation0 + $0x48] sm:$0x4] %vm195_vm2, %v4991_v42   ;;  %2118 = vst.msk [vmem:[#allocation0 + $0x67] sm:$0x8] %vm195_vm2, %v4991_v42  }
 0x1e1   :  { %2120 = vst.msk [vmem:[#allocation0 + $0x86] sm:$0x10] %vm195_vm2, %v4991_v42   ;;  %2122 = vst.msk [vmem:[#allocation0 + $0xa5] sm:$0x20] %vm195_vm2, %v4991_v42  }
 0x1e2   :  { %2124 = vst.msk [vmem:[#allocation0 + $0xc4] sm:$0x40] %vm195_vm2, %v4991_v42   ;;  %2126 = vst.msk [vmem:[#allocation0 + $0xe3] sm:$0x80] %vm195_vm2, %v4991_v42  }
 0x1e3   :  { %2701 = vst.msk [vmem:[#allocation0 + $0x1c] sm:$0x1] %vm2699_vm3, %v4996_v45   ;;  %2703 = vst.msk [vmem:[#allocation0 + $0x3b] sm:$0x2] %vm2699_vm3, %v4996_v45  }
 0x1e4   :  { %2705 = vst.msk [vmem:[#allocation0 + $0x5a] sm:$0x4] %vm2699_vm3, %v4996_v45   ;;  %2707 = vst.msk [vmem:[#allocation0 + $0x79] sm:$0x8] %vm2699_vm3, %v4996_v45  }
 0x1e5   :  { %2709 = vst.msk [vmem:[#allocation0 + $0x98] sm:$0x10] %vm2699_vm3, %v4996_v45   ;;  %2711 = vst.msk [vmem:[#allocation0 + $0xb7] sm:$0x20] %vm2699_vm3, %v4996_v45  }
 0x1e6   :  { %2713 = vst.msk [vmem:[#allocation0 + $0xd6] sm:$0x40] %vm2699_vm3, %v4996_v45   ;;  %2715 = vst.msk [vmem:[#allocation0 + $0xf5] sm:$0x80] %vm2699_vm3, %v4996_v45  }
 0x1e7   :  { %2743 = vst.msk [vmem:[#allocation0 + $0x11c] sm:$0x1] %vm2699_vm3, %v4997_v44   ;;  %2745 = vst.msk [vmem:[#allocation0 + $0x13b] sm:$0x2] %vm2699_vm3, %v4997_v44  }
 0x1e8   :  { %2747 = vst.msk [vmem:[#allocation0 + $0x15a] sm:$0x4] %vm2699_vm3, %v4997_v44   ;;  %2749 = vst.msk [vmem:[#allocation0 + $0x179] sm:$0x8] %vm2699_vm3, %v4997_v44  }
 0x1e9   :  { %2751 = vst.msk [vmem:[#allocation0 + $0x198] sm:$0x10] %vm2699_vm3, %v4997_v44   ;;  %2753 = vst.msk [vmem:[#allocation0 + $0x1b7] sm:$0x20] %vm2699_vm3, %v4997_v44  }
 0x1ea   :  { %2755 = vst.msk [vmem:[#allocation0 + $0x1d6] sm:$0x40] %vm2699_vm3, %v4997_v44   ;;  %2757 = vst.msk [vmem:[#allocation0 + $0x1f5] sm:$0x80] %vm2699_vm3, %v4997_v44  }
 0x1eb   :  { %2718 = vst.msk [vmem:[#allocation0 + $0x1c] sm:$0x1] %vm2716_vm4, %v4996_v45   ;;  %2720 = vst.msk [vmem:[#allocation0 + $0x3b] sm:$0x2] %vm2716_vm4, %v4996_v45  }
 0x1ec   :  { %2722 = vst.msk [vmem:[#allocation0 + $0x5a] sm:$0x4] %vm2716_vm4, %v4996_v45   ;;  %2724 = vst.msk [vmem:[#allocation0 + $0x79] sm:$0x8] %vm2716_vm4, %v4996_v45  }
 0x1ed   :  { %2726 = vst.msk [vmem:[#allocation0 + $0x98] sm:$0x10] %vm2716_vm4, %v4996_v45   ;;  %2728 = vst.msk [vmem:[#allocation0 + $0xb7] sm:$0x20] %vm2716_vm4, %v4996_v45  }
 0x1ee   :  { %2730 = vst.msk [vmem:[#allocation0 + $0xd6] sm:$0x40] %vm2716_vm4, %v4996_v45   ;;  %2732 = vst.msk [vmem:[#allocation0 + $0xf5] sm:$0x80] %vm2716_vm4, %v4996_v45  }
 0x1ef   :  { %2760 = vst.msk [vmem:[#allocation0 + $0x11c] sm:$0x1] %vm2716_vm4, %v4997_v44   ;;  %2762 = vst.msk [vmem:[#allocation0 + $0x13b] sm:$0x2] %vm2716_vm4, %v4997_v44  }
 0x1f0   :  { %2764 = vst.msk [vmem:[#allocation0 + $0x15a] sm:$0x4] %vm2716_vm4, %v4997_v44   ;;  %2766 = vst.msk [vmem:[#allocation0 + $0x179] sm:$0x8] %vm2716_vm4, %v4997_v44  }
 0x1f1   :  { %2768 = vst.msk [vmem:[#allocation0 + $0x198] sm:$0x10] %vm2716_vm4, %v4997_v44   ;;  %2770 = vst.msk [vmem:[#allocation0 + $0x1b7] sm:$0x20] %vm2716_vm4, %v4997_v44  }
 0x1f2   :  { %2772 = vst.msk [vmem:[#allocation0 + $0x1d6] sm:$0x40] %vm2716_vm4, %v4997_v44   ;;  %2774 = vst.msk [vmem:[#allocation0 + $0x1f5] sm:$0x80] %vm2716_vm4, %v4997_v44  }
 0x1f3   :  { %2785 = vst.msk [vmem:[#allocation0 + $0x21c] sm:$0x1] %vm2699_vm3, %v5001_v49   ;;  %2787 = vst.msk [vmem:[#allocation0 + $0x23b] sm:$0x2] %vm2699_vm3, %v5001_v49  }
 0x1f4   :  { %2789 = vst.msk [vmem:[#allocation0 + $0x25a] sm:$0x4] %vm2699_vm3, %v5001_v49   ;;  %2791 = vst.msk [vmem:[#allocation0 + $0x279] sm:$0x8] %vm2699_vm3, %v5001_v49  }
 0x1f5   :  { %2793 = vst.msk [vmem:[#allocation0 + $0x298] sm:$0x10] %vm2699_vm3, %v5001_v49   ;;  %2795 = vst.msk [vmem:[#allocation0 + $0x2b7] sm:$0x20] %vm2699_vm3, %v5001_v49  }
 0x1f6   :  { %2797 = vst.msk [vmem:[#allocation0 + $0x2d6] sm:$0x40] %vm2699_vm3, %v5001_v49   ;;  %2799 = vst.msk [vmem:[#allocation0 + $0x2f5] sm:$0x80] %vm2699_vm3, %v5001_v49  }
 0x1f7   :  { %2827 = vst.msk [vmem:[#allocation0 + $0x31c] sm:$0x1] %vm2699_vm3, %v5002_v48   ;;  %2829 = vst.msk [vmem:[#allocation0 + $0x33b] sm:$0x2] %vm2699_vm3, %v5002_v48  }
 0x1f8   :  { %2831 = vst.msk [vmem:[#allocation0 + $0x35a] sm:$0x4] %vm2699_vm3, %v5002_v48   ;;  %2833 = vst.msk [vmem:[#allocation0 + $0x379] sm:$0x8] %vm2699_vm3, %v5002_v48  }
 0x1f9   :  { %2835 = vst.msk [vmem:[#allocation0 + $0x398] sm:$0x10] %vm2699_vm3, %v5002_v48   ;;  %2837 = vst.msk [vmem:[#allocation0 + $0x3b7] sm:$0x20] %vm2699_vm3, %v5002_v48  }
 0x1fa   :  { %2839 = vst.msk [vmem:[#allocation0 + $0x3d6] sm:$0x40] %vm2699_vm3, %v5002_v48   ;;  %2841 = vst.msk [vmem:[#allocation0 + $0x3f5] sm:$0x80] %vm2699_vm3, %v5002_v48  }
 0x1fb   :  { %2802 = vst.msk [vmem:[#allocation0 + $0x21c] sm:$0x1] %vm2716_vm4, %v5001_v49   ;;  %2804 = vst.msk [vmem:[#allocation0 + $0x23b] sm:$0x2] %vm2716_vm4, %v5001_v49  }
 0x1fc   :  { %2806 = vst.msk [vmem:[#allocation0 + $0x25a] sm:$0x4] %vm2716_vm4, %v5001_v49   ;;  %2808 = vst.msk [vmem:[#allocation0 + $0x279] sm:$0x8] %vm2716_vm4, %v5001_v49  }
 0x1fd   :  { %2810 = vst.msk [vmem:[#allocation0 + $0x298] sm:$0x10] %vm2716_vm4, %v5001_v49   ;;  %2812 = vst.msk [vmem:[#allocation0 + $0x2b7] sm:$0x20] %vm2716_vm4, %v5001_v49  }
 0x1fe   :  { %2814 = vst.msk [vmem:[#allocation0 + $0x2d6] sm:$0x40] %vm2716_vm4, %v5001_v49   ;;  %2816 = vst.msk [vmem:[#allocation0 + $0x2f5] sm:$0x80] %vm2716_vm4, %v5001_v49   ;;  %v3364_v49 = vld [vmem:[#allocation0 + $0x150] sm:$0xff] }
 0x1ff   :  { %2844 = vst.msk [vmem:[#allocation0 + $0x31c] sm:$0x1] %vm2716_vm4, %v5002_v48   ;;  %2846 = vst.msk [vmem:[#allocation0 + $0x33b] sm:$0x2] %vm2716_vm4, %v5002_v48  }
 0x200   :  { %2848 = vst.msk [vmem:[#allocation0 + $0x35a] sm:$0x4] %vm2716_vm4, %v5002_v48   ;;  %2850 = vst.msk [vmem:[#allocation0 + $0x379] sm:$0x8] %vm2716_vm4, %v5002_v48  }
 0x201   :  { %2852 = vst.msk [vmem:[#allocation0 + $0x398] sm:$0x10] %vm2716_vm4, %v5002_v48   ;;  %2854 = vst.msk [vmem:[#allocation0 + $0x3b7] sm:$0x20] %vm2716_vm4, %v5002_v48  }
 0x202   :  { %2856 = vst.msk [vmem:[#allocation0 + $0x3d6] sm:$0x40] %vm2716_vm4, %v5002_v48   ;;  %2858 = vst.msk [vmem:[#allocation0 + $0x3f5] sm:$0x80] %vm2716_vm4, %v5002_v48   ;;  %v3332_v48 = vld [vmem:[#allocation0 + $0x130] sm:$0xff] }
 0x203   :  { %2868 = vst.msk [vmem:[#allocation0 + $0xe] sm:$0x1] %vm2866_vm5, %v5006_v51   ;;  %2870 = vst.msk [vmem:[#allocation0 + $0x2d] sm:$0x2] %vm2866_vm5, %v5006_v51  }
 0x204   :  { %2872 = vst.msk [vmem:[#allocation0 + $0x4c] sm:$0x4] %vm2866_vm5, %v5006_v51   ;;  %2874 = vst.msk [vmem:[#allocation0 + $0x6b] sm:$0x8] %vm2866_vm5, %v5006_v51  }
 0x205   :  { %2876 = vst.msk [vmem:[#allocation0 + $0x8a] sm:$0x10] %vm2866_vm5, %v5006_v51   ;;  %2878 = vst.msk [vmem:[#allocation0 + $0xa9] sm:$0x20] %vm2866_vm5, %v5006_v51  }
 0x206   :  { %2880 = vst.msk [vmem:[#allocation0 + $0xc8] sm:$0x40] %vm2866_vm5, %v5006_v51   ;;  %2882 = vst.msk [vmem:[#allocation0 + $0xe7] sm:$0x80] %vm2866_vm5, %v5006_v51  }
 0x207   :  { %2910 = vst.msk [vmem:[#allocation0 + $0x10e] sm:$0x1] %vm2866_vm5, %v6029_v50   ;;  %2912 = vst.msk [vmem:[#allocation0 + $0x12d] sm:$0x2] %vm2866_vm5, %v6029_v50  }
 0x208   :  { %2914 = vst.msk [vmem:[#allocation0 + $0x14c] sm:$0x4] %vm2866_vm5, %v6029_v50   ;;  %2916 = vst.msk [vmem:[#allocation0 + $0x16b] sm:$0x8] %vm2866_vm5, %v6029_v50  }
 0x209   :  { %2918 = vst.msk [vmem:[#allocation0 + $0x18a] sm:$0x10] %vm2866_vm5, %v6029_v50   ;;  %2920 = vst.msk [vmem:[#allocation0 + $0x1a9] sm:$0x20] %vm2866_vm5, %v6029_v50  }
 0x20a   :  { %2922 = vst.msk [vmem:[#allocation0 + $0x1c8] sm:$0x40] %vm2866_vm5, %v6029_v50   ;;  %2924 = vst.msk [vmem:[#allocation0 + $0x1e7] sm:$0x80] %vm2866_vm5, %v6029_v50  }
 0x20b   :  { %2885 = vst.msk [vmem:[#allocation0 + $0xe] sm:$0x1] %vm2883_vm6, %v5006_v51   ;;  %2887 = vst.msk [vmem:[#allocation0 + $0x2d] sm:$0x2] %vm2883_vm6, %v5006_v51  }
 0x20c   :  { %2889 = vst.msk [vmem:[#allocation0 + $0x4c] sm:$0x4] %vm2883_vm6, %v5006_v51   ;;  %2891 = vst.msk [vmem:[#allocation0 + $0x6b] sm:$0x8] %vm2883_vm6, %v5006_v51  }
 0x20d   :  { %2893 = vst.msk [vmem:[#allocation0 + $0x8a] sm:$0x10] %vm2883_vm6, %v5006_v51   ;;  %2895 = vst.msk [vmem:[#allocation0 + $0xa9] sm:$0x20] %vm2883_vm6, %v5006_v51  }
 0x20e   :  { %2897 = vst.msk [vmem:[#allocation0 + $0xc8] sm:$0x40] %vm2883_vm6, %v5006_v51   ;;  %2899 = vst.msk [vmem:[#allocation0 + $0xe7] sm:$0x80] %vm2883_vm6, %v5006_v51   ;;  %v3031_v51 = vld [vmem:[#allocation0] sm:$0xff] }
 0x20f   :  { %2927 = vst.msk [vmem:[#allocation0 + $0x10e] sm:$0x1] %vm2883_vm6, %v6029_v50   ;;  %2929 = vst.msk [vmem:[#allocation0 + $0x12d] sm:$0x2] %vm2883_vm6, %v6029_v50  }
 0x210   :  { %2931 = vst.msk [vmem:[#allocation0 + $0x14c] sm:$0x4] %vm2883_vm6, %v6029_v50   ;;  %2933 = vst.msk [vmem:[#allocation0 + $0x16b] sm:$0x8] %vm2883_vm6, %v6029_v50  }
 0x211   :  { %2935 = vst.msk [vmem:[#allocation0 + $0x18a] sm:$0x10] %vm2883_vm6, %v6029_v50   ;;  %2937 = vst.msk [vmem:[#allocation0 + $0x1a9] sm:$0x20] %vm2883_vm6, %v6029_v50  }
 0x212   :  { %2939 = vst.msk [vmem:[#allocation0 + $0x1c8] sm:$0x40] %vm2883_vm6, %v6029_v50   ;;  %2941 = vst.msk [vmem:[#allocation0 + $0x1e7] sm:$0x80] %vm2883_vm6, %v6029_v50   ;;  %v3396_v50 = vld [vmem:[#allocation0 + $0x170] sm:$0xff] }
 0x213   :  { %2952 = vst.msk [vmem:[#allocation0 + $0x20e] sm:$0x1] %vm2866_vm5, %v5011_v55   ;;  %2954 = vst.msk [vmem:[#allocation0 + $0x22d] sm:$0x2] %vm2866_vm5, %v5011_v55  }
 0x214   :  { %2956 = vst.msk [vmem:[#allocation0 + $0x24c] sm:$0x4] %vm2866_vm5, %v5011_v55   ;;  %2958 = vst.msk [vmem:[#allocation0 + $0x26b] sm:$0x8] %vm2866_vm5, %v5011_v55  }
 0x215   :  { %2960 = vst.msk [vmem:[#allocation0 + $0x28a] sm:$0x10] %vm2866_vm5, %v5011_v55   ;;  %2962 = vst.msk [vmem:[#allocation0 + $0x2a9] sm:$0x20] %vm2866_vm5, %v5011_v55  }
 0x216   :  { %2964 = vst.msk [vmem:[#allocation0 + $0x2c8] sm:$0x40] %vm2866_vm5, %v5011_v55   ;;  %2966 = vst.msk [vmem:[#allocation0 + $0x2e7] sm:$0x80] %vm2866_vm5, %v5011_v55  }
 0x217   :  { %2994 = vst.msk [vmem:[#allocation0 + $0x30e] sm:$0x1] %vm2866_vm5, %v6087_v54   ;;  %2996 = vst.msk [vmem:[#allocation0 + $0x32d] sm:$0x2] %vm2866_vm5, %v6087_v54  }
 0x218   :  { %2998 = vst.msk [vmem:[#allocation0 + $0x34c] sm:$0x4] %vm2866_vm5, %v6087_v54   ;;  %3000 = vst.msk [vmem:[#allocation0 + $0x36b] sm:$0x8] %vm2866_vm5, %v6087_v54  }
 0x219   :  { %3002 = vst.msk [vmem:[#allocation0 + $0x38a] sm:$0x10] %vm2866_vm5, %v6087_v54   ;;  %3004 = vst.msk [vmem:[#allocation0 + $0x3a9] sm:$0x20] %vm2866_vm5, %v6087_v54  }
 0x21a   :  { %3006 = vst.msk [vmem:[#allocation0 + $0x3c8] sm:$0x40] %vm2866_vm5, %v6087_v54   ;;  %3008 = vst.msk [vmem:[#allocation0 + $0x3e7] sm:$0x80] %vm2866_vm5, %v6087_v54  }
 0x21b   :  { %2175 = vst.msk [vmem:[#allocation0 + $0x30a] sm:$0x1] %vm195_vm2, %v5017_v56   ;;  %2177 = vst.msk [vmem:[#allocation0 + $0x329] sm:$0x2] %vm195_vm2, %v5017_v56  }
 0x21c   :  { %2179 = vst.msk [vmem:[#allocation0 + $0x348] sm:$0x4] %vm195_vm2, %v5017_v56   ;;  %2181 = vst.msk [vmem:[#allocation0 + $0x367] sm:$0x8] %vm195_vm2, %v5017_v56  }
 0x21d   :  { %2183 = vst.msk [vmem:[#allocation0 + $0x386] sm:$0x10] %vm195_vm2, %v5017_v56   ;;  %2185 = vst.msk [vmem:[#allocation0 + $0x3a5] sm:$0x20] %vm195_vm2, %v5017_v56  }
 0x21e   :  { %2187 = vst.msk [vmem:[#allocation0 + $0x3c4] sm:$0x40] %vm195_vm2, %v5017_v56   ;;  %2189 = vst.msk [vmem:[#allocation0 + $0x3e3] sm:$0x80] %vm195_vm2, %v5017_v56  }
 0x21f   :  { %2154 = vst.msk [vmem:[#allocation0 + $0x20a] sm:$0x1] %vm195_vm2, %v5016_v57   ;;  %2156 = vst.msk [vmem:[#allocation0 + $0x229] sm:$0x2] %vm195_vm2, %v5016_v57  }
 0x220   :  { %2158 = vst.msk [vmem:[#allocation0 + $0x248] sm:$0x4] %vm195_vm2, %v5016_v57   ;;  %2160 = vst.msk [vmem:[#allocation0 + $0x267] sm:$0x8] %vm195_vm2, %v5016_v57  }
 0x221   :  { %2162 = vst.msk [vmem:[#allocation0 + $0x286] sm:$0x10] %vm195_vm2, %v5016_v57   ;;  %2164 = vst.msk [vmem:[#allocation0 + $0x2a5] sm:$0x20] %vm195_vm2, %v5016_v57  }
 0x222   :  { %2166 = vst.msk [vmem:[#allocation0 + $0x2c4] sm:$0x40] %vm195_vm2, %v5016_v57   ;;  %2168 = vst.msk [vmem:[#allocation0 + $0x2e3] sm:$0x80] %vm195_vm2, %v5016_v57  }
 0x223   :  { %2969 = vst.msk [vmem:[#allocation0 + $0x20e] sm:$0x1] %vm2883_vm6, %v5011_v55   ;;  %2971 = vst.msk [vmem:[#allocation0 + $0x22d] sm:$0x2] %vm2883_vm6, %v5011_v55  }
 0x224   :  { %2973 = vst.msk [vmem:[#allocation0 + $0x24c] sm:$0x4] %vm2883_vm6, %v5011_v55   ;;  %2975 = vst.msk [vmem:[#allocation0 + $0x26b] sm:$0x8] %vm2883_vm6, %v5011_v55  }
 0x225   :  { %2977 = vst.msk [vmem:[#allocation0 + $0x28a] sm:$0x10] %vm2883_vm6, %v5011_v55   ;;  %2979 = vst.msk [vmem:[#allocation0 + $0x2a9] sm:$0x20] %vm2883_vm6, %v5011_v55  }
 0x226   :  { %2981 = vst.msk [vmem:[#allocation0 + $0x2c8] sm:$0x40] %vm2883_vm6, %v5011_v55   ;;  %2983 = vst.msk [vmem:[#allocation0 + $0x2e7] sm:$0x80] %vm2883_vm6, %v5011_v55  }
 0x227   :  { %3011 = vst.msk [vmem:[#allocation0 + $0x30e] sm:$0x1] %vm2883_vm6, %v6087_v54   ;;  %3013 = vst.msk [vmem:[#allocation0 + $0x32d] sm:$0x2] %vm2883_vm6, %v6087_v54  }
 0x228   :  { %3015 = vst.msk [vmem:[#allocation0 + $0x34c] sm:$0x4] %vm2883_vm6, %v6087_v54   ;;  %3017 = vst.msk [vmem:[#allocation0 + $0x36b] sm:$0x8] %vm2883_vm6, %v6087_v54  }
 0x229   :  { %3019 = vst.msk [vmem:[#allocation0 + $0x38a] sm:$0x10] %vm2883_vm6, %v6087_v54   ;;  %3021 = vst.msk [vmem:[#allocation0 + $0x3a9] sm:$0x20] %vm2883_vm6, %v6087_v54  }
 0x22a   :  { %3023 = vst.msk [vmem:[#allocation0 + $0x3c8] sm:$0x40] %vm2883_vm6, %v6087_v54   ;;  %3025 = vst.msk [vmem:[#allocation0 + $0x3e7] sm:$0x80] %vm2883_vm6, %v6087_v54  }
 0x22b   :  { %2217 = vst.msk [vmem:[#allocation0 + $0x119] sm:$0x1] %vm195_vm2, %v5022_v60   ;;  %2219 = vst.msk [vmem:[#allocation0 + $0x138] sm:$0x2] %vm195_vm2, %v5022_v60  }
 0x22c   :  { %2221 = vst.msk [vmem:[#allocation0 + $0x157] sm:$0x4] %vm195_vm2, %v5022_v60   ;;  %2223 = vst.msk [vmem:[#allocation0 + $0x176] sm:$0x8] %vm195_vm2, %v5022_v60  }
 0x22d   :  { %2225 = vst.msk [vmem:[#allocation0 + $0x195] sm:$0x10] %vm195_vm2, %v5022_v60   ;;  %2227 = vst.msk [vmem:[#allocation0 + $0x1b4] sm:$0x20] %vm195_vm2, %v5022_v60  }
 0x22e   :  { %2229 = vst.msk [vmem:[#allocation0 + $0x1d3] sm:$0x40] %vm195_vm2, %v5022_v60   ;;  %2231 = vst.msk [vmem:[#allocation0 + $0x1f2] sm:$0x80] %vm195_vm2, %v5022_v60   ;;  %v3124_v60 = vld [vmem:[#allocation0 + $0x60] sm:$0xff] }
 0x22f   :  { %2196 = vst.msk [vmem:[#allocation0 + $0x19] sm:$0x1] %vm195_vm2, %v5021_v61   ;;  %2198 = vst.msk [vmem:[#allocation0 + $0x38] sm:$0x2] %vm195_vm2, %v5021_v61  }
 0x230   :  { %2200 = vst.msk [vmem:[#allocation0 + $0x57] sm:$0x4] %vm195_vm2, %v5021_v61   ;;  %2202 = vst.msk [vmem:[#allocation0 + $0x76] sm:$0x8] %vm195_vm2, %v5021_v61  }
 0x231   :  { %2204 = vst.msk [vmem:[#allocation0 + $0x95] sm:$0x10] %vm195_vm2, %v5021_v61   ;;  %2206 = vst.msk [vmem:[#allocation0 + $0xb4] sm:$0x20] %vm195_vm2, %v5021_v61  }
 0x232   :  { %2208 = vst.msk [vmem:[#allocation0 + $0xd3] sm:$0x40] %vm195_vm2, %v5021_v61   ;;  %2210 = vst.msk [vmem:[#allocation0 + $0xf2] sm:$0x80] %vm195_vm2, %v5021_v61   ;;  %v3156_v61 = vld [vmem:[#allocation0 + $0x80] sm:$0xff] }
 0x233   :  { %2259 = vst.msk [vmem:[#allocation0 + $0x319] sm:$0x1] %vm195_vm2, %v5027_v62   ;;  %2261 = vst.msk [vmem:[#allocation0 + $0x338] sm:$0x2] %vm195_vm2, %v5027_v62  }
 0x234   :  { %2263 = vst.msk [vmem:[#allocation0 + $0x357] sm:$0x4] %vm195_vm2, %v5027_v62   ;;  %2265 = vst.msk [vmem:[#allocation0 + $0x376] sm:$0x8] %vm195_vm2, %v5027_v62  }
 0x235   :  { %2267 = vst.msk [vmem:[#allocation0 + $0x395] sm:$0x10] %vm195_vm2, %v5027_v62   ;;  %2269 = vst.msk [vmem:[#allocation0 + $0x3b4] sm:$0x20] %vm195_vm2, %v5027_v62  }
 0x236   :  { %2271 = vst.msk [vmem:[#allocation0 + $0x3d3] sm:$0x40] %vm195_vm2, %v5027_v62   ;;  %2273 = vst.msk [vmem:[#allocation0 + $0x3f2] sm:$0x80] %vm195_vm2, %v5027_v62   ;;  %v3188_v62 = vld [vmem:[#allocation0 + $0xa0] sm:$0xff] }
 0x237   :  { %2238 = vst.msk [vmem:[#allocation0 + $0x219] sm:$0x1] %vm195_vm2, %v5026_v63   ;;  %2240 = vst.msk [vmem:[#allocation0 + $0x238] sm:$0x2] %vm195_vm2, %v5026_v63  }
 0x238   :  { %2242 = vst.msk [vmem:[#allocation0 + $0x257] sm:$0x4] %vm195_vm2, %v5026_v63   ;;  %2244 = vst.msk [vmem:[#allocation0 + $0x276] sm:$0x8] %vm195_vm2, %v5026_v63  }
 0x239   :  { %2246 = vst.msk [vmem:[#allocation0 + $0x295] sm:$0x10] %vm195_vm2, %v5026_v63   ;;  %2248 = vst.msk [vmem:[#allocation0 + $0x2b4] sm:$0x20] %vm195_vm2, %v5026_v63  }
 0x23a   :  { %2250 = vst.msk [vmem:[#allocation0 + $0x2d3] sm:$0x40] %vm195_vm2, %v5026_v63   ;;  %2252 = vst.msk [vmem:[#allocation0 + $0x2f2] sm:$0x80] %vm195_vm2, %v5026_v63  }
 0x23b   :  { %2300 = vst.msk [vmem:[#allocation0 + $0x10b] sm:$0x1] %vm195_vm2, %v5032_v2   ;;  %2302 = vst.msk [vmem:[#allocation0 + $0x12a] sm:$0x2] %vm195_vm2, %v5032_v2  }
 0x23c   :  { %2304 = vst.msk [vmem:[#allocation0 + $0x149] sm:$0x4] %vm195_vm2, %v5032_v2   ;;  %2306 = vst.msk [vmem:[#allocation0 + $0x168] sm:$0x8] %vm195_vm2, %v5032_v2  }
 0x23d   :  { %2308 = vst.msk [vmem:[#allocation0 + $0x187] sm:$0x10] %vm195_vm2, %v5032_v2   ;;  %2310 = vst.msk [vmem:[#allocation0 + $0x1a6] sm:$0x20] %vm195_vm2, %v5032_v2  }
 0x23e   :  { %2312 = vst.msk [vmem:[#allocation0 + $0x1c5] sm:$0x40] %vm195_vm2, %v5032_v2   ;;  %2314 = vst.msk [vmem:[#allocation0 + $0x1e4] sm:$0x80] %vm195_vm2, %v5032_v2  }
 0x23f   :  { %2279 = vst.msk [vmem:[#allocation0 + $0xb] sm:$0x1] %vm195_vm2, %v5031_v3   ;;  %2281 = vst.msk [vmem:[#allocation0 + $0x2a] sm:$0x2] %vm195_vm2, %v5031_v3  }
 0x240   :  { %2283 = vst.msk [vmem:[#allocation0 + $0x49] sm:$0x4] %vm195_vm2, %v5031_v3   ;;  %2285 = vst.msk [vmem:[#allocation0 + $0x68] sm:$0x8] %vm195_vm2, %v5031_v3  }
 0x241   :  { %2287 = vst.msk [vmem:[#allocation0 + $0x87] sm:$0x10] %vm195_vm2, %v5031_v3   ;;  %2289 = vst.msk [vmem:[#allocation0 + $0xa6] sm:$0x20] %vm195_vm2, %v5031_v3  }
 0x242   :  { %2291 = vst.msk [vmem:[#allocation0 + $0xc5] sm:$0x40] %vm195_vm2, %v5031_v3   ;;  %2293 = vst.msk [vmem:[#allocation0 + $0xe4] sm:$0x80] %vm195_vm2, %v5031_v3  }
 0x243   :  { %2342 = vst.msk [vmem:[#allocation0 + $0x30b] sm:$0x1] %vm195_vm2, %v5037_v4   ;;  %2344 = vst.msk [vmem:[#allocation0 + $0x32a] sm:$0x2] %vm195_vm2, %v5037_v4  }
 0x244   :  { %2346 = vst.msk [vmem:[#allocation0 + $0x349] sm:$0x4] %vm195_vm2, %v5037_v4   ;;  %2348 = vst.msk [vmem:[#allocation0 + $0x368] sm:$0x8] %vm195_vm2, %v5037_v4  }
 0x245   :  { %2350 = vst.msk [vmem:[#allocation0 + $0x387] sm:$0x10] %vm195_vm2, %v5037_v4   ;;  %2352 = vst.msk [vmem:[#allocation0 + $0x3a6] sm:$0x20] %vm195_vm2, %v5037_v4  }
 0x246   :  { %2354 = vst.msk [vmem:[#allocation0 + $0x3c5] sm:$0x40] %vm195_vm2, %v5037_v4   ;;  %2356 = vst.msk [vmem:[#allocation0 + $0x3e4] sm:$0x80] %vm195_vm2, %v5037_v4  }
 0x247   :  { %2321 = vst.msk [vmem:[#allocation0 + $0x20b] sm:$0x1] %vm195_vm2, %v5036_v5   ;;  %2323 = vst.msk [vmem:[#allocation0 + $0x22a] sm:$0x2] %vm195_vm2, %v5036_v5  }
 0x248   :  { %2325 = vst.msk [vmem:[#allocation0 + $0x249] sm:$0x4] %vm195_vm2, %v5036_v5   ;;  %2327 = vst.msk [vmem:[#allocation0 + $0x268] sm:$0x8] %vm195_vm2, %v5036_v5  }
 0x249   :  { %2329 = vst.msk [vmem:[#allocation0 + $0x287] sm:$0x10] %vm195_vm2, %v5036_v5   ;;  %2331 = vst.msk [vmem:[#allocation0 + $0x2a6] sm:$0x20] %vm195_vm2, %v5036_v5  }
 0x24a   :  { %2333 = vst.msk [vmem:[#allocation0 + $0x2c5] sm:$0x40] %vm195_vm2, %v5036_v5   ;;  %2335 = vst.msk [vmem:[#allocation0 + $0x2e4] sm:$0x80] %vm195_vm2, %v5036_v5  }
 0x24b   :  { %2384 = vst.msk [vmem:[#allocation0 + $0x11a] sm:$0x1] %vm195_vm2, %v5042_v8   ;;  %2386 = vst.msk [vmem:[#allocation0 + $0x139] sm:$0x2] %vm195_vm2, %v5042_v8  }
 0x24c   :  { %2388 = vst.msk [vmem:[#allocation0 + $0x158] sm:$0x4] %vm195_vm2, %v5042_v8   ;;  %2390 = vst.msk [vmem:[#allocation0 + $0x177] sm:$0x8] %vm195_vm2, %v5042_v8  }
 0x24d   :  { %2392 = vst.msk [vmem:[#allocation0 + $0x196] sm:$0x10] %vm195_vm2, %v5042_v8   ;;  %2394 = vst.msk [vmem:[#allocation0 + $0x1b5] sm:$0x20] %vm195_vm2, %v5042_v8  }
 0x24e   :  { %2396 = vst.msk [vmem:[#allocation0 + $0x1d4] sm:$0x40] %vm195_vm2, %v5042_v8   ;;  %2398 = vst.msk [vmem:[#allocation0 + $0x1f3] sm:$0x80] %vm195_vm2, %v5042_v8   ;;  %v3220_v8 = vld [vmem:[#allocation0 + $0xc0] sm:$0xff] }
 0x24f   :  { %2363 = vst.msk [vmem:[#allocation0 + $0x1a] sm:$0x1] %vm195_vm2, %v5041_v9   ;;  %2365 = vst.msk [vmem:[#allocation0 + $0x39] sm:$0x2] %vm195_vm2, %v5041_v9  }
 0x250   :  { %2367 = vst.msk [vmem:[#allocation0 + $0x58] sm:$0x4] %vm195_vm2, %v5041_v9   ;;  %2369 = vst.msk [vmem:[#allocation0 + $0x77] sm:$0x8] %vm195_vm2, %v5041_v9  }
 0x251   :  { %2371 = vst.msk [vmem:[#allocation0 + $0x96] sm:$0x10] %vm195_vm2, %v5041_v9   ;;  %2373 = vst.msk [vmem:[#allocation0 + $0xb5] sm:$0x20] %vm195_vm2, %v5041_v9  }
 0x252   :  { %2375 = vst.msk [vmem:[#allocation0 + $0xd4] sm:$0x40] %vm195_vm2, %v5041_v9   ;;  %2377 = vst.msk [vmem:[#allocation0 + $0xf3] sm:$0x80] %vm195_vm2, %v5041_v9   ;;  %v3252_v9 = vld [vmem:[#allocation0 + $0xe0] sm:$0xff] }
 0x253   :  { %2426 = vst.msk [vmem:[#allocation0 + $0x31a] sm:$0x1] %vm195_vm2, %v5047_v10   ;;  %2428 = vst.msk [vmem:[#allocation0 + $0x339] sm:$0x2] %vm195_vm2, %v5047_v10  }
 0x254   :  { %2430 = vst.msk [vmem:[#allocation0 + $0x358] sm:$0x4] %vm195_vm2, %v5047_v10   ;;  %2432 = vst.msk [vmem:[#allocation0 + $0x377] sm:$0x8] %vm195_vm2, %v5047_v10  }
 0x255   :  { %2434 = vst.msk [vmem:[#allocation0 + $0x396] sm:$0x10] %vm195_vm2, %v5047_v10   ;;  %2436 = vst.msk [vmem:[#allocation0 + $0x3b5] sm:$0x20] %vm195_vm2, %v5047_v10  }
 0x256   :  { %2438 = vst.msk [vmem:[#allocation0 + $0x3d4] sm:$0x40] %vm195_vm2, %v5047_v10   ;;  %2440 = vst.msk [vmem:[#allocation0 + $0x3f3] sm:$0x80] %vm195_vm2, %v5047_v10   ;;  %v3284_v10 = vld [vmem:[#allocation0 + $0x100] sm:$0xff] }
 0x257   :  { %2405 = vst.msk [vmem:[#allocation0 + $0x21a] sm:$0x1] %vm195_vm2, %v5046_v11   ;;  %2407 = vst.msk [vmem:[#allocation0 + $0x239] sm:$0x2] %vm195_vm2, %v5046_v11  }
 0x258   :  { %2409 = vst.msk [vmem:[#allocation0 + $0x258] sm:$0x4] %vm195_vm2, %v5046_v11   ;;  %2411 = vst.msk [vmem:[#allocation0 + $0x277] sm:$0x8] %vm195_vm2, %v5046_v11  }
 0x259   :  { %2413 = vst.msk [vmem:[#allocation0 + $0x296] sm:$0x10] %vm195_vm2, %v5046_v11   ;;  %2415 = vst.msk [vmem:[#allocation0 + $0x2b5] sm:$0x20] %vm195_vm2, %v5046_v11  }
 0x25a   :  { %2417 = vst.msk [vmem:[#allocation0 + $0x2d4] sm:$0x40] %vm195_vm2, %v5046_v11   ;;  %2419 = vst.msk [vmem:[#allocation0 + $0x2f3] sm:$0x80] %vm195_vm2, %v5046_v11  }
 0x25b   :  { %2467 = vst.msk [vmem:[#allocation0 + $0x10c] sm:$0x1] %vm195_vm2, %v5052_v14   ;;  %2469 = vst.msk [vmem:[#allocation0 + $0x12b] sm:$0x2] %vm195_vm2, %v5052_v14  }
 0x25c   :  { %2471 = vst.msk [vmem:[#allocation0 + $0x14a] sm:$0x4] %vm195_vm2, %v5052_v14   ;;  %2473 = vst.msk [vmem:[#allocation0 + $0x169] sm:$0x8] %vm195_vm2, %v5052_v14  }
 0x25d   :  { %2475 = vst.msk [vmem:[#allocation0 + $0x188] sm:$0x10] %vm195_vm2, %v5052_v14   ;;  %2477 = vst.msk [vmem:[#allocation0 + $0x1a7] sm:$0x20] %vm195_vm2, %v5052_v14  }
 0x25e   :  { %2479 = vst.msk [vmem:[#allocation0 + $0x1c6] sm:$0x40] %vm195_vm2, %v5052_v14   ;;  %2481 = vst.msk [vmem:[#allocation0 + $0x1e5] sm:$0x80] %vm195_vm2, %v5052_v14  }
 0x25f   :  { %2446 = vst.msk [vmem:[#allocation0 + $0xc] sm:$0x1] %vm195_vm2, %v5051_v15   ;;  %2448 = vst.msk [vmem:[#allocation0 + $0x2b] sm:$0x2] %vm195_vm2, %v5051_v15  }
 0x260   :  { %2450 = vst.msk [vmem:[#allocation0 + $0x4a] sm:$0x4] %vm195_vm2, %v5051_v15   ;;  %2452 = vst.msk [vmem:[#allocation0 + $0x69] sm:$0x8] %vm195_vm2, %v5051_v15  }
 0x261   :  { %2454 = vst.msk [vmem:[#allocation0 + $0x88] sm:$0x10] %vm195_vm2, %v5051_v15   ;;  %2456 = vst.msk [vmem:[#allocation0 + $0xa7] sm:$0x20] %vm195_vm2, %v5051_v15  }
 0x262   :  { %2458 = vst.msk [vmem:[#allocation0 + $0xc6] sm:$0x40] %vm195_vm2, %v5051_v15   ;;  %2460 = vst.msk [vmem:[#allocation0 + $0xe5] sm:$0x80] %vm195_vm2, %v5051_v15  }
 0x263   :  { %2509 = vst.msk [vmem:[#allocation0 + $0x30c] sm:$0x1] %vm195_vm2, %v5057_v16   ;;  %2511 = vst.msk [vmem:[#allocation0 + $0x32b] sm:$0x2] %vm195_vm2, %v5057_v16  }
 0x264   :  { %2513 = vst.msk [vmem:[#allocation0 + $0x34a] sm:$0x4] %vm195_vm2, %v5057_v16   ;;  %2515 = vst.msk [vmem:[#allocation0 + $0x369] sm:$0x8] %vm195_vm2, %v5057_v16  }
 0x265   :  { %2517 = vst.msk [vmem:[#allocation0 + $0x388] sm:$0x10] %vm195_vm2, %v5057_v16   ;;  %2519 = vst.msk [vmem:[#allocation0 + $0x3a7] sm:$0x20] %vm195_vm2, %v5057_v16  }
 0x266   :  { %2521 = vst.msk [vmem:[#allocation0 + $0x3c6] sm:$0x40] %vm195_vm2, %v5057_v16   ;;  %2523 = vst.msk [vmem:[#allocation0 + $0x3e5] sm:$0x80] %vm195_vm2, %v5057_v16  }
 0x267   :  { %2488 = vst.msk [vmem:[#allocation0 + $0x20c] sm:$0x1] %vm195_vm2, %v5056_v17   ;;  %2490 = vst.msk [vmem:[#allocation0 + $0x22b] sm:$0x2] %vm195_vm2, %v5056_v17  }
 0x268   :  { %2492 = vst.msk [vmem:[#allocation0 + $0x24a] sm:$0x4] %vm195_vm2, %v5056_v17   ;;  %2494 = vst.msk [vmem:[#allocation0 + $0x269] sm:$0x8] %vm195_vm2, %v5056_v17  }
 0x269   :  { %2496 = vst.msk [vmem:[#allocation0 + $0x288] sm:$0x10] %vm195_vm2, %v5056_v17   ;;  %2498 = vst.msk [vmem:[#allocation0 + $0x2a7] sm:$0x20] %vm195_vm2, %v5056_v17  }
 0x26a   :  { %2500 = vst.msk [vmem:[#allocation0 + $0x2c6] sm:$0x40] %vm195_vm2, %v5056_v17   ;;  %2502 = vst.msk [vmem:[#allocation0 + $0x2e5] sm:$0x80] %vm195_vm2, %v5056_v17  }
 0x26b   :  { %2551 = vst.msk [vmem:[#allocation0 + $0x11b] sm:$0x1] %vm195_vm2, %v5062_v20   ;;  %2553 = vst.msk [vmem:[#allocation0 + $0x13a] sm:$0x2] %vm195_vm2, %v5062_v20  }
 0x26c   :  { %2555 = vst.msk [vmem:[#allocation0 + $0x159] sm:$0x4] %vm195_vm2, %v5062_v20   ;;  %2557 = vst.msk [vmem:[#allocation0 + $0x178] sm:$0x8] %vm195_vm2, %v5062_v20  }
 0x26d   :  { %2559 = vst.msk [vmem:[#allocation0 + $0x197] sm:$0x10] %vm195_vm2, %v5062_v20   ;;  %2561 = vst.msk [vmem:[#allocation0 + $0x1b6] sm:$0x20] %vm195_vm2, %v5062_v20  }
 0x26e   :  { %2563 = vst.msk [vmem:[#allocation0 + $0x1d5] sm:$0x40] %vm195_vm2, %v5062_v20   ;;  %2565 = vst.msk [vmem:[#allocation0 + $0x1f4] sm:$0x80] %vm195_vm2, %v5062_v20   ;;  %v3316_v20 = vld [vmem:[#allocation0 + $0x120] sm:$0xff] }
 0x26f   :  { %2530 = vst.msk [vmem:[#allocation0 + $0x1b] sm:$0x1] %vm195_vm2, %v5061_v21   ;;  %2532 = vst.msk [vmem:[#allocation0 + $0x3a] sm:$0x2] %vm195_vm2, %v5061_v21  }
 0x270   :  { %2534 = vst.msk [vmem:[#allocation0 + $0x59] sm:$0x4] %vm195_vm2, %v5061_v21   ;;  %2536 = vst.msk [vmem:[#allocation0 + $0x78] sm:$0x8] %vm195_vm2, %v5061_v21  }
 0x271   :  { %2538 = vst.msk [vmem:[#allocation0 + $0x97] sm:$0x10] %vm195_vm2, %v5061_v21   ;;  %2540 = vst.msk [vmem:[#allocation0 + $0xb6] sm:$0x20] %vm195_vm2, %v5061_v21  }
 0x272   :  { %2542 = vst.msk [vmem:[#allocation0 + $0xd5] sm:$0x40] %vm195_vm2, %v5061_v21   ;;  %2544 = vst.msk [vmem:[#allocation0 + $0xf4] sm:$0x80] %vm195_vm2, %v5061_v21   ;;  %v3308_v59 = vld [vmem:[#allocation0 + $0x118] sm:$0xff]  ;;  %v3348_v21 = vld [vmem:[#allocation0 + $0x140] sm:$0xff] }
 0x273   :  { %2593 = vst.msk [vmem:[#allocation0 + $0x31b] sm:$0x1] %vm195_vm2, %v5067_v22   ;;  %2595 = vst.msk [vmem:[#allocation0 + $0x33a] sm:$0x2] %vm195_vm2, %v5067_v22   ;;  %v4437_v1 = vpack.c.bf16 %v3308_v59, %v3300_v41  ;;  %v3340_v2 = vld [vmem:[#allocation0 + $0x138] sm:$0xff] }
 0x274   :  { %2597 = vst.msk [vmem:[#allocation0 + $0x359] sm:$0x4] %vm195_vm2, %v5067_v22   ;;  %2599 = vst.msk [vmem:[#allocation0 + $0x378] sm:$0x8] %vm195_vm2, %v5067_v22   ;;  %v3372_v3 = vld [vmem:[#allocation0 + $0x158] sm:$0xff]  ;;  %v4447_v11 = vpack.c.bf16 %v3340_v2, %v3332_v48  ;;  %v3524_v48 = vld [vmem:[#allocation0 + $0x1f0] sm:$0xff] }
 0x275   :  { %2601 = vst.msk [vmem:[#allocation0 + $0x397] sm:$0x10] %vm195_vm2, %v5067_v22   ;;  %2603 = vst.msk [vmem:[#allocation0 + $0x3b6] sm:$0x20] %vm195_vm2, %v5067_v22   ;;  %v3404_v4 = vld [vmem:[#allocation0 + $0x178] sm:$0xff]  ;;  %v4457_v12 = vpack.c.bf16 %v3372_v3, %v3364_v49  ;;  %v3540_v49 = vld [vmem:[#allocation0 + $0x200] sm:$0xff] }
 0x276   :  { %2605 = vst.msk [vmem:[#allocation0 + $0x3d5] sm:$0x40] %vm195_vm2, %v5067_v22   ;;  %2607 = vst.msk [vmem:[#allocation0 + $0x3f4] sm:$0x80] %vm195_vm2, %v5067_v22   ;;  %v3052_v36 = vld [vmem:[#allocation0 + $0x18] sm:$0xff]  ;;  %v4467_v13 = vpack.c.bf16 %v3404_v4, %v3396_v50  ;;  %v3380_v22 = vld [vmem:[#allocation0 + $0x160] sm:$0xff] }
 0x277   :  { %2572 = vst.msk [vmem:[#allocation0 + $0x21b] sm:$0x1] %vm195_vm2, %v5066_v23   ;;  %2574 = vst.msk [vmem:[#allocation0 + $0x23a] sm:$0x2] %vm195_vm2, %v5066_v23   ;;  %v3084_v37 = vld [vmem:[#allocation0 + $0x38] sm:$0xff]  ;;  %v4357_v42 = vpack.c.bf16 %v3052_v36, %v3044_v30  ;;  %v3428_v30 = vld [vmem:[#allocation0 + $0x190] sm:$0xff] }
 0x278   :  { %2576 = vst.msk [vmem:[#allocation0 + $0x259] sm:$0x4] %vm195_vm2, %v5066_v23   ;;  %2578 = vst.msk [vmem:[#allocation0 + $0x278] sm:$0x8] %vm195_vm2, %v5066_v23   ;;  %v3116_v38 = vld [vmem:[#allocation0 + $0x58] sm:$0xff]  ;;  %v4367_v43 = vpack.c.bf16 %v3084_v37, %v3076_v31  ;;  %v3444_v31 = vld [vmem:[#allocation0 + $0x1a0] sm:$0xff] }
 0x279   :  { %2580 = vst.msk [vmem:[#allocation0 + $0x297] sm:$0x10] %vm195_vm2, %v5066_v23   ;;  %2582 = vst.msk [vmem:[#allocation0 + $0x2b6] sm:$0x20] %vm195_vm2, %v5066_v23   ;;  %v4377_v44 = vpack.c.bf16 %v3116_v38, %v3108_v32  ;;  %v3148_v45 = vld [vmem:[#allocation0 + $0x78] sm:$0xff]  ;;  %v3460_v38 = vld [vmem:[#allocation0 + $0x1b0] sm:$0xff] }
 0x27a   :  { %2584 = vst.msk [vmem:[#allocation0 + $0x2d5] sm:$0x40] %vm195_vm2, %v5066_v23   ;;  %2586 = vst.msk [vmem:[#allocation0 + $0x2f4] sm:$0x80] %vm195_vm2, %v5066_v23   ;;  %v3180_v46 = vld [vmem:[#allocation0 + $0x98] sm:$0xff]  ;;  %v4387_v54 = vpack.c.bf16 %v3148_v45, %v3140_v33  ;;  %v3620_v2 = vld [vmem:[#allocation0 + $0x250] sm:$0xff] }
 0x27b   :  { %2634 = vst.msk [vmem:[#allocation0 + $0x10d] sm:$0x1] %vm195_vm2, %v5072_v26   ;;  %2636 = vst.msk [vmem:[#allocation0 + $0x12c] sm:$0x2] %vm195_vm2, %v5072_v26   ;;  %v3212_v47 = vld [vmem:[#allocation0 + $0xb8] sm:$0xff]  ;;  %v4397_v55 = vpack.c.bf16 %v3180_v46, %v3172_v34  ;;  %v3636_v3 = vld [vmem:[#allocation0 + $0x260] sm:$0xff] }
 0x27c   :  { %2638 = vst.msk [vmem:[#allocation0 + $0x14b] sm:$0x4] %vm195_vm2, %v5072_v26   ;;  %2640 = vst.msk [vmem:[#allocation0 + $0x16a] sm:$0x8] %vm195_vm2, %v5072_v26   ;;  %v4407_v56 = vpack.c.bf16 %v3212_v47, %v3204_v35  ;;  %v3244_v57 = vld [vmem:[#allocation0 + $0xd8] sm:$0xff]  ;;  %v3508_v47 = vld [vmem:[#allocation0 + $0x1e0] sm:$0xff] }
 0x27d   :  { %2642 = vst.msk [vmem:[#allocation0 + $0x189] sm:$0x10] %vm195_vm2, %v5072_v26   ;;  %2644 = vst.msk [vmem:[#allocation0 + $0x1a8] sm:$0x20] %vm195_vm2, %v5072_v26   ;;  %v3276_v58 = vld [vmem:[#allocation0 + $0xf8] sm:$0xff]  ;;  %v4417_v63 = vpack.c.bf16 %v3244_v57, %v3236_v39  ;;  %v3476_v39 = vld [vmem:[#allocation0 + $0x1c0] sm:$0xff] }
 0x27e   :  { %2646 = vst.msk [vmem:[#allocation0 + $0x1c7] sm:$0x40] %vm195_vm2, %v5072_v26   ;;  %2648 = vst.msk [vmem:[#allocation0 + $0x1e6] sm:$0x80] %vm195_vm2, %v5072_v26   ;;  %v4427_v0 = vpack.c.bf16 %v3276_v58, %v3268_v40  ;;  %v3492_v40 = vld [vmem:[#allocation0 + $0x1d0] sm:$0xff]  ;;  %v3436_v45 = vld [vmem:[#allocation0 + $0x198] sm:$0xff] }
 0x27f   :  { %2613 = vst.msk [vmem:[#allocation0 + $0xd] sm:$0x1] %vm195_vm2, %v5071_v27   ;;  %2615 = vst.msk [vmem:[#allocation0 + $0x2c] sm:$0x2] %vm195_vm2, %v5071_v27   ;;  %v3572_v57 = vld [vmem:[#allocation0 + $0x220] sm:$0xff]  ;;  %v3588_v58 = vld [vmem:[#allocation0 + $0x230] sm:$0xff] }
 0x280   :  { %2617 = vst.msk [vmem:[#allocation0 + $0x4b] sm:$0x4] %vm195_vm2, %v5071_v27   ;;  %2619 = vst.msk [vmem:[#allocation0 + $0x6a] sm:$0x8] %vm195_vm2, %v5071_v27  }
 0x281   :  { %2621 = vst.msk [vmem:[#allocation0 + $0x89] sm:$0x10] %vm195_vm2, %v5071_v27   ;;  %2623 = vst.msk [vmem:[#allocation0 + $0xa8] sm:$0x20] %vm195_vm2, %v5071_v27  }
 0x282   :  { %2625 = vst.msk [vmem:[#allocation0 + $0xc7] sm:$0x40] %vm195_vm2, %v5071_v27   ;;  %2627 = vst.msk [vmem:[#allocation0 + $0xe6] sm:$0x80] %vm195_vm2, %v5071_v27   ;;  %v3324_v35 = vld [vmem:[#allocation0 + $0x128] sm:$0xff] }
 0x283   :  { %2676 = vst.msk [vmem:[#allocation0 + $0x30d] sm:$0x1] %vm195_vm2, %v5077_v28   ;;  %2678 = vst.msk [vmem:[#allocation0 + $0x32c] sm:$0x2] %vm195_vm2, %v5077_v28   ;;  %v3356_v36 = vld [vmem:[#allocation0 + $0x148] sm:$0xff]  ;;  %v4442_v41 = vpack.c.bf16 %v3324_v35, %v3316_v20  ;;  %v3716_v20 = vld [vmem:[#allocation0 + $0x2b0] sm:$0xff] }
 0x284   :  { %2680 = vst.msk [vmem:[#allocation0 + $0x34b] sm:$0x4] %vm195_vm2, %v5077_v28   ;;  %2682 = vst.msk [vmem:[#allocation0 + $0x36a] sm:$0x8] %vm195_vm2, %v5077_v28   ;;  %v3388_v37 = vld [vmem:[#allocation0 + $0x168] sm:$0xff]  ;;  %v3724_v35 = vld [vmem:[#allocation0 + $0x2b8] sm:$0xff] }
 0x285   :  { %2684 = vst.msk [vmem:[#allocation0 + $0x389] sm:$0x10] %vm195_vm2, %v5077_v28   ;;  %2686 = vst.msk [vmem:[#allocation0 + $0x3a8] sm:$0x20] %vm195_vm2, %v5077_v28   ;;  %v3452_v46 = vld [vmem:[#allocation0 + $0x1a8] sm:$0xff] }
 0x286   :  { %2688 = vst.msk [vmem:[#allocation0 + $0x3c7] sm:$0x40] %vm195_vm2, %v5077_v28   ;;  %2690 = vst.msk [vmem:[#allocation0 + $0x3e6] sm:$0x80] %vm195_vm2, %v5077_v28   ;;  %v3037_v5 = vld [vmem:[#allocation0 + $0x8] sm:$0xff] }
 0x287   :  { %2655 = vst.msk [vmem:[#allocation0 + $0x20d] sm:$0x1] %vm195_vm2, %v5076_v29   ;;  %2657 = vst.msk [vmem:[#allocation0 + $0x22c] sm:$0x2] %vm195_vm2, %v5076_v29   ;;  %v3068_v6 = vld [vmem:[#allocation0 + $0x28] sm:$0xff]  ;;  %v4352_v14 = vpack.c.bf16 %v3037_v5, %v3031_v51  ;;  %v4477_v51 = vpack.c.bf16 %v3436_v45, %v3428_v30  ;;  %v3780_v30 = vld [vmem:[#allocation0 + $0x2f0] sm:$0xff] }
 0x288   :  { %2659 = vst.msk [vmem:[#allocation0 + $0x24b] sm:$0x4] %vm195_vm2, %v5076_v29   ;;  %2661 = vst.msk [vmem:[#allocation0 + $0x26a] sm:$0x8] %vm195_vm2, %v5076_v29   ;;  %v3100_v7 = vld [vmem:[#allocation0 + $0x48] sm:$0xff]  ;;  %v4362_v15 = vpack.c.bf16 %v3068_v6, %v3060_v52  ;;  %v4482_v52 = vpack.c.bf16 %v3452_v46, %v3444_v31  ;;  %v3788_v45 = vld [vmem:[#allocation0 + $0x2f8] sm:$0xff] }
 0x289   :  { %2663 = vst.msk [vmem:[#allocation0 + $0x289] sm:$0x10] %vm195_vm2, %v5076_v29   ;;  %2665 = vst.msk [vmem:[#allocation0 + $0x2a8] sm:$0x20] %vm195_vm2, %v5076_v29   ;;  %v4372_v16 = vpack.c.bf16 %v3100_v7, %v3092_v53  ;;  %v3132_v17 = vld [vmem:[#allocation0 + $0x68] sm:$0xff]  ;;  %v3468_v53 = vld [vmem:[#allocation0 + $0x1b8] sm:$0xff] }
 0x28a   :  { %2667 = vst.msk [vmem:[#allocation0 + $0x2c7] sm:$0x40] %vm195_vm2, %v5076_v29   ;;  %2669 = vst.msk [vmem:[#allocation0 + $0x2e6] sm:$0x80] %vm195_vm2, %v5076_v29   ;;  %v3164_v18 = vld [vmem:[#allocation0 + $0x88] sm:$0xff]  ;;  %v4382_v23 = vpack.c.bf16 %v3132_v17, %v3124_v60  ;;  %v3412_v29 = vld [vmem:[#allocation0 + $0x180] sm:$0xff]  ;;  %v4487_v59 = vpack.c.bf16 %v3468_v53, %v3460_v38 }
 0x28b   :  { %4674 = vst [vmem:[%s6562_s1 + $0x8] sm:$0xff] %v4357_v42   ;;  %4676 = vst [vmem:[%s6562_s1 + $0x18] sm:$0xff] %v4367_v43   ;;  %v3196_v19 = vld [vmem:[#allocation0 + $0xa8] sm:$0xff]  ;;  %v4392_v24 = vpack.c.bf16 %v3164_v18, %v3156_v61  ;;  %v4452_v42 = vpack.c.bf16 %v3356_v36, %v3348_v21  ;;  %v4462_v43 = vpack.c.bf16 %v3388_v37, %v3380_v22  ;;  %v3564_v7 = vld [vmem:[#allocation0 + $0x218] sm:$0xff] }
 0x28c   :  { %4678 = vst [vmem:[%s6562_s1 + $0x28] sm:$0xff] %v4377_v44   ;;  %4680 = vst [vmem:[%s6562_s1 + $0x38] sm:$0xff] %v4387_v54   ;;  %v4402_v25 = vpack.c.bf16 %v3196_v19, %v3188_v62  ;;  %v3228_v26 = vld [vmem:[#allocation0 + $0xc8] sm:$0xff]  ;;  %v3628_v17 = vld [vmem:[#allocation0 + $0x258] sm:$0xff] }
 0x28d   :  { %4682 = vst [vmem:[%s6562_s1 + $0x48] sm:$0xff] %v4397_v55   ;;  %4684 = vst [vmem:[%s6562_s1 + $0x58] sm:$0xff] %v4407_v56   ;;  %v3260_v27 = vld [vmem:[#allocation0 + $0xe8] sm:$0xff]  ;;  %v4412_v32 = vpack.c.bf16 %v3228_v26, %v3220_v8  ;;  %v3500_v55 = vld [vmem:[#allocation0 + $0x1d8] sm:$0xff] }
 0x28e   :  { %4686 = vst [vmem:[%s6562_s1 + $0x68] sm:$0xff] %v4417_v63   ;;  %4688 = vst [vmem:[%s6562_s1 + $0x78] sm:$0xff] %v4427_v0   ;;  %v3292_v28 = vld [vmem:[#allocation0 + $0x108] sm:$0xff]  ;;  %v4422_v33 = vpack.c.bf16 %v3260_v27, %v3252_v9  ;;  %v3556_v56 = vld [vmem:[#allocation0 + $0x210] sm:$0xff]  ;;  %v4497_v61 = vpack.c.bf16 %v3500_v55, %v3492_v40 }
 0x28f   :  { %4690 = vst [vmem:[%s6562_s1 + $0x88] sm:$0xff] %v4437_v1   ;;  %4692 = vst [vmem:[%s6562_s1 + $0x98] sm:$0xff] %v4447_v11   ;;  %v4432_v34 = vpack.c.bf16 %v3292_v28, %v3284_v10  ;;  %v3420_v44 = vld [vmem:[#allocation0 + $0x188] sm:$0xff]  ;;  %v3532_v63 = vld [vmem:[#allocation0 + $0x1f8] sm:$0xff] }
 0x290   :  { %4694 = vst [vmem:[%s6562_s1 + $0xa8] sm:$0xff] %v4457_v12   ;;  %4696 = vst [vmem:[%s6562_s1 + $0xb8] sm:$0xff] %v4467_v13   ;;  %v4472_v50 = vpack.c.bf16 %v3420_v44, %v3412_v29  ;;  %v3484_v54 = vld [vmem:[#allocation0 + $0x1c8] sm:$0xff]  ;;  %v3604_v1 = vld [vmem:[#allocation0 + $0x240] sm:$0xff]  ;;  %v4507_v5 = vpack.c.bf16 %v3532_v63, %v3524_v48  ;;  %v4517_v13 = vpack.c.bf16 %v3564_v7, %v3556_v56 }
 0x291   :  { %4353 = vst [vmem:[%s6562_s1] sm:$0xff] %v4352_v14   ;;  %4675 = vst [vmem:[%s6562_s1 + $0x10] sm:$0xff] %v4362_v15   ;;  %v4492_v60 = vpack.c.bf16 %v3484_v54, %v3476_v39  ;;  %v3516_v62 = vld [vmem:[#allocation0 + $0x1e8] sm:$0xff]  ;;  %v3596_v9 = vld [vmem:[#allocation0 + $0x238] sm:$0xff] }
 0x292   :  { %4677 = vst [vmem:[%s6562_s1 + $0x20] sm:$0xff] %v4372_v16   ;;  %4679 = vst [vmem:[%s6562_s1 + $0x30] sm:$0xff] %v4382_v23   ;;  %v3548_v0 = vld [vmem:[#allocation0 + $0x208] sm:$0xff]  ;;  %v4502_v4 = vpack.c.bf16 %v3516_v62, %v3508_v47  ;;  %v3652_v10 = vld [vmem:[#allocation0 + $0x270] sm:$0xff]  ;;  %v4527_v15 = vpack.c.bf16 %v3596_v9, %v3588_v58  ;;  %v4537_v23 = vpack.c.bf16 %v3628_v17, %v3620_v2 }
 0x293   :  { %4681 = vst [vmem:[%s6562_s1 + $0x40] sm:$0xff] %v4392_v24   ;;  %4683 = vst [vmem:[%s6562_s1 + $0x50] sm:$0xff] %v4402_v25   ;;  %v4512_v6 = vpack.c.bf16 %v3548_v0, %v3540_v49  ;;  %v3580_v8 = vld [vmem:[#allocation0 + $0x228] sm:$0xff]  ;;  %v3668_v11 = vld [vmem:[#allocation0 + $0x280] sm:$0xff] }
 0x294   :  { %4685 = vst [vmem:[%s6562_s1 + $0x60] sm:$0xff] %v4412_v32   ;;  %4687 = vst [vmem:[%s6562_s1 + $0x70] sm:$0xff] %v4422_v33   ;;  %v3684_v12 = vld [vmem:[#allocation0 + $0x290] sm:$0xff]  ;;  %v4522_v14 = vpack.c.bf16 %v3580_v8, %v3572_v57  ;;  %v3612_v16 = vld [vmem:[#allocation0 + $0x248] sm:$0xff] }
 0x295   :  { %4689 = vst [vmem:[%s6562_s1 + $0x80] sm:$0xff] %v4432_v34   ;;  %4691 = vst [vmem:[%s6562_s1 + $0x90] sm:$0xff] %v4442_v41   ;;  %v3644_v18 = vld [vmem:[#allocation0 + $0x268] sm:$0xff]  ;;  %v3700_v19 = vld [vmem:[#allocation0 + $0x2a0] sm:$0xff]  ;;  %v4532_v22 = vpack.c.bf16 %v3612_v16, %v3604_v1  ;;  %v4567_v41 = vpack.c.bf16 %v3724_v35, %v3716_v20 }
 0x296   :  { %4693 = vst [vmem:[%s6562_s1 + $0xa0] sm:$0xff] %v4452_v42   ;;  %4695 = vst [vmem:[%s6562_s1 + $0xb0] sm:$0xff] %v4462_v43   ;;  %v3732_v21 = vld [vmem:[#allocation0 + $0x2c0] sm:$0xff]  ;;  %v4542_v24 = vpack.c.bf16 %v3644_v18, %v3636_v3  ;;  %v3660_v25 = vld [vmem:[#allocation0 + $0x278] sm:$0xff] }
 0x297   :  { %4697 = vst [vmem:[%s6562_s1 + $0xc0] sm:$0xff] %v4472_v50   ;;  %4698 = vst [vmem:[%s6562_s1 + $0xc8] sm:$0xff] %v4477_v51   ;;  %v3676_v26 = vld [vmem:[#allocation0 + $0x288] sm:$0xff]  ;;  %v3692_v27 = vld [vmem:[#allocation0 + $0x298] sm:$0xff]  ;;  %v4547_v31 = vpack.c.bf16 %v3660_v25, %v3652_v10  ;;  %v4587_v51 = vpack.c.bf16 %v3788_v45, %v3780_v30 }
 0x298   :  { %4699 = vst [vmem:[%s6562_s1 + $0xd0] sm:$0xff] %v4482_v52   ;;  %4700 = vst [vmem:[%s6562_s1 + $0xd8] sm:$0xff] %v4487_v59   ;;  %v3748_v28 = vld [vmem:[#allocation0 + $0x2d0] sm:$0xff]  ;;  %v3764_v29 = vld [vmem:[#allocation0 + $0x2e0] sm:$0xff]  ;;  %v4552_v32 = vpack.c.bf16 %v3676_v26, %v3668_v11  ;;  %v4557_v33 = vpack.c.bf16 %v3692_v27, %v3684_v12 }
 0x299   :  { %4701 = vst [vmem:[%s6562_s1 + $0xe0] sm:$0xff] %v4492_v60   ;;  %4702 = vst [vmem:[%s6562_s1 + $0xe8] sm:$0xff] %v4497_v61   ;;  %v3708_v34 = vld [vmem:[#allocation0 + $0x2a8] sm:$0xff]  ;;  %v3796_v37 = vld [vmem:[#allocation0 + $0x300] sm:$0xff] }
 0x29a   :  { %4703 = vst [vmem:[%s6562_s1 + $0xf0] sm:$0xff] %v4502_v4   ;;  %4704 = vst [vmem:[%s6562_s1 + $0xf8] sm:$0xff] %v4507_v5   ;;  %v3740_v36 = vld [vmem:[#allocation0 + $0x2c8] sm:$0xff]  ;;  %v3812_v38 = vld [vmem:[#allocation0 + $0x310] sm:$0xff]  ;;  %v4562_v40 = vpack.c.bf16 %v3708_v34, %v3700_v19 }
 0x29b   :  { %4705 = vst [vmem:[%s6562_s1 + $0x100] sm:$0xff] %v4512_v6   ;;  %4706 = vst [vmem:[%s6562_s1 + $0x108] sm:$0xff] %v4517_v13   ;;  %v3828_v39 = vld [vmem:[#allocation0 + $0x320] sm:$0xff]  ;;  %v4572_v42 = vpack.c.bf16 %v3740_v36, %v3732_v21  ;;  %v3756_v43 = vld [vmem:[#allocation0 + $0x2d8] sm:$0xff] }
 0x29c   :  { %4707 = vst [vmem:[%s6562_s1 + $0x110] sm:$0xff] %v4522_v14   ;;  %4708 = vst [vmem:[%s6562_s1 + $0x118] sm:$0xff] %v4527_v15   ;;  %v3772_v44 = vld [vmem:[#allocation0 + $0x2e8] sm:$0xff]  ;;  %v3844_v46 = vld [vmem:[#allocation0 + $0x330] sm:$0xff]  ;;  %v4577_v49 = vpack.c.bf16 %v3756_v43, %v3748_v28 }
 0x29d   :  { %4709 = vst [vmem:[%s6562_s1 + $0x120] sm:$0xff] %v4532_v22   ;;  %4710 = vst [vmem:[%s6562_s1 + $0x128] sm:$0xff] %v4537_v23   ;;  %v3860_v47 = vld [vmem:[#allocation0 + $0x340] sm:$0xff]  ;;  %v3876_v48 = vld [vmem:[#allocation0 + $0x350] sm:$0xff]  ;;  %v4582_v50 = vpack.c.bf16 %v3772_v44, %v3764_v29 }
 0x29e   :  { %4711 = vst [vmem:[%s6562_s1 + $0x130] sm:$0xff] %v4542_v24   ;;  %4712 = vst [vmem:[%s6562_s1 + $0x138] sm:$0xff] %v4547_v31   ;;  %v3804_v52 = vld [vmem:[#allocation0 + $0x308] sm:$0xff]  ;;  %v3820_v53 = vld [vmem:[#allocation0 + $0x318] sm:$0xff] }
 0x29f   :  { %4713 = vst [vmem:[%s6562_s1 + $0x140] sm:$0xff] %v4552_v32   ;;  %4714 = vst [vmem:[%s6562_s1 + $0x148] sm:$0xff] %v4557_v33   ;;  %v3836_v54 = vld [vmem:[#allocation0 + $0x328] sm:$0xff]  ;;  %v3892_v55 = vld [vmem:[#allocation0 + $0x360] sm:$0xff]  ;;  %v4592_v58 = vpack.c.bf16 %v3804_v52, %v3796_v37  ;;  %v4597_v59 = vpack.c.bf16 %v3820_v53, %v3812_v38 }
 0x2a0   :  { %v3908_v56 = vld [vmem:[#allocation0 + $0x370] sm:$0xff]  ;;  %v3924_v57 = vld [vmem:[#allocation0 + $0x380] sm:$0xff]  ;;  %4715 = vst [vmem:[%s6562_s1 + $0x150] sm:$0xff] %v4562_v40   ;;  %4716 = vst [vmem:[%s6562_s1 + $0x158] sm:$0xff] %v4567_v41   ;;  %v4602_v60 = vpack.c.bf16 %v3836_v54, %v3828_v39 }
 0x2a1   :  { %4717 = vst [vmem:[%s6562_s1 + $0x160] sm:$0xff] %v4572_v42   ;;  %v3852_v61 = vld [vmem:[#allocation0 + $0x338] sm:$0xff]  ;;  %v3868_v62 = vld [vmem:[#allocation0 + $0x348] sm:$0xff]  ;;  %v3940_v0 = vld [vmem:[#allocation0 + $0x390] sm:$0xff] }
 0x2a2   :  { %v3884_v63 = vld [vmem:[#allocation0 + $0x358] sm:$0xff]  ;;  %v3956_v1 = vld [vmem:[#allocation0 + $0x3a0] sm:$0xff]  ;;  %v3972_v2 = vld [vmem:[#allocation0 + $0x3b0] sm:$0xff]  ;;  %4718 = vst [vmem:[%s6562_s1 + $0x168] sm:$0xff] %v4577_v49   ;;  %v4607_v3 = vpack.c.bf16 %v3852_v61, %v3844_v46  ;;  %v4612_v4 = vpack.c.bf16 %v3868_v62, %v3860_v47 }
 0x2a3   :  { %4719 = vst [vmem:[%s6562_s1 + $0x170] sm:$0xff] %v4582_v50   ;;  %4720 = vst [vmem:[%s6562_s1 + $0x178] sm:$0xff] %v4587_v51   ;;  %v4617_v5 = vpack.c.bf16 %v3884_v63, %v3876_v48  ;;  %v3900_v6 = vld [vmem:[#allocation0 + $0x368] sm:$0xff]  ;;  %v3916_v7 = vld [vmem:[#allocation0 + $0x378] sm:$0xff] }
 0x2a4   :  { %v3932_v8 = vld [vmem:[#allocation0 + $0x388] sm:$0xff]  ;;  %v3988_v9 = vld [vmem:[#allocation0 + $0x3c0] sm:$0xff]  ;;  %v4004_v10 = vld [vmem:[#allocation0 + $0x3d0] sm:$0xff]  ;;  %4721 = vst [vmem:[%s6562_s1 + $0x180] sm:$0xff] %v4592_v58   ;;  %v4622_v12 = vpack.c.bf16 %v3900_v6, %v3892_v55  ;;  %v4627_v13 = vpack.c.bf16 %v3916_v7, %v3908_v56 }
 0x2a5   :  { %v4020_v11 = vld [vmem:[#allocation0 + $0x3e0] sm:$0xff]  ;;  %4722 = vst [vmem:[%s6562_s1 + $0x188] sm:$0xff] %v4597_v59   ;;  %4723 = vst [vmem:[%s6562_s1 + $0x190] sm:$0xff] %v4602_v60   ;;  %v4632_v14 = vpack.c.bf16 %v3932_v8, %v3924_v57  ;;  %v3948_v15 = vld [vmem:[#allocation0 + $0x398] sm:$0xff] }
 0x2a6   :  { %v3964_v16 = vld [vmem:[#allocation0 + $0x3a8] sm:$0xff]  ;;  %v3980_v17 = vld [vmem:[#allocation0 + $0x3b8] sm:$0xff]  ;;  %4724 = vst [vmem:[%s6562_s1 + $0x198] sm:$0xff] %v4607_v3   ;;  %4725 = vst [vmem:[%s6562_s1 + $0x1a0] sm:$0xff] %v4612_v4   ;;  %v4637_v18 = vpack.c.bf16 %v3948_v15, %v3940_v0 }
 0x2a7   :  { %4726 = vst [vmem:[%s6562_s1 + $0x1a8] sm:$0xff] %v4617_v5   ;;  %v4642_v19 = vpack.c.bf16 %v3964_v16, %v3956_v1  ;;  %v4647_v20 = vpack.c.bf16 %v3980_v17, %v3972_v2  ;;  %v3996_v21 = vld [vmem:[#allocation0 + $0x3c8] sm:$0xff]  ;;  %v4012_v22 = vld [vmem:[#allocation0 + $0x3d8] sm:$0xff]  ;;  %4727 = vst [vmem:[%s6562_s1 + $0x1b0] sm:$0xff] %v4622_v12  }
 0x2a8   :  { %v4028_v23 = vld [vmem:[#allocation0 + $0x3e8] sm:$0xff]  ;;  %4728 = vst [vmem:[%s6562_s1 + $0x1b8] sm:$0xff] %v4627_v13   ;;  %4729 = vst [vmem:[%s6562_s1 + $0x1c0] sm:$0xff] %v4632_v14   ;;  %v4652_v24 = vpack.c.bf16 %v3996_v21, %v3988_v9  ;;  %v4657_v25 = vpack.c.bf16 %v4012_v22, %v4004_v10  ;;  %v4036_v27 = vld [vmem:[#allocation0 + $0x3f0] sm:$0xff] }
 0x2a9   :  { %v4662_v26 = vpack.c.bf16 %v4028_v23, %v4020_v11  ;;  %v4044_v28 = vld [vmem:[#allocation0 + $0x3f8] sm:$0xff]  ;;  %4730 = vst [vmem:[%s6562_s1 + $0x1c8] sm:$0xff] %v4637_v18   ;;  %4731 = vst [vmem:[%s6562_s1 + $0x1d0] sm:$0xff] %v4642_v19  }
 0x2aa   :  { %4732 = vst [vmem:[%s6562_s1 + $0x1d8] sm:$0xff] %v4647_v20   ;;  %v4667_v29 = vpack.c.bf16 %v4044_v28, %v4036_v27  ;;  %4733 = vst [vmem:[%s6562_s1 + $0x1e0] sm:$0xff] %v4652_v24  }
 0x2ab   :  { %4734 = vst [vmem:[%s6562_s1 + $0x1e8] sm:$0xff] %v4657_v25   ;;  %4735 = vst [vmem:[%s6562_s1 + $0x1f0] sm:$0xff] %v4662_v26  }
 0x2ac   :  { %4736 = vst [vmem:[%s6562_s1 + $0x1f8] sm:$0xff] %v4667_v29  }

// kernel: reverse.1
= control target key start
LH: loop header
LB: loop body
LE: loop exit
PB: predicated region body
PF: predicated region fallthrough
CT: control target
= control target key end

     0   :  { %s344_s0 = inlined_call_operand.vmem [shape: f32[2,32,16,7], index: 0, kind: input, shape index: {}]   ;;  %s345_s1 = inlined_call_operand.vmem [shape: f32[2,32,16,7], index: 1, kind: output, shape index: {}]  }
   0x1   :  { %v112_v0 = vld [vmem:[%s344_s0 + $0x60] sm:$0xff]  ;;  %v113_v1 = vld [vmem:[%s344_s0 + $0xd0] sm:$0xff]  ;;  %v138_v14 = vld [vmem:[%s344_s0 + $0x68] sm:$0xff] }
   0x2   :  { %v115_v2 = vld [vmem:[%s344_s0 + $0x50] sm:$0xff]  ;;  %4 = vst [vmem:[%s345_s1] sm:$0xff] %v112_v0  ;;  %114 = vst [vmem:[%s345_s1 + $0x70] sm:$0xff] %v113_v1  ;;  %v117_v3 = vld [vmem:[%s344_s0 + $0xc0] sm:$0xff] }
   0x3   :  { %116 = vst [vmem:[%s345_s1 + $0x10] sm:$0xff] %v115_v2  ;;  %v119_v4 = vld [vmem:[%s344_s0 + $0x40] sm:$0xff]  ;;  %v121_v5 = vld [vmem:[%s344_s0 + $0xb0] sm:$0xff]  ;;  %118 = vst [vmem:[%s345_s1 + $0x80] sm:$0xff] %v117_v3 }
   0x4   :  { %120 = vst [vmem:[%s345_s1 + $0x20] sm:$0xff] %v119_v4  ;;  %122 = vst [vmem:[%s345_s1 + $0x90] sm:$0xff] %v121_v5  ;;  %v123_v6 = vld [vmem:[%s344_s0 + $0x30] sm:$0xff]  ;;  %v125_v7 = vld [vmem:[%s344_s0 + $0xa0] sm:$0xff] }
   0x5   :  { %v127_v8 = vld [vmem:[%s344_s0 + $0x20] sm:$0xff]  ;;  %124 = vst [vmem:[%s345_s1 + $0x30] sm:$0xff] %v123_v6  ;;  %126 = vst [vmem:[%s345_s1 + $0xa0] sm:$0xff] %v125_v7  ;;  %v129_v9 = vld [vmem:[%s344_s0 + $0x90] sm:$0xff] }
   0x6   :  { %128 = vst [vmem:[%s345_s1 + $0x40] sm:$0xff] %v127_v8  ;;  %v131_v10 = vld [vmem:[%s344_s0 + $0x10] sm:$0xff]  ;;  %v133_v11 = vld [vmem:[%s344_s0 + $0x80] sm:$0xff]  ;;  %130 = vst [vmem:[%s345_s1 + $0xb0] sm:$0xff] %v129_v9 }
   0x7   :  { %132 = vst [vmem:[%s345_s1 + $0x50] sm:$0xff] %v131_v10  ;;  %134 = vst [vmem:[%s345_s1 + $0xc0] sm:$0xff] %v133_v11  ;;  %v49_v12 = vld [vmem:[%s344_s0] sm:$0xff]  ;;  %v136_v13 = vld [vmem:[%s344_s0 + $0x70] sm:$0xff] }
   0x8   :  { %135 = vst [vmem:[%s345_s1 + $0x60] sm:$0xff] %v49_v12  ;;  %137 = vst [vmem:[%s345_s1 + $0xd0] sm:$0xff] %v136_v13  ;;  %v140_v15 = vld [vmem:[%s344_s0 + $0xd8] sm:$0xff]  ;;  %v144_v17 = vld [vmem:[%s344_s0 + $0xc8] sm:$0xff] }
   0x9   :  { %139 = vst [vmem:[%s345_s1 + $0x8] sm:$0xff] %v138_v14  ;;  %v142_v16 = vld [vmem:[%s344_s0 + $0x58] sm:$0xff]  ;;  %141 = vst [vmem:[%s345_s1 + $0x78] sm:$0xff] %v140_v15  ;;  %v146_v18 = vld [vmem:[%s344_s0 + $0x48] sm:$0xff] }
   0xa   :  { %143 = vst [vmem:[%s345_s1 + $0x18] sm:$0xff] %v142_v16  ;;  %145 = vst [vmem:[%s345_s1 + $0x88] sm:$0xff] %v144_v17  ;;  %v148_v19 = vld [vmem:[%s344_s0 + $0xb8] sm:$0xff]  ;;  %v152_v21 = vld [vmem:[%s344_s0 + $0xa8] sm:$0xff] }
   0xb   :  { %v150_v20 = vld [vmem:[%s344_s0 + $0x38] sm:$0xff]  ;;  %147 = vst [vmem:[%s345_s1 + $0x28] sm:$0xff] %v146_v18  ;;  %149 = vst [vmem:[%s345_s1 + $0x98] sm:$0xff] %v148_v19  ;;  %v154_v22 = vld [vmem:[%s344_s0 + $0x28] sm:$0xff] }
   0xc   :  { %151 = vst [vmem:[%s345_s1 + $0x38] sm:$0xff] %v150_v20  ;;  %v156_v23 = vld [vmem:[%s344_s0 + $0x98] sm:$0xff]  ;;  %153 = vst [vmem:[%s345_s1 + $0xa8] sm:$0xff] %v152_v21  ;;  %v160_v25 = vld [vmem:[%s344_s0 + $0x88] sm:$0xff] }
   0xd   :  { %155 = vst [vmem:[%s345_s1 + $0x48] sm:$0xff] %v154_v22  ;;  %157 = vst [vmem:[%s345_s1 + $0xb8] sm:$0xff] %v156_v23  ;;  %v158_v24 = vld [vmem:[%s344_s0 + $0x18] sm:$0xff]  ;;  %v162_v26 = vld [vmem:[%s344_s0 + $0x8] sm:$0xff] }
   0xe   :  { %159 = vst [vmem:[%s345_s1 + $0x58] sm:$0xff] %v158_v24  ;;  %161 = vst [vmem:[%s345_s1 + $0xc8] sm:$0xff] %v160_v25  ;;  %v164_v27 = vld [vmem:[%s344_s0 + $0x78] sm:$0xff] }
   0xf   :  { %163 = vst [vmem:[%s345_s1 + $0x68] sm:$0xff] %v162_v26  ;;  %165 = vst [vmem:[%s345_s1 + $0xd8] sm:$0xff] %v164_v27 }

</bundles_post_ra>
